<compile_context>
chip_gen: v6e
topology: v6e:2x2x1
jax: 0.10.0
libtpu: 0.0.40
codegen_flags: <defaults>
</compile_context>

<pallas_src>
import math
import numpy as np
import jax
import jax.numpy as jnp
from jax.experimental import pallas as pl
from jax.experimental.pallas import tpu as pltpu

VOCAB = 4
EMBED_DIM = 64
NUM_HEADS = 8
HEAD_DIM = EMBED_DIM // NUM_HEADS
NUM_LAYERS = 3
FF_DIM = 2048          # PyTorch TransformerEncoderLayer default dim_feedforward
FF_CHUNK = 512         # FF tiled over the hidden dim (bounds peak VMEM)
OUT_DIM = 32
MAX_LEN = 1000
LN_EPS = 1e-5


def _layer_norm(x, gamma, beta):
    mu = jnp.mean(x, axis=-1, keepdims=True)
    var = jnp.mean(jnp.square(x - mu), axis=-1, keepdims=True)
    return (x - mu) * jax.lax.rsqrt(var + LN_EPS) * gamma + beta


# ----------------------- fused forward kernel (Bt batch elements per grid step) -----------------------
def _make_kernel(Bt, S):
    R = Bt * S
    E, H, Dh = EMBED_DIM, NUM_HEADS, HEAD_DIM
    f32, bf16 = jnp.float32, jnp.bfloat16

    def kernel(tok_ref, emb_ref, pe_ref,
               wqkv_ref, bqkv_ref, wo_ref, bo_ref, ln1g_ref, ln1b_ref,
               w1_ref, b1_ref, w2_ref, b2_ref, ln2g_ref, ln2b_ref,
               fcw_ref, fcb_ref, o_ref, ctx_sc):
        # ---- embedding (select over the 4-symbol vocab) * sqrt(E) + positional encoding ----
        toks = tok_ref[...]                                   # (Bt, S, 1) int32
        emb = emb_ref[...]                                    # (VOCAB, E) f32
        x3 = jnp.zeros((Bt, S, E), f32)
        for c in range(VOCAB):                                # V == 4: tiny static unroll (VPU select)
            x3 = x3 + jnp.where(toks == c, emb[c:c + 1, :].reshape(1, 1, E), 0.0)
        x3 = x3 * jnp.float32(math.sqrt(E)) + pe_ref[...][None, :, :]
        x = x3.reshape(R, E)                                  # lane-dense (Bt*S, E) slab, f32

        # ---- NUM_LAYERS post-norm TransformerEncoderLayers; activations stay VMEM-resident ----
        for l in range(NUM_LAYERS):
            xb = x.astype(bf16)

            # fused QKV projection: one lane-dense (R,64)x(64,192) GEMM, f32 accumulation.
            # (1/sqrt(Dh) is folded into the q columns of wqkv/bqkv at init time.)
            qkv = jnp.dot(xb, wqkv_ref[l], preferred_element_type=f32) + bqkv_ref[l]
            qkvb = qkv.astype(bf16)                           # (R, 3E)

            # attention: heads unrolled statically; each head is batched over the Bt sequences.
            # (Dh=8 score/PV matmuls are inherently narrow; all heavy GEMMs are slab-wide.)
            for h in range(H):
                qh = qkvb[:, h * Dh:(h + 1) * Dh].reshape(Bt, S, Dh)
                kh = qkvb[:, E + h * Dh:E + (h + 1) * Dh].reshape(Bt, S, Dh)
                vh = qkvb[:, 2 * E + h * Dh:2 * E + (h + 1) * Dh].reshape(Bt, S, Dh)

                s = jnp.einsum('bqd,bkd->bqk', qh, kh, preferred_element_type=f32)  # (Bt,S,S)
                m = jnp.max(s, axis=-1, keepdims=True)
                p = jnp.exp(s - m)
                p = p / jnp.sum(p, axis=-1, keepdims=True)    # exact f32 softmax normalization
                ctx = jnp.einsum('bqk,bkd->bqd', p.astype(bf16), vh,
                                 preferred_element_type=f32)  # (Bt,S,Dh)
                ctx_sc[:, h * Dh:(h + 1) * Dh] = ctx.reshape(R, Dh)

            # single lane-dense output projection (contraction 64) + residual + LayerNorm1
            attn = jnp.dot(ctx_sc[...].astype(bf16), wo_ref[l],
                           preferred_element_type=f32) + bo_ref[l]
            x1 = _layer_norm(x + attn, ln1g_ref[l], ln1b_ref[l])

            # feed-forward (ReLU), chunked over FF_DIM; GEMMs bf16-in / f32-accumulate
            x1b = x1.astype(bf16)
            ff = jnp.zeros((R, E), f32)
            for c in range(FF_DIM // FF_CHUNK):
                c0 = c * FF_CHUNK
                hid = jnp.dot(x1b, w1_ref[l, :, c0:c0 + FF_CHUNK],
                              preferred_element_type=f32)
                hid = jnp.maximum(hid + b1_ref[l, :, c0:c0 + FF_CHUNK], 0.0)
                ff = ff + jnp.dot(hid.astype(bf16), w2_ref[l, c0:c0 + FF_CHUNK, :],
                                  preferred_element_type=f32)
            ff = ff + b2_ref[l]

            # residual + LayerNorm2
            x = _layer_norm(x1 + ff, ln2g_ref[l], ln2b_ref[l])

        # ---- mean over the sequence + final Linear(E, OUT_DIM), one (Bt, 32) store ----
        xm = jnp.mean(x.reshape(Bt, S, E), axis=1)            # (Bt, E) f32
        o_ref[...] = jnp.dot(xm.astype(bf16), fcw_ref[...],
                             preferred_element_type=f32) + fcb_ref[...]

    return kernel


# ----------------------- wrapper -----------------------
def dna_encoder_forward(tokens, params):
    B, S = tokens.shape
    # batch elements per grid step so R = Bt*S fills the MXU rows (~256)
    cap = max(1, 256 // S)
    if B <= cap:
        Bt = B
    else:
        Bt = max(8, (cap // 8) * 8)
    B_pad = ((B + Bt - 1) // Bt) * Bt

    toks = tokens.astype(jnp.int32)
    if B_pad != B:
        toks = jnp.concatenate([toks, jnp.zeros((B_pad - B, S), jnp.int32)], axis=0)
    tok3 = toks.reshape(B_pad, S, 1)
    pe_s = params['pe'][:S]                                   # (S, E)

    weight_args = (params['emb'], pe_s,
                   params['wqkv'], params['bqkv'], params['wo'], params['bo'],
                   params['ln1g'], params['ln1b'],
                   params['w1'], params['b1'], params['w2'], params['b2'],
                   params['ln2g'], params['ln2b'],
                   params['fc_w'], params['fc_b'])

    def const_spec(a):
        zeros = (0,) * a.ndim

        def idx(b, _z=zeros):                                 # same full-array block every step
            return _z

        if hasattr(pl, "Buffered"):
            try:                                              # single-buffer never-changing weights
                return pl.BlockSpec(a.shape, idx, pipeline_mode=pl.Buffered(1))
            except TypeError:
                pass
        return pl.BlockSpec(a.shape, idx)

    in_specs = [pl.BlockSpec((Bt, S, 1), lambda b: (b, 0, 0))]
    in_specs += [const_spec(a) for a in weight_args]

    out = pl.pallas_call(
        _make_kernel(Bt, S),
        out_shape=jax.ShapeDtypeStruct((B_pad, OUT_DIM), jnp.float32),
        grid_spec=pltpu.PrefetchScalarGridSpec(
            num_scalar_prefetch=0,
            grid=(B_pad // Bt,),
            in_specs=in_specs,
            out_specs=pl.BlockSpec((Bt, OUT_DIM), lambda b: (b, 0)),
            scratch_shapes=[pltpu.VMEM((Bt * S, EMBED_DIM), jnp.float32)],  # per-head ctx slab
        ),
        compiler_params=pltpu.CompilerParams(
            dimension_semantics=("parallel",),                # multi-TC chips shard the batch grid
            vmem_limit_bytes=48 * 1024 * 1024,
        ),
    )(tok3, *weight_args)
    return out[:B]


# ----------------------- parameters (deterministic, synthetic) -----------------------
def init_params(key):
    ks = jax.random.split(key, 2 + NUM_LAYERS)
    E, H, Dh = EMBED_DIM, NUM_HEADS, HEAD_DIM

    def nrm(k, shape, scale=0.05):
        return scale * jax.random.normal(k, shape, jnp.float32)

    params = {'emb': nrm(ks[0], (VOCAB, E), 1.0)}

    # sinusoidal positional encoding buffer (same formula as the reference)
    pos = np.arange(MAX_LEN, dtype=np.float32)[:, None]
    div = np.exp(np.arange(0, E, 2, dtype=np.float32) * (-math.log(10000.0) / E))
    pe = np.zeros((MAX_LEN, E), np.float32)
    pe[:, 0::2] = np.sin(pos * div)
    pe[:, 1::2] = np.cos(pos * div)
    params['pe'] = jnp.asarray(pe)

    q_scale = 1.0 / math.sqrt(Dh)                             # folded attention scale
    wqkv, bqkv, wo, bo = [], [], [], []
    ln1g, ln1b, w1, b1, w2, b2, ln2g, ln2b = ([] for _ in range(8))
    for i in range(NUM_LAYERS):
        lk = jax.random.split(ks[1 + i], 4)
        w_in = nrm(lk[0], (E, 3 * E))                         # in_proj_weight.T, cols = [q | k | v]
        b_in = jnp.zeros((1, 3 * E), jnp.float32)             # in_proj_bias (zero synthetic init)
        w_in = w_in.at[:, 0:E].multiply(q_scale)              # fold 1/sqrt(Dh) into q weights
        b_in = b_in.at[:, 0:E].multiply(q_scale)              # ... and q bias
        wqkv.append(w_in); bqkv.append(b_in)

        wo.append(nrm(lk[1], (E, E)))                         # out_proj.weight.T (rows = concat-head)
        bo.append(jnp.zeros((1, E), jnp.float32))

        ln1g.append(jnp.ones((1, E), jnp.float32)); ln1b.append(jnp.zeros((1, E), jnp.float32))
        w1.append(nrm(lk[2], (E, FF_DIM)))                    # linear1.weight.T
        b1.append(jnp.zeros((1, FF_DIM), jnp.float32))
        w2.append(nrm(lk[3], (FF_DIM, E)))                    # linear2.weight.T
        b2.append(jnp.zeros((1, E), jnp.float32))
        ln2g.append(jnp.ones((1, E), jnp.float32)); ln2b.append(jnp.zeros((1, E), jnp.float32))

    stack = lambda xs: jnp.stack(xs, axis=0)
    params.update(
        # matmul weights stored/DMA'd in bf16 (f32 accumulation in-kernel)
        wqkv=stack(wqkv).astype(jnp.bfloat16),
        wo=stack(wo).astype(jnp.bfloat16),
        w1=stack(w1).astype(jnp.bfloat16),
        w2=stack(w2).astype(jnp.bfloat16),
        fc_w=nrm(ks[-1], (E, OUT_DIM)).astype(jnp.bfloat16),  # fc.weight.T
        # biases / LayerNorm params stay f32
        bqkv=stack(bqkv), bo=stack(bo),
        ln1g=stack(ln1g), ln1b=stack(ln1b), ln2g=stack(ln2g), ln2b=stack(ln2b),
        b1=stack(b1), b2=stack(b2),
        fc_b=jnp.zeros((1, OUT_DIM), jnp.float32),
    )
    return params


if __name__ == "__main__":
    B, S = 2, 8
    key = jax.random.PRNGKey(0)
    pkey, tkey = jax.random.split(key)
    params = init_params(pkey)
    tokens = jax.random.randint(tkey, (B, S), 0, VOCAB, dtype=jnp.int32)

    out = jax.block_until_ready(dna_encoder_forward(tokens, params))
    assert out.shape == (B, OUT_DIM) and out.dtype == jnp.float32
    assert bool(jnp.all(jnp.isfinite(out)))
    print("KERNEL_OK")
</pallas_src>

<mosaic_0001>
module attributes {stable_mosaic.version = 11 : i64} {
  func.func @kernel(%arg0: i32, %arg1: memref<2x8x1xi32, #tpu.memory_space<vmem>>, %arg2: memref<4x64xf32, #tpu.memory_space<vmem>>, %arg3: memref<8x64xf32, #tpu.memory_space<vmem>>, %arg4: memref<3x64x192xbf16, #tpu.memory_space<vmem>>, %arg5: memref<3x1x192xf32, #tpu.memory_space<vmem>>, %arg6: memref<3x64x64xbf16, #tpu.memory_space<vmem>>, %arg7: memref<3x1x64xf32, #tpu.memory_space<vmem>>, %arg8: memref<3x1x64xf32, #tpu.memory_space<vmem>>, %arg9: memref<3x1x64xf32, #tpu.memory_space<vmem>>, %arg10: memref<3x64x2048xbf16, #tpu.memory_space<vmem>>, %arg11: memref<3x1x2048xf32, #tpu.memory_space<vmem>>, %arg12: memref<3x2048x64xbf16, #tpu.memory_space<vmem>>, %arg13: memref<3x1x64xf32, #tpu.memory_space<vmem>>, %arg14: memref<3x1x64xf32, #tpu.memory_space<vmem>>, %arg15: memref<3x1x64xf32, #tpu.memory_space<vmem>>, %arg16: memref<64x32xbf16, #tpu.memory_space<vmem>>, %arg17: memref<1x32xf32, #tpu.memory_space<vmem>>, %arg18: memref<2x32xf32, #tpu.memory_space<vmem>>, %arg19: memref<16x64xf32, #tpu.memory_space<vmem>>) attributes {dimension_semantics = [#tpu.dimension_semantics<parallel>], iteration_bounds = array<i64: 1>, scalar_prefetch = 0 : i64, scratch_operands = 1 : i64, tpu.core_type = #tpu.core_type<tc>, window_params = [{transform_indices = @transform_0, window_bounds = array<i64: 2, 8, 1>}, {pipeline_mode = #tpu.pipeline_mode<synchronous>, transform_indices = @transform_1, window_bounds = array<i64: 4, 64>}, {pipeline_mode = #tpu.pipeline_mode<synchronous>, transform_indices = @transform_2, window_bounds = array<i64: 8, 64>}, {pipeline_mode = #tpu.pipeline_mode<synchronous>, transform_indices = @transform_3, window_bounds = array<i64: 3, 64, 192>}, {pipeline_mode = #tpu.pipeline_mode<synchronous>, transform_indices = @transform_4, window_bounds = array<i64: 3, 1, 192>}, {pipeline_mode = #tpu.pipeline_mode<synchronous>, transform_indices = @transform_5, window_bounds = array<i64: 3, 64, 64>}, {pipeline_mode = #tpu.pipeline_mode<synchronous>, transform_indices = @transform_6, window_bounds = array<i64: 3, 1, 64>}, {pipeline_mode = #tpu.pipeline_mode<synchronous>, transform_indices = @transform_7, window_bounds = array<i64: 3, 1, 64>}, {pipeline_mode = #tpu.pipeline_mode<synchronous>, transform_indices = @transform_8, window_bounds = array<i64: 3, 1, 64>}, {pipeline_mode = #tpu.pipeline_mode<synchronous>, transform_indices = @transform_9, window_bounds = array<i64: 3, 64, 2048>}, {pipeline_mode = #tpu.pipeline_mode<synchronous>, transform_indices = @transform_10, window_bounds = array<i64: 3, 1, 2048>}, {pipeline_mode = #tpu.pipeline_mode<synchronous>, transform_indices = @transform_11, window_bounds = array<i64: 3, 2048, 64>}, {pipeline_mode = #tpu.pipeline_mode<synchronous>, transform_indices = @transform_12, window_bounds = array<i64: 3, 1, 64>}, {pipeline_mode = #tpu.pipeline_mode<synchronous>, transform_indices = @transform_13, window_bounds = array<i64: 3, 1, 64>}, {pipeline_mode = #tpu.pipeline_mode<synchronous>, transform_indices = @transform_14, window_bounds = array<i64: 3, 1, 64>}, {pipeline_mode = #tpu.pipeline_mode<synchronous>, transform_indices = @transform_15, window_bounds = array<i64: 64, 32>}, {pipeline_mode = #tpu.pipeline_mode<synchronous>, transform_indices = @transform_16, window_bounds = array<i64: 1, 32>}, {transform_indices = @transform_17, window_bounds = array<i64: 2, 32>}]} {
    %c0 = arith.constant 0 : index
    %c0_0 = arith.constant 0 : index
    %c0_1 = arith.constant 0 : index
    %0 = vector.load %arg1[%c0, %c0_0, %c0_1] : memref<2x8x1xi32, #tpu.memory_space<vmem>>, vector<2x8x1xi32>
    %c0_2 = arith.constant 0 : index
    %c0_3 = arith.constant 0 : index
    %1 = vector.load %arg2[%c0_2, %c0_3] : memref<4x64xf32, #tpu.memory_space<vmem>>, vector<4x64xf32>
    %cst = arith.constant 0.000000e+00 : f32
    %2 = vector.broadcast %cst : f32 to vector<2x8x64xf32>
    %c0_i32 = arith.constant 0 : i32
    %3 = vector.broadcast %c0_i32 : i32 to vector<2x8x1xi32>
    %4 = arith.cmpi eq, %0, %3 : vector<2x8x1xi32>
    %5 = vector.extract_strided_slice %1 {offsets = [0, 0], sizes = [1, 64], strides = [1, 1]} : vector<4x64xf32> to vector<1x64xf32>
    %6 = vector.shape_cast %5 : vector<1x64xf32> to vector<1x1x64xf32>
    %cst_4 = arith.constant 0.000000e+00 : f32
    %7 = vector.shape_cast %4 : vector<2x8x1xi1> to vector<2x8x1xi1>
    %8 = vector.broadcast %7 : vector<2x8x1xi1> to vector<2x8x64xi1>
    %9 = vector.shape_cast %6 : vector<1x1x64xf32> to vector<1x1x64xf32>
    %10 = vector.broadcast %9 : vector<1x1x64xf32> to vector<2x8x64xf32>
    %11 = vector.broadcast %cst_4 : f32 to vector<2x8x64xf32>
    %12 = arith.select %8, %10, %11 : vector<2x8x64xi1>, vector<2x8x64xf32>
    %13 = arith.addf %2, %12 : vector<2x8x64xf32>
    %c1_i32 = arith.constant 1 : i32
    %14 = vector.broadcast %c1_i32 : i32 to vector<2x8x1xi32>
    %15 = arith.cmpi eq, %0, %14 : vector<2x8x1xi32>
    %16 = vector.extract_strided_slice %1 {offsets = [1, 0], sizes = [1, 64], strides = [1, 1]} : vector<4x64xf32> to vector<1x64xf32>
    %17 = vector.shape_cast %16 : vector<1x64xf32> to vector<1x1x64xf32>
    %cst_5 = arith.constant 0.000000e+00 : f32
    %18 = vector.shape_cast %15 : vector<2x8x1xi1> to vector<2x8x1xi1>
    %19 = vector.broadcast %18 : vector<2x8x1xi1> to vector<2x8x64xi1>
    %20 = vector.shape_cast %17 : vector<1x1x64xf32> to vector<1x1x64xf32>
    %21 = vector.broadcast %20 : vector<1x1x64xf32> to vector<2x8x64xf32>
    %22 = vector.broadcast %cst_5 : f32 to vector<2x8x64xf32>
    %23 = arith.select %19, %21, %22 : vector<2x8x64xi1>, vector<2x8x64xf32>
    %24 = arith.addf %13, %23 : vector<2x8x64xf32>
    %c2_i32 = arith.constant 2 : i32
    %25 = vector.broadcast %c2_i32 : i32 to vector<2x8x1xi32>
    %26 = arith.cmpi eq, %0, %25 : vector<2x8x1xi32>
    %27 = vector.extract_strided_slice %1 {offsets = [2, 0], sizes = [1, 64], strides = [1, 1]} : vector<4x64xf32> to vector<1x64xf32>
    %28 = vector.shape_cast %27 : vector<1x64xf32> to vector<1x1x64xf32>
    %cst_6 = arith.constant 0.000000e+00 : f32
    %29 = vector.shape_cast %26 : vector<2x8x1xi1> to vector<2x8x1xi1>
    %30 = vector.broadcast %29 : vector<2x8x1xi1> to vector<2x8x64xi1>
    %31 = vector.shape_cast %28 : vector<1x1x64xf32> to vector<1x1x64xf32>
    %32 = vector.broadcast %31 : vector<1x1x64xf32> to vector<2x8x64xf32>
    %33 = vector.broadcast %cst_6 : f32 to vector<2x8x64xf32>
    %34 = arith.select %30, %32, %33 : vector<2x8x64xi1>, vector<2x8x64xf32>
    %35 = arith.addf %24, %34 : vector<2x8x64xf32>
    %c3_i32 = arith.constant 3 : i32
    %36 = vector.broadcast %c3_i32 : i32 to vector<2x8x1xi32>
    %37 = arith.cmpi eq, %0, %36 : vector<2x8x1xi32>
    %38 = vector.extract_strided_slice %1 {offsets = [3, 0], sizes = [1, 64], strides = [1, 1]} : vector<4x64xf32> to vector<1x64xf32>
    %39 = vector.shape_cast %38 : vector<1x64xf32> to vector<1x1x64xf32>
    %cst_7 = arith.constant 0.000000e+00 : f32
    %40 = vector.shape_cast %37 : vector<2x8x1xi1> to vector<2x8x1xi1>
    %41 = vector.broadcast %40 : vector<2x8x1xi1> to vector<2x8x64xi1>
    %42 = vector.shape_cast %39 : vector<1x1x64xf32> to vector<1x1x64xf32>
    %43 = vector.broadcast %42 : vector<1x1x64xf32> to vector<2x8x64xf32>
    %44 = vector.broadcast %cst_7 : f32 to vector<2x8x64xf32>
    %45 = arith.select %41, %43, %44 : vector<2x8x64xi1>, vector<2x8x64xf32>
    %46 = arith.addf %35, %45 : vector<2x8x64xf32>
    %cst_8 = arith.constant 8.000000e+00 : f32
    %47 = vector.broadcast %cst_8 : f32 to vector<2x8x64xf32>
    %48 = arith.mulf %46, %47 : vector<2x8x64xf32>
    %c0_9 = arith.constant 0 : index
    %c0_10 = arith.constant 0 : index
    %49 = vector.load %arg3[%c0_9, %c0_10] : memref<8x64xf32, #tpu.memory_space<vmem>>, vector<8x64xf32>
    %50 = vector.shape_cast %49 : vector<8x64xf32> to vector<1x8x64xf32>
    %51 = vector.broadcast %50 : vector<1x8x64xf32> to vector<2x8x64xf32>
    %52 = arith.addf %48, %51 : vector<2x8x64xf32>
    %53 = vector.shape_cast %52 : vector<2x8x64xf32> to vector<16x64xf32>
    %54 = arith.truncf %53 : vector<16x64xf32> to vector<16x64xbf16>
    %c0_11 = arith.constant 0 : index
    %c0_12 = arith.constant 0 : index
    %c0_13 = arith.constant 0 : index
    %55 = vector.load %arg4[%c0_11, %c0_12, %c0_13] : memref<3x64x192xbf16, #tpu.memory_space<vmem>>, vector<1x64x192xbf16>
    %56 = vector.shape_cast %55 : vector<1x64x192xbf16> to vector<64x192xbf16>
    %cst_14 = arith.constant dense<0.000000e+00> : vector<16x192xf32>
    %57 = tpu.matmul %54, %56, %cst_14 {dimension_numbers = #tpu.dot_dimension_numbers<[1], [0], [0], [1], [0, 0, 1, 1], [], []>} : vector<16x64xbf16>, vector<64x192xbf16>, vector<16x192xf32> -> vector<16x192xf32>
    %c0_15 = arith.constant 0 : index
    %c0_16 = arith.constant 0 : index
    %c0_17 = arith.constant 0 : index
    %58 = vector.load %arg5[%c0_15, %c0_16, %c0_17] : memref<3x1x192xf32, #tpu.memory_space<vmem>>, vector<1x1x192xf32>
    %59 = vector.shape_cast %58 : vector<1x1x192xf32> to vector<1x192xf32>
    %60 = vector.broadcast %59 : vector<1x192xf32> to vector<16x192xf32>
    %61 = arith.addf %57, %60 : vector<16x192xf32>
    %62 = arith.truncf %61 : vector<16x192xf32> to vector<16x192xbf16>
    %63 = vector.extract_strided_slice %62 {offsets = [0, 0], sizes = [16, 8], strides = [1, 1]} : vector<16x192xbf16> to vector<16x8xbf16>
    %64 = vector.shape_cast %63 : vector<16x8xbf16> to vector<2x8x8xbf16>
    %65 = vector.extract_strided_slice %62 {offsets = [0, 64], sizes = [16, 8], strides = [1, 1]} : vector<16x192xbf16> to vector<16x8xbf16>
    %66 = vector.shape_cast %65 : vector<16x8xbf16> to vector<2x8x8xbf16>
    %67 = vector.extract_strided_slice %62 {offsets = [0, 128], sizes = [16, 8], strides = [1, 1]} : vector<16x192xbf16> to vector<16x8xbf16>
    %68 = vector.shape_cast %67 : vector<16x8xbf16> to vector<2x8x8xbf16>
    "tpu.trace_start"() <{level = 10 : i32, message = "bqd,bkd->bqk"}> : () -> ()
    %cst_18 = arith.constant dense<0.000000e+00> : vector<2x8x8xf32>
    %69 = tpu.matmul %64, %66, %cst_18 {dimension_numbers = #tpu.dot_dimension_numbers<[2], [2], [1], [1], [0, 0, 0, 1, 1, 1], [0], [0]>} : vector<2x8x8xbf16>, vector<2x8x8xbf16>, vector<2x8x8xf32> -> vector<2x8x8xf32>
    "tpu.trace_stop"() : () -> ()
    %cst_19 = arith.constant dense<0xFF800000> : vector<2x8xf32>
    %70 = vector.multi_reduction <maximumf>, %69, %cst_19 [2] : vector<2x8x8xf32> to vector<2x8xf32>
    %71 = vector.shape_cast %70 : vector<2x8xf32> to vector<2x8x1xf32>
    %72 = vector.broadcast %71 : vector<2x8x1xf32> to vector<2x8x8xf32>
    %73 = arith.subf %69, %72 : vector<2x8x8xf32>
    %74 = math.exp %73 : vector<2x8x8xf32>
    %cst_20 = arith.constant dense<0.000000e+00> : vector<2x8xf32>
    %75 = vector.multi_reduction <add>, %74, %cst_20 [2] : vector<2x8x8xf32> to vector<2x8xf32>
    %76 = vector.shape_cast %75 : vector<2x8xf32> to vector<2x8x1xf32>
    %77 = vector.broadcast %76 : vector<2x8x1xf32> to vector<2x8x8xf32>
    %78 = arith.divf %74, %77 : vector<2x8x8xf32>
    %79 = arith.truncf %78 : vector<2x8x8xf32> to vector<2x8x8xbf16>
    "tpu.trace_start"() <{level = 10 : i32, message = "bqk,bkd->bqd"}> : () -> ()
    %cst_21 = arith.constant dense<0.000000e+00> : vector<2x8x8xf32>
    %80 = tpu.matmul %79, %68, %cst_21 {dimension_numbers = #tpu.dot_dimension_numbers<[2], [1], [1], [2], [0, 0, 0, 1, 1, 2], [0], [0]>} : vector<2x8x8xbf16>, vector<2x8x8xbf16>, vector<2x8x8xf32> -> vector<2x8x8xf32>
    "tpu.trace_stop"() : () -> ()
    %81 = vector.shape_cast %80 : vector<2x8x8xf32> to vector<16x8xf32>
    %c0_22 = arith.constant 0 : index
    %c0_23 = arith.constant 0 : index
    %82 = vector.load %arg19[%c0_22, %c0_23] : memref<16x64xf32, #tpu.memory_space<vmem>>, vector<16x8xf32>
    tpu.vector_store %arg19[%c0_22, %c0_23], %81 {strides = array<i32>} : memref<16x64xf32, #tpu.memory_space<vmem>>, vector<16x8xf32>,
    %83 = vector.extract_strided_slice %62 {offsets = [0, 8], sizes = [16, 8], strides = [1, 1]} : vector<16x192xbf16> to vector<16x8xbf16>
    %84 = vector.shape_cast %83 : vector<16x8xbf16> to vector<2x8x8xbf16>
    %85 = vector.extract_strided_slice %62 {offsets = [0, 72], sizes = [16, 8], strides = [1, 1]} : vector<16x192xbf16> to vector<16x8xbf16>
    %86 = vector.shape_cast %85 : vector<16x8xbf16> to vector<2x8x8xbf16>
    %87 = vector.extract_strided_slice %62 {offsets = [0, 136], sizes = [16, 8], strides = [1, 1]} : vector<16x192xbf16> to vector<16x8xbf16>
    %88 = vector.shape_cast %87 : vector<16x8xbf16> to vector<2x8x8xbf16>
    "tpu.trace_start"() <{level = 10 : i32, message = "bqd,bkd->bqk"}> : () -> ()
    %cst_24 = arith.constant dense<0.000000e+00> : vector<2x8x8xf32>
    %89 = tpu.matmul %84, %86, %cst_24 {dimension_numbers = #tpu.dot_dimension_numbers<[2], [2], [1], [1], [0, 0, 0, 1, 1, 1], [0], [0]>} : vector<2x8x8xbf16>, vector<2x8x8xbf16>, vector<2x8x8xf32> -> vector<2x8x8xf32>
    "tpu.trace_stop"() : () -> ()
    %cst_25 = arith.constant dense<0xFF800000> : vector<2x8xf32>
    %90 = vector.multi_reduction <maximumf>, %89, %cst_25 [2] : vector<2x8x8xf32> to vector<2x8xf32>
    %91 = vector.shape_cast %90 : vector<2x8xf32> to vector<2x8x1xf32>
    %92 = vector.broadcast %91 : vector<2x8x1xf32> to vector<2x8x8xf32>
    %93 = arith.subf %89, %92 : vector<2x8x8xf32>
    %94 = math.exp %93 : vector<2x8x8xf32>
    %cst_26 = arith.constant dense<0.000000e+00> : vector<2x8xf32>
    %95 = vector.multi_reduction <add>, %94, %cst_26 [2] : vector<2x8x8xf32> to vector<2x8xf32>
    %96 = vector.shape_cast %95 : vector<2x8xf32> to vector<2x8x1xf32>
    %97 = vector.broadcast %96 : vector<2x8x1xf32> to vector<2x8x8xf32>
    %98 = arith.divf %94, %97 : vector<2x8x8xf32>
    %99 = arith.truncf %98 : vector<2x8x8xf32> to vector<2x8x8xbf16>
    "tpu.trace_start"() <{level = 10 : i32, message = "bqk,bkd->bqd"}> : () -> ()
    %cst_27 = arith.constant dense<0.000000e+00> : vector<2x8x8xf32>
    %100 = tpu.matmul %99, %88, %cst_27 {dimension_numbers = #tpu.dot_dimension_numbers<[2], [1], [1], [2], [0, 0, 0, 1, 1, 2], [0], [0]>} : vector<2x8x8xbf16>, vector<2x8x8xbf16>, vector<2x8x8xf32> -> vector<2x8x8xf32>
    "tpu.trace_stop"() : () -> ()
    %101 = vector.shape_cast %100 : vector<2x8x8xf32> to vector<16x8xf32>
    %c0_28 = arith.constant 0 : index
    %c8 = arith.constant 8 : index
    %102 = vector.load %arg19[%c0_28, %c8] : memref<16x64xf32, #tpu.memory_space<vmem>>, vector<16x8xf32>
    tpu.vector_store %arg19[%c0_28, %c8], %101 {strides = array<i32>} : memref<16x64xf32, #tpu.memory_space<vmem>>, vector<16x8xf32>,
    %103 = vector.extract_strided_slice %62 {offsets = [0, 16], sizes = [16, 8], strides = [1, 1]} : vector<16x192xbf16> to vector<16x8xbf16>
    %104 = vector.shape_cast %103 : vector<16x8xbf16> to vector<2x8x8xbf16>
    %105 = vector.extract_strided_slice %62 {offsets = [0, 80], sizes = [16, 8], strides = [1, 1]} : vector<16x192xbf16> to vector<16x8xbf16>
    %106 = vector.shape_cast %105 : vector<16x8xbf16> to vector<2x8x8xbf16>
    %107 = vector.extract_strided_slice %62 {offsets = [0, 144], sizes = [16, 8], strides = [1, 1]} : vector<16x192xbf16> to vector<16x8xbf16>
    %108 = vector.shape_cast %107 : vector<16x8xbf16> to vector<2x8x8xbf16>
    "tpu.trace_start"() <{level = 10 : i32, message = "bqd,bkd->bqk"}> : () -> ()
    %cst_29 = arith.constant dense<0.000000e+00> : vector<2x8x8xf32>
    %109 = tpu.matmul %104, %106, %cst_29 {dimension_numbers = #tpu.dot_dimension_numbers<[2], [2], [1], [1], [0, 0, 0, 1, 1, 1], [0], [0]>} : vector<2x8x8xbf16>, vector<2x8x8xbf16>, vector<2x8x8xf32> -> vector<2x8x8xf32>
    "tpu.trace_stop"() : () -> ()
    %cst_30 = arith.constant dense<0xFF800000> : vector<2x8xf32>
    %110 = vector.multi_reduction <maximumf>, %109, %cst_30 [2] : vector<2x8x8xf32> to vector<2x8xf32>
    %111 = vector.shape_cast %110 : vector<2x8xf32> to vector<2x8x1xf32>
    %112 = vector.broadcast %111 : vector<2x8x1xf32> to vector<2x8x8xf32>
    %113 = arith.subf %109, %112 : vector<2x8x8xf32>
    %114 = math.exp %113 : vector<2x8x8xf32>
    %cst_31 = arith.constant dense<0.000000e+00> : vector<2x8xf32>
    %115 = vector.multi_reduction <add>, %114, %cst_31 [2] : vector<2x8x8xf32> to vector<2x8xf32>
    %116 = vector.shape_cast %115 : vector<2x8xf32> to vector<2x8x1xf32>
    %117 = vector.broadcast %116 : vector<2x8x1xf32> to vector<2x8x8xf32>
    %118 = arith.divf %114, %117 : vector<2x8x8xf32>
    %119 = arith.truncf %118 : vector<2x8x8xf32> to vector<2x8x8xbf16>
    "tpu.trace_start"() <{level = 10 : i32, message = "bqk,bkd->bqd"}> : () -> ()
    %cst_32 = arith.constant dense<0.000000e+00> : vector<2x8x8xf32>
    %120 = tpu.matmul %119, %108, %cst_32 {dimension_numbers = #tpu.dot_dimension_numbers<[2], [1], [1], [2], [0, 0, 0, 1, 1, 2], [0], [0]>} : vector<2x8x8xbf16>, vector<2x8x8xbf16>, vector<2x8x8xf32> -> vector<2x8x8xf32>
    "tpu.trace_stop"() : () -> ()
    %121 = vector.shape_cast %120 : vector<2x8x8xf32> to vector<16x8xf32>
    %c0_33 = arith.constant 0 : index
    %c16 = arith.constant 16 : index
    %122 = vector.load %arg19[%c0_33, %c16] : memref<16x64xf32, #tpu.memory_space<vmem>>, vector<16x8xf32>
    tpu.vector_store %arg19[%c0_33, %c16], %121 {strides = array<i32>} : memref<16x64xf32, #tpu.memory_space<vmem>>, vector<16x8xf32>,
    %123 = vector.extract_strided_slice %62 {offsets = [0, 24], sizes = [16, 8], strides = [1, 1]} : vector<16x192xbf16> to vector<16x8xbf16>
    %124 = vector.shape_cast %123 : vector<16x8xbf16> to vector<2x8x8xbf16>
    %125 = vector.extract_strided_slice %62 {offsets = [0, 88], sizes = [16, 8], strides = [1, 1]} : vector<16x192xbf16> to vector<16x8xbf16>
    %126 = vector.shape_cast %125 : vector<16x8xbf16> to vector<2x8x8xbf16>
    %127 = vector.extract_strided_slice %62 {offsets = [0, 152], sizes = [16, 8], strides = [1, 1]} : vector<16x192xbf16> to vector<16x8xbf16>
    %128 = vector.shape_cast %127 : vector<16x8xbf16> to vector<2x8x8xbf16>
    "tpu.trace_start"() <{level = 10 : i32, message = "bqd,bkd->bqk"}> : () -> ()
    %cst_34 = arith.constant dense<0.000000e+00> : vector<2x8x8xf32>
    %129 = tpu.matmul %124, %126, %cst_34 {dimension_numbers = #tpu.dot_dimension_numbers<[2], [2], [1], [1], [0, 0, 0, 1, 1, 1], [0], [0]>} : vector<2x8x8xbf16>, vector<2x8x8xbf16>, vector<2x8x8xf32> -> vector<2x8x8xf32>
    "tpu.trace_stop"() : () -> ()
    %cst_35 = arith.constant dense<0xFF800000> : vector<2x8xf32>
    %130 = vector.multi_reduction <maximumf>, %129, %cst_35 [2] : vector<2x8x8xf32> to vector<2x8xf32>
    %131 = vector.shape_cast %130 : vector<2x8xf32> to vector<2x8x1xf32>
    %132 = vector.broadcast %131 : vector<2x8x1xf32> to vector<2x8x8xf32>
    %133 = arith.subf %129, %132 : vector<2x8x8xf32>
    %134 = math.exp %133 : vector<2x8x8xf32>
    %cst_36 = arith.constant dense<0.000000e+00> : vector<2x8xf32>
    %135 = vector.multi_reduction <add>, %134, %cst_36 [2] : vector<2x8x8xf32> to vector<2x8xf32>
    %136 = vector.shape_cast %135 : vector<2x8xf32> to vector<2x8x1xf32>
    %137 = vector.broadcast %136 : vector<2x8x1xf32> to vector<2x8x8xf32>
    %138 = arith.divf %134, %137 : vector<2x8x8xf32>
    %139 = arith.truncf %138 : vector<2x8x8xf32> to vector<2x8x8xbf16>
    "tpu.trace_start"() <{level = 10 : i32, message = "bqk,bkd->bqd"}> : () -> ()
    %cst_37 = arith.constant dense<0.000000e+00> : vector<2x8x8xf32>
    %140 = tpu.matmul %139, %128, %cst_37 {dimension_numbers = #tpu.dot_dimension_numbers<[2], [1], [1], [2], [0, 0, 0, 1, 1, 2], [0], [0]>} : vector<2x8x8xbf16>, vector<2x8x8xbf16>, vector<2x8x8xf32> -> vector<2x8x8xf32>
    "tpu.trace_stop"() : () -> ()
    %141 = vector.shape_cast %140 : vector<2x8x8xf32> to vector<16x8xf32>
    %c0_38 = arith.constant 0 : index
    %c24 = arith.constant 24 : index
    %142 = vector.load %arg19[%c0_38, %c24] : memref<16x64xf32, #tpu.memory_space<vmem>>, vector<16x8xf32>
    tpu.vector_store %arg19[%c0_38, %c24], %141 {strides = array<i32>} : memref<16x64xf32, #tpu.memory_space<vmem>>, vector<16x8xf32>,
    %143 = vector.extract_strided_slice %62 {offsets = [0, 32], sizes = [16, 8], strides = [1, 1]} : vector<16x192xbf16> to vector<16x8xbf16>
    %144 = vector.shape_cast %143 : vector<16x8xbf16> to vector<2x8x8xbf16>
    %145 = vector.extract_strided_slice %62 {offsets = [0, 96], sizes = [16, 8], strides = [1, 1]} : vector<16x192xbf16> to vector<16x8xbf16>
    %146 = vector.shape_cast %145 : vector<16x8xbf16> to vector<2x8x8xbf16>
    %147 = vector.extract_strided_slice %62 {offsets = [0, 160], sizes = [16, 8], strides = [1, 1]} : vector<16x192xbf16> to vector<16x8xbf16>
    %148 = vector.shape_cast %147 : vector<16x8xbf16> to vector<2x8x8xbf16>
    "tpu.trace_start"() <{level = 10 : i32, message = "bqd,bkd->bqk"}> : () -> ()
    %cst_39 = arith.constant dense<0.000000e+00> : vector<2x8x8xf32>
    %149 = tpu.matmul %144, %146, %cst_39 {dimension_numbers = #tpu.dot_dimension_numbers<[2], [2], [1], [1], [0, 0, 0, 1, 1, 1], [0], [0]>} : vector<2x8x8xbf16>, vector<2x8x8xbf16>, vector<2x8x8xf32> -> vector<2x8x8xf32>
    "tpu.trace_stop"() : () -> ()
    %cst_40 = arith.constant dense<0xFF800000> : vector<2x8xf32>
    %150 = vector.multi_reduction <maximumf>, %149, %cst_40 [2] : vector<2x8x8xf32> to vector<2x8xf32>
    %151 = vector.shape_cast %150 : vector<2x8xf32> to vector<2x8x1xf32>
    %152 = vector.broadcast %151 : vector<2x8x1xf32> to vector<2x8x8xf32>
    %153 = arith.subf %149, %152 : vector<2x8x8xf32>
    %154 = math.exp %153 : vector<2x8x8xf32>
    %cst_41 = arith.constant dense<0.000000e+00> : vector<2x8xf32>
    %155 = vector.multi_reduction <add>, %154, %cst_41 [2] : vector<2x8x8xf32> to vector<2x8xf32>
    %156 = vector.shape_cast %155 : vector<2x8xf32> to vector<2x8x1xf32>
    %157 = vector.broadcast %156 : vector<2x8x1xf32> to vector<2x8x8xf32>
    %158 = arith.divf %154, %157 : vector<2x8x8xf32>
    %159 = arith.truncf %158 : vector<2x8x8xf32> to vector<2x8x8xbf16>
    "tpu.trace_start"() <{level = 10 : i32, message = "bqk,bkd->bqd"}> : () -> ()
    %cst_42 = arith.constant dense<0.000000e+00> : vector<2x8x8xf32>
    %160 = tpu.matmul %159, %148, %cst_42 {dimension_numbers = #tpu.dot_dimension_numbers<[2], [1], [1], [2], [0, 0, 0, 1, 1, 2], [0], [0]>} : vector<2x8x8xbf16>, vector<2x8x8xbf16>, vector<2x8x8xf32> -> vector<2x8x8xf32>
    "tpu.trace_stop"() : () -> ()
    %161 = vector.shape_cast %160 : vector<2x8x8xf32> to vector<16x8xf32>
    %c0_43 = arith.constant 0 : index
    %c32 = arith.constant 32 : index
    %162 = vector.load %arg19[%c0_43, %c32] : memref<16x64xf32, #tpu.memory_space<vmem>>, vector<16x8xf32>
    tpu.vector_store %arg19[%c0_43, %c32], %161 {strides = array<i32>} : memref<16x64xf32, #tpu.memory_space<vmem>>, vector<16x8xf32>,
    %163 = vector.extract_strided_slice %62 {offsets = [0, 40], sizes = [16, 8], strides = [1, 1]} : vector<16x192xbf16> to vector<16x8xbf16>
    %164 = vector.shape_cast %163 : vector<16x8xbf16> to vector<2x8x8xbf16>
    %165 = vector.extract_strided_slice %62 {offsets = [0, 104], sizes = [16, 8], strides = [1, 1]} : vector<16x192xbf16> to vector<16x8xbf16>
    %166 = vector.shape_cast %165 : vector<16x8xbf16> to vector<2x8x8xbf16>
    %167 = vector.extract_strided_slice %62 {offsets = [0, 168], sizes = [16, 8], strides = [1, 1]} : vector<16x192xbf16> to vector<16x8xbf16>
    %168 = vector.shape_cast %167 : vector<16x8xbf16> to vector<2x8x8xbf16>
    "tpu.trace_start"() <{level = 10 : i32, message = "bqd,bkd->bqk"}> : () -> ()
    %cst_44 = arith.constant dense<0.000000e+00> : vector<2x8x8xf32>
    %169 = tpu.matmul %164, %166, %cst_44 {dimension_numbers = #tpu.dot_dimension_numbers<[2], [2], [1], [1], [0, 0, 0, 1, 1, 1], [0], [0]>} : vector<2x8x8xbf16>, vector<2x8x8xbf16>, vector<2x8x8xf32> -> vector<2x8x8xf32>
    "tpu.trace_stop"() : () -> ()
    %cst_45 = arith.constant dense<0xFF800000> : vector<2x8xf32>
    %170 = vector.multi_reduction <maximumf>, %169, %cst_45 [2] : vector<2x8x8xf32> to vector<2x8xf32>
    %171 = vector.shape_cast %170 : vector<2x8xf32> to vector<2x8x1xf32>
    %172 = vector.broadcast %171 : vector<2x8x1xf32> to vector<2x8x8xf32>
    %173 = arith.subf %169, %172 : vector<2x8x8xf32>
    %174 = math.exp %173 : vector<2x8x8xf32>
    %cst_46 = arith.constant dense<0.000000e+00> : vector<2x8xf32>
    %175 = vector.multi_reduction <add>, %174, %cst_46 [2] : vector<2x8x8xf32> to vector<2x8xf32>
    %176 = vector.shape_cast %175 : vector<2x8xf32> to vector<2x8x1xf32>
    %177 = vector.broadcast %176 : vector<2x8x1xf32> to vector<2x8x8xf32>
    %178 = arith.divf %174, %177 : vector<2x8x8xf32>
    %179 = arith.truncf %178 : vector<2x8x8xf32> to vector<2x8x8xbf16>
    "tpu.trace_start"() <{level = 10 : i32, message = "bqk,bkd->bqd"}> : () -> ()
    %cst_47 = arith.constant dense<0.000000e+00> : vector<2x8x8xf32>
    %180 = tpu.matmul %179, %168, %cst_47 {dimension_numbers = #tpu.dot_dimension_numbers<[2], [1], [1], [2], [0, 0, 0, 1, 1, 2], [0], [0]>} : vector<2x8x8xbf16>, vector<2x8x8xbf16>, vector<2x8x8xf32> -> vector<2x8x8xf32>
    "tpu.trace_stop"() : () -> ()
    %181 = vector.shape_cast %180 : vector<2x8x8xf32> to vector<16x8xf32>
    %c0_48 = arith.constant 0 : index
    %c40 = arith.constant 40 : index
    %182 = vector.load %arg19[%c0_48, %c40] : memref<16x64xf32, #tpu.memory_space<vmem>>, vector<16x8xf32>
    tpu.vector_store %arg19[%c0_48, %c40], %181 {strides = array<i32>} : memref<16x64xf32, #tpu.memory_space<vmem>>, vector<16x8xf32>,
    %183 = vector.extract_strided_slice %62 {offsets = [0, 48], sizes = [16, 8], strides = [1, 1]} : vector<16x192xbf16> to vector<16x8xbf16>
    %184 = vector.shape_cast %183 : vector<16x8xbf16> to vector<2x8x8xbf16>
    %185 = vector.extract_strided_slice %62 {offsets = [0, 112], sizes = [16, 8], strides = [1, 1]} : vector<16x192xbf16> to vector<16x8xbf16>
    %186 = vector.shape_cast %185 : vector<16x8xbf16> to vector<2x8x8xbf16>
    %187 = vector.extract_strided_slice %62 {offsets = [0, 176], sizes = [16, 8], strides = [1, 1]} : vector<16x192xbf16> to vector<16x8xbf16>
    %188 = vector.shape_cast %187 : vector<16x8xbf16> to vector<2x8x8xbf16>
    "tpu.trace_start"() <{level = 10 : i32, message = "bqd,bkd->bqk"}> : () -> ()
    %cst_49 = arith.constant dense<0.000000e+00> : vector<2x8x8xf32>
    %189 = tpu.matmul %184, %186, %cst_49 {dimension_numbers = #tpu.dot_dimension_numbers<[2], [2], [1], [1], [0, 0, 0, 1, 1, 1], [0], [0]>} : vector<2x8x8xbf16>, vector<2x8x8xbf16>, vector<2x8x8xf32> -> vector<2x8x8xf32>
    "tpu.trace_stop"() : () -> ()
    %cst_50 = arith.constant dense<0xFF800000> : vector<2x8xf32>
    %190 = vector.multi_reduction <maximumf>, %189, %cst_50 [2] : vector<2x8x8xf32> to vector<2x8xf32>
    %191 = vector.shape_cast %190 : vector<2x8xf32> to vector<2x8x1xf32>
    %192 = vector.broadcast %191 : vector<2x8x1xf32> to vector<2x8x8xf32>
    %193 = arith.subf %189, %192 : vector<2x8x8xf32>
    %194 = math.exp %193 : vector<2x8x8xf32>
    %cst_51 = arith.constant dense<0.000000e+00> : vector<2x8xf32>
    %195 = vector.multi_reduction <add>, %194, %cst_51 [2] : vector<2x8x8xf32> to vector<2x8xf32>
    %196 = vector.shape_cast %195 : vector<2x8xf32> to vector<2x8x1xf32>
    %197 = vector.broadcast %196 : vector<2x8x1xf32> to vector<2x8x8xf32>
    %198 = arith.divf %194, %197 : vector<2x8x8xf32>
    %199 = arith.truncf %198 : vector<2x8x8xf32> to vector<2x8x8xbf16>
    "tpu.trace_start"() <{level = 10 : i32, message = "bqk,bkd->bqd"}> : () -> ()
    %cst_52 = arith.constant dense<0.000000e+00> : vector<2x8x8xf32>
    %200 = tpu.matmul %199, %188, %cst_52 {dimension_numbers = #tpu.dot_dimension_numbers<[2], [1], [1], [2], [0, 0, 0, 1, 1, 2], [0], [0]>} : vector<2x8x8xbf16>, vector<2x8x8xbf16>, vector<2x8x8xf32> -> vector<2x8x8xf32>
    "tpu.trace_stop"() : () -> ()
    %201 = vector.shape_cast %200 : vector<2x8x8xf32> to vector<16x8xf32>
    %c0_53 = arith.constant 0 : index
    %c48 = arith.constant 48 : index
    %202 = vector.load %arg19[%c0_53, %c48] : memref<16x64xf32, #tpu.memory_space<vmem>>, vector<16x8xf32>
    tpu.vector_store %arg19[%c0_53, %c48], %201 {strides = array<i32>} : memref<16x64xf32, #tpu.memory_space<vmem>>, vector<16x8xf32>,
    %203 = vector.extract_strided_slice %62 {offsets = [0, 56], sizes = [16, 8], strides = [1, 1]} : vector<16x192xbf16> to vector<16x8xbf16>
    %204 = vector.shape_cast %203 : vector<16x8xbf16> to vector<2x8x8xbf16>
    %205 = vector.extract_strided_slice %62 {offsets = [0, 120], sizes = [16, 8], strides = [1, 1]} : vector<16x192xbf16> to vector<16x8xbf16>
    %206 = vector.shape_cast %205 : vector<16x8xbf16> to vector<2x8x8xbf16>
    %207 = vector.extract_strided_slice %62 {offsets = [0, 184], sizes = [16, 8], strides = [1, 1]} : vector<16x192xbf16> to vector<16x8xbf16>
    %208 = vector.shape_cast %207 : vector<16x8xbf16> to vector<2x8x8xbf16>
    "tpu.trace_start"() <{level = 10 : i32, message = "bqd,bkd->bqk"}> : () -> ()
    %cst_54 = arith.constant dense<0.000000e+00> : vector<2x8x8xf32>
    %209 = tpu.matmul %204, %206, %cst_54 {dimension_numbers = #tpu.dot_dimension_numbers<[2], [2], [1], [1], [0, 0, 0, 1, 1, 1], [0], [0]>} : vector<2x8x8xbf16>, vector<2x8x8xbf16>, vector<2x8x8xf32> -> vector<2x8x8xf32>
    "tpu.trace_stop"() : () -> ()
    %cst_55 = arith.constant dense<0xFF800000> : vector<2x8xf32>
    %210 = vector.multi_reduction <maximumf>, %209, %cst_55 [2] : vector<2x8x8xf32> to vector<2x8xf32>
    %211 = vector.shape_cast %210 : vector<2x8xf32> to vector<2x8x1xf32>
    %212 = vector.broadcast %211 : vector<2x8x1xf32> to vector<2x8x8xf32>
    %213 = arith.subf %209, %212 : vector<2x8x8xf32>
    %214 = math.exp %213 : vector<2x8x8xf32>
    %cst_56 = arith.constant dense<0.000000e+00> : vector<2x8xf32>
    %215 = vector.multi_reduction <add>, %214, %cst_56 [2] : vector<2x8x8xf32> to vector<2x8xf32>
    %216 = vector.shape_cast %215 : vector<2x8xf32> to vector<2x8x1xf32>
    %217 = vector.broadcast %216 : vector<2x8x1xf32> to vector<2x8x8xf32>
    %218 = arith.divf %214, %217 : vector<2x8x8xf32>
    %219 = arith.truncf %218 : vector<2x8x8xf32> to vector<2x8x8xbf16>
    "tpu.trace_start"() <{level = 10 : i32, message = "bqk,bkd->bqd"}> : () -> ()
    %cst_57 = arith.constant dense<0.000000e+00> : vector<2x8x8xf32>
    %220 = tpu.matmul %219, %208, %cst_57 {dimension_numbers = #tpu.dot_dimension_numbers<[2], [1], [1], [2], [0, 0, 0, 1, 1, 2], [0], [0]>} : vector<2x8x8xbf16>, vector<2x8x8xbf16>, vector<2x8x8xf32> -> vector<2x8x8xf32>
    "tpu.trace_stop"() : () -> ()
    %221 = vector.shape_cast %220 : vector<2x8x8xf32> to vector<16x8xf32>
    %c0_58 = arith.constant 0 : index
    %c56 = arith.constant 56 : index
    %222 = vector.load %arg19[%c0_58, %c56] : memref<16x64xf32, #tpu.memory_space<vmem>>, vector<16x8xf32>
    tpu.vector_store %arg19[%c0_58, %c56], %221 {strides = array<i32>} : memref<16x64xf32, #tpu.memory_space<vmem>>, vector<16x8xf32>,
    %c0_59 = arith.constant 0 : index
    %c0_60 = arith.constant 0 : index
    %223 = vector.load %arg19[%c0_59, %c0_60] : memref<16x64xf32, #tpu.memory_space<vmem>>, vector<16x64xf32>
    %224 = arith.truncf %223 : vector<16x64xf32> to vector<16x64xbf16>
    %c0_61 = arith.constant 0 : index
    %c0_62 = arith.constant 0 : index
    %c0_63 = arith.constant 0 : index
    %225 = vector.load %arg6[%c0_61, %c0_62, %c0_63] : memref<3x64x64xbf16, #tpu.memory_space<vmem>>, vector<1x64x64xbf16>
    %226 = vector.shape_cast %225 : vector<1x64x64xbf16> to vector<64x64xbf16>
    %cst_64 = arith.constant dense<0.000000e+00> : vector<16x64xf32>
    %227 = tpu.matmul %224, %226, %cst_64 {dimension_numbers = #tpu.dot_dimension_numbers<[1], [0], [0], [1], [0, 0, 1, 1], [], []>} : vector<16x64xbf16>, vector<64x64xbf16>, vector<16x64xf32> -> vector<16x64xf32>
    %c0_65 = arith.constant 0 : index
    %c0_66 = arith.constant 0 : index
    %c0_67 = arith.constant 0 : index
    %228 = vector.load %arg7[%c0_65, %c0_66, %c0_67] : memref<3x1x64xf32, #tpu.memory_space<vmem>>, vector<1x1x64xf32>
    %229 = vector.shape_cast %228 : vector<1x1x64xf32> to vector<1x64xf32>
    %230 = vector.broadcast %229 : vector<1x64xf32> to vector<16x64xf32>
    %231 = arith.addf %227, %230 : vector<16x64xf32>
    %232 = arith.addf %53, %231 : vector<16x64xf32>
    %c0_68 = arith.constant 0 : index
    %c0_69 = arith.constant 0 : index
    %c0_70 = arith.constant 0 : index
    %233 = vector.load %arg8[%c0_68, %c0_69, %c0_70] : memref<3x1x64xf32, #tpu.memory_space<vmem>>, vector<1x1x64xf32>
    %234 = vector.shape_cast %233 : vector<1x1x64xf32> to vector<1x64xf32>
    %c0_71 = arith.constant 0 : index
    %c0_72 = arith.constant 0 : index
    %c0_73 = arith.constant 0 : index
    %235 = vector.load %arg9[%c0_71, %c0_72, %c0_73] : memref<3x1x64xf32, #tpu.memory_space<vmem>>, vector<1x1x64xf32>
    %236 = vector.shape_cast %235 : vector<1x1x64xf32> to vector<1x64xf32>
    %cst_74 = arith.constant dense<0.000000e+00> : vector<16xf32>
    %237 = vector.multi_reduction <add>, %232, %cst_74 [1] : vector<16x64xf32> to vector<16xf32>
    %238 = vector.shape_cast %237 : vector<16xf32> to vector<16x1xf32>
    %cst_75 = arith.constant 6.400000e+01 : f32
    %239 = vector.broadcast %cst_75 : f32 to vector<16x1xf32>
    %240 = arith.divf %238, %239 : vector<16x1xf32>
    %241 = vector.broadcast %240 : vector<16x1xf32> to vector<16x64xf32>
    %242 = arith.subf %232, %241 : vector<16x64xf32>
    %243 = arith.mulf %242, %242 : vector<16x64xf32>
    %cst_76 = arith.constant dense<0.000000e+00> : vector<16xf32>
    %244 = vector.multi_reduction <add>, %243, %cst_76 [1] : vector<16x64xf32> to vector<16xf32>
    %245 = vector.shape_cast %244 : vector<16xf32> to vector<16x1xf32>
    %cst_77 = arith.constant 6.400000e+01 : f32
    %246 = vector.broadcast %cst_77 : f32 to vector<16x1xf32>
    %247 = arith.divf %245, %246 : vector<16x1xf32>
    %248 = vector.broadcast %240 : vector<16x1xf32> to vector<16x64xf32>
    %249 = arith.subf %232, %248 : vector<16x64xf32>
    %cst_78 = arith.constant 9.99999974E-6 : f32
    %250 = vector.broadcast %cst_78 : f32 to vector<16x1xf32>
    %251 = arith.addf %247, %250 : vector<16x1xf32>
    %252 = math.rsqrt %251 : vector<16x1xf32>
    %253 = vector.broadcast %252 : vector<16x1xf32> to vector<16x64xf32>
    %254 = arith.mulf %249, %253 : vector<16x64xf32>
    %255 = vector.broadcast %234 : vector<1x64xf32> to vector<16x64xf32>
    %256 = arith.mulf %254, %255 : vector<16x64xf32>
    %257 = vector.broadcast %236 : vector<1x64xf32> to vector<16x64xf32>
    %258 = arith.addf %256, %257 : vector<16x64xf32>
    %259 = arith.truncf %258 : vector<16x64xf32> to vector<16x64xbf16>
    %cst_79 = arith.constant 0.000000e+00 : f32
    %260 = vector.broadcast %cst_79 : f32 to vector<16x64xf32>
    %c0_80 = arith.constant 0 : index
    %c0_81 = arith.constant 0 : index
    %c0_82 = arith.constant 0 : index
    %261 = vector.load %arg10[%c0_80, %c0_81, %c0_82] : memref<3x64x2048xbf16, #tpu.memory_space<vmem>>, vector<1x64x512xbf16>
    %262 = vector.shape_cast %261 : vector<1x64x512xbf16> to vector<64x512xbf16>
    %cst_83 = arith.constant dense<0.000000e+00> : vector<16x512xf32>
    %263 = tpu.matmul %259, %262, %cst_83 {dimension_numbers = #tpu.dot_dimension_numbers<[1], [0], [0], [1], [0, 0, 1, 1], [], []>} : vector<16x64xbf16>, vector<64x512xbf16>, vector<16x512xf32> -> vector<16x512xf32>
    %c0_84 = arith.constant 0 : index
    %c0_85 = arith.constant 0 : index
    %c0_86 = arith.constant 0 : index
    %264 = vector.load %arg11[%c0_84, %c0_85, %c0_86] : memref<3x1x2048xf32, #tpu.memory_space<vmem>>, vector<1x1x512xf32>
    %265 = vector.shape_cast %264 : vector<1x1x512xf32> to vector<1x512xf32>
    %266 = vector.broadcast %265 : vector<1x512xf32> to vector<16x512xf32>
    %267 = arith.addf %263, %266 : vector<16x512xf32>
    %cst_87 = arith.constant 0.000000e+00 : f32
    %268 = vector.broadcast %cst_87 : f32 to vector<16x512xf32>
    %269 = arith.maximumf %267, %268 : vector<16x512xf32>
    %270 = arith.truncf %269 : vector<16x512xf32> to vector<16x512xbf16>
    %c0_88 = arith.constant 0 : index
    %c0_89 = arith.constant 0 : index
    %c0_90 = arith.constant 0 : index
    %271 = vector.load %arg12[%c0_88, %c0_89, %c0_90] : memref<3x2048x64xbf16, #tpu.memory_space<vmem>>, vector<1x512x64xbf16>
    %272 = vector.shape_cast %271 : vector<1x512x64xbf16> to vector<512x64xbf16>
    %cst_91 = arith.constant dense<0.000000e+00> : vector<16x64xf32>
    %273 = tpu.matmul %270, %272, %cst_91 {dimension_numbers = #tpu.dot_dimension_numbers<[1], [0], [0], [1], [0, 0, 1, 1], [], []>} : vector<16x512xbf16>, vector<512x64xbf16>, vector<16x64xf32> -> vector<16x64xf32>
    %274 = arith.addf %260, %273 : vector<16x64xf32>
    %c0_92 = arith.constant 0 : index
    %c0_93 = arith.constant 0 : index
    %c512 = arith.constant 512 : index
    %275 = vector.load %arg10[%c0_92, %c0_93, %c512] : memref<3x64x2048xbf16, #tpu.memory_space<vmem>>, vector<1x64x512xbf16>
    %276 = vector.shape_cast %275 : vector<1x64x512xbf16> to vector<64x512xbf16>
    %cst_94 = arith.constant dense<0.000000e+00> : vector<16x512xf32>
    %277 = tpu.matmul %259, %276, %cst_94 {dimension_numbers = #tpu.dot_dimension_numbers<[1], [0], [0], [1], [0, 0, 1, 1], [], []>} : vector<16x64xbf16>, vector<64x512xbf16>, vector<16x512xf32> -> vector<16x512xf32>
    %c0_95 = arith.constant 0 : index
    %c0_96 = arith.constant 0 : index
    %c512_97 = arith.constant 512 : index
    %278 = vector.load %arg11[%c0_95, %c0_96, %c512_97] : memref<3x1x2048xf32, #tpu.memory_space<vmem>>, vector<1x1x512xf32>
    %279 = vector.shape_cast %278 : vector<1x1x512xf32> to vector<1x512xf32>
    %280 = vector.broadcast %279 : vector<1x512xf32> to vector<16x512xf32>
    %281 = arith.addf %277, %280 : vector<16x512xf32>
    %cst_98 = arith.constant 0.000000e+00 : f32
    %282 = vector.broadcast %cst_98 : f32 to vector<16x512xf32>
    %283 = arith.maximumf %281, %282 : vector<16x512xf32>
    %284 = arith.truncf %283 : vector<16x512xf32> to vector<16x512xbf16>
    %c0_99 = arith.constant 0 : index
    %c512_100 = arith.constant 512 : index
    %c0_101 = arith.constant 0 : index
    %285 = vector.load %arg12[%c0_99, %c512_100, %c0_101] : memref<3x2048x64xbf16, #tpu.memory_space<vmem>>, vector<1x512x64xbf16>
    %286 = vector.shape_cast %285 : vector<1x512x64xbf16> to vector<512x64xbf16>
    %cst_102 = arith.constant dense<0.000000e+00> : vector<16x64xf32>
    %287 = tpu.matmul %284, %286, %cst_102 {dimension_numbers = #tpu.dot_dimension_numbers<[1], [0], [0], [1], [0, 0, 1, 1], [], []>} : vector<16x512xbf16>, vector<512x64xbf16>, vector<16x64xf32> -> vector<16x64xf32>
    %288 = arith.addf %274, %287 : vector<16x64xf32>
    %c0_103 = arith.constant 0 : index
    %c0_104 = arith.constant 0 : index
    %c1024 = arith.constant 1024 : index
    %289 = vector.load %arg10[%c0_103, %c0_104, %c1024] : memref<3x64x2048xbf16, #tpu.memory_space<vmem>>, vector<1x64x512xbf16>
    %290 = vector.shape_cast %289 : vector<1x64x512xbf16> to vector<64x512xbf16>
    %cst_105 = arith.constant dense<0.000000e+00> : vector<16x512xf32>
    %291 = tpu.matmul %259, %290, %cst_105 {dimension_numbers = #tpu.dot_dimension_numbers<[1], [0], [0], [1], [0, 0, 1, 1], [], []>} : vector<16x64xbf16>, vector<64x512xbf16>, vector<16x512xf32> -> vector<16x512xf32>
    %c0_106 = arith.constant 0 : index
    %c0_107 = arith.constant 0 : index
    %c1024_108 = arith.constant 1024 : index
    %292 = vector.load %arg11[%c0_106, %c0_107, %c1024_108] : memref<3x1x2048xf32, #tpu.memory_space<vmem>>, vector<1x1x512xf32>
    %293 = vector.shape_cast %292 : vector<1x1x512xf32> to vector<1x512xf32>
    %294 = vector.broadcast %293 : vector<1x512xf32> to vector<16x512xf32>
    %295 = arith.addf %291, %294 : vector<16x512xf32>
    %cst_109 = arith.constant 0.000000e+00 : f32
    %296 = vector.broadcast %cst_109 : f32 to vector<16x512xf32>
    %297 = arith.maximumf %295, %296 : vector<16x512xf32>
    %298 = arith.truncf %297 : vector<16x512xf32> to vector<16x512xbf16>
    %c0_110 = arith.constant 0 : index
    %c1024_111 = arith.constant 1024 : index
    %c0_112 = arith.constant 0 : index
    %299 = vector.load %arg12[%c0_110, %c1024_111, %c0_112] : memref<3x2048x64xbf16, #tpu.memory_space<vmem>>, vector<1x512x64xbf16>
    %300 = vector.shape_cast %299 : vector<1x512x64xbf16> to vector<512x64xbf16>
    %cst_113 = arith.constant dense<0.000000e+00> : vector<16x64xf32>
    %301 = tpu.matmul %298, %300, %cst_113 {dimension_numbers = #tpu.dot_dimension_numbers<[1], [0], [0], [1], [0, 0, 1, 1], [], []>} : vector<16x512xbf16>, vector<512x64xbf16>, vector<16x64xf32> -> vector<16x64xf32>
    %302 = arith.addf %288, %301 : vector<16x64xf32>
    %c0_114 = arith.constant 0 : index
    %c0_115 = arith.constant 0 : index
    %c1536 = arith.constant 1536 : index
    %303 = vector.load %arg10[%c0_114, %c0_115, %c1536] : memref<3x64x2048xbf16, #tpu.memory_space<vmem>>, vector<1x64x512xbf16>
    %304 = vector.shape_cast %303 : vector<1x64x512xbf16> to vector<64x512xbf16>
    %cst_116 = arith.constant dense<0.000000e+00> : vector<16x512xf32>
    %305 = tpu.matmul %259, %304, %cst_116 {dimension_numbers = #tpu.dot_dimension_numbers<[1], [0], [0], [1], [0, 0, 1, 1], [], []>} : vector<16x64xbf16>, vector<64x512xbf16>, vector<16x512xf32> -> vector<16x512xf32>
    %c0_117 = arith.constant 0 : index
    %c0_118 = arith.constant 0 : index
    %c1536_119 = arith.constant 1536 : index
    %306 = vector.load %arg11[%c0_117, %c0_118, %c1536_119] : memref<3x1x2048xf32, #tpu.memory_space<vmem>>, vector<1x1x512xf32>
    %307 = vector.shape_cast %306 : vector<1x1x512xf32> to vector<1x512xf32>
    %308 = vector.broadcast %307 : vector<1x512xf32> to vector<16x512xf32>
    %309 = arith.addf %305, %308 : vector<16x512xf32>
    %cst_120 = arith.constant 0.000000e+00 : f32
    %310 = vector.broadcast %cst_120 : f32 to vector<16x512xf32>
    %311 = arith.maximumf %309, %310 : vector<16x512xf32>
    %312 = arith.truncf %311 : vector<16x512xf32> to vector<16x512xbf16>
    %c0_121 = arith.constant 0 : index
    %c1536_122 = arith.constant 1536 : index
    %c0_123 = arith.constant 0 : index
    %313 = vector.load %arg12[%c0_121, %c1536_122, %c0_123] : memref<3x2048x64xbf16, #tpu.memory_space<vmem>>, vector<1x512x64xbf16>
    %314 = vector.shape_cast %313 : vector<1x512x64xbf16> to vector<512x64xbf16>
    %cst_124 = arith.constant dense<0.000000e+00> : vector<16x64xf32>
    %315 = tpu.matmul %312, %314, %cst_124 {dimension_numbers = #tpu.dot_dimension_numbers<[1], [0], [0], [1], [0, 0, 1, 1], [], []>} : vector<16x512xbf16>, vector<512x64xbf16>, vector<16x64xf32> -> vector<16x64xf32>
    %316 = arith.addf %302, %315 : vector<16x64xf32>
    %c0_125 = arith.constant 0 : index
    %c0_126 = arith.constant 0 : index
    %c0_127 = arith.constant 0 : index
    %317 = vector.load %arg13[%c0_125, %c0_126, %c0_127] : memref<3x1x64xf32, #tpu.memory_space<vmem>>, vector<1x1x64xf32>
    %318 = vector.shape_cast %317 : vector<1x1x64xf32> to vector<1x64xf32>
    %319 = vector.broadcast %318 : vector<1x64xf32> to vector<16x64xf32>
    %320 = arith.addf %316, %319 : vector<16x64xf32>
    %321 = arith.addf %258, %320 : vector<16x64xf32>
    %c0_128 = arith.constant 0 : index
    %c0_129 = arith.constant 0 : index
    %c0_130 = arith.constant 0 : index
    %322 = vector.load %arg14[%c0_128, %c0_129, %c0_130] : memref<3x1x64xf32, #tpu.memory_space<vmem>>, vector<1x1x64xf32>
    %323 = vector.shape_cast %322 : vector<1x1x64xf32> to vector<1x64xf32>
    %c0_131 = arith.constant 0 : index
    %c0_132 = arith.constant 0 : index
    %c0_133 = arith.constant 0 : index
    %324 = vector.load %arg15[%c0_131, %c0_132, %c0_133] : memref<3x1x64xf32, #tpu.memory_space<vmem>>, vector<1x1x64xf32>
    %325 = vector.shape_cast %324 : vector<1x1x64xf32> to vector<1x64xf32>
    %cst_134 = arith.constant dense<0.000000e+00> : vector<16xf32>
    %326 = vector.multi_reduction <add>, %321, %cst_134 [1] : vector<16x64xf32> to vector<16xf32>
    %327 = vector.shape_cast %326 : vector<16xf32> to vector<16x1xf32>
    %cst_135 = arith.constant 6.400000e+01 : f32
    %328 = vector.broadcast %cst_135 : f32 to vector<16x1xf32>
    %329 = arith.divf %327, %328 : vector<16x1xf32>
    %330 = vector.broadcast %329 : vector<16x1xf32> to vector<16x64xf32>
    %331 = arith.subf %321, %330 : vector<16x64xf32>
    %332 = arith.mulf %331, %331 : vector<16x64xf32>
    %cst_136 = arith.constant dense<0.000000e+00> : vector<16xf32>
    %333 = vector.multi_reduction <add>, %332, %cst_136 [1] : vector<16x64xf32> to vector<16xf32>
    %334 = vector.shape_cast %333 : vector<16xf32> to vector<16x1xf32>
    %cst_137 = arith.constant 6.400000e+01 : f32
    %335 = vector.broadcast %cst_137 : f32 to vector<16x1xf32>
    %336 = arith.divf %334, %335 : vector<16x1xf32>
    %337 = vector.broadcast %329 : vector<16x1xf32> to vector<16x64xf32>
    %338 = arith.subf %321, %337 : vector<16x64xf32>
    %cst_138 = arith.constant 9.99999974E-6 : f32
    %339 = vector.broadcast %cst_138 : f32 to vector<16x1xf32>
    %340 = arith.addf %336, %339 : vector<16x1xf32>
    %341 = math.rsqrt %340 : vector<16x1xf32>
    %342 = vector.broadcast %341 : vector<16x1xf32> to vector<16x64xf32>
    %343 = arith.mulf %338, %342 : vector<16x64xf32>
    %344 = vector.broadcast %323 : vector<1x64xf32> to vector<16x64xf32>
    %345 = arith.mulf %343, %344 : vector<16x64xf32>
    %346 = vector.broadcast %325 : vector<1x64xf32> to vector<16x64xf32>
    %347 = arith.addf %345, %346 : vector<16x64xf32>
    %348 = arith.truncf %347 : vector<16x64xf32> to vector<16x64xbf16>
    %c1 = arith.constant 1 : index
    %c0_139 = arith.constant 0 : index
    %c0_140 = arith.constant 0 : index
    %349 = vector.load %arg4[%c1, %c0_139, %c0_140] : memref<3x64x192xbf16, #tpu.memory_space<vmem>>, vector<1x64x192xbf16>
    %350 = vector.shape_cast %349 : vector<1x64x192xbf16> to vector<64x192xbf16>
    %cst_141 = arith.constant dense<0.000000e+00> : vector<16x192xf32>
    %351 = tpu.matmul %348, %350, %cst_141 {dimension_numbers = #tpu.dot_dimension_numbers<[1], [0], [0], [1], [0, 0, 1, 1], [], []>} : vector<16x64xbf16>, vector<64x192xbf16>, vector<16x192xf32> -> vector<16x192xf32>
    %c1_142 = arith.constant 1 : index
    %c0_143 = arith.constant 0 : index
    %c0_144 = arith.constant 0 : index
    %352 = vector.load %arg5[%c1_142, %c0_143, %c0_144] : memref<3x1x192xf32, #tpu.memory_space<vmem>>, vector<1x1x192xf32>
    %353 = vector.shape_cast %352 : vector<1x1x192xf32> to vector<1x192xf32>
    %354 = vector.broadcast %353 : vector<1x192xf32> to vector<16x192xf32>
    %355 = arith.addf %351, %354 : vector<16x192xf32>
    %356 = arith.truncf %355 : vector<16x192xf32> to vector<16x192xbf16>
    %357 = vector.extract_strided_slice %356 {offsets = [0, 0], sizes = [16, 8], strides = [1, 1]} : vector<16x192xbf16> to vector<16x8xbf16>
    %358 = vector.shape_cast %357 : vector<16x8xbf16> to vector<2x8x8xbf16>
    %359 = vector.extract_strided_slice %356 {offsets = [0, 64], sizes = [16, 8], strides = [1, 1]} : vector<16x192xbf16> to vector<16x8xbf16>
    %360 = vector.shape_cast %359 : vector<16x8xbf16> to vector<2x8x8xbf16>
    %361 = vector.extract_strided_slice %356 {offsets = [0, 128], sizes = [16, 8], strides = [1, 1]} : vector<16x192xbf16> to vector<16x8xbf16>
    %362 = vector.shape_cast %361 : vector<16x8xbf16> to vector<2x8x8xbf16>
    "tpu.trace_start"() <{level = 10 : i32, message = "bqd,bkd->bqk"}> : () -> ()
    %cst_145 = arith.constant dense<0.000000e+00> : vector<2x8x8xf32>
    %363 = tpu.matmul %358, %360, %cst_145 {dimension_numbers = #tpu.dot_dimension_numbers<[2], [2], [1], [1], [0, 0, 0, 1, 1, 1], [0], [0]>} : vector<2x8x8xbf16>, vector<2x8x8xbf16>, vector<2x8x8xf32> -> vector<2x8x8xf32>
    "tpu.trace_stop"() : () -> ()
    %cst_146 = arith.constant dense<0xFF800000> : vector<2x8xf32>
    %364 = vector.multi_reduction <maximumf>, %363, %cst_146 [2] : vector<2x8x8xf32> to vector<2x8xf32>
    %365 = vector.shape_cast %364 : vector<2x8xf32> to vector<2x8x1xf32>
    %366 = vector.broadcast %365 : vector<2x8x1xf32> to vector<2x8x8xf32>
    %367 = arith.subf %363, %366 : vector<2x8x8xf32>
    %368 = math.exp %367 : vector<2x8x8xf32>
    %cst_147 = arith.constant dense<0.000000e+00> : vector<2x8xf32>
    %369 = vector.multi_reduction <add>, %368, %cst_147 [2] : vector<2x8x8xf32> to vector<2x8xf32>
    %370 = vector.shape_cast %369 : vector<2x8xf32> to vector<2x8x1xf32>
    %371 = vector.broadcast %370 : vector<2x8x1xf32> to vector<2x8x8xf32>
    %372 = arith.divf %368, %371 : vector<2x8x8xf32>
    %373 = arith.truncf %372 : vector<2x8x8xf32> to vector<2x8x8xbf16>
    "tpu.trace_start"() <{level = 10 : i32, message = "bqk,bkd->bqd"}> : () -> ()
    %cst_148 = arith.constant dense<0.000000e+00> : vector<2x8x8xf32>
    %374 = tpu.matmul %373, %362, %cst_148 {dimension_numbers = #tpu.dot_dimension_numbers<[2], [1], [1], [2], [0, 0, 0, 1, 1, 2], [0], [0]>} : vector<2x8x8xbf16>, vector<2x8x8xbf16>, vector<2x8x8xf32> -> vector<2x8x8xf32>
    "tpu.trace_stop"() : () -> ()
    %375 = vector.shape_cast %374 : vector<2x8x8xf32> to vector<16x8xf32>
    %c0_149 = arith.constant 0 : index
    %c0_150 = arith.constant 0 : index
    %376 = vector.load %arg19[%c0_149, %c0_150] : memref<16x64xf32, #tpu.memory_space<vmem>>, vector<16x8xf32>
    tpu.vector_store %arg19[%c0_149, %c0_150], %375 {strides = array<i32>} : memref<16x64xf32, #tpu.memory_space<vmem>>, vector<16x8xf32>,
    %377 = vector.extract_strided_slice %356 {offsets = [0, 8], sizes = [16, 8], strides = [1, 1]} : vector<16x192xbf16> to vector<16x8xbf16>
    %378 = vector.shape_cast %377 : vector<16x8xbf16> to vector<2x8x8xbf16>
    %379 = vector.extract_strided_slice %356 {offsets = [0, 72], sizes = [16, 8], strides = [1, 1]} : vector<16x192xbf16> to vector<16x8xbf16>
    %380 = vector.shape_cast %379 : vector<16x8xbf16> to vector<2x8x8xbf16>
    %381 = vector.extract_strided_slice %356 {offsets = [0, 136], sizes = [16, 8], strides = [1, 1]} : vector<16x192xbf16> to vector<16x8xbf16>
    %382 = vector.shape_cast %381 : vector<16x8xbf16> to vector<2x8x8xbf16>
    "tpu.trace_start"() <{level = 10 : i32, message = "bqd,bkd->bqk"}> : () -> ()
    %cst_151 = arith.constant dense<0.000000e+00> : vector<2x8x8xf32>
    %383 = tpu.matmul %378, %380, %cst_151 {dimension_numbers = #tpu.dot_dimension_numbers<[2], [2], [1], [1], [0, 0, 0, 1, 1, 1], [0], [0]>} : vector<2x8x8xbf16>, vector<2x8x8xbf16>, vector<2x8x8xf32> -> vector<2x8x8xf32>
    "tpu.trace_stop"() : () -> ()
    %cst_152 = arith.constant dense<0xFF800000> : vector<2x8xf32>
    %384 = vector.multi_reduction <maximumf>, %383, %cst_152 [2] : vector<2x8x8xf32> to vector<2x8xf32>
    %385 = vector.shape_cast %384 : vector<2x8xf32> to vector<2x8x1xf32>
    %386 = vector.broadcast %385 : vector<2x8x1xf32> to vector<2x8x8xf32>
    %387 = arith.subf %383, %386 : vector<2x8x8xf32>
    %388 = math.exp %387 : vector<2x8x8xf32>
    %cst_153 = arith.constant dense<0.000000e+00> : vector<2x8xf32>
    %389 = vector.multi_reduction <add>, %388, %cst_153 [2] : vector<2x8x8xf32> to vector<2x8xf32>
    %390 = vector.shape_cast %389 : vector<2x8xf32> to vector<2x8x1xf32>
    %391 = vector.broadcast %390 : vector<2x8x1xf32> to vector<2x8x8xf32>
    %392 = arith.divf %388, %391 : vector<2x8x8xf32>
    %393 = arith.truncf %392 : vector<2x8x8xf32> to vector<2x8x8xbf16>
    "tpu.trace_start"() <{level = 10 : i32, message = "bqk,bkd->bqd"}> : () -> ()
    %cst_154 = arith.constant dense<0.000000e+00> : vector<2x8x8xf32>
    %394 = tpu.matmul %393, %382, %cst_154 {dimension_numbers = #tpu.dot_dimension_numbers<[2], [1], [1], [2], [0, 0, 0, 1, 1, 2], [0], [0]>} : vector<2x8x8xbf16>, vector<2x8x8xbf16>, vector<2x8x8xf32> -> vector<2x8x8xf32>
    "tpu.trace_stop"() : () -> ()
    %395 = vector.shape_cast %394 : vector<2x8x8xf32> to vector<16x8xf32>
    %c0_155 = arith.constant 0 : index
    %c8_156 = arith.constant 8 : index
    %396 = vector.load %arg19[%c0_155, %c8_156] : memref<16x64xf32, #tpu.memory_space<vmem>>, vector<16x8xf32>
    tpu.vector_store %arg19[%c0_155, %c8_156], %395 {strides = array<i32>} : memref<16x64xf32, #tpu.memory_space<vmem>>, vector<16x8xf32>,
    %397 = vector.extract_strided_slice %356 {offsets = [0, 16], sizes = [16, 8], strides = [1, 1]} : vector<16x192xbf16> to vector<16x8xbf16>
    %398 = vector.shape_cast %397 : vector<16x8xbf16> to vector<2x8x8xbf16>
    %399 = vector.extract_strided_slice %356 {offsets = [0, 80], sizes = [16, 8], strides = [1, 1]} : vector<16x192xbf16> to vector<16x8xbf16>
    %400 = vector.shape_cast %399 : vector<16x8xbf16> to vector<2x8x8xbf16>
    %401 = vector.extract_strided_slice %356 {offsets = [0, 144], sizes = [16, 8], strides = [1, 1]} : vector<16x192xbf16> to vector<16x8xbf16>
    %402 = vector.shape_cast %401 : vector<16x8xbf16> to vector<2x8x8xbf16>
    "tpu.trace_start"() <{level = 10 : i32, message = "bqd,bkd->bqk"}> : () -> ()
    %cst_157 = arith.constant dense<0.000000e+00> : vector<2x8x8xf32>
    %403 = tpu.matmul %398, %400, %cst_157 {dimension_numbers = #tpu.dot_dimension_numbers<[2], [2], [1], [1], [0, 0, 0, 1, 1, 1], [0], [0]>} : vector<2x8x8xbf16>, vector<2x8x8xbf16>, vector<2x8x8xf32> -> vector<2x8x8xf32>
    "tpu.trace_stop"() : () -> ()
    %cst_158 = arith.constant dense<0xFF800000> : vector<2x8xf32>
    %404 = vector.multi_reduction <maximumf>, %403, %cst_158 [2] : vector<2x8x8xf32> to vector<2x8xf32>
    %405 = vector.shape_cast %404 : vector<2x8xf32> to vector<2x8x1xf32>
    %406 = vector.broadcast %405 : vector<2x8x1xf32> to vector<2x8x8xf32>
    %407 = arith.subf %403, %406 : vector<2x8x8xf32>
    %408 = math.exp %407 : vector<2x8x8xf32>
    %cst_159 = arith.constant dense<0.000000e+00> : vector<2x8xf32>
    %409 = vector.multi_reduction <add>, %408, %cst_159 [2] : vector<2x8x8xf32> to vector<2x8xf32>
    %410 = vector.shape_cast %409 : vector<2x8xf32> to vector<2x8x1xf32>
    %411 = vector.broadcast %410 : vector<2x8x1xf32> to vector<2x8x8xf32>
    %412 = arith.divf %408, %411 : vector<2x8x8xf32>
    %413 = arith.truncf %412 : vector<2x8x8xf32> to vector<2x8x8xbf16>
    "tpu.trace_start"() <{level = 10 : i32, message = "bqk,bkd->bqd"}> : () -> ()
    %cst_160 = arith.constant dense<0.000000e+00> : vector<2x8x8xf32>
    %414 = tpu.matmul %413, %402, %cst_160 {dimension_numbers = #tpu.dot_dimension_numbers<[2], [1], [1], [2], [0, 0, 0, 1, 1, 2], [0], [0]>} : vector<2x8x8xbf16>, vector<2x8x8xbf16>, vector<2x8x8xf32> -> vector<2x8x8xf32>
    "tpu.trace_stop"() : () -> ()
    %415 = vector.shape_cast %414 : vector<2x8x8xf32> to vector<16x8xf32>
    %c0_161 = arith.constant 0 : index
    %c16_162 = arith.constant 16 : index
    %416 = vector.load %arg19[%c0_161, %c16_162] : memref<16x64xf32, #tpu.memory_space<vmem>>, vector<16x8xf32>
    tpu.vector_store %arg19[%c0_161, %c16_162], %415 {strides = array<i32>} : memref<16x64xf32, #tpu.memory_space<vmem>>, vector<16x8xf32>,
    %417 = vector.extract_strided_slice %356 {offsets = [0, 24], sizes = [16, 8], strides = [1, 1]} : vector<16x192xbf16> to vector<16x8xbf16>
    %418 = vector.shape_cast %417 : vector<16x8xbf16> to vector<2x8x8xbf16>
    %419 = vector.extract_strided_slice %356 {offsets = [0, 88], sizes = [16, 8], strides = [1, 1]} : vector<16x192xbf16> to vector<16x8xbf16>
    %420 = vector.shape_cast %419 : vector<16x8xbf16> to vector<2x8x8xbf16>
    %421 = vector.extract_strided_slice %356 {offsets = [0, 152], sizes = [16, 8], strides = [1, 1]} : vector<16x192xbf16> to vector<16x8xbf16>
    %422 = vector.shape_cast %421 : vector<16x8xbf16> to vector<2x8x8xbf16>
    "tpu.trace_start"() <{level = 10 : i32, message = "bqd,bkd->bqk"}> : () -> ()
    %cst_163 = arith.constant dense<0.000000e+00> : vector<2x8x8xf32>
    %423 = tpu.matmul %418, %420, %cst_163 {dimension_numbers = #tpu.dot_dimension_numbers<[2], [2], [1], [1], [0, 0, 0, 1, 1, 1], [0], [0]>} : vector<2x8x8xbf16>, vector<2x8x8xbf16>, vector<2x8x8xf32> -> vector<2x8x8xf32>
    "tpu.trace_stop"() : () -> ()
    %cst_164 = arith.constant dense<0xFF800000> : vector<2x8xf32>
    %424 = vector.multi_reduction <maximumf>, %423, %cst_164 [2] : vector<2x8x8xf32> to vector<2x8xf32>
    %425 = vector.shape_cast %424 : vector<2x8xf32> to vector<2x8x1xf32>
    %426 = vector.broadcast %425 : vector<2x8x1xf32> to vector<2x8x8xf32>
    %427 = arith.subf %423, %426 : vector<2x8x8xf32>
    %428 = math.exp %427 : vector<2x8x8xf32>
    %cst_165 = arith.constant dense<0.000000e+00> : vector<2x8xf32>
    %429 = vector.multi_reduction <add>, %428, %cst_165 [2] : vector<2x8x8xf32> to vector<2x8xf32>
    %430 = vector.shape_cast %429 : vector<2x8xf32> to vector<2x8x1xf32>
    %431 = vector.broadcast %430 : vector<2x8x1xf32> to vector<2x8x8xf32>
    %432 = arith.divf %428, %431 : vector<2x8x8xf32>
    %433 = arith.truncf %432 : vector<2x8x8xf32> to vector<2x8x8xbf16>
    "tpu.trace_start"() <{level = 10 : i32, message = "bqk,bkd->bqd"}> : () -> ()
    %cst_166 = arith.constant dense<0.000000e+00> : vector<2x8x8xf32>
    %434 = tpu.matmul %433, %422, %cst_166 {dimension_numbers = #tpu.dot_dimension_numbers<[2], [1], [1], [2], [0, 0, 0, 1, 1, 2], [0], [0]>} : vector<2x8x8xbf16>, vector<2x8x8xbf16>, vector<2x8x8xf32> -> vector<2x8x8xf32>
    "tpu.trace_stop"() : () -> ()
    %435 = vector.shape_cast %434 : vector<2x8x8xf32> to vector<16x8xf32>
    %c0_167 = arith.constant 0 : index
    %c24_168 = arith.constant 24 : index
    %436 = vector.load %arg19[%c0_167, %c24_168] : memref<16x64xf32, #tpu.memory_space<vmem>>, vector<16x8xf32>
    tpu.vector_store %arg19[%c0_167, %c24_168], %435 {strides = array<i32>} : memref<16x64xf32, #tpu.memory_space<vmem>>, vector<16x8xf32>,
    %437 = vector.extract_strided_slice %356 {offsets = [0, 32], sizes = [16, 8], strides = [1, 1]} : vector<16x192xbf16> to vector<16x8xbf16>
    %438 = vector.shape_cast %437 : vector<16x8xbf16> to vector<2x8x8xbf16>
    %439 = vector.extract_strided_slice %356 {offsets = [0, 96], sizes = [16, 8], strides = [1, 1]} : vector<16x192xbf16> to vector<16x8xbf16>
    %440 = vector.shape_cast %439 : vector<16x8xbf16> to vector<2x8x8xbf16>
    %441 = vector.extract_strided_slice %356 {offsets = [0, 160], sizes = [16, 8], strides = [1, 1]} : vector<16x192xbf16> to vector<16x8xbf16>
    %442 = vector.shape_cast %441 : vector<16x8xbf16> to vector<2x8x8xbf16>
    "tpu.trace_start"() <{level = 10 : i32, message = "bqd,bkd->bqk"}> : () -> ()
    %cst_169 = arith.constant dense<0.000000e+00> : vector<2x8x8xf32>
    %443 = tpu.matmul %438, %440, %cst_169 {dimension_numbers = #tpu.dot_dimension_numbers<[2], [2], [1], [1], [0, 0, 0, 1, 1, 1], [0], [0]>} : vector<2x8x8xbf16>, vector<2x8x8xbf16>, vector<2x8x8xf32> -> vector<2x8x8xf32>
    "tpu.trace_stop"() : () -> ()
    %cst_170 = arith.constant dense<0xFF800000> : vector<2x8xf32>
    %444 = vector.multi_reduction <maximumf>, %443, %cst_170 [2] : vector<2x8x8xf32> to vector<2x8xf32>
    %445 = vector.shape_cast %444 : vector<2x8xf32> to vector<2x8x1xf32>
    %446 = vector.broadcast %445 : vector<2x8x1xf32> to vector<2x8x8xf32>
    %447 = arith.subf %443, %446 : vector<2x8x8xf32>
    %448 = math.exp %447 : vector<2x8x8xf32>
    %cst_171 = arith.constant dense<0.000000e+00> : vector<2x8xf32>
    %449 = vector.multi_reduction <add>, %448, %cst_171 [2] : vector<2x8x8xf32> to vector<2x8xf32>
    %450 = vector.shape_cast %449 : vector<2x8xf32> to vector<2x8x1xf32>
    %451 = vector.broadcast %450 : vector<2x8x1xf32> to vector<2x8x8xf32>
    %452 = arith.divf %448, %451 : vector<2x8x8xf32>
    %453 = arith.truncf %452 : vector<2x8x8xf32> to vector<2x8x8xbf16>
    "tpu.trace_start"() <{level = 10 : i32, message = "bqk,bkd->bqd"}> : () -> ()
    %cst_172 = arith.constant dense<0.000000e+00> : vector<2x8x8xf32>
    %454 = tpu.matmul %453, %442, %cst_172 {dimension_numbers = #tpu.dot_dimension_numbers<[2], [1], [1], [2], [0, 0, 0, 1, 1, 2], [0], [0]>} : vector<2x8x8xbf16>, vector<2x8x8xbf16>, vector<2x8x8xf32> -> vector<2x8x8xf32>
    "tpu.trace_stop"() : () -> ()
    %455 = vector.shape_cast %454 : vector<2x8x8xf32> to vector<16x8xf32>
    %c0_173 = arith.constant 0 : index
    %c32_174 = arith.constant 32 : index
    %456 = vector.load %arg19[%c0_173, %c32_174] : memref<16x64xf32, #tpu.memory_space<vmem>>, vector<16x8xf32>
    tpu.vector_store %arg19[%c0_173, %c32_174], %455 {strides = array<i32>} : memref<16x64xf32, #tpu.memory_space<vmem>>, vector<16x8xf32>,
    %457 = vector.extract_strided_slice %356 {offsets = [0, 40], sizes = [16, 8], strides = [1, 1]} : vector<16x192xbf16> to vector<16x8xbf16>
    %458 = vector.shape_cast %457 : vector<16x8xbf16> to vector<2x8x8xbf16>
    %459 = vector.extract_strided_slice %356 {offsets = [0, 104], sizes = [16, 8], strides = [1, 1]} : vector<16x192xbf16> to vector<16x8xbf16>
    %460 = vector.shape_cast %459 : vector<16x8xbf16> to vector<2x8x8xbf16>
    %461 = vector.extract_strided_slice %356 {offsets = [0, 168], sizes = [16, 8], strides = [1, 1]} : vector<16x192xbf16> to vector<16x8xbf16>
    %462 = vector.shape_cast %461 : vector<16x8xbf16> to vector<2x8x8xbf16>
    "tpu.trace_start"() <{level = 10 : i32, message = "bqd,bkd->bqk"}> : () -> ()
    %cst_175 = arith.constant dense<0.000000e+00> : vector<2x8x8xf32>
    %463 = tpu.matmul %458, %460, %cst_175 {dimension_numbers = #tpu.dot_dimension_numbers<[2], [2], [1], [1], [0, 0, 0, 1, 1, 1], [0], [0]>} : vector<2x8x8xbf16>, vector<2x8x8xbf16>, vector<2x8x8xf32> -> vector<2x8x8xf32>
    "tpu.trace_stop"() : () -> ()
    %cst_176 = arith.constant dense<0xFF800000> : vector<2x8xf32>
    %464 = vector.multi_reduction <maximumf>, %463, %cst_176 [2] : vector<2x8x8xf32> to vector<2x8xf32>
    %465 = vector.shape_cast %464 : vector<2x8xf32> to vector<2x8x1xf32>
    %466 = vector.broadcast %465 : vector<2x8x1xf32> to vector<2x8x8xf32>
    %467 = arith.subf %463, %466 : vector<2x8x8xf32>
    %468 = math.exp %467 : vector<2x8x8xf32>
    %cst_177 = arith.constant dense<0.000000e+00> : vector<2x8xf32>
    %469 = vector.multi_reduction <add>, %468, %cst_177 [2] : vector<2x8x8xf32> to vector<2x8xf32>
    %470 = vector.shape_cast %469 : vector<2x8xf32> to vector<2x8x1xf32>
    %471 = vector.broadcast %470 : vector<2x8x1xf32> to vector<2x8x8xf32>
    %472 = arith.divf %468, %471 : vector<2x8x8xf32>
    %473 = arith.truncf %472 : vector<2x8x8xf32> to vector<2x8x8xbf16>
    "tpu.trace_start"() <{level = 10 : i32, message = "bqk,bkd->bqd"}> : () -> ()
    %cst_178 = arith.constant dense<0.000000e+00> : vector<2x8x8xf32>
    %474 = tpu.matmul %473, %462, %cst_178 {dimension_numbers = #tpu.dot_dimension_numbers<[2], [1], [1], [2], [0, 0, 0, 1, 1, 2], [0], [0]>} : vector<2x8x8xbf16>, vector<2x8x8xbf16>, vector<2x8x8xf32> -> vector<2x8x8xf32>
    "tpu.trace_stop"() : () -> ()
    %475 = vector.shape_cast %474 : vector<2x8x8xf32> to vector<16x8xf32>
    %c0_179 = arith.constant 0 : index
    %c40_180 = arith.constant 40 : index
    %476 = vector.load %arg19[%c0_179, %c40_180] : memref<16x64xf32, #tpu.memory_space<vmem>>, vector<16x8xf32>
    tpu.vector_store %arg19[%c0_179, %c40_180], %475 {strides = array<i32>} : memref<16x64xf32, #tpu.memory_space<vmem>>, vector<16x8xf32>,
    %477 = vector.extract_strided_slice %356 {offsets = [0, 48], sizes = [16, 8], strides = [1, 1]} : vector<16x192xbf16> to vector<16x8xbf16>
    %478 = vector.shape_cast %477 : vector<16x8xbf16> to vector<2x8x8xbf16>
    %479 = vector.extract_strided_slice %356 {offsets = [0, 112], sizes = [16, 8], strides = [1, 1]} : vector<16x192xbf16> to vector<16x8xbf16>
    %480 = vector.shape_cast %479 : vector<16x8xbf16> to vector<2x8x8xbf16>
    %481 = vector.extract_strided_slice %356 {offsets = [0, 176], sizes = [16, 8], strides = [1, 1]} : vector<16x192xbf16> to vector<16x8xbf16>
    %482 = vector.shape_cast %481 : vector<16x8xbf16> to vector<2x8x8xbf16>
    "tpu.trace_start"() <{level = 10 : i32, message = "bqd,bkd->bqk"}> : () -> ()
    %cst_181 = arith.constant dense<0.000000e+00> : vector<2x8x8xf32>
    %483 = tpu.matmul %478, %480, %cst_181 {dimension_numbers = #tpu.dot_dimension_numbers<[2], [2], [1], [1], [0, 0, 0, 1, 1, 1], [0], [0]>} : vector<2x8x8xbf16>, vector<2x8x8xbf16>, vector<2x8x8xf32> -> vector<2x8x8xf32>
    "tpu.trace_stop"() : () -> ()
    %cst_182 = arith.constant dense<0xFF800000> : vector<2x8xf32>
    %484 = vector.multi_reduction <maximumf>, %483, %cst_182 [2] : vector<2x8x8xf32> to vector<2x8xf32>
    %485 = vector.shape_cast %484 : vector<2x8xf32> to vector<2x8x1xf32>
    %486 = vector.broadcast %485 : vector<2x8x1xf32> to vector<2x8x8xf32>
    %487 = arith.subf %483, %486 : vector<2x8x8xf32>
    %488 = math.exp %487 : vector<2x8x8xf32>
    %cst_183 = arith.constant dense<0.000000e+00> : vector<2x8xf32>
    %489 = vector.multi_reduction <add>, %488, %cst_183 [2] : vector<2x8x8xf32> to vector<2x8xf32>
    %490 = vector.shape_cast %489 : vector<2x8xf32> to vector<2x8x1xf32>
    %491 = vector.broadcast %490 : vector<2x8x1xf32> to vector<2x8x8xf32>
    %492 = arith.divf %488, %491 : vector<2x8x8xf32>
    %493 = arith.truncf %492 : vector<2x8x8xf32> to vector<2x8x8xbf16>
    "tpu.trace_start"() <{level = 10 : i32, message = "bqk,bkd->bqd"}> : () -> ()
    %cst_184 = arith.constant dense<0.000000e+00> : vector<2x8x8xf32>
    %494 = tpu.matmul %493, %482, %cst_184 {dimension_numbers = #tpu.dot_dimension_numbers<[2], [1], [1], [2], [0, 0, 0, 1, 1, 2], [0], [0]>} : vector<2x8x8xbf16>, vector<2x8x8xbf16>, vector<2x8x8xf32> -> vector<2x8x8xf32>
    "tpu.trace_stop"() : () -> ()
    %495 = vector.shape_cast %494 : vector<2x8x8xf32> to vector<16x8xf32>
    %c0_185 = arith.constant 0 : index
    %c48_186 = arith.constant 48 : index
    %496 = vector.load %arg19[%c0_185, %c48_186] : memref<16x64xf32, #tpu.memory_space<vmem>>, vector<16x8xf32>
    tpu.vector_store %arg19[%c0_185, %c48_186], %495 {strides = array<i32>} : memref<16x64xf32, #tpu.memory_space<vmem>>, vector<16x8xf32>,
    %497 = vector.extract_strided_slice %356 {offsets = [0, 56], sizes = [16, 8], strides = [1, 1]} : vector<16x192xbf16> to vector<16x8xbf16>
    %498 = vector.shape_cast %497 : vector<16x8xbf16> to vector<2x8x8xbf16>
    %499 = vector.extract_strided_slice %356 {offsets = [0, 120], sizes = [16, 8], strides = [1, 1]} : vector<16x192xbf16> to vector<16x8xbf16>
    %500 = vector.shape_cast %499 : vector<16x8xbf16> to vector<2x8x8xbf16>
    %501 = vector.extract_strided_slice %356 {offsets = [0, 184], sizes = [16, 8], strides = [1, 1]} : vector<16x192xbf16> to vector<16x8xbf16>
    %502 = vector.shape_cast %501 : vector<16x8xbf16> to vector<2x8x8xbf16>
    "tpu.trace_start"() <{level = 10 : i32, message = "bqd,bkd->bqk"}> : () -> ()
    %cst_187 = arith.constant dense<0.000000e+00> : vector<2x8x8xf32>
    %503 = tpu.matmul %498, %500, %cst_187 {dimension_numbers = #tpu.dot_dimension_numbers<[2], [2], [1], [1], [0, 0, 0, 1, 1, 1], [0], [0]>} : vector<2x8x8xbf16>, vector<2x8x8xbf16>, vector<2x8x8xf32> -> vector<2x8x8xf32>
    "tpu.trace_stop"() : () -> ()
    %cst_188 = arith.constant dense<0xFF800000> : vector<2x8xf32>
    %504 = vector.multi_reduction <maximumf>, %503, %cst_188 [2] : vector<2x8x8xf32> to vector<2x8xf32>
    %505 = vector.shape_cast %504 : vector<2x8xf32> to vector<2x8x1xf32>
    %506 = vector.broadcast %505 : vector<2x8x1xf32> to vector<2x8x8xf32>
    %507 = arith.subf %503, %506 : vector<2x8x8xf32>
    %508 = math.exp %507 : vector<2x8x8xf32>
    %cst_189 = arith.constant dense<0.000000e+00> : vector<2x8xf32>
    %509 = vector.multi_reduction <add>, %508, %cst_189 [2] : vector<2x8x8xf32> to vector<2x8xf32>
    %510 = vector.shape_cast %509 : vector<2x8xf32> to vector<2x8x1xf32>
    %511 = vector.broadcast %510 : vector<2x8x1xf32> to vector<2x8x8xf32>
    %512 = arith.divf %508, %511 : vector<2x8x8xf32>
    %513 = arith.truncf %512 : vector<2x8x8xf32> to vector<2x8x8xbf16>
    "tpu.trace_start"() <{level = 10 : i32, message = "bqk,bkd->bqd"}> : () -> ()
    %cst_190 = arith.constant dense<0.000000e+00> : vector<2x8x8xf32>
    %514 = tpu.matmul %513, %502, %cst_190 {dimension_numbers = #tpu.dot_dimension_numbers<[2], [1], [1], [2], [0, 0, 0, 1, 1, 2], [0], [0]>} : vector<2x8x8xbf16>, vector<2x8x8xbf16>, vector<2x8x8xf32> -> vector<2x8x8xf32>
    "tpu.trace_stop"() : () -> ()
    %515 = vector.shape_cast %514 : vector<2x8x8xf32> to vector<16x8xf32>
    %c0_191 = arith.constant 0 : index
    %c56_192 = arith.constant 56 : index
    %516 = vector.load %arg19[%c0_191, %c56_192] : memref<16x64xf32, #tpu.memory_space<vmem>>, vector<16x8xf32>
    tpu.vector_store %arg19[%c0_191, %c56_192], %515 {strides = array<i32>} : memref<16x64xf32, #tpu.memory_space<vmem>>, vector<16x8xf32>,
    %c0_193 = arith.constant 0 : index
    %c0_194 = arith.constant 0 : index
    %517 = vector.load %arg19[%c0_193, %c0_194] : memref<16x64xf32, #tpu.memory_space<vmem>>, vector<16x64xf32>
    %518 = arith.truncf %517 : vector<16x64xf32> to vector<16x64xbf16>
    %c1_195 = arith.constant 1 : index
    %c0_196 = arith.constant 0 : index
    %c0_197 = arith.constant 0 : index
    %519 = vector.load %arg6[%c1_195, %c0_196, %c0_197] : memref<3x64x64xbf16, #tpu.memory_space<vmem>>, vector<1x64x64xbf16>
    %520 = vector.shape_cast %519 : vector<1x64x64xbf16> to vector<64x64xbf16>
    %cst_198 = arith.constant dense<0.000000e+00> : vector<16x64xf32>
    %521 = tpu.matmul %518, %520, %cst_198 {dimension_numbers = #tpu.dot_dimension_numbers<[1], [0], [0], [1], [0, 0, 1, 1], [], []>} : vector<16x64xbf16>, vector<64x64xbf16>, vector<16x64xf32> -> vector<16x64xf32>
    %c1_199 = arith.constant 1 : index
    %c0_200 = arith.constant 0 : index
    %c0_201 = arith.constant 0 : index
    %522 = vector.load %arg7[%c1_199, %c0_200, %c0_201] : memref<3x1x64xf32, #tpu.memory_space<vmem>>, vector<1x1x64xf32>
    %523 = vector.shape_cast %522 : vector<1x1x64xf32> to vector<1x64xf32>
    %524 = vector.broadcast %523 : vector<1x64xf32> to vector<16x64xf32>
    %525 = arith.addf %521, %524 : vector<16x64xf32>
    %526 = arith.addf %347, %525 : vector<16x64xf32>
    %c1_202 = arith.constant 1 : index
    %c0_203 = arith.constant 0 : index
    %c0_204 = arith.constant 0 : index
    %527 = vector.load %arg8[%c1_202, %c0_203, %c0_204] : memref<3x1x64xf32, #tpu.memory_space<vmem>>, vector<1x1x64xf32>
    %528 = vector.shape_cast %527 : vector<1x1x64xf32> to vector<1x64xf32>
    %c1_205 = arith.constant 1 : index
    %c0_206 = arith.constant 0 : index
    %c0_207 = arith.constant 0 : index
    %529 = vector.load %arg9[%c1_205, %c0_206, %c0_207] : memref<3x1x64xf32, #tpu.memory_space<vmem>>, vector<1x1x64xf32>
    %530 = vector.shape_cast %529 : vector<1x1x64xf32> to vector<1x64xf32>
    %cst_208 = arith.constant dense<0.000000e+00> : vector<16xf32>
    %531 = vector.multi_reduction <add>, %526, %cst_208 [1] : vector<16x64xf32> to vector<16xf32>
    %532 = vector.shape_cast %531 : vector<16xf32> to vector<16x1xf32>
    %cst_209 = arith.constant 6.400000e+01 : f32
    %533 = vector.broadcast %cst_209 : f32 to vector<16x1xf32>
    %534 = arith.divf %532, %533 : vector<16x1xf32>
    %535 = vector.broadcast %534 : vector<16x1xf32> to vector<16x64xf32>
    %536 = arith.subf %526, %535 : vector<16x64xf32>
    %537 = arith.mulf %536, %536 : vector<16x64xf32>
    %cst_210 = arith.constant dense<0.000000e+00> : vector<16xf32>
    %538 = vector.multi_reduction <add>, %537, %cst_210 [1] : vector<16x64xf32> to vector<16xf32>
    %539 = vector.shape_cast %538 : vector<16xf32> to vector<16x1xf32>
    %cst_211 = arith.constant 6.400000e+01 : f32
    %540 = vector.broadcast %cst_211 : f32 to vector<16x1xf32>
    %541 = arith.divf %539, %540 : vector<16x1xf32>
    %542 = vector.broadcast %534 : vector<16x1xf32> to vector<16x64xf32>
    %543 = arith.subf %526, %542 : vector<16x64xf32>
    %cst_212 = arith.constant 9.99999974E-6 : f32
    %544 = vector.broadcast %cst_212 : f32 to vector<16x1xf32>
    %545 = arith.addf %541, %544 : vector<16x1xf32>
    %546 = math.rsqrt %545 : vector<16x1xf32>
    %547 = vector.broadcast %546 : vector<16x1xf32> to vector<16x64xf32>
    %548 = arith.mulf %543, %547 : vector<16x64xf32>
    %549 = vector.broadcast %528 : vector<1x64xf32> to vector<16x64xf32>
    %550 = arith.mulf %548, %549 : vector<16x64xf32>
    %551 = vector.broadcast %530 : vector<1x64xf32> to vector<16x64xf32>
    %552 = arith.addf %550, %551 : vector<16x64xf32>
    %553 = arith.truncf %552 : vector<16x64xf32> to vector<16x64xbf16>
    %cst_213 = arith.constant 0.000000e+00 : f32
    %554 = vector.broadcast %cst_213 : f32 to vector<16x64xf32>
    %c1_214 = arith.constant 1 : index
    %c0_215 = arith.constant 0 : index
    %c0_216 = arith.constant 0 : index
    %555 = vector.load %arg10[%c1_214, %c0_215, %c0_216] : memref<3x64x2048xbf16, #tpu.memory_space<vmem>>, vector<1x64x512xbf16>
    %556 = vector.shape_cast %555 : vector<1x64x512xbf16> to vector<64x512xbf16>
    %cst_217 = arith.constant dense<0.000000e+00> : vector<16x512xf32>
    %557 = tpu.matmul %553, %556, %cst_217 {dimension_numbers = #tpu.dot_dimension_numbers<[1], [0], [0], [1], [0, 0, 1, 1], [], []>} : vector<16x64xbf16>, vector<64x512xbf16>, vector<16x512xf32> -> vector<16x512xf32>
    %c1_218 = arith.constant 1 : index
    %c0_219 = arith.constant 0 : index
    %c0_220 = arith.constant 0 : index
    %558 = vector.load %arg11[%c1_218, %c0_219, %c0_220] : memref<3x1x2048xf32, #tpu.memory_space<vmem>>, vector<1x1x512xf32>
    %559 = vector.shape_cast %558 : vector<1x1x512xf32> to vector<1x512xf32>
    %560 = vector.broadcast %559 : vector<1x512xf32> to vector<16x512xf32>
    %561 = arith.addf %557, %560 : vector<16x512xf32>
    %cst_221 = arith.constant 0.000000e+00 : f32
    %562 = vector.broadcast %cst_221 : f32 to vector<16x512xf32>
    %563 = arith.maximumf %561, %562 : vector<16x512xf32>
    %564 = arith.truncf %563 : vector<16x512xf32> to vector<16x512xbf16>
    %c1_222 = arith.constant 1 : index
    %c0_223 = arith.constant 0 : index
    %c0_224 = arith.constant 0 : index
    %565 = vector.load %arg12[%c1_222, %c0_223, %c0_224] : memref<3x2048x64xbf16, #tpu.memory_space<vmem>>, vector<1x512x64xbf16>
    %566 = vector.shape_cast %565 : vector<1x512x64xbf16> to vector<512x64xbf16>
    %cst_225 = arith.constant dense<0.000000e+00> : vector<16x64xf32>
    %567 = tpu.matmul %564, %566, %cst_225 {dimension_numbers = #tpu.dot_dimension_numbers<[1], [0], [0], [1], [0, 0, 1, 1], [], []>} : vector<16x512xbf16>, vector<512x64xbf16>, vector<16x64xf32> -> vector<16x64xf32>
    %568 = arith.addf %554, %567 : vector<16x64xf32>
    %c1_226 = arith.constant 1 : index
    %c0_227 = arith.constant 0 : index
    %c512_228 = arith.constant 512 : index
    %569 = vector.load %arg10[%c1_226, %c0_227, %c512_228] : memref<3x64x2048xbf16, #tpu.memory_space<vmem>>, vector<1x64x512xbf16>
    %570 = vector.shape_cast %569 : vector<1x64x512xbf16> to vector<64x512xbf16>
    %cst_229 = arith.constant dense<0.000000e+00> : vector<16x512xf32>
    %571 = tpu.matmul %553, %570, %cst_229 {dimension_numbers = #tpu.dot_dimension_numbers<[1], [0], [0], [1], [0, 0, 1, 1], [], []>} : vector<16x64xbf16>, vector<64x512xbf16>, vector<16x512xf32> -> vector<16x512xf32>
    %c1_230 = arith.constant 1 : index
    %c0_231 = arith.constant 0 : index
    %c512_232 = arith.constant 512 : index
    %572 = vector.load %arg11[%c1_230, %c0_231, %c512_232] : memref<3x1x2048xf32, #tpu.memory_space<vmem>>, vector<1x1x512xf32>
    %573 = vector.shape_cast %572 : vector<1x1x512xf32> to vector<1x512xf32>
    %574 = vector.broadcast %573 : vector<1x512xf32> to vector<16x512xf32>
    %575 = arith.addf %571, %574 : vector<16x512xf32>
    %cst_233 = arith.constant 0.000000e+00 : f32
    %576 = vector.broadcast %cst_233 : f32 to vector<16x512xf32>
    %577 = arith.maximumf %575, %576 : vector<16x512xf32>
    %578 = arith.truncf %577 : vector<16x512xf32> to vector<16x512xbf16>
    %c1_234 = arith.constant 1 : index
    %c512_235 = arith.constant 512 : index
    %c0_236 = arith.constant 0 : index
    %579 = vector.load %arg12[%c1_234, %c512_235, %c0_236] : memref<3x2048x64xbf16, #tpu.memory_space<vmem>>, vector<1x512x64xbf16>
    %580 = vector.shape_cast %579 : vector<1x512x64xbf16> to vector<512x64xbf16>
    %cst_237 = arith.constant dense<0.000000e+00> : vector<16x64xf32>
    %581 = tpu.matmul %578, %580, %cst_237 {dimension_numbers = #tpu.dot_dimension_numbers<[1], [0], [0], [1], [0, 0, 1, 1], [], []>} : vector<16x512xbf16>, vector<512x64xbf16>, vector<16x64xf32> -> vector<16x64xf32>
    %582 = arith.addf %568, %581 : vector<16x64xf32>
    %c1_238 = arith.constant 1 : index
    %c0_239 = arith.constant 0 : index
    %c1024_240 = arith.constant 1024 : index
    %583 = vector.load %arg10[%c1_238, %c0_239, %c1024_240] : memref<3x64x2048xbf16, #tpu.memory_space<vmem>>, vector<1x64x512xbf16>
    %584 = vector.shape_cast %583 : vector<1x64x512xbf16> to vector<64x512xbf16>
    %cst_241 = arith.constant dense<0.000000e+00> : vector<16x512xf32>
    %585 = tpu.matmul %553, %584, %cst_241 {dimension_numbers = #tpu.dot_dimension_numbers<[1], [0], [0], [1], [0, 0, 1, 1], [], []>} : vector<16x64xbf16>, vector<64x512xbf16>, vector<16x512xf32> -> vector<16x512xf32>
    %c1_242 = arith.constant 1 : index
    %c0_243 = arith.constant 0 : index
    %c1024_244 = arith.constant 1024 : index
    %586 = vector.load %arg11[%c1_242, %c0_243, %c1024_244] : memref<3x1x2048xf32, #tpu.memory_space<vmem>>, vector<1x1x512xf32>
    %587 = vector.shape_cast %586 : vector<1x1x512xf32> to vector<1x512xf32>
    %588 = vector.broadcast %587 : vector<1x512xf32> to vector<16x512xf32>
    %589 = arith.addf %585, %588 : vector<16x512xf32>
    %cst_245 = arith.constant 0.000000e+00 : f32
    %590 = vector.broadcast %cst_245 : f32 to vector<16x512xf32>
    %591 = arith.maximumf %589, %590 : vector<16x512xf32>
    %592 = arith.truncf %591 : vector<16x512xf32> to vector<16x512xbf16>
    %c1_246 = arith.constant 1 : index
    %c1024_247 = arith.constant 1024 : index
    %c0_248 = arith.constant 0 : index
    %593 = vector.load %arg12[%c1_246, %c1024_247, %c0_248] : memref<3x2048x64xbf16, #tpu.memory_space<vmem>>, vector<1x512x64xbf16>
    %594 = vector.shape_cast %593 : vector<1x512x64xbf16> to vector<512x64xbf16>
    %cst_249 = arith.constant dense<0.000000e+00> : vector<16x64xf32>
    %595 = tpu.matmul %592, %594, %cst_249 {dimension_numbers = #tpu.dot_dimension_numbers<[1], [0], [0], [1], [0, 0, 1, 1], [], []>} : vector<16x512xbf16>, vector<512x64xbf16>, vector<16x64xf32> -> vector<16x64xf32>
    %596 = arith.addf %582, %595 : vector<16x64xf32>
    %c1_250 = arith.constant 1 : index
    %c0_251 = arith.constant 0 : index
    %c1536_252 = arith.constant 1536 : index
    %597 = vector.load %arg10[%c1_250, %c0_251, %c1536_252] : memref<3x64x2048xbf16, #tpu.memory_space<vmem>>, vector<1x64x512xbf16>
    %598 = vector.shape_cast %597 : vector<1x64x512xbf16> to vector<64x512xbf16>
    %cst_253 = arith.constant dense<0.000000e+00> : vector<16x512xf32>
    %599 = tpu.matmul %553, %598, %cst_253 {dimension_numbers = #tpu.dot_dimension_numbers<[1], [0], [0], [1], [0, 0, 1, 1], [], []>} : vector<16x64xbf16>, vector<64x512xbf16>, vector<16x512xf32> -> vector<16x512xf32>
    %c1_254 = arith.constant 1 : index
    %c0_255 = arith.constant 0 : index
    %c1536_256 = arith.constant 1536 : index
    %600 = vector.load %arg11[%c1_254, %c0_255, %c1536_256] : memref<3x1x2048xf32, #tpu.memory_space<vmem>>, vector<1x1x512xf32>
    %601 = vector.shape_cast %600 : vector<1x1x512xf32> to vector<1x512xf32>
    %602 = vector.broadcast %601 : vector<1x512xf32> to vector<16x512xf32>
    %603 = arith.addf %599, %602 : vector<16x512xf32>
    %cst_257 = arith.constant 0.000000e+00 : f32
    %604 = vector.broadcast %cst_257 : f32 to vector<16x512xf32>
    %605 = arith.maximumf %603, %604 : vector<16x512xf32>
    %606 = arith.truncf %605 : vector<16x512xf32> to vector<16x512xbf16>
    %c1_258 = arith.constant 1 : index
    %c1536_259 = arith.constant 1536 : index
    %c0_260 = arith.constant 0 : index
    %607 = vector.load %arg12[%c1_258, %c1536_259, %c0_260] : memref<3x2048x64xbf16, #tpu.memory_space<vmem>>, vector<1x512x64xbf16>
    %608 = vector.shape_cast %607 : vector<1x512x64xbf16> to vector<512x64xbf16>
    %cst_261 = arith.constant dense<0.000000e+00> : vector<16x64xf32>
    %609 = tpu.matmul %606, %608, %cst_261 {dimension_numbers = #tpu.dot_dimension_numbers<[1], [0], [0], [1], [0, 0, 1, 1], [], []>} : vector<16x512xbf16>, vector<512x64xbf16>, vector<16x64xf32> -> vector<16x64xf32>
    %610 = arith.addf %596, %609 : vector<16x64xf32>
    %c1_262 = arith.constant 1 : index
    %c0_263 = arith.constant 0 : index
    %c0_264 = arith.constant 0 : index
    %611 = vector.load %arg13[%c1_262, %c0_263, %c0_264] : memref<3x1x64xf32, #tpu.memory_space<vmem>>, vector<1x1x64xf32>
    %612 = vector.shape_cast %611 : vector<1x1x64xf32> to vector<1x64xf32>
    %613 = vector.broadcast %612 : vector<1x64xf32> to vector<16x64xf32>
    %614 = arith.addf %610, %613 : vector<16x64xf32>
    %615 = arith.addf %552, %614 : vector<16x64xf32>
    %c1_265 = arith.constant 1 : index
    %c0_266 = arith.constant 0 : index
    %c0_267 = arith.constant 0 : index
    %616 = vector.load %arg14[%c1_265, %c0_266, %c0_267] : memref<3x1x64xf32, #tpu.memory_space<vmem>>, vector<1x1x64xf32>
    %617 = vector.shape_cast %616 : vector<1x1x64xf32> to vector<1x64xf32>
    %c1_268 = arith.constant 1 : index
    %c0_269 = arith.constant 0 : index
    %c0_270 = arith.constant 0 : index
    %618 = vector.load %arg15[%c1_268, %c0_269, %c0_270] : memref<3x1x64xf32, #tpu.memory_space<vmem>>, vector<1x1x64xf32>
    %619 = vector.shape_cast %618 : vector<1x1x64xf32> to vector<1x64xf32>
    %cst_271 = arith.constant dense<0.000000e+00> : vector<16xf32>
    %620 = vector.multi_reduction <add>, %615, %cst_271 [1] : vector<16x64xf32> to vector<16xf32>
    %621 = vector.shape_cast %620 : vector<16xf32> to vector<16x1xf32>
    %cst_272 = arith.constant 6.400000e+01 : f32
    %622 = vector.broadcast %cst_272 : f32 to vector<16x1xf32>
    %623 = arith.divf %621, %622 : vector<16x1xf32>
    %624 = vector.broadcast %623 : vector<16x1xf32> to vector<16x64xf32>
    %625 = arith.subf %615, %624 : vector<16x64xf32>
    %626 = arith.mulf %625, %625 : vector<16x64xf32>
    %cst_273 = arith.constant dense<0.000000e+00> : vector<16xf32>
    %627 = vector.multi_reduction <add>, %626, %cst_273 [1] : vector<16x64xf32> to vector<16xf32>
    %628 = vector.shape_cast %627 : vector<16xf32> to vector<16x1xf32>
    %cst_274 = arith.constant 6.400000e+01 : f32
    %629 = vector.broadcast %cst_274 : f32 to vector<16x1xf32>
    %630 = arith.divf %628, %629 : vector<16x1xf32>
    %631 = vector.broadcast %623 : vector<16x1xf32> to vector<16x64xf32>
    %632 = arith.subf %615, %631 : vector<16x64xf32>
    %cst_275 = arith.constant 9.99999974E-6 : f32
    %633 = vector.broadcast %cst_275 : f32 to vector<16x1xf32>
    %634 = arith.addf %630, %633 : vector<16x1xf32>
    %635 = math.rsqrt %634 : vector<16x1xf32>
    %636 = vector.broadcast %635 : vector<16x1xf32> to vector<16x64xf32>
    %637 = arith.mulf %632, %636 : vector<16x64xf32>
    %638 = vector.broadcast %617 : vector<1x64xf32> to vector<16x64xf32>
    %639 = arith.mulf %637, %638 : vector<16x64xf32>
    %640 = vector.broadcast %619 : vector<1x64xf32> to vector<16x64xf32>
    %641 = arith.addf %639, %640 : vector<16x64xf32>
    %642 = arith.truncf %641 : vector<16x64xf32> to vector<16x64xbf16>
    %c2 = arith.constant 2 : index
    %c0_276 = arith.constant 0 : index
    %c0_277 = arith.constant 0 : index
    %643 = vector.load %arg4[%c2, %c0_276, %c0_277] : memref<3x64x192xbf16, #tpu.memory_space<vmem>>, vector<1x64x192xbf16>
    %644 = vector.shape_cast %643 : vector<1x64x192xbf16> to vector<64x192xbf16>
    %cst_278 = arith.constant dense<0.000000e+00> : vector<16x192xf32>
    %645 = tpu.matmul %642, %644, %cst_278 {dimension_numbers = #tpu.dot_dimension_numbers<[1], [0], [0], [1], [0, 0, 1, 1], [], []>} : vector<16x64xbf16>, vector<64x192xbf16>, vector<16x192xf32> -> vector<16x192xf32>
    %c2_279 = arith.constant 2 : index
    %c0_280 = arith.constant 0 : index
    %c0_281 = arith.constant 0 : index
    %646 = vector.load %arg5[%c2_279, %c0_280, %c0_281] : memref<3x1x192xf32, #tpu.memory_space<vmem>>, vector<1x1x192xf32>
    %647 = vector.shape_cast %646 : vector<1x1x192xf32> to vector<1x192xf32>
    %648 = vector.broadcast %647 : vector<1x192xf32> to vector<16x192xf32>
    %649 = arith.addf %645, %648 : vector<16x192xf32>
    %650 = arith.truncf %649 : vector<16x192xf32> to vector<16x192xbf16>
    %651 = vector.extract_strided_slice %650 {offsets = [0, 0], sizes = [16, 8], strides = [1, 1]} : vector<16x192xbf16> to vector<16x8xbf16>
    %652 = vector.shape_cast %651 : vector<16x8xbf16> to vector<2x8x8xbf16>
    %653 = vector.extract_strided_slice %650 {offsets = [0, 64], sizes = [16, 8], strides = [1, 1]} : vector<16x192xbf16> to vector<16x8xbf16>
    %654 = vector.shape_cast %653 : vector<16x8xbf16> to vector<2x8x8xbf16>
    %655 = vector.extract_strided_slice %650 {offsets = [0, 128], sizes = [16, 8], strides = [1, 1]} : vector<16x192xbf16> to vector<16x8xbf16>
    %656 = vector.shape_cast %655 : vector<16x8xbf16> to vector<2x8x8xbf16>
    "tpu.trace_start"() <{level = 10 : i32, message = "bqd,bkd->bqk"}> : () -> ()
    %cst_282 = arith.constant dense<0.000000e+00> : vector<2x8x8xf32>
    %657 = tpu.matmul %652, %654, %cst_282 {dimension_numbers = #tpu.dot_dimension_numbers<[2], [2], [1], [1], [0, 0, 0, 1, 1, 1], [0], [0]>} : vector<2x8x8xbf16>, vector<2x8x8xbf16>, vector<2x8x8xf32> -> vector<2x8x8xf32>
    "tpu.trace_stop"() : () -> ()
    %cst_283 = arith.constant dense<0xFF800000> : vector<2x8xf32>
    %658 = vector.multi_reduction <maximumf>, %657, %cst_283 [2] : vector<2x8x8xf32> to vector<2x8xf32>
    %659 = vector.shape_cast %658 : vector<2x8xf32> to vector<2x8x1xf32>
    %660 = vector.broadcast %659 : vector<2x8x1xf32> to vector<2x8x8xf32>
    %661 = arith.subf %657, %660 : vector<2x8x8xf32>
    %662 = math.exp %661 : vector<2x8x8xf32>
    %cst_284 = arith.constant dense<0.000000e+00> : vector<2x8xf32>
    %663 = vector.multi_reduction <add>, %662, %cst_284 [2] : vector<2x8x8xf32> to vector<2x8xf32>
    %664 = vector.shape_cast %663 : vector<2x8xf32> to vector<2x8x1xf32>
    %665 = vector.broadcast %664 : vector<2x8x1xf32> to vector<2x8x8xf32>
    %666 = arith.divf %662, %665 : vector<2x8x8xf32>
    %667 = arith.truncf %666 : vector<2x8x8xf32> to vector<2x8x8xbf16>
    "tpu.trace_start"() <{level = 10 : i32, message = "bqk,bkd->bqd"}> : () -> ()
    %cst_285 = arith.constant dense<0.000000e+00> : vector<2x8x8xf32>
    %668 = tpu.matmul %667, %656, %cst_285 {dimension_numbers = #tpu.dot_dimension_numbers<[2], [1], [1], [2], [0, 0, 0, 1, 1, 2], [0], [0]>} : vector<2x8x8xbf16>, vector<2x8x8xbf16>, vector<2x8x8xf32> -> vector<2x8x8xf32>
    "tpu.trace_stop"() : () -> ()
    %669 = vector.shape_cast %668 : vector<2x8x8xf32> to vector<16x8xf32>
    %c0_286 = arith.constant 0 : index
    %c0_287 = arith.constant 0 : index
    %670 = vector.load %arg19[%c0_286, %c0_287] : memref<16x64xf32, #tpu.memory_space<vmem>>, vector<16x8xf32>
    tpu.vector_store %arg19[%c0_286, %c0_287], %669 {strides = array<i32>} : memref<16x64xf32, #tpu.memory_space<vmem>>, vector<16x8xf32>,
    %671 = vector.extract_strided_slice %650 {offsets = [0, 8], sizes = [16, 8], strides = [1, 1]} : vector<16x192xbf16> to vector<16x8xbf16>
    %672 = vector.shape_cast %671 : vector<16x8xbf16> to vector<2x8x8xbf16>
    %673 = vector.extract_strided_slice %650 {offsets = [0, 72], sizes = [16, 8], strides = [1, 1]} : vector<16x192xbf16> to vector<16x8xbf16>
    %674 = vector.shape_cast %673 : vector<16x8xbf16> to vector<2x8x8xbf16>
    %675 = vector.extract_strided_slice %650 {offsets = [0, 136], sizes = [16, 8], strides = [1, 1]} : vector<16x192xbf16> to vector<16x8xbf16>
    %676 = vector.shape_cast %675 : vector<16x8xbf16> to vector<2x8x8xbf16>
    "tpu.trace_start"() <{level = 10 : i32, message = "bqd,bkd->bqk"}> : () -> ()
    %cst_288 = arith.constant dense<0.000000e+00> : vector<2x8x8xf32>
    %677 = tpu.matmul %672, %674, %cst_288 {dimension_numbers = #tpu.dot_dimension_numbers<[2], [2], [1], [1], [0, 0, 0, 1, 1, 1], [0], [0]>} : vector<2x8x8xbf16>, vector<2x8x8xbf16>, vector<2x8x8xf32> -> vector<2x8x8xf32>
    "tpu.trace_stop"() : () -> ()
    %cst_289 = arith.constant dense<0xFF800000> : vector<2x8xf32>
    %678 = vector.multi_reduction <maximumf>, %677, %cst_289 [2] : vector<2x8x8xf32> to vector<2x8xf32>
    %679 = vector.shape_cast %678 : vector<2x8xf32> to vector<2x8x1xf32>
    %680 = vector.broadcast %679 : vector<2x8x1xf32> to vector<2x8x8xf32>
    %681 = arith.subf %677, %680 : vector<2x8x8xf32>
    %682 = math.exp %681 : vector<2x8x8xf32>
    %cst_290 = arith.constant dense<0.000000e+00> : vector<2x8xf32>
    %683 = vector.multi_reduction <add>, %682, %cst_290 [2] : vector<2x8x8xf32> to vector<2x8xf32>
    %684 = vector.shape_cast %683 : vector<2x8xf32> to vector<2x8x1xf32>
    %685 = vector.broadcast %684 : vector<2x8x1xf32> to vector<2x8x8xf32>
    %686 = arith.divf %682, %685 : vector<2x8x8xf32>
    %687 = arith.truncf %686 : vector<2x8x8xf32> to vector<2x8x8xbf16>
    "tpu.trace_start"() <{level = 10 : i32, message = "bqk,bkd->bqd"}> : () -> ()
    %cst_291 = arith.constant dense<0.000000e+00> : vector<2x8x8xf32>
    %688 = tpu.matmul %687, %676, %cst_291 {dimension_numbers = #tpu.dot_dimension_numbers<[2], [1], [1], [2], [0, 0, 0, 1, 1, 2], [0], [0]>} : vector<2x8x8xbf16>, vector<2x8x8xbf16>, vector<2x8x8xf32> -> vector<2x8x8xf32>
    "tpu.trace_stop"() : () -> ()
    %689 = vector.shape_cast %688 : vector<2x8x8xf32> to vector<16x8xf32>
    %c0_292 = arith.constant 0 : index
    %c8_293 = arith.constant 8 : index
    %690 = vector.load %arg19[%c0_292, %c8_293] : memref<16x64xf32, #tpu.memory_space<vmem>>, vector<16x8xf32>
    tpu.vector_store %arg19[%c0_292, %c8_293], %689 {strides = array<i32>} : memref<16x64xf32, #tpu.memory_space<vmem>>, vector<16x8xf32>,
    %691 = vector.extract_strided_slice %650 {offsets = [0, 16], sizes = [16, 8], strides = [1, 1]} : vector<16x192xbf16> to vector<16x8xbf16>
    %692 = vector.shape_cast %691 : vector<16x8xbf16> to vector<2x8x8xbf16>
    %693 = vector.extract_strided_slice %650 {offsets = [0, 80], sizes = [16, 8], strides = [1, 1]} : vector<16x192xbf16> to vector<16x8xbf16>
    %694 = vector.shape_cast %693 : vector<16x8xbf16> to vector<2x8x8xbf16>
    %695 = vector.extract_strided_slice %650 {offsets = [0, 144], sizes = [16, 8], strides = [1, 1]} : vector<16x192xbf16> to vector<16x8xbf16>
    %696 = vector.shape_cast %695 : vector<16x8xbf16> to vector<2x8x8xbf16>
    "tpu.trace_start"() <{level = 10 : i32, message = "bqd,bkd->bqk"}> : () -> ()
    %cst_294 = arith.constant dense<0.000000e+00> : vector<2x8x8xf32>
    %697 = tpu.matmul %692, %694, %cst_294 {dimension_numbers = #tpu.dot_dimension_numbers<[2], [2], [1], [1], [0, 0, 0, 1, 1, 1], [0], [0]>} : vector<2x8x8xbf16>, vector<2x8x8xbf16>, vector<2x8x8xf32> -> vector<2x8x8xf32>
    "tpu.trace_stop"() : () -> ()
    %cst_295 = arith.constant dense<0xFF800000> : vector<2x8xf32>
    %698 = vector.multi_reduction <maximumf>, %697, %cst_295 [2] : vector<2x8x8xf32> to vector<2x8xf32>
    %699 = vector.shape_cast %698 : vector<2x8xf32> to vector<2x8x1xf32>
    %700 = vector.broadcast %699 : vector<2x8x1xf32> to vector<2x8x8xf32>
    %701 = arith.subf %697, %700 : vector<2x8x8xf32>
    %702 = math.exp %701 : vector<2x8x8xf32>
    %cst_296 = arith.constant dense<0.000000e+00> : vector<2x8xf32>
    %703 = vector.multi_reduction <add>, %702, %cst_296 [2] : vector<2x8x8xf32> to vector<2x8xf32>
    %704 = vector.shape_cast %703 : vector<2x8xf32> to vector<2x8x1xf32>
    %705 = vector.broadcast %704 : vector<2x8x1xf32> to vector<2x8x8xf32>
    %706 = arith.divf %702, %705 : vector<2x8x8xf32>
    %707 = arith.truncf %706 : vector<2x8x8xf32> to vector<2x8x8xbf16>
    "tpu.trace_start"() <{level = 10 : i32, message = "bqk,bkd->bqd"}> : () -> ()
    %cst_297 = arith.constant dense<0.000000e+00> : vector<2x8x8xf32>
    %708 = tpu.matmul %707, %696, %cst_297 {dimension_numbers = #tpu.dot_dimension_numbers<[2], [1], [1], [2], [0, 0, 0, 1, 1, 2], [0], [0]>} : vector<2x8x8xbf16>, vector<2x8x8xbf16>, vector<2x8x8xf32> -> vector<2x8x8xf32>
    "tpu.trace_stop"() : () -> ()
    %709 = vector.shape_cast %708 : vector<2x8x8xf32> to vector<16x8xf32>
    %c0_298 = arith.constant 0 : index
    %c16_299 = arith.constant 16 : index
    %710 = vector.load %arg19[%c0_298, %c16_299] : memref<16x64xf32, #tpu.memory_space<vmem>>, vector<16x8xf32>
    tpu.vector_store %arg19[%c0_298, %c16_299], %709 {strides = array<i32>} : memref<16x64xf32, #tpu.memory_space<vmem>>, vector<16x8xf32>,
    %711 = vector.extract_strided_slice %650 {offsets = [0, 24], sizes = [16, 8], strides = [1, 1]} : vector<16x192xbf16> to vector<16x8xbf16>
    %712 = vector.shape_cast %711 : vector<16x8xbf16> to vector<2x8x8xbf16>
    %713 = vector.extract_strided_slice %650 {offsets = [0, 88], sizes = [16, 8], strides = [1, 1]} : vector<16x192xbf16> to vector<16x8xbf16>
    %714 = vector.shape_cast %713 : vector<16x8xbf16> to vector<2x8x8xbf16>
    %715 = vector.extract_strided_slice %650 {offsets = [0, 152], sizes = [16, 8], strides = [1, 1]} : vector<16x192xbf16> to vector<16x8xbf16>
    %716 = vector.shape_cast %715 : vector<16x8xbf16> to vector<2x8x8xbf16>
    "tpu.trace_start"() <{level = 10 : i32, message = "bqd,bkd->bqk"}> : () -> ()
    %cst_300 = arith.constant dense<0.000000e+00> : vector<2x8x8xf32>
    %717 = tpu.matmul %712, %714, %cst_300 {dimension_numbers = #tpu.dot_dimension_numbers<[2], [2], [1], [1], [0, 0, 0, 1, 1, 1], [0], [0]>} : vector<2x8x8xbf16>, vector<2x8x8xbf16>, vector<2x8x8xf32> -> vector<2x8x8xf32>
    "tpu.trace_stop"() : () -> ()
    %cst_301 = arith.constant dense<0xFF800000> : vector<2x8xf32>
    %718 = vector.multi_reduction <maximumf>, %717, %cst_301 [2] : vector<2x8x8xf32> to vector<2x8xf32>
    %719 = vector.shape_cast %718 : vector<2x8xf32> to vector<2x8x1xf32>
    %720 = vector.broadcast %719 : vector<2x8x1xf32> to vector<2x8x8xf32>
    %721 = arith.subf %717, %720 : vector<2x8x8xf32>
    %722 = math.exp %721 : vector<2x8x8xf32>
    %cst_302 = arith.constant dense<0.000000e+00> : vector<2x8xf32>
    %723 = vector.multi_reduction <add>, %722, %cst_302 [2] : vector<2x8x8xf32> to vector<2x8xf32>
    %724 = vector.shape_cast %723 : vector<2x8xf32> to vector<2x8x1xf32>
    %725 = vector.broadcast %724 : vector<2x8x1xf32> to vector<2x8x8xf32>
    %726 = arith.divf %722, %725 : vector<2x8x8xf32>
    %727 = arith.truncf %726 : vector<2x8x8xf32> to vector<2x8x8xbf16>
    "tpu.trace_start"() <{level = 10 : i32, message = "bqk,bkd->bqd"}> : () -> ()
    %cst_303 = arith.constant dense<0.000000e+00> : vector<2x8x8xf32>
    %728 = tpu.matmul %727, %716, %cst_303 {dimension_numbers = #tpu.dot_dimension_numbers<[2], [1], [1], [2], [0, 0, 0, 1, 1, 2], [0], [0]>} : vector<2x8x8xbf16>, vector<2x8x8xbf16>, vector<2x8x8xf32> -> vector<2x8x8xf32>
    "tpu.trace_stop"() : () -> ()
    %729 = vector.shape_cast %728 : vector<2x8x8xf32> to vector<16x8xf32>
    %c0_304 = arith.constant 0 : index
    %c24_305 = arith.constant 24 : index
    %730 = vector.load %arg19[%c0_304, %c24_305] : memref<16x64xf32, #tpu.memory_space<vmem>>, vector<16x8xf32>
    tpu.vector_store %arg19[%c0_304, %c24_305], %729 {strides = array<i32>} : memref<16x64xf32, #tpu.memory_space<vmem>>, vector<16x8xf32>,
    %731 = vector.extract_strided_slice %650 {offsets = [0, 32], sizes = [16, 8], strides = [1, 1]} : vector<16x192xbf16> to vector<16x8xbf16>
    %732 = vector.shape_cast %731 : vector<16x8xbf16> to vector<2x8x8xbf16>
    %733 = vector.extract_strided_slice %650 {offsets = [0, 96], sizes = [16, 8], strides = [1, 1]} : vector<16x192xbf16> to vector<16x8xbf16>
    %734 = vector.shape_cast %733 : vector<16x8xbf16> to vector<2x8x8xbf16>
    %735 = vector.extract_strided_slice %650 {offsets = [0, 160], sizes = [16, 8], strides = [1, 1]} : vector<16x192xbf16> to vector<16x8xbf16>
    %736 = vector.shape_cast %735 : vector<16x8xbf16> to vector<2x8x8xbf16>
    "tpu.trace_start"() <{level = 10 : i32, message = "bqd,bkd->bqk"}> : () -> ()
    %cst_306 = arith.constant dense<0.000000e+00> : vector<2x8x8xf32>
    %737 = tpu.matmul %732, %734, %cst_306 {dimension_numbers = #tpu.dot_dimension_numbers<[2], [2], [1], [1], [0, 0, 0, 1, 1, 1], [0], [0]>} : vector<2x8x8xbf16>, vector<2x8x8xbf16>, vector<2x8x8xf32> -> vector<2x8x8xf32>
    "tpu.trace_stop"() : () -> ()
    %cst_307 = arith.constant dense<0xFF800000> : vector<2x8xf32>
    %738 = vector.multi_reduction <maximumf>, %737, %cst_307 [2] : vector<2x8x8xf32> to vector<2x8xf32>
    %739 = vector.shape_cast %738 : vector<2x8xf32> to vector<2x8x1xf32>
    %740 = vector.broadcast %739 : vector<2x8x1xf32> to vector<2x8x8xf32>
    %741 = arith.subf %737, %740 : vector<2x8x8xf32>
    %742 = math.exp %741 : vector<2x8x8xf32>
    %cst_308 = arith.constant dense<0.000000e+00> : vector<2x8xf32>
    %743 = vector.multi_reduction <add>, %742, %cst_308 [2] : vector<2x8x8xf32> to vector<2x8xf32>
    %744 = vector.shape_cast %743 : vector<2x8xf32> to vector<2x8x1xf32>
    %745 = vector.broadcast %744 : vector<2x8x1xf32> to vector<2x8x8xf32>
    %746 = arith.divf %742, %745 : vector<2x8x8xf32>
    %747 = arith.truncf %746 : vector<2x8x8xf32> to vector<2x8x8xbf16>
    "tpu.trace_start"() <{level = 10 : i32, message = "bqk,bkd->bqd"}> : () -> ()
    %cst_309 = arith.constant dense<0.000000e+00> : vector<2x8x8xf32>
    %748 = tpu.matmul %747, %736, %cst_309 {dimension_numbers = #tpu.dot_dimension_numbers<[2], [1], [1], [2], [0, 0, 0, 1, 1, 2], [0], [0]>} : vector<2x8x8xbf16>, vector<2x8x8xbf16>, vector<2x8x8xf32> -> vector<2x8x8xf32>
    "tpu.trace_stop"() : () -> ()
    %749 = vector.shape_cast %748 : vector<2x8x8xf32> to vector<16x8xf32>
    %c0_310 = arith.constant 0 : index
    %c32_311 = arith.constant 32 : index
    %750 = vector.load %arg19[%c0_310, %c32_311] : memref<16x64xf32, #tpu.memory_space<vmem>>, vector<16x8xf32>
    tpu.vector_store %arg19[%c0_310, %c32_311], %749 {strides = array<i32>} : memref<16x64xf32, #tpu.memory_space<vmem>>, vector<16x8xf32>,
    %751 = vector.extract_strided_slice %650 {offsets = [0, 40], sizes = [16, 8], strides = [1, 1]} : vector<16x192xbf16> to vector<16x8xbf16>
    %752 = vector.shape_cast %751 : vector<16x8xbf16> to vector<2x8x8xbf16>
    %753 = vector.extract_strided_slice %650 {offsets = [0, 104], sizes = [16, 8], strides = [1, 1]} : vector<16x192xbf16> to vector<16x8xbf16>
    %754 = vector.shape_cast %753 : vector<16x8xbf16> to vector<2x8x8xbf16>
    %755 = vector.extract_strided_slice %650 {offsets = [0, 168], sizes = [16, 8], strides = [1, 1]} : vector<16x192xbf16> to vector<16x8xbf16>
    %756 = vector.shape_cast %755 : vector<16x8xbf16> to vector<2x8x8xbf16>
    "tpu.trace_start"() <{level = 10 : i32, message = "bqd,bkd->bqk"}> : () -> ()
    %cst_312 = arith.constant dense<0.000000e+00> : vector<2x8x8xf32>
    %757 = tpu.matmul %752, %754, %cst_312 {dimension_numbers = #tpu.dot_dimension_numbers<[2], [2], [1], [1], [0, 0, 0, 1, 1, 1], [0], [0]>} : vector<2x8x8xbf16>, vector<2x8x8xbf16>, vector<2x8x8xf32> -> vector<2x8x8xf32>
    "tpu.trace_stop"() : () -> ()
    %cst_313 = arith.constant dense<0xFF800000> : vector<2x8xf32>
    %758 = vector.multi_reduction <maximumf>, %757, %cst_313 [2] : vector<2x8x8xf32> to vector<2x8xf32>
    %759 = vector.shape_cast %758 : vector<2x8xf32> to vector<2x8x1xf32>
    %760 = vector.broadcast %759 : vector<2x8x1xf32> to vector<2x8x8xf32>
    %761 = arith.subf %757, %760 : vector<2x8x8xf32>
    %762 = math.exp %761 : vector<2x8x8xf32>
    %cst_314 = arith.constant dense<0.000000e+00> : vector<2x8xf32>
    %763 = vector.multi_reduction <add>, %762, %cst_314 [2] : vector<2x8x8xf32> to vector<2x8xf32>
    %764 = vector.shape_cast %763 : vector<2x8xf32> to vector<2x8x1xf32>
    %765 = vector.broadcast %764 : vector<2x8x1xf32> to vector<2x8x8xf32>
    %766 = arith.divf %762, %765 : vector<2x8x8xf32>
    %767 = arith.truncf %766 : vector<2x8x8xf32> to vector<2x8x8xbf16>
    "tpu.trace_start"() <{level = 10 : i32, message = "bqk,bkd->bqd"}> : () -> ()
    %cst_315 = arith.constant dense<0.000000e+00> : vector<2x8x8xf32>
    %768 = tpu.matmul %767, %756, %cst_315 {dimension_numbers = #tpu.dot_dimension_numbers<[2], [1], [1], [2], [0, 0, 0, 1, 1, 2], [0], [0]>} : vector<2x8x8xbf16>, vector<2x8x8xbf16>, vector<2x8x8xf32> -> vector<2x8x8xf32>
    "tpu.trace_stop"() : () -> ()
    %769 = vector.shape_cast %768 : vector<2x8x8xf32> to vector<16x8xf32>
    %c0_316 = arith.constant 0 : index
    %c40_317 = arith.constant 40 : index
    %770 = vector.load %arg19[%c0_316, %c40_317] : memref<16x64xf32, #tpu.memory_space<vmem>>, vector<16x8xf32>
    tpu.vector_store %arg19[%c0_316, %c40_317], %769 {strides = array<i32>} : memref<16x64xf32, #tpu.memory_space<vmem>>, vector<16x8xf32>,
    %771 = vector.extract_strided_slice %650 {offsets = [0, 48], sizes = [16, 8], strides = [1, 1]} : vector<16x192xbf16> to vector<16x8xbf16>
    %772 = vector.shape_cast %771 : vector<16x8xbf16> to vector<2x8x8xbf16>
    %773 = vector.extract_strided_slice %650 {offsets = [0, 112], sizes = [16, 8], strides = [1, 1]} : vector<16x192xbf16> to vector<16x8xbf16>
    %774 = vector.shape_cast %773 : vector<16x8xbf16> to vector<2x8x8xbf16>
    %775 = vector.extract_strided_slice %650 {offsets = [0, 176], sizes = [16, 8], strides = [1, 1]} : vector<16x192xbf16> to vector<16x8xbf16>
    %776 = vector.shape_cast %775 : vector<16x8xbf16> to vector<2x8x8xbf16>
    "tpu.trace_start"() <{level = 10 : i32, message = "bqd,bkd->bqk"}> : () -> ()
    %cst_318 = arith.constant dense<0.000000e+00> : vector<2x8x8xf32>
    %777 = tpu.matmul %772, %774, %cst_318 {dimension_numbers = #tpu.dot_dimension_numbers<[2], [2], [1], [1], [0, 0, 0, 1, 1, 1], [0], [0]>} : vector<2x8x8xbf16>, vector<2x8x8xbf16>, vector<2x8x8xf32> -> vector<2x8x8xf32>
    "tpu.trace_stop"() : () -> ()
    %cst_319 = arith.constant dense<0xFF800000> : vector<2x8xf32>
    %778 = vector.multi_reduction <maximumf>, %777, %cst_319 [2] : vector<2x8x8xf32> to vector<2x8xf32>
    %779 = vector.shape_cast %778 : vector<2x8xf32> to vector<2x8x1xf32>
    %780 = vector.broadcast %779 : vector<2x8x1xf32> to vector<2x8x8xf32>
    %781 = arith.subf %777, %780 : vector<2x8x8xf32>
    %782 = math.exp %781 : vector<2x8x8xf32>
    %cst_320 = arith.constant dense<0.000000e+00> : vector<2x8xf32>
    %783 = vector.multi_reduction <add>, %782, %cst_320 [2] : vector<2x8x8xf32> to vector<2x8xf32>
    %784 = vector.shape_cast %783 : vector<2x8xf32> to vector<2x8x1xf32>
    %785 = vector.broadcast %784 : vector<2x8x1xf32> to vector<2x8x8xf32>
    %786 = arith.divf %782, %785 : vector<2x8x8xf32>
    %787 = arith.truncf %786 : vector<2x8x8xf32> to vector<2x8x8xbf16>
    "tpu.trace_start"() <{level = 10 : i32, message = "bqk,bkd->bqd"}> : () -> ()
    %cst_321 = arith.constant dense<0.000000e+00> : vector<2x8x8xf32>
    %788 = tpu.matmul %787, %776, %cst_321 {dimension_numbers = #tpu.dot_dimension_numbers<[2], [1], [1], [2], [0, 0, 0, 1, 1, 2], [0], [0]>} : vector<2x8x8xbf16>, vector<2x8x8xbf16>, vector<2x8x8xf32> -> vector<2x8x8xf32>
    "tpu.trace_stop"() : () -> ()
    %789 = vector.shape_cast %788 : vector<2x8x8xf32> to vector<16x8xf32>
    %c0_322 = arith.constant 0 : index
    %c48_323 = arith.constant 48 : index
    %790 = vector.load %arg19[%c0_322, %c48_323] : memref<16x64xf32, #tpu.memory_space<vmem>>, vector<16x8xf32>
    tpu.vector_store %arg19[%c0_322, %c48_323], %789 {strides = array<i32>} : memref<16x64xf32, #tpu.memory_space<vmem>>, vector<16x8xf32>,
    %791 = vector.extract_strided_slice %650 {offsets = [0, 56], sizes = [16, 8], strides = [1, 1]} : vector<16x192xbf16> to vector<16x8xbf16>
    %792 = vector.shape_cast %791 : vector<16x8xbf16> to vector<2x8x8xbf16>
    %793 = vector.extract_strided_slice %650 {offsets = [0, 120], sizes = [16, 8], strides = [1, 1]} : vector<16x192xbf16> to vector<16x8xbf16>
    %794 = vector.shape_cast %793 : vector<16x8xbf16> to vector<2x8x8xbf16>
    %795 = vector.extract_strided_slice %650 {offsets = [0, 184], sizes = [16, 8], strides = [1, 1]} : vector<16x192xbf16> to vector<16x8xbf16>
    %796 = vector.shape_cast %795 : vector<16x8xbf16> to vector<2x8x8xbf16>
    "tpu.trace_start"() <{level = 10 : i32, message = "bqd,bkd->bqk"}> : () -> ()
    %cst_324 = arith.constant dense<0.000000e+00> : vector<2x8x8xf32>
    %797 = tpu.matmul %792, %794, %cst_324 {dimension_numbers = #tpu.dot_dimension_numbers<[2], [2], [1], [1], [0, 0, 0, 1, 1, 1], [0], [0]>} : vector<2x8x8xbf16>, vector<2x8x8xbf16>, vector<2x8x8xf32> -> vector<2x8x8xf32>
    "tpu.trace_stop"() : () -> ()
    %cst_325 = arith.constant dense<0xFF800000> : vector<2x8xf32>
    %798 = vector.multi_reduction <maximumf>, %797, %cst_325 [2] : vector<2x8x8xf32> to vector<2x8xf32>
    %799 = vector.shape_cast %798 : vector<2x8xf32> to vector<2x8x1xf32>
    %800 = vector.broadcast %799 : vector<2x8x1xf32> to vector<2x8x8xf32>
    %801 = arith.subf %797, %800 : vector<2x8x8xf32>
    %802 = math.exp %801 : vector<2x8x8xf32>
    %cst_326 = arith.constant dense<0.000000e+00> : vector<2x8xf32>
    %803 = vector.multi_reduction <add>, %802, %cst_326 [2] : vector<2x8x8xf32> to vector<2x8xf32>
    %804 = vector.shape_cast %803 : vector<2x8xf32> to vector<2x8x1xf32>
    %805 = vector.broadcast %804 : vector<2x8x1xf32> to vector<2x8x8xf32>
    %806 = arith.divf %802, %805 : vector<2x8x8xf32>
    %807 = arith.truncf %806 : vector<2x8x8xf32> to vector<2x8x8xbf16>
    "tpu.trace_start"() <{level = 10 : i32, message = "bqk,bkd->bqd"}> : () -> ()
    %cst_327 = arith.constant dense<0.000000e+00> : vector<2x8x8xf32>
    %808 = tpu.matmul %807, %796, %cst_327 {dimension_numbers = #tpu.dot_dimension_numbers<[2], [1], [1], [2], [0, 0, 0, 1, 1, 2], [0], [0]>} : vector<2x8x8xbf16>, vector<2x8x8xbf16>, vector<2x8x8xf32> -> vector<2x8x8xf32>
    "tpu.trace_stop"() : () -> ()
    %809 = vector.shape_cast %808 : vector<2x8x8xf32> to vector<16x8xf32>
    %c0_328 = arith.constant 0 : index
    %c56_329 = arith.constant 56 : index
    %810 = vector.load %arg19[%c0_328, %c56_329] : memref<16x64xf32, #tpu.memory_space<vmem>>, vector<16x8xf32>
    tpu.vector_store %arg19[%c0_328, %c56_329], %809 {strides = array<i32>} : memref<16x64xf32, #tpu.memory_space<vmem>>, vector<16x8xf32>,
    %c0_330 = arith.constant 0 : index
    %c0_331 = arith.constant 0 : index
    %811 = vector.load %arg19[%c0_330, %c0_331] : memref<16x64xf32, #tpu.memory_space<vmem>>, vector<16x64xf32>
    %812 = arith.truncf %811 : vector<16x64xf32> to vector<16x64xbf16>
    %c2_332 = arith.constant 2 : index
    %c0_333 = arith.constant 0 : index
    %c0_334 = arith.constant 0 : index
    %813 = vector.load %arg6[%c2_332, %c0_333, %c0_334] : memref<3x64x64xbf16, #tpu.memory_space<vmem>>, vector<1x64x64xbf16>
    %814 = vector.shape_cast %813 : vector<1x64x64xbf16> to vector<64x64xbf16>
    %cst_335 = arith.constant dense<0.000000e+00> : vector<16x64xf32>
    %815 = tpu.matmul %812, %814, %cst_335 {dimension_numbers = #tpu.dot_dimension_numbers<[1], [0], [0], [1], [0, 0, 1, 1], [], []>} : vector<16x64xbf16>, vector<64x64xbf16>, vector<16x64xf32> -> vector<16x64xf32>
    %c2_336 = arith.constant 2 : index
    %c0_337 = arith.constant 0 : index
    %c0_338 = arith.constant 0 : index
    %816 = vector.load %arg7[%c2_336, %c0_337, %c0_338] : memref<3x1x64xf32, #tpu.memory_space<vmem>>, vector<1x1x64xf32>
    %817 = vector.shape_cast %816 : vector<1x1x64xf32> to vector<1x64xf32>
    %818 = vector.broadcast %817 : vector<1x64xf32> to vector<16x64xf32>
    %819 = arith.addf %815, %818 : vector<16x64xf32>
    %820 = arith.addf %641, %819 : vector<16x64xf32>
    %c2_339 = arith.constant 2 : index
    %c0_340 = arith.constant 0 : index
    %c0_341 = arith.constant 0 : index
    %821 = vector.load %arg8[%c2_339, %c0_340, %c0_341] : memref<3x1x64xf32, #tpu.memory_space<vmem>>, vector<1x1x64xf32>
    %822 = vector.shape_cast %821 : vector<1x1x64xf32> to vector<1x64xf32>
    %c2_342 = arith.constant 2 : index
    %c0_343 = arith.constant 0 : index
    %c0_344 = arith.constant 0 : index
    %823 = vector.load %arg9[%c2_342, %c0_343, %c0_344] : memref<3x1x64xf32, #tpu.memory_space<vmem>>, vector<1x1x64xf32>
    %824 = vector.shape_cast %823 : vector<1x1x64xf32> to vector<1x64xf32>
    %cst_345 = arith.constant dense<0.000000e+00> : vector<16xf32>
    %825 = vector.multi_reduction <add>, %820, %cst_345 [1] : vector<16x64xf32> to vector<16xf32>
    %826 = vector.shape_cast %825 : vector<16xf32> to vector<16x1xf32>
    %cst_346 = arith.constant 6.400000e+01 : f32
    %827 = vector.broadcast %cst_346 : f32 to vector<16x1xf32>
    %828 = arith.divf %826, %827 : vector<16x1xf32>
    %829 = vector.broadcast %828 : vector<16x1xf32> to vector<16x64xf32>
    %830 = arith.subf %820, %829 : vector<16x64xf32>
    %831 = arith.mulf %830, %830 : vector<16x64xf32>
    %cst_347 = arith.constant dense<0.000000e+00> : vector<16xf32>
    %832 = vector.multi_reduction <add>, %831, %cst_347 [1] : vector<16x64xf32> to vector<16xf32>
    %833 = vector.shape_cast %832 : vector<16xf32> to vector<16x1xf32>
    %cst_348 = arith.constant 6.400000e+01 : f32
    %834 = vector.broadcast %cst_348 : f32 to vector<16x1xf32>
    %835 = arith.divf %833, %834 : vector<16x1xf32>
    %836 = vector.broadcast %828 : vector<16x1xf32> to vector<16x64xf32>
    %837 = arith.subf %820, %836 : vector<16x64xf32>
    %cst_349 = arith.constant 9.99999974E-6 : f32
    %838 = vector.broadcast %cst_349 : f32 to vector<16x1xf32>
    %839 = arith.addf %835, %838 : vector<16x1xf32>
    %840 = math.rsqrt %839 : vector<16x1xf32>
    %841 = vector.broadcast %840 : vector<16x1xf32> to vector<16x64xf32>
    %842 = arith.mulf %837, %841 : vector<16x64xf32>
    %843 = vector.broadcast %822 : vector<1x64xf32> to vector<16x64xf32>
    %844 = arith.mulf %842, %843 : vector<16x64xf32>
    %845 = vector.broadcast %824 : vector<1x64xf32> to vector<16x64xf32>
    %846 = arith.addf %844, %845 : vector<16x64xf32>
    %847 = arith.truncf %846 : vector<16x64xf32> to vector<16x64xbf16>
    %cst_350 = arith.constant 0.000000e+00 : f32
    %848 = vector.broadcast %cst_350 : f32 to vector<16x64xf32>
    %c2_351 = arith.constant 2 : index
    %c0_352 = arith.constant 0 : index
    %c0_353 = arith.constant 0 : index
    %849 = vector.load %arg10[%c2_351, %c0_352, %c0_353] : memref<3x64x2048xbf16, #tpu.memory_space<vmem>>, vector<1x64x512xbf16>
    %850 = vector.shape_cast %849 : vector<1x64x512xbf16> to vector<64x512xbf16>
    %cst_354 = arith.constant dense<0.000000e+00> : vector<16x512xf32>
    %851 = tpu.matmul %847, %850, %cst_354 {dimension_numbers = #tpu.dot_dimension_numbers<[1], [0], [0], [1], [0, 0, 1, 1], [], []>} : vector<16x64xbf16>, vector<64x512xbf16>, vector<16x512xf32> -> vector<16x512xf32>
    %c2_355 = arith.constant 2 : index
    %c0_356 = arith.constant 0 : index
    %c0_357 = arith.constant 0 : index
    %852 = vector.load %arg11[%c2_355, %c0_356, %c0_357] : memref<3x1x2048xf32, #tpu.memory_space<vmem>>, vector<1x1x512xf32>
    %853 = vector.shape_cast %852 : vector<1x1x512xf32> to vector<1x512xf32>
    %854 = vector.broadcast %853 : vector<1x512xf32> to vector<16x512xf32>
    %855 = arith.addf %851, %854 : vector<16x512xf32>
    %cst_358 = arith.constant 0.000000e+00 : f32
    %856 = vector.broadcast %cst_358 : f32 to vector<16x512xf32>
    %857 = arith.maximumf %855, %856 : vector<16x512xf32>
    %858 = arith.truncf %857 : vector<16x512xf32> to vector<16x512xbf16>
    %c2_359 = arith.constant 2 : index
    %c0_360 = arith.constant 0 : index
    %c0_361 = arith.constant 0 : index
    %859 = vector.load %arg12[%c2_359, %c0_360, %c0_361] : memref<3x2048x64xbf16, #tpu.memory_space<vmem>>, vector<1x512x64xbf16>
    %860 = vector.shape_cast %859 : vector<1x512x64xbf16> to vector<512x64xbf16>
    %cst_362 = arith.constant dense<0.000000e+00> : vector<16x64xf32>
    %861 = tpu.matmul %858, %860, %cst_362 {dimension_numbers = #tpu.dot_dimension_numbers<[1], [0], [0], [1], [0, 0, 1, 1], [], []>} : vector<16x512xbf16>, vector<512x64xbf16>, vector<16x64xf32> -> vector<16x64xf32>
    %862 = arith.addf %848, %861 : vector<16x64xf32>
    %c2_363 = arith.constant 2 : index
    %c0_364 = arith.constant 0 : index
    %c512_365 = arith.constant 512 : index
    %863 = vector.load %arg10[%c2_363, %c0_364, %c512_365] : memref<3x64x2048xbf16, #tpu.memory_space<vmem>>, vector<1x64x512xbf16>
    %864 = vector.shape_cast %863 : vector<1x64x512xbf16> to vector<64x512xbf16>
    %cst_366 = arith.constant dense<0.000000e+00> : vector<16x512xf32>
    %865 = tpu.matmul %847, %864, %cst_366 {dimension_numbers = #tpu.dot_dimension_numbers<[1], [0], [0], [1], [0, 0, 1, 1], [], []>} : vector<16x64xbf16>, vector<64x512xbf16>, vector<16x512xf32> -> vector<16x512xf32>
    %c2_367 = arith.constant 2 : index
    %c0_368 = arith.constant 0 : index
    %c512_369 = arith.constant 512 : index
    %866 = vector.load %arg11[%c2_367, %c0_368, %c512_369] : memref<3x1x2048xf32, #tpu.memory_space<vmem>>, vector<1x1x512xf32>
    %867 = vector.shape_cast %866 : vector<1x1x512xf32> to vector<1x512xf32>
    %868 = vector.broadcast %867 : vector<1x512xf32> to vector<16x512xf32>
    %869 = arith.addf %865, %868 : vector<16x512xf32>
    %cst_370 = arith.constant 0.000000e+00 : f32
    %870 = vector.broadcast %cst_370 : f32 to vector<16x512xf32>
    %871 = arith.maximumf %869, %870 : vector<16x512xf32>
    %872 = arith.truncf %871 : vector<16x512xf32> to vector<16x512xbf16>
    %c2_371 = arith.constant 2 : index
    %c512_372 = arith.constant 512 : index
    %c0_373 = arith.constant 0 : index
    %873 = vector.load %arg12[%c2_371, %c512_372, %c0_373] : memref<3x2048x64xbf16, #tpu.memory_space<vmem>>, vector<1x512x64xbf16>
    %874 = vector.shape_cast %873 : vector<1x512x64xbf16> to vector<512x64xbf16>
    %cst_374 = arith.constant dense<0.000000e+00> : vector<16x64xf32>
    %875 = tpu.matmul %872, %874, %cst_374 {dimension_numbers = #tpu.dot_dimension_numbers<[1], [0], [0], [1], [0, 0, 1, 1], [], []>} : vector<16x512xbf16>, vector<512x64xbf16>, vector<16x64xf32> -> vector<16x64xf32>
    %876 = arith.addf %862, %875 : vector<16x64xf32>
    %c2_375 = arith.constant 2 : index
    %c0_376 = arith.constant 0 : index
    %c1024_377 = arith.constant 1024 : index
    %877 = vector.load %arg10[%c2_375, %c0_376, %c1024_377] : memref<3x64x2048xbf16, #tpu.memory_space<vmem>>, vector<1x64x512xbf16>
    %878 = vector.shape_cast %877 : vector<1x64x512xbf16> to vector<64x512xbf16>
    %cst_378 = arith.constant dense<0.000000e+00> : vector<16x512xf32>
    %879 = tpu.matmul %847, %878, %cst_378 {dimension_numbers = #tpu.dot_dimension_numbers<[1], [0], [0], [1], [0, 0, 1, 1], [], []>} : vector<16x64xbf16>, vector<64x512xbf16>, vector<16x512xf32> -> vector<16x512xf32>
    %c2_379 = arith.constant 2 : index
    %c0_380 = arith.constant 0 : index
    %c1024_381 = arith.constant 1024 : index
    %880 = vector.load %arg11[%c2_379, %c0_380, %c1024_381] : memref<3x1x2048xf32, #tpu.memory_space<vmem>>, vector<1x1x512xf32>
    %881 = vector.shape_cast %880 : vector<1x1x512xf32> to vector<1x512xf32>
    %882 = vector.broadcast %881 : vector<1x512xf32> to vector<16x512xf32>
    %883 = arith.addf %879, %882 : vector<16x512xf32>
    %cst_382 = arith.constant 0.000000e+00 : f32
    %884 = vector.broadcast %cst_382 : f32 to vector<16x512xf32>
    %885 = arith.maximumf %883, %884 : vector<16x512xf32>
    %886 = arith.truncf %885 : vector<16x512xf32> to vector<16x512xbf16>
    %c2_383 = arith.constant 2 : index
    %c1024_384 = arith.constant 1024 : index
    %c0_385 = arith.constant 0 : index
    %887 = vector.load %arg12[%c2_383, %c1024_384, %c0_385] : memref<3x2048x64xbf16, #tpu.memory_space<vmem>>, vector<1x512x64xbf16>
    %888 = vector.shape_cast %887 : vector<1x512x64xbf16> to vector<512x64xbf16>
    %cst_386 = arith.constant dense<0.000000e+00> : vector<16x64xf32>
    %889 = tpu.matmul %886, %888, %cst_386 {dimension_numbers = #tpu.dot_dimension_numbers<[1], [0], [0], [1], [0, 0, 1, 1], [], []>} : vector<16x512xbf16>, vector<512x64xbf16>, vector<16x64xf32> -> vector<16x64xf32>
    %890 = arith.addf %876, %889 : vector<16x64xf32>
    %c2_387 = arith.constant 2 : index
    %c0_388 = arith.constant 0 : index
    %c1536_389 = arith.constant 1536 : index
    %891 = vector.load %arg10[%c2_387, %c0_388, %c1536_389] : memref<3x64x2048xbf16, #tpu.memory_space<vmem>>, vector<1x64x512xbf16>
    %892 = vector.shape_cast %891 : vector<1x64x512xbf16> to vector<64x512xbf16>
    %cst_390 = arith.constant dense<0.000000e+00> : vector<16x512xf32>
    %893 = tpu.matmul %847, %892, %cst_390 {dimension_numbers = #tpu.dot_dimension_numbers<[1], [0], [0], [1], [0, 0, 1, 1], [], []>} : vector<16x64xbf16>, vector<64x512xbf16>, vector<16x512xf32> -> vector<16x512xf32>
    %c2_391 = arith.constant 2 : index
    %c0_392 = arith.constant 0 : index
    %c1536_393 = arith.constant 1536 : index
    %894 = vector.load %arg11[%c2_391, %c0_392, %c1536_393] : memref<3x1x2048xf32, #tpu.memory_space<vmem>>, vector<1x1x512xf32>
    %895 = vector.shape_cast %894 : vector<1x1x512xf32> to vector<1x512xf32>
    %896 = vector.broadcast %895 : vector<1x512xf32> to vector<16x512xf32>
    %897 = arith.addf %893, %896 : vector<16x512xf32>
    %cst_394 = arith.constant 0.000000e+00 : f32
    %898 = vector.broadcast %cst_394 : f32 to vector<16x512xf32>
    %899 = arith.maximumf %897, %898 : vector<16x512xf32>
    %900 = arith.truncf %899 : vector<16x512xf32> to vector<16x512xbf16>
    %c2_395 = arith.constant 2 : index
    %c1536_396 = arith.constant 1536 : index
    %c0_397 = arith.constant 0 : index
    %901 = vector.load %arg12[%c2_395, %c1536_396, %c0_397] : memref<3x2048x64xbf16, #tpu.memory_space<vmem>>, vector<1x512x64xbf16>
    %902 = vector.shape_cast %901 : vector<1x512x64xbf16> to vector<512x64xbf16>
    %cst_398 = arith.constant dense<0.000000e+00> : vector<16x64xf32>
    %903 = tpu.matmul %900, %902, %cst_398 {dimension_numbers = #tpu.dot_dimension_numbers<[1], [0], [0], [1], [0, 0, 1, 1], [], []>} : vector<16x512xbf16>, vector<512x64xbf16>, vector<16x64xf32> -> vector<16x64xf32>
    %904 = arith.addf %890, %903 : vector<16x64xf32>
    %c2_399 = arith.constant 2 : index
    %c0_400 = arith.constant 0 : index
    %c0_401 = arith.constant 0 : index
    %905 = vector.load %arg13[%c2_399, %c0_400, %c0_401] : memref<3x1x64xf32, #tpu.memory_space<vmem>>, vector<1x1x64xf32>
    %906 = vector.shape_cast %905 : vector<1x1x64xf32> to vector<1x64xf32>
    %907 = vector.broadcast %906 : vector<1x64xf32> to vector<16x64xf32>
    %908 = arith.addf %904, %907 : vector<16x64xf32>
    %909 = arith.addf %846, %908 : vector<16x64xf32>
    %c2_402 = arith.constant 2 : index
    %c0_403 = arith.constant 0 : index
    %c0_404 = arith.constant 0 : index
    %910 = vector.load %arg14[%c2_402, %c0_403, %c0_404] : memref<3x1x64xf32, #tpu.memory_space<vmem>>, vector<1x1x64xf32>
    %911 = vector.shape_cast %910 : vector<1x1x64xf32> to vector<1x64xf32>
    %c2_405 = arith.constant 2 : index
    %c0_406 = arith.constant 0 : index
    %c0_407 = arith.constant 0 : index
    %912 = vector.load %arg15[%c2_405, %c0_406, %c0_407] : memref<3x1x64xf32, #tpu.memory_space<vmem>>, vector<1x1x64xf32>
    %913 = vector.shape_cast %912 : vector<1x1x64xf32> to vector<1x64xf32>
    %cst_408 = arith.constant dense<0.000000e+00> : vector<16xf32>
    %914 = vector.multi_reduction <add>, %909, %cst_408 [1] : vector<16x64xf32> to vector<16xf32>
    %915 = vector.shape_cast %914 : vector<16xf32> to vector<16x1xf32>
    %cst_409 = arith.constant 6.400000e+01 : f32
    %916 = vector.broadcast %cst_409 : f32 to vector<16x1xf32>
    %917 = arith.divf %915, %916 : vector<16x1xf32>
    %918 = vector.broadcast %917 : vector<16x1xf32> to vector<16x64xf32>
    %919 = arith.subf %909, %918 : vector<16x64xf32>
    %920 = arith.mulf %919, %919 : vector<16x64xf32>
    %cst_410 = arith.constant dense<0.000000e+00> : vector<16xf32>
    %921 = vector.multi_reduction <add>, %920, %cst_410 [1] : vector<16x64xf32> to vector<16xf32>
    %922 = vector.shape_cast %921 : vector<16xf32> to vector<16x1xf32>
    %cst_411 = arith.constant 6.400000e+01 : f32
    %923 = vector.broadcast %cst_411 : f32 to vector<16x1xf32>
    %924 = arith.divf %922, %923 : vector<16x1xf32>
    %925 = vector.broadcast %917 : vector<16x1xf32> to vector<16x64xf32>
    %926 = arith.subf %909, %925 : vector<16x64xf32>
    %cst_412 = arith.constant 9.99999974E-6 : f32
    %927 = vector.broadcast %cst_412 : f32 to vector<16x1xf32>
    %928 = arith.addf %924, %927 : vector<16x1xf32>
    %929 = math.rsqrt %928 : vector<16x1xf32>
    %930 = vector.broadcast %929 : vector<16x1xf32> to vector<16x64xf32>
    %931 = arith.mulf %926, %930 : vector<16x64xf32>
    %932 = vector.broadcast %911 : vector<1x64xf32> to vector<16x64xf32>
    %933 = arith.mulf %931, %932 : vector<16x64xf32>
    %934 = vector.broadcast %913 : vector<1x64xf32> to vector<16x64xf32>
    %935 = arith.addf %933, %934 : vector<16x64xf32>
    %936 = vector.shape_cast %935 : vector<16x64xf32> to vector<2x8x64xf32>
    %cst_413 = arith.constant dense<0.000000e+00> : vector<2x64xf32>
    %937 = vector.multi_reduction <add>, %936, %cst_413 [1] : vector<2x8x64xf32> to vector<2x64xf32>
    %cst_414 = arith.constant 8.000000e+00 : f32
    %938 = vector.broadcast %cst_414 : f32 to vector<2x64xf32>
    %939 = arith.divf %937, %938 : vector<2x64xf32>
    %940 = arith.truncf %939 : vector<2x64xf32> to vector<2x64xbf16>
    %c0_415 = arith.constant 0 : index
    %c0_416 = arith.constant 0 : index
    %941 = vector.load %arg16[%c0_415, %c0_416] : memref<64x32xbf16, #tpu.memory_space<vmem>>, vector<64x32xbf16>
    %cst_417 = arith.constant dense<0.000000e+00> : vector<2x32xf32>
    %942 = tpu.matmul %940, %941, %cst_417 {dimension_numbers = #tpu.dot_dimension_numbers<[1], [0], [0], [1], [0, 0, 1, 1], [], []>} : vector<2x64xbf16>, vector<64x32xbf16>, vector<2x32xf32> -> vector<2x32xf32>
    %c0_418 = arith.constant 0 : index
    %c0_419 = arith.constant 0 : index
    %943 = vector.load %arg17[%c0_418, %c0_419] : memref<1x32xf32, #tpu.memory_space<vmem>>, vector<1x32xf32>
    %944 = vector.broadcast %943 : vector<1x32xf32> to vector<2x32xf32>
    %945 = arith.addf %942, %944 : vector<2x32xf32>
    %c0_420 = arith.constant 0 : index
    %c0_421 = arith.constant 0 : index
    %946 = vector.load %arg18[%c0_420, %c0_421] : memref<2x32xf32, #tpu.memory_space<vmem>>, vector<2x32xf32>
    tpu.vector_store %arg18[%c0_420, %c0_421], %945 {strides = array<i32>} : memref<2x32xf32, #tpu.memory_space<vmem>>, vector<2x32xf32>,
    return
  }
  func.func @transform_0(%arg0: i32) -> (i32, i32, i32) {
    %c0_i32 = arith.constant 0 : i32
    %c0_i32_0 = arith.constant 0 : i32
    %c0_i32_1 = arith.constant 0 : i32
    return %arg0, %c0_i32, %c0_i32_0 : i32, i32, i32
  }
  func.func @transform_1(%arg0: i32) -> (i32, i32) {
    %c0_i32 = arith.constant 0 : i32
    %c0_i32_0 = arith.constant 0 : i32
    %c0_i32_1 = arith.constant 0 : i32
    return %c0_i32, %c0_i32_0 : i32, i32
  }
  func.func @transform_2(%arg0: i32) -> (i32, i32) {
    %c0_i32 = arith.constant 0 : i32
    %c0_i32_0 = arith.constant 0 : i32
    %c0_i32_1 = arith.constant 0 : i32
    return %c0_i32, %c0_i32_0 : i32, i32
  }
  func.func @transform_3(%arg0: i32) -> (i32, i32, i32) {
    %c0_i32 = arith.constant 0 : i32
    %c0_i32_0 = arith.constant 0 : i32
    %c0_i32_1 = arith.constant 0 : i32
    %c0_i32_2 = arith.constant 0 : i32
    return %c0_i32, %c0_i32_0, %c0_i32_1 : i32, i32, i32
  }
  func.func @transform_4(%arg0: i32) -> (i32, i32, i32) {
    %c0_i32 = arith.constant 0 : i32
    %c0_i32_0 = arith.constant 0 : i32
    %c0_i32_1 = arith.constant 0 : i32
    %c0_i32_2 = arith.constant 0 : i32
    return %c0_i32, %c0_i32_0, %c0_i32_1 : i32, i32, i32
  }
  func.func @transform_5(%arg0: i32) -> (i32, i32, i32) {
    %c0_i32 = arith.constant 0 : i32
    %c0_i32_0 = arith.constant 0 : i32
    %c0_i32_1 = arith.constant 0 : i32
    %c0_i32_2 = arith.constant 0 : i32
    return %c0_i32, %c0_i32_0, %c0_i32_1 : i32, i32, i32
  }
  func.func @transform_6(%arg0: i32) -> (i32, i32, i32) {
    %c0_i32 = arith.constant 0 : i32
    %c0_i32_0 = arith.constant 0 : i32
    %c0_i32_1 = arith.constant 0 : i32
    %c0_i32_2 = arith.constant 0 : i32
    return %c0_i32, %c0_i32_0, %c0_i32_1 : i32, i32, i32
  }
  func.func @transform_7(%arg0: i32) -> (i32, i32, i32) {
    %c0_i32 = arith.constant 0 : i32
    %c0_i32_0 = arith.constant 0 : i32
    %c0_i32_1 = arith.constant 0 : i32
    %c0_i32_2 = arith.constant 0 : i32
    return %c0_i32, %c0_i32_0, %c0_i32_1 : i32, i32, i32
  }
  func.func @transform_8(%arg0: i32) -> (i32, i32, i32) {
    %c0_i32 = arith.constant 0 : i32
    %c0_i32_0 = arith.constant 0 : i32
    %c0_i32_1 = arith.constant 0 : i32
    %c0_i32_2 = arith.constant 0 : i32
    return %c0_i32, %c0_i32_0, %c0_i32_1 : i32, i32, i32
  }
  func.func @transform_9(%arg0: i32) -> (i32, i32, i32) {
    %c0_i32 = arith.constant 0 : i32
    %c0_i32_0 = arith.constant 0 : i32
    %c0_i32_1 = arith.constant 0 : i32
    %c0_i32_2 = arith.constant 0 : i32
    return %c0_i32, %c0_i32_0, %c0_i32_1 : i32, i32, i32
  }
  func.func @transform_10(%arg0: i32) -> (i32, i32, i32) {
    %c0_i32 = arith.constant 0 : i32
    %c0_i32_0 = arith.constant 0 : i32
    %c0_i32_1 = arith.constant 0 : i32
    %c0_i32_2 = arith.constant 0 : i32
    return %c0_i32, %c0_i32_0, %c0_i32_1 : i32, i32, i32
  }
  func.func @transform_11(%arg0: i32) -> (i32, i32, i32) {
    %c0_i32 = arith.constant 0 : i32
    %c0_i32_0 = arith.constant 0 : i32
    %c0_i32_1 = arith.constant 0 : i32
    %c0_i32_2 = arith.constant 0 : i32
    return %c0_i32, %c0_i32_0, %c0_i32_1 : i32, i32, i32
  }
  func.func @transform_12(%arg0: i32) -> (i32, i32, i32) {
    %c0_i32 = arith.constant 0 : i32
    %c0_i32_0 = arith.constant 0 : i32
    %c0_i32_1 = arith.constant 0 : i32
    %c0_i32_2 = arith.constant 0 : i32
    return %c0_i32, %c0_i32_0, %c0_i32_1 : i32, i32, i32
  }
  func.func @transform_13(%arg0: i32) -> (i32, i32, i32) {
    %c0_i32 = arith.constant 0 : i32
    %c0_i32_0 = arith.constant 0 : i32
    %c0_i32_1 = arith.constant 0 : i32
    %c0_i32_2 = arith.constant 0 : i32
    return %c0_i32, %c0_i32_0, %c0_i32_1 : i32, i32, i32
  }
  func.func @transform_14(%arg0: i32) -> (i32, i32, i32) {
    %c0_i32 = arith.constant 0 : i32
    %c0_i32_0 = arith.constant 0 : i32
    %c0_i32_1 = arith.constant 0 : i32
    %c0_i32_2 = arith.constant 0 : i32
    return %c0_i32, %c0_i32_0, %c0_i32_1 : i32, i32, i32
  }
  func.func @transform_15(%arg0: i32) -> (i32, i32) {
    %c0_i32 = arith.constant 0 : i32
    %c0_i32_0 = arith.constant 0 : i32
    %c0_i32_1 = arith.constant 0 : i32
    return %c0_i32, %c0_i32_0 : i32, i32
  }
  func.func @transform_16(%arg0: i32) -> (i32, i32) {
    %c0_i32 = arith.constant 0 : i32
    %c0_i32_0 = arith.constant 0 : i32
    %c0_i32_1 = arith.constant 0 : i32
    return %c0_i32, %c0_i32_0 : i32, i32
  }
  func.func @transform_17(%arg0: i32) -> (i32, i32) {
    %c0_i32 = arith.constant 0 : i32
    %c0_i32_0 = arith.constant 0 : i32
    return %arg0, %c0_i32 : i32, i32
  }
}

</mosaic_0001>

<bundles_post_ra>
// kernel: tpu_custom_call.1
= control target key start
LH: loop header
LB: loop body
LE: loop exit
PB: predicated region body
PF: predicated region fallthrough
CT: control target
= control target key end

     0   :  { %s20475_s0 = inlined_call_operand.vmem [shape: s32[2,8,1], index: 0, kind: input, shape index: {}]   ;;  %s20476_s1 = inlined_call_operand.vmem [shape: f32[4,64], index: 1, kind: input, shape index: {}]   ;;  %s20477_s2 = inlined_call_operand.vmem [shape: f32[8,64], index: 2, kind: input, shape index: {}]   ;;  %s20478_s3 = inlined_call_operand.vmem [shape: bf16[3,64,192], index: 3, kind: input, shape index: {}]   ;;  %s20479_s4 = inlined_call_operand.vmem [shape: f32[3,1,192], index: 4, kind: input, shape index: {}]   ;;  %s20480_s5 = inlined_call_operand.vmem [shape: bf16[3,64,64], index: 5, kind: input, shape index: {}]   ;;  %s20481_s6 = inlined_call_operand.vmem [shape: f32[3,1,64], index: 6, kind: input, shape index: {}]   ;;  %s20482_s7 = inlined_call_operand.vmem [shape: f32[3,1,64], index: 7, kind: input, shape index: {}]   ;;  %s20483_s8 = inlined_call_operand.vmem [shape: f32[3,1,64], index: 8, kind: input, shape index: {}]   ;;  %s20484_s9 = inlined_call_operand.vmem [shape: bf16[3,64,2048], index: 9, kind: input, shape index: {}]   ;;  %s20485_s10 = inlined_call_operand.vmem [shape: f32[3,1,2048], index: 10, kind: input, shape index: {}]   ;;  %s20486_s11 = inlined_call_operand.vmem [shape: bf16[3,2048,64], index: 11, kind: input, shape index: {}]   ;;  %s20487_s12 = inlined_call_operand.vmem [shape: f32[3,1,64], index: 12, kind: input, shape index: {}]   ;;  %s20488_s13 = inlined_call_operand.vmem [shape: f32[3,1,64], index: 13, kind: input, shape index: {}]   ;;  %s20489_s14 = inlined_call_operand.vmem [shape: f32[3,1,64], index: 14, kind: input, shape index: {}]   ;;  %s20490_s15 = inlined_call_operand.vmem [shape: bf16[64,32], index: 15, kind: input, shape index: {}]   ;;  %s20491_s16 = inlined_call_operand.vmem [shape: f32[1,32], index: 16, kind: input, shape index: {}]   ;;  %s20492_s17 = inlined_call_operand.hbm [shape: f32[2,32], index: 17, kind: output, shape index: {}]  }
   0x1   :  { %20531 = sst [smem:[#allocation6_spill]] %s20475_s0 }
   0x2   :  { %20532 = sst [smem:[#allocation7_spill]] %s20476_s1 }
   0x3   :  { %20533 = sst [smem:[#allocation8_spill]] %s20480_s5 }
   0x4   :  { %20534 = sst [smem:[#allocation9_spill]] %s20481_s6 }
   0x5   :  { %20535 = sst [smem:[#allocation10_spill]] %s20482_s7 }
   0x6   :  { %20536 = sst [smem:[#allocation11_spill]] %s20483_s8 }
   0x7   :  { %20537 = sst [smem:[#allocation12_spill]] %s20490_s15 }
   0x8   :  { %20538 = sst [smem:[#allocation13_spill]] %s20491_s16 }
   0x9   :  { %20539 = sst [smem:[#allocation14_spill]] %s20492_s17 }
   0xa   :  { %s20540_s26 = sld [smem:[#allocation6_spill]]  ;;  %v16906_v2 = vmov 0   ;;  %v16232_v5 = vld [vmem:[%s20478_s3 + $0x34] ss:$8 sps:$4 sm:$0xff]   ;;  %v16234_v8 = vld [vmem:[%s20478_s3 + $0x30] ss:$8 sps:$4 sm:$0xff]   ;;  %v73_v19 = vlaneseq }
   0xb   :  { %16231 = vset.pattern.permute.xlu1 %v16906_v2  ;;  %16230 = vset.pattern.permute.xlu0 %v16906_v2  ;;  %v16235_v10 = vld [vmem:[%s20478_s3 + $0x24] ss:$8 sps:$4 sm:$0xff]   ;;  %v16237_v12 = vld [vmem:[%s20478_s3 + $0x20] ss:$8 sps:$4 sm:$0xff]   ;;  %v16238_v15 = vld [vmem:[%s20478_s3 + $0x14] ss:$8 sps:$4 sm:$0xff]  }
   0xc   :  { %243 = vmatprep.mubr.bf16.mxu0 %v16906_v2  ;;  %219 = vmatprep.subr.bf16.mxu0 %v16232_v5  ;;  %v16240_v16 = vld [vmem:[%s20478_s3 + $0x10] ss:$8 sps:$4 sm:$0xff]   ;;  %v16241_v17 = vld [vmem:[%s20478_s3 + $0x4] ss:$8 sps:$4 sm:$0xff]   ;;  %v16243_v18 = vld [vmem:[%s20478_s3] ss:$8 sps:$4 sm:$0xff]  }
   0xd   :  { %220 = vmatpush1.bf16.msra.mxu0 %v16234_v8  ;;  %v74_v20 = vshrl.u32 %v73_v19, 7  ;;  %s20541_s18 = sld [smem:[#allocation7_spill]]  ;;  %vm207_vm14 = vcmask 523264   ;;  %v143_v48 = vld [vmem:[%s20477_s2] sm:$0xff]  ;;  %v16907_v58 = vmov 0.0  }
   0xe   :  { %221 = vmatprep.subr.bf16.mxu0 %v16235_v10  ;;  %15587 = vmatprep.subr.bf16.mxu1 %v16907_v58 }
   0xf   :  { %v17056_v21 = vsub.s32 1, %v74_v20  ;;  %v17058_v22 = vsub.s32 0, %v74_v20  ;;  %v17060_v23 = vsub.s32 2, %v74_v20  ;;  %v17062_v24 = vsub.s32 3, %v74_v20 }
  0x10   :  { %v58_v0 = vld [vmem:[%s20540_s26] sm:$0xff]  ;;  %v59_v1 = vld [vmem:[%s20540_s26 + $0x8] sm:$0xff] }
  0x11   :  { %vm81_vm0 = vcmp.eq.s32.totalorder %v58_v0, 1  ;;  %vm61_vm1 = vcmp.eq.s32.totalorder %v58_v0, 0  ;;  %vm82_vm2 = vcmp.eq.s32.totalorder %v59_v1, 1  ;;  %vm62_vm3 = vcmp.eq.s32.totalorder %v59_v1, 0  ;;  %222 = vmatpush1.bf16.msra.mxu0 %v16237_v12 }
  0x12   :  { %v83_v3 = vsel %vm81_vm0, 1, %v16906_v2  ;;  %v63_v4 = vsel %vm61_vm1, 1, %v16906_v2  ;;  %v84_v6 = vsel %vm82_vm2, 1, %v16906_v2  ;;  %v64_v7 = vsel %vm62_vm3, 1, %v16906_v2  ;;  %223 = vmatprep.subr.bf16.mxu0 %v16238_v15 }
  0x13   :  { %86 = vperm.xlu1 %16231, %v83_v3   ;;  %66 = vperm.xlu0 %16230, %v63_v4   ;;  %vm102_vm4 = vcmp.eq.s32.totalorder %v59_v1, 2  ;;  %vm101_vm5 = vcmp.eq.s32.totalorder %v58_v0, 2  ;;  %vm122_vm6 = vcmp.eq.s32.totalorder %v59_v1, 3  ;;  %vm121_vm7 = vcmp.eq.s32.totalorder %v58_v0, 3  ;;  %v60_v25 = vld [vmem:[%s20541_s18] sm:$0xf] }
  0x14   :  { %v104_v9 = vsel %vm102_vm4, 1, %v16906_v2  ;;  %v103_v11 = vsel %vm101_vm5, 1, %v16906_v2  ;;  %v124_v13 = vsel %vm122_vm6, 1, %v16906_v2  ;;  %v123_v14 = vsel %vm121_vm7, 1, %v16906_v2 }
  0x15   :  { %224 = vmatpush1.bf16.msra.mxu0 %v16240_v16  ;;  %v96_v26 = vrot.slane %v60_v25, %v17056_v21  ;;  %v76_v27 = vrot.slane %v60_v25, %v17058_v22  ;;  %v116_v36 = vrot.slane %v60_v25, %v17060_v23  ;;  %v136_v41 = vrot.slane %v60_v25, %v17062_v24 }
  0x16   :  { %225 = vmatprep.subr.bf16.mxu0 %v16241_v17 }
  0x17   :  { %89 = vperm.xlu1 %16231, %v84_v6   ;;  %69 = vperm.xlu0 %16230, %v64_v7  }
  0x19   :  { %226 = vmatpush1.bf16.msra.mxu0 %v16243_v18 }
  0x1a   :  { %15599 = vmatprep.subr.bf16.mxu0 %v16907_v58 }
  0x1b   :  { %109 = vperm.xlu1 %16231, %v104_v9   ;;  %106 = vperm.xlu0 %16230, %v103_v11  }
  0x1f   :  { %129 = vperm.xlu1 %16231, %v124_v13   ;;  %126 = vperm.xlu0 %16230, %v123_v14  }
  0x8e   :  { %v87_v28 = vpop.permute.xlu1 %86  ;;  %v67_v29 = vpop.permute.xlu0 %66 }
  0x8f   :  { %vm91_vm8 = vcmp.eq.s32.totalorder %v87_v28, 1  ;;  %vm71_vm9 = vcmp.eq.s32.totalorder %v67_v29, 1 }
  0x90   :  { %v97_v30 = vsel %vm91_vm8, %v96_v26, 0.0  ;;  %v77_v31 = vsel %vm71_vm9, %v76_v27, 0.0 }
  0x91   :  { %v99_v42 = vadd.f32 %v97_v30, %v77_v31 }
  0x92   :  { %v90_v32 = vpop.permute.xlu1 %89  ;;  %v70_v33 = vpop.permute.xlu0 %69 }
  0x93   :  { %vm92_vm10 = vcmp.eq.s32.totalorder %v90_v32, 1  ;;  %vm72_vm11 = vcmp.eq.s32.totalorder %v70_v33, 1 }
  0x94   :  { %v98_v34 = vsel %vm92_vm10, %v96_v26, 0.0  ;;  %v78_v35 = vsel %vm72_vm11, %v76_v27, 0.0 }
  0x95   :  { %v100_v43 = vadd.f32 %v98_v34, %v78_v35 }
  0x96   :  { %v110_v37 = vpop.permute.xlu1 %109  ;;  %v107_v38 = vpop.permute.xlu0 %106 }
  0x97   :  { %vm112_vm12 = vcmp.eq.s32.totalorder %v110_v37, 1  ;;  %vm111_vm13 = vcmp.eq.s32.totalorder %v107_v38, 1 }
  0x98   :  { %v118_v39 = vsel %vm112_vm12, %v116_v36, 0.0  ;;  %v117_v40 = vsel %vm111_vm13, %v116_v36, 0.0 }
  0x99   :  { %v120_v46 = vadd.f32 %v118_v39, %v100_v43  ;;  %v119_v47 = vadd.f32 %v117_v40, %v99_v42 }
  0x9a   :  { %v130_v44 = vpop.permute.xlu1 %129  ;;  %v127_v45 = vpop.permute.xlu0 %126 }
  0x9b   :  { %vm132_vm15 = vcmp.eq.s32.totalorder %v130_v44, 1  ;;  %vm131_vm0 = vcmp.eq.s32.totalorder %v127_v45, 1 }
  0x9c   :  { %v138_v49 = vsel %vm132_vm15, %v136_v41, 0.0  ;;  %v137_v50 = vsel %vm131_vm0, %v136_v41, 0.0 }
  0x9d   :  { %v140_v51 = vadd.f32 %v138_v49, %v120_v46  ;;  %v139_v52 = vadd.f32 %v137_v50, %v119_v47 }
  0x9f   :  { %v142_v53 = vmul.f32 8.0, %v140_v51  ;;  %v141_v54 = vmul.f32 8.0, %v139_v52 }
  0xa1   :  { %v17074_v55 = vadd.f32 %v143_v48, %v142_v53  ;;  %v17076_v56 = vadd.f32 %v143_v48, %v141_v54 }
  0xa3   :  { %v146_v57 = vpack.c.bf16 %v17074_v55, %v17076_v56 }
  0xa5   :  { %13375 = vmatmul.mubr.msk.bf16.vlgmr.msra.gmra.mxu0 %vm207_vm14, %v146_v57 }
  0xa6   :  { %22 = vsyncpa [#allocation4], 0  ;;  %v155_v59 = vld [vmem:[%s20479_s4] sm:$0x3]  ;;  %vm16908_vm1 = vmmov 0   ;;  %vm390_vm2 = vcmask 1043456  }
  0xa7   :  { %v160_v60 = vrot.slane %v155_v59, %v17058_v22  ;;  %15589 = vmatprep.mubr.msk.bf16.mxu1 %vm16908_vm1, %v16907_v58  ;;  %15601 = vmatprep.mubr.msk.bf16.mxu0 %vm16908_vm1, %v16907_v58  ;;  %v164_v61 = vrot.slane %v155_v59, %v17056_v21  ;;  %s20520_s21 = smov 64   ;;  %vm268_vm3 = vcmask 64512   ;;  %s20522_s22 = smov 56   ;;  %vm710_vm4 = vcmask 130112  }
  0xa8   :  { %s20518_s23 = smov 120   ;;  %s20516_s24 = smov 48   ;;  %vm941_vm5 = vcmask 195712   ;;  %vm1172_vm6 = vcmask 261312   ;;  %vm1403_vm7 = vcmask 326912   ;;  %vm1634_vm8 = vcmask 392512  }
  0xa9   :  { %s20514_s25 = smov 112   ;;  %s20512_s26 = smov 40   ;;  %vm1865_vm9 = vcmask 458112   ;;  %vm2096_vm10 = vcmask 523712   ;;  %vm13281_vm11 = vcmask 1041409   ;;  %vm13351_vm12 = vcmask 254976  }
  0xaa   :  { %s20510_s27 = smov 104   ;;  %s20508_s28 = smov 32  }
  0xab   :  { %s20506_s29 = smov 96   ;;  %s20504_s0 = smov 24  }
  0xac   :  { %s20502_s30 = smov 88   ;;  %s20500_s18 = smov 16  }
  0xad   :  { %s20498_s19 = smov 80   ;;  %s20496_s1 = smov 8  }
  0xae   :  { %s20494_s2 = smov 72   ;;  %s20549_s20 = smov 16  }
  0xaf   :  { %s20563_s16 = sld [smem:[#allocation13_spill]] }
 0x165   :  { %v245_v62 = vpop.f32.mrf.mxu0 }
 0x166   :  { %v246_v63 = vadd.f32 %v245_v62, %v160_v60 }
 0x167   :  { %v247_v0 = vpop.f32.mrf.mxu0 }
 0x168   :  { %v17092_v1 = vpack.c.bf16 %v246_v63, %v246_v63  ;;  %v248_v3 = vadd.f32 %v247_v0, %v164_v61 }
 0x169   :  { %v249_v4 = vpop.f32.mrf.mxu0 }
 0x16a   :  { %v17094_v5 = vpack.c.bf16 %v248_v3, %v248_v3  ;;  %v250_v6 = vadd.f32 %v249_v4, %v160_v60  ;;  %266 = vrot.lane.b32.xlu0 %v17092_v1, %s20520_s21 }
 0x16b   :  { %v251_v11 = vpop.f32.mrf.mxu0 }
 0x16c   :  { %v17098_v7 = vpack.c.bf16 %v250_v6, %v250_v6  ;;  %v392_v8 = vsel %vm390_vm2, %v17094_v5, 0  ;;  %v252_v13 = vadd.f32 %v251_v11, %v164_v61 }
 0x16d   :  { %15600 = vmatpush3.bf16.msra.mxu0 %v392_v8 }
 0x16e   :  { %315 = vrot.lane.b32.xlu1 %v17098_v7, %s20520_s21  ;;  %15611 = vmatprep.subr.bf16.mxu0 %v16907_v58  ;;  %v17113_v15 = vpack.c.bf16 %v252_v13, %v252_v13 }
 0x170   :  { %v438_v16 = vsel %vm390_vm2, %v17113_v15, 0 }
 0x1dc   :  { %v267_v9 = vpop.permute.xlu0 %266 }
 0x1dd   :  { %v273_v10 = vsel %vm268_vm3, %v267_v9, 0 }
 0x1de   :  { %15588 = vmatpush3.bf16.xpose.msra.mxu1 %v273_v10 }
 0x1df   :  { %15593 = vmatprep.subr.bf16.mxu1 %v16907_v58 }
 0x1e0   :  { %v316_v12 = vpop.permute.xlu1 %315 }
 0x1e1   :  { %v321_v14 = vsel %vm268_vm3, %v316_v12, 0 }
 0x1e5   :  { %15590 = vmatmul.mubr.msk.bf16.vlgmr.msra.gmra.mxu1 %vm268_vm3, %v17092_v1 }
 0x1e6   :  { %15594 = vmatpush3.bf16.xpose.msra.mxu1 %v321_v14  ;;  %15595 = vmatprep.mubr.msk.bf16.mxu1 %vm16908_vm1, %v16907_v58 }
 0x1e7   :  { %15605 = vmatprep.subr.bf16.mxu1 %v16907_v58 }
 0x1ed   :  { %15596 = vmatmul.mubr.msk.bf16.vlgmr.msra.gmra.mxu1 %vm268_vm3, %v17098_v7 }
 0x1ee   :  { %15606 = vmatpush3.bf16.msra.mxu1 %v438_v16  ;;  %15607 = vmatprep.mubr.msk.bf16.mxu1 %vm16908_vm1, %v16907_v58 }
 0x1ef   :  { %15617 = vmatprep.subr.bf16.mxu1 %v16907_v58 }
 0x2a5   :  { %v309_v17 = vpop.f32.mrf.mxu1 }
 0x2a6   :  { %v363_v18 = vsel %vm268_vm3, %v309_v17, -inf }
 0x2a7   :  { %364 = vmax.xlane.f32.xlu0 %v363_v18  ;;  %v15591_v19 = vpop.f32.mrf.mxu1 }
 0x2a9   :  { %v312_v20 = vpop.f32.mrf.mxu1 }
 0x2ab   :  { %v15592_v25 = vpop.f32.mrf.mxu1 }
 0x2ad   :  { %v357_v26 = vpop.f32.mrf.mxu1 }
 0x2ae   :  { %v366_v27 = vsel %vm268_vm3, %v357_v26, -inf }
 0x2af   :  { %367 = vmax.xlane.f32.xlu1 %v366_v27  ;;  %v15597_v28 = vpop.f32.mrf.mxu1 }
 0x2b1   :  { %v360_v29 = vpop.f32.mrf.mxu1 }
 0x2b3   :  { %v15598_v30 = vpop.f32.mrf.mxu1 }
 0x2c0   :  { %484 = vrot.lane.b32.xlu1 %v17092_v1, %s20522_s22 }
 0x2c4   :  { %482 = vrot.lane.b32.xlu1 %v17092_v1, %s20518_s23 }
 0x2c8   :  { %532 = vrot.lane.b32.xlu1 %v17098_v7, %s20518_s23 }
 0x330   :  { %v365_v31 = vpop.xlane.xlu0 %364 }
 0x331   :  { %v369_v32 = vsub.f32 %v309_v17, %v365_v31 }
 0x333   :  { %v371_v33 = vmul.f32 1.442695, %v369_v32 }
 0x335   :  { %16668 = vpow2.f32 %v371_v33 }
 0x338   :  { %v368_v34 = vpop.xlane.xlu1 %367 }
 0x339   :  { %v370_v35 = vsub.f32 %v357_v26, %v368_v34 }
 0x33b   :  { %v373_v36 = vmul.f32 1.442695, %v370_v35 }
 0x33c   :  { %v485_v45 = vpop.permute.xlu1 %484 }
 0x33d   :  { %16670 = vpow2.f32 %v373_v36  ;;  %v490_v47 = vsel %vm268_vm3, %v485_v45, 0 }
 0x340   :  { %v483_v52 = vpop.permute.xlu1 %482 }
 0x342   :  { %v16669_v37 = vpop.eup %16668 }
 0x343   :  { %v375_v38 = vsel %vm268_vm3, %v16669_v37, 0.0 }
 0x344   :  { %376 = vadd.xlane.f32.xlu0 %v375_v38  ;;  %v533_v54 = vpop.permute.xlu1 %532 }
 0x34a   :  { %v16671_v39 = vpop.eup %16670 }
 0x34b   :  { %v378_v40 = vsel %vm268_vm3, %v16671_v39, 0.0 }
 0x34c   :  { %379 = vadd.xlane.f32.xlu0 %v378_v40 }
 0x362   :  { %534 = vrot.lane.b32.xlu0 %v17098_v7, %s20522_s22 }
 0x3cd   :  { %v377_v41 = vpop.xlane.xlu0 %376 }
 0x3ce   :  { %16672 = vrcp.f32 %v377_v41 }
 0x3d5   :  { %v380_v42 = vpop.xlane.xlu0 %379 }
 0x3d6   :  { %16674 = vrcp.f32 %v380_v42 }
 0x3d9   :  { %v535_v50 = vpop.permute.xlu0 %534 }
 0x3da   :  { %v540_v53 = vsel %vm268_vm3, %v535_v50, 0 }
 0x3db   :  { %v16673_v43 = vpop.eup %16672 }
 0x3dc   :  { %v382_v44 = vmul.f32 %v16673_v43, %v16669_v37 }
 0x3de   :  { %v385_v46 = vpack.c.bf16 %v382_v44, %v382_v44 }
 0x3e0   :  { %15602 = vmatmul.mubr.msk.bf16.vlgmr.msra.gmra.mxu0 %vm268_vm3, %v385_v46 }
 0x3e1   :  { %15612 = vmatpush3.bf16.xpose.msra.mxu0 %v490_v47  ;;  %15613 = vmatprep.mubr.msk.bf16.mxu0 %vm16908_vm1, %v16907_v58 }
 0x3e2   :  { %15623 = vmatprep.subr.bf16.mxu0 %v16907_v58 }
 0x3e3   :  { %v16675_v48 = vpop.eup %16674 }
 0x3e4   :  { %v384_v49 = vmul.f32 %v16675_v48, %v16671_v39 }
 0x3e6   :  { %v386_v51 = vpack.c.bf16 %v384_v49, %v384_v49 }
 0x3e8   :  { %15608 = vmatmul.mubr.msk.bf16.vlgmr.msra.gmra.mxu1 %vm268_vm3, %v386_v51  ;;  %15614 = vmatmul.mubr.msk.bf16.vlgmr.msra.gmra.mxu0 %vm268_vm3, %v483_v52 }
 0x3e9   :  { %15618 = vmatpush3.bf16.xpose.msra.mxu1 %v540_v53  ;;  %15619 = vmatprep.mubr.msk.bf16.mxu1 %vm16908_vm1, %v16907_v58 }
 0x3ea   :  { %15629 = vmatprep.subr.bf16.mxu1 %v16907_v58  ;;  %15625 = vmatprep.mubr.msk.bf16.mxu0 %vm16908_vm1, %v16907_v58 }
 0x3f0   :  { %15620 = vmatmul.mubr.msk.bf16.vlgmr.msra.gmra.mxu1 %vm268_vm3, %v533_v54 }
 0x3f1   :  { %15631 = vmatprep.mubr.msk.bf16.mxu1 %vm16908_vm1, %v16907_v58 }
 0x4a0   :  { %v428_v57 = vpop.f32.mrf.mxu0 }
 0x4a1   :  { %480 = vst.msk [vmem:[#allocation2] sm:$0xff] %vm268_vm3, %v428_v57 }
 0x4a2   :  { %v15603_v59 = vpop.f32.mrf.mxu0 }
 0x4a4   :  { %v431_v60 = vpop.f32.mrf.mxu0 }
 0x4a6   :  { %v15604_v61 = vpop.f32.mrf.mxu0 }
 0x4a8   :  { %v474_v62 = vpop.f32.mrf.mxu1  ;;  %v526_v63 = vpop.f32.mrf.mxu0 }
 0x4a9   :  { %481 = vst.msk [vmem:[#allocation2 + $0x8] sm:$0xff] %vm268_vm3, %v474_v62  ;;  %v582_v0 = vsel %vm268_vm3, %v526_v63, -inf }
 0x4aa   :  { %583 = vmax.xlane.f32.xlu0 %v582_v0  ;;  %v15609_v3 = vpop.f32.mrf.mxu1  ;;  %v15615_v4 = vpop.f32.mrf.mxu0 }
 0x4ac   :  { %v477_v6 = vpop.f32.mrf.mxu1  ;;  %v529_v8 = vpop.f32.mrf.mxu0 }
 0x4ae   :  { %v15610_v9 = vpop.f32.mrf.mxu1  ;;  %v15616_v10 = vpop.f32.mrf.mxu0 }
 0x4b0   :  { %v576_v11 = vpop.f32.mrf.mxu1 }
 0x4b1   :  { %v585_v12 = vsel %vm268_vm3, %v576_v11, -inf }
 0x4b2   :  { %586 = vmax.xlane.f32.xlu1 %v585_v12  ;;  %v15621_v13 = vpop.f32.mrf.mxu1 }
 0x4b4   :  { %v579_v14 = vpop.f32.mrf.mxu1 }
 0x4b6   :  { %v15622_v16 = vpop.f32.mrf.mxu1 }
 0x4c3   :  { %606 = vrot.lane.b32.xlu1 %v17094_v5, %s20518_s23 }
 0x4c7   :  { %715 = vrot.lane.b32.xlu1 %v17092_v1, %s20516_s24 }
 0x4cb   :  { %765 = vrot.lane.b32.xlu1 %v17098_v7, %s20516_s24 }
 0x4cf   :  { %763 = vrot.lane.b32.xlu1 %v17098_v7, %s20514_s25 }
 0x533   :  { %v584_v17 = vpop.xlane.xlu0 %583 }
 0x534   :  { %v588_v18 = vsub.f32 %v526_v63, %v584_v17 }
 0x536   :  { %v590_v19 = vmul.f32 1.442695, %v588_v18 }
 0x538   :  { %16676 = vpow2.f32 %v590_v19 }
 0x53b   :  { %v587_v20 = vpop.xlane.xlu1 %586 }
 0x53c   :  { %v589_v25 = vsub.f32 %v576_v11, %v587_v20 }
 0x53e   :  { %v592_v26 = vmul.f32 1.442695, %v589_v25 }
 0x53f   :  { %v607_v27 = vpop.permute.xlu1 %606 }
 0x540   :  { %16678 = vpow2.f32 %v592_v26  ;;  %v612_v28 = vsel %vm390_vm2, %v607_v27, 0 }
 0x541   :  { %15624 = vmatpush3.bf16.msra.mxu0 %v612_v28 }
 0x542   :  { %15635 = vmatprep.subr.bf16.mxu0 %v16907_v58 }
 0x543   :  { %v716_v39 = vpop.permute.xlu1 %715 }
 0x544   :  { %v721_v41 = vsel %vm268_vm3, %v716_v39, 0 }
 0x545   :  { %v16677_v29 = vpop.eup %16676 }
 0x546   :  { %v594_v30 = vsel %vm268_vm3, %v16677_v29, 0.0 }
 0x547   :  { %595 = vadd.xlane.f32.xlu0 %v594_v30  ;;  %v766_v44 = vpop.permute.xlu1 %765 }
 0x548   :  { %v771_v47 = vsel %vm268_vm3, %v766_v44, 0 }
 0x54b   :  { %v764_v48 = vpop.permute.xlu1 %763 }
 0x54d   :  { %v16679_v31 = vpop.eup %16678 }
 0x54e   :  { %v597_v32 = vsel %vm268_vm3, %v16679_v31, 0.0 }
 0x54f   :  { %598 = vadd.xlane.f32.xlu0 %v597_v32 }
 0x565   :  { %654 = vrot.lane.b32.xlu0 %v17113_v15, %s20518_s23 }
 0x569   :  { %713 = vrot.lane.b32.xlu0 %v17092_v1, %s20514_s25 }
 0x5d0   :  { %v596_v33 = vpop.xlane.xlu0 %595 }
 0x5d1   :  { %16680 = vrcp.f32 %v596_v33 }
 0x5d8   :  { %v599_v34 = vpop.xlane.xlu0 %598 }
 0x5d9   :  { %16682 = vrcp.f32 %v599_v34 }
 0x5dc   :  { %v655_v35 = vpop.permute.xlu0 %654 }
 0x5dd   :  { %v660_v36 = vsel %vm390_vm2, %v655_v35, 0 }
 0x5de   :  { %v16681_v37 = vpop.eup %16680  ;;  %15630 = vmatpush3.bf16.msra.mxu1 %v660_v36 }
 0x5df   :  { %v601_v38 = vmul.f32 %v16681_v37, %v16677_v29  ;;  %15641 = vmatprep.subr.bf16.mxu1 %v16907_v58 }
 0x5e0   :  { %v714_v46 = vpop.permute.xlu0 %713 }
 0x5e1   :  { %v604_v40 = vpack.c.bf16 %v601_v38, %v601_v38 }
 0x5e3   :  { %15626 = vmatmul.mubr.msk.bf16.vlgmr.msra.gmra.mxu0 %vm268_vm3, %v604_v40 }
 0x5e4   :  { %15636 = vmatpush3.bf16.xpose.msra.mxu0 %v721_v41  ;;  %15637 = vmatprep.mubr.msk.bf16.mxu0 %vm16908_vm1, %v16907_v58 }
 0x5e5   :  { %15647 = vmatprep.subr.bf16.mxu0 %v16907_v58 }
 0x5e6   :  { %v16683_v42 = vpop.eup %16682 }
 0x5e7   :  { %v603_v43 = vmul.f32 %v16683_v42, %v16679_v31 }
 0x5e9   :  { %v605_v45 = vpack.c.bf16 %v603_v43, %v603_v43 }
 0x5eb   :  { %15632 = vmatmul.mubr.msk.bf16.vlgmr.msra.gmra.mxu1 %vm268_vm3, %v605_v45  ;;  %15638 = vmatmul.mubr.msk.bf16.vlgmr.msra.gmra.mxu0 %vm268_vm3, %v714_v46 }
 0x5ec   :  { %15642 = vmatpush3.bf16.xpose.msra.mxu1 %v771_v47  ;;  %15643 = vmatprep.mubr.msk.bf16.mxu1 %vm16908_vm1, %v16907_v58 }
 0x5ed   :  { %15653 = vmatprep.subr.bf16.mxu1 %v16907_v58  ;;  %15649 = vmatprep.mubr.msk.bf16.mxu0 %vm16908_vm1, %v16907_v58 }
 0x5f3   :  { %15644 = vmatmul.mubr.msk.bf16.vlgmr.msra.gmra.mxu1 %vm268_vm3, %v764_v48 }
 0x5f4   :  { %15655 = vmatprep.mubr.msk.bf16.mxu1 %vm16908_vm1, %v16907_v58 }
 0x6a3   :  { %v17188_v49 = vpop.f32.mrf.mxu0 }
 0x6a5   :  { %v15627_v50 = vpop.f32.mrf.mxu0 }
 0x6a7   :  { %v651_v51 = vpop.f32.mrf.mxu0 }
 0x6a9   :  { %v15628_v52 = vpop.f32.mrf.mxu0 }
 0x6ab   :  { %v17190_v53 = vpop.f32.mrf.mxu1  ;;  %v757_v54 = vpop.f32.mrf.mxu0 }
 0x6ac   :  { %v813_v57 = vsel %vm268_vm3, %v757_v54, -inf }
 0x6ad   :  { %814 = vmax.xlane.f32.xlu0 %v813_v57  ;;  %v15633_v59 = vpop.f32.mrf.mxu1  ;;  %v15639_v60 = vpop.f32.mrf.mxu0 }
 0x6af   :  { %v699_v61 = vpop.f32.mrf.mxu1  ;;  %v760_v62 = vpop.f32.mrf.mxu0 }
 0x6b1   :  { %v15634_v63 = vpop.f32.mrf.mxu1  ;;  %v15640_v0 = vpop.f32.mrf.mxu0 }
 0x6b3   :  { %v807_v3 = vpop.f32.mrf.mxu1 }
 0x6b4   :  { %v816_v4 = vsel %vm268_vm3, %v807_v3, -inf }
 0x6b5   :  { %817 = vmax.xlane.f32.xlu1 %v816_v4  ;;  %v15645_v6 = vpop.f32.mrf.mxu1 }
 0x6b7   :  { %v810_v8 = vpop.f32.mrf.mxu1 }
 0x6b9   :  { %v15646_v9 = vpop.f32.mrf.mxu1 }
 0x6c6   :  { %837 = vrot.lane.b32.xlu1 %v17094_v5, %s20514_s25 }
 0x6ca   :  { %946 = vrot.lane.b32.xlu1 %v17092_v1, %s20512_s26 }
 0x6ce   :  { %996 = vrot.lane.b32.xlu1 %v17098_v7, %s20512_s26 }
 0x6d2   :  { %994 = vrot.lane.b32.xlu1 %v17098_v7, %s20510_s27 }
 0x736   :  { %v815_v10 = vpop.xlane.xlu0 %814 }
 0x737   :  { %v819_v11 = vsub.f32 %v757_v54, %v815_v10 }
 0x739   :  { %v821_v12 = vmul.f32 1.442695, %v819_v11 }
 0x73b   :  { %16684 = vpow2.f32 %v821_v12 }
 0x73e   :  { %v818_v13 = vpop.xlane.xlu1 %817 }
 0x73f   :  { %v820_v14 = vsub.f32 %v807_v3, %v818_v13 }
 0x741   :  { %v823_v16 = vmul.f32 1.442695, %v820_v14 }
 0x742   :  { %v838_v17 = vpop.permute.xlu1 %837 }
 0x743   :  { %16686 = vpow2.f32 %v823_v16  ;;  %v843_v18 = vsel %vm390_vm2, %v838_v17, 0 }
 0x744   :  { %15648 = vmatpush3.bf16.msra.mxu0 %v843_v18 }
 0x745   :  { %15659 = vmatprep.subr.bf16.mxu0 %v16907_v58 }
 0x746   :  { %v947_v33 = vpop.permute.xlu1 %946 }
 0x747   :  { %v952_v35 = vsel %vm268_vm3, %v947_v33, 0 }
 0x748   :  { %v16685_v19 = vpop.eup %16684 }
 0x749   :  { %v825_v20 = vsel %vm268_vm3, %v16685_v19, 0.0 }
 0x74a   :  { %826 = vadd.xlane.f32.xlu0 %v825_v20  ;;  %v997_v38 = vpop.permute.xlu1 %996 }
 0x74b   :  { %v1002_v41 = vsel %vm268_vm3, %v997_v38, 0 }
 0x74e   :  { %v995_v42 = vpop.permute.xlu1 %994 }
 0x750   :  { %v16687_v25 = vpop.eup %16686 }
 0x751   :  { %v828_v26 = vsel %vm268_vm3, %v16687_v25, 0.0 }
 0x752   :  { %829 = vadd.xlane.f32.xlu0 %v828_v26 }
 0x768   :  { %885 = vrot.lane.b32.xlu0 %v17113_v15, %s20514_s25  ;;  %s20546_s25 = smov 96  }
 0x76c   :  { %944 = vrot.lane.b32.xlu0 %v17092_v1, %s20510_s27 }
 0x7d3   :  { %v827_v27 = vpop.xlane.xlu0 %826 }
 0x7d4   :  { %16688 = vrcp.f32 %v827_v27 }
 0x7db   :  { %v830_v28 = vpop.xlane.xlu0 %829 }
 0x7dc   :  { %16690 = vrcp.f32 %v830_v28 }
 0x7df   :  { %v886_v29 = vpop.permute.xlu0 %885 }
 0x7e0   :  { %v891_v30 = vsel %vm390_vm2, %v886_v29, 0 }
 0x7e1   :  { %v16689_v31 = vpop.eup %16688  ;;  %15654 = vmatpush3.bf16.msra.mxu1 %v891_v30 }
 0x7e2   :  { %v832_v32 = vmul.f32 %v16689_v31, %v16685_v19  ;;  %15665 = vmatprep.subr.bf16.mxu1 %v16907_v58 }
 0x7e3   :  { %v945_v40 = vpop.permute.xlu0 %944 }
 0x7e4   :  { %v835_v34 = vpack.c.bf16 %v832_v32, %v832_v32 }
 0x7e6   :  { %15650 = vmatmul.mubr.msk.bf16.vlgmr.msra.gmra.mxu0 %vm268_vm3, %v835_v34 }
 0x7e7   :  { %15660 = vmatpush3.bf16.xpose.msra.mxu0 %v952_v35  ;;  %15661 = vmatprep.mubr.msk.bf16.mxu0 %vm16908_vm1, %v16907_v58 }
 0x7e8   :  { %15671 = vmatprep.subr.bf16.mxu0 %v16907_v58 }
 0x7e9   :  { %v16691_v36 = vpop.eup %16690 }
 0x7ea   :  { %v834_v37 = vmul.f32 %v16691_v36, %v16687_v25 }
 0x7ec   :  { %v836_v39 = vpack.c.bf16 %v834_v37, %v834_v37 }
 0x7ee   :  { %15656 = vmatmul.mubr.msk.bf16.vlgmr.msra.gmra.mxu1 %vm268_vm3, %v836_v39  ;;  %15662 = vmatmul.mubr.msk.bf16.vlgmr.msra.gmra.mxu0 %vm268_vm3, %v945_v40 }
 0x7ef   :  { %15666 = vmatpush3.bf16.xpose.msra.mxu1 %v1002_v41  ;;  %15667 = vmatprep.mubr.msk.bf16.mxu1 %vm16908_vm1, %v16907_v58 }
 0x7f0   :  { %15677 = vmatprep.subr.bf16.mxu1 %v16907_v58  ;;  %15673 = vmatprep.mubr.msk.bf16.mxu0 %vm16908_vm1, %v16907_v58 }
 0x7f6   :  { %15668 = vmatmul.mubr.msk.bf16.vlgmr.msra.gmra.mxu1 %vm268_vm3, %v995_v42 }
 0x7f7   :  { %15679 = vmatprep.mubr.msk.bf16.mxu1 %vm16908_vm1, %v16907_v58 }
 0x8a6   :  { %v17228_v43 = vpop.f32.mrf.mxu0 }
 0x8a8   :  { %v15651_v44 = vpop.f32.mrf.mxu0 }
 0x8aa   :  { %v882_v45 = vpop.f32.mrf.mxu0 }
 0x8ac   :  { %v15652_v46 = vpop.f32.mrf.mxu0 }
 0x8ae   :  { %v17230_v47 = vpop.f32.mrf.mxu1  ;;  %v988_v48 = vpop.f32.mrf.mxu0 }
 0x8af   :  { %v1044_v50 = vsel %vm268_vm3, %v988_v48, -inf }
 0x8b0   :  { %1045 = vmax.xlane.f32.xlu0 %v1044_v50  ;;  %v15657_v51 = vpop.f32.mrf.mxu1  ;;  %v15663_v52 = vpop.f32.mrf.mxu0 }
 0x8b2   :  { %v930_v54 = vpop.f32.mrf.mxu1  ;;  %v991_v57 = vpop.f32.mrf.mxu0 }
 0x8b4   :  { %v15658_v59 = vpop.f32.mrf.mxu1  ;;  %v15664_v60 = vpop.f32.mrf.mxu0 }
 0x8b6   :  { %v1038_v61 = vpop.f32.mrf.mxu1 }
 0x8b7   :  { %v1047_v62 = vsel %vm268_vm3, %v1038_v61, -inf }
 0x8b8   :  { %1048 = vmax.xlane.f32.xlu1 %v1047_v62  ;;  %v15669_v63 = vpop.f32.mrf.mxu1 }
 0x8ba   :  { %v1041_v0 = vpop.f32.mrf.mxu1 }
 0x8bc   :  { %v15670_v3 = vpop.f32.mrf.mxu1 }
 0x8c9   :  { %1068 = vrot.lane.b32.xlu1 %v17094_v5, %s20510_s27 }
 0x8cd   :  { %1177 = vrot.lane.b32.xlu1 %v17092_v1, %s20508_s28 }
 0x8d1   :  { %1227 = vrot.lane.b32.xlu1 %v17098_v7, %s20508_s28 }
 0x8d5   :  { %1225 = vrot.lane.b32.xlu1 %v17098_v7, %s20506_s29 }
 0x939   :  { %v1046_v4 = vpop.xlane.xlu0 %1045 }
 0x93a   :  { %v1050_v6 = vsub.f32 %v988_v48, %v1046_v4 }
 0x93c   :  { %v1052_v8 = vmul.f32 1.442695, %v1050_v6 }
 0x93e   :  { %16692 = vpow2.f32 %v1052_v8 }
 0x941   :  { %v1049_v9 = vpop.xlane.xlu1 %1048 }
 0x942   :  { %v1051_v10 = vsub.f32 %v1038_v61, %v1049_v9 }
 0x944   :  { %v1054_v11 = vmul.f32 1.442695, %v1051_v10 }
 0x945   :  { %v1069_v12 = vpop.permute.xlu1 %1068 }
 0x946   :  { %16694 = vpow2.f32 %v1054_v11  ;;  %v1074_v13 = vsel %vm390_vm2, %v1069_v12, 0 }
 0x947   :  { %15672 = vmatpush3.bf16.msra.mxu0 %v1074_v13 }
 0x948   :  { %15683 = vmatprep.subr.bf16.mxu0 %v16907_v58 }
 0x949   :  { %v1178_v29 = vpop.permute.xlu1 %1177 }
 0x94a   :  { %v1183_v31 = vsel %vm268_vm3, %v1178_v29, 0 }
 0x94b   :  { %v16693_v14 = vpop.eup %16692 }
 0x94c   :  { %v1056_v16 = vsel %vm268_vm3, %v16693_v14, 0.0 }
 0x94d   :  { %1057 = vadd.xlane.f32.xlu0 %v1056_v16  ;;  %v1228_v34 = vpop.permute.xlu1 %1227 }
 0x94e   :  { %v1233_v37 = vsel %vm268_vm3, %v1228_v34, 0 }
 0x951   :  { %v1226_v38 = vpop.permute.xlu1 %1225 }
 0x953   :  { %v16695_v17 = vpop.eup %16694 }
 0x954   :  { %v1059_v18 = vsel %vm268_vm3, %v16695_v17, 0.0 }
 0x955   :  { %1060 = vadd.xlane.f32.xlu0 %v1059_v18 }
 0x96b   :  { %1116 = vrot.lane.b32.xlu0 %v17113_v15, %s20510_s27  ;;  %s20548_s27 = smov 88  }
 0x96f   :  { %1175 = vrot.lane.b32.xlu0 %v17092_v1, %s20506_s29 }
 0x9d6   :  { %v1058_v19 = vpop.xlane.xlu0 %1057 }
 0x9d7   :  { %16696 = vrcp.f32 %v1058_v19 }
 0x9de   :  { %v1061_v20 = vpop.xlane.xlu0 %1060 }
 0x9df   :  { %16698 = vrcp.f32 %v1061_v20 }
 0x9e2   :  { %v1117_v25 = vpop.permute.xlu0 %1116 }
 0x9e3   :  { %v1122_v26 = vsel %vm390_vm2, %v1117_v25, 0 }
 0x9e4   :  { %v16697_v27 = vpop.eup %16696  ;;  %15678 = vmatpush3.bf16.msra.mxu1 %v1122_v26 }
 0x9e5   :  { %v1063_v28 = vmul.f32 %v16697_v27, %v16693_v14  ;;  %15689 = vmatprep.subr.bf16.mxu1 %v16907_v58 }
 0x9e6   :  { %v1176_v36 = vpop.permute.xlu0 %1175 }
 0x9e7   :  { %v1066_v30 = vpack.c.bf16 %v1063_v28, %v1063_v28 }
 0x9e9   :  { %15674 = vmatmul.mubr.msk.bf16.vlgmr.msra.gmra.mxu0 %vm268_vm3, %v1066_v30 }
 0x9ea   :  { %15684 = vmatpush3.bf16.xpose.msra.mxu0 %v1183_v31  ;;  %15685 = vmatprep.mubr.msk.bf16.mxu0 %vm16908_vm1, %v16907_v58 }
 0x9eb   :  { %15695 = vmatprep.subr.bf16.mxu0 %v16907_v58 }
 0x9ec   :  { %v16699_v32 = vpop.eup %16698 }
 0x9ed   :  { %v1065_v33 = vmul.f32 %v16699_v32, %v16695_v17 }
 0x9ef   :  { %v1067_v35 = vpack.c.bf16 %v1065_v33, %v1065_v33 }
 0x9f1   :  { %15680 = vmatmul.mubr.msk.bf16.vlgmr.msra.gmra.mxu1 %vm268_vm3, %v1067_v35  ;;  %15686 = vmatmul.mubr.msk.bf16.vlgmr.msra.gmra.mxu0 %vm268_vm3, %v1176_v36 }
 0x9f2   :  { %15690 = vmatpush3.bf16.xpose.msra.mxu1 %v1233_v37  ;;  %15691 = vmatprep.mubr.msk.bf16.mxu1 %vm16908_vm1, %v16907_v58 }
 0x9f3   :  { %15701 = vmatprep.subr.bf16.mxu1 %v16907_v58  ;;  %15697 = vmatprep.mubr.msk.bf16.mxu0 %vm16908_vm1, %v16907_v58 }
 0x9f9   :  { %15692 = vmatmul.mubr.msk.bf16.vlgmr.msra.gmra.mxu1 %vm268_vm3, %v1226_v38 }
 0x9fa   :  { %15703 = vmatprep.mubr.msk.bf16.mxu1 %vm16908_vm1, %v16907_v58 }
 0xaa9   :  { %v17268_v39 = vpop.f32.mrf.mxu0 }
 0xaab   :  { %v15675_v40 = vpop.f32.mrf.mxu0 }
 0xaad   :  { %v1113_v41 = vpop.f32.mrf.mxu0 }
 0xaaf   :  { %v15676_v42 = vpop.f32.mrf.mxu0 }
 0xab1   :  { %v17270_v44 = vpop.f32.mrf.mxu1  ;;  %v1219_v45 = vpop.f32.mrf.mxu0 }
 0xab2   :  { %v1275_v46 = vsel %vm268_vm3, %v1219_v45, -inf }
 0xab3   :  { %1276 = vmax.xlane.f32.xlu0 %v1275_v46  ;;  %v15681_v48 = vpop.f32.mrf.mxu1  ;;  %v15687_v50 = vpop.f32.mrf.mxu0 }
 0xab5   :  { %v1161_v51 = vpop.f32.mrf.mxu1  ;;  %v1222_v52 = vpop.f32.mrf.mxu0 }
 0xab7   :  { %v15682_v54 = vpop.f32.mrf.mxu1  ;;  %v15688_v57 = vpop.f32.mrf.mxu0 }
 0xab9   :  { %v1269_v59 = vpop.f32.mrf.mxu1 }
 0xaba   :  { %v1278_v60 = vsel %vm268_vm3, %v1269_v59, -inf }
 0xabb   :  { %1279 = vmax.xlane.f32.xlu1 %v1278_v60  ;;  %v15693_v61 = vpop.f32.mrf.mxu1 }
 0xabd   :  { %v1272_v62 = vpop.f32.mrf.mxu1 }
 0xabf   :  { %v15694_v63 = vpop.f32.mrf.mxu1 }
 0xacc   :  { %1299 = vrot.lane.b32.xlu1 %v17094_v5, %s20506_s29 }
 0xad0   :  { %1408 = vrot.lane.b32.xlu1 %v17092_v1, %s20504_s0 }
 0xad4   :  { %1458 = vrot.lane.b32.xlu1 %v17098_v7, %s20504_s0 }
 0xad8   :  { %1456 = vrot.lane.b32.xlu1 %v17098_v7, %s20502_s30 }
 0xb3c   :  { %v1277_v0 = vpop.xlane.xlu0 %1276 }
 0xb3d   :  { %v1281_v3 = vsub.f32 %v1219_v45, %v1277_v0 }
 0xb3f   :  { %v1283_v4 = vmul.f32 1.442695, %v1281_v3 }
 0xb41   :  { %16700 = vpow2.f32 %v1283_v4 }
 0xb44   :  { %v1280_v6 = vpop.xlane.xlu1 %1279 }
 0xb45   :  { %v1282_v8 = vsub.f32 %v1269_v59, %v1280_v6 }
 0xb47   :  { %v1285_v9 = vmul.f32 1.442695, %v1282_v8 }
 0xb48   :  { %v1300_v10 = vpop.permute.xlu1 %1299 }
 0xb49   :  { %16702 = vpow2.f32 %v1285_v9  ;;  %v1305_v11 = vsel %vm390_vm2, %v1300_v10, 0 }
 0xb4a   :  { %15696 = vmatpush3.bf16.msra.mxu0 %v1305_v11 }
 0xb4b   :  { %15707 = vmatprep.subr.bf16.mxu0 %v16907_v58 }
 0xb4c   :  { %v1409_v27 = vpop.permute.xlu1 %1408 }
 0xb4d   :  { %v1414_v29 = vsel %vm268_vm3, %v1409_v27, 0 }
 0xb4e   :  { %v16701_v12 = vpop.eup %16700 }
 0xb4f   :  { %v1287_v13 = vsel %vm268_vm3, %v16701_v12, 0.0 }
 0xb50   :  { %1288 = vadd.xlane.f32.xlu0 %v1287_v13  ;;  %v1459_v32 = vpop.permute.xlu1 %1458 }
 0xb51   :  { %v1464_v35 = vsel %vm268_vm3, %v1459_v32, 0 }
 0xb54   :  { %v1457_v36 = vpop.permute.xlu1 %1456 }
 0xb56   :  { %v16703_v14 = vpop.eup %16702 }
 0xb57   :  { %v1290_v16 = vsel %vm268_vm3, %v16703_v14, 0.0 }
 0xb58   :  { %1291 = vadd.xlane.f32.xlu0 %v1290_v16 }
 0xb6e   :  { %1347 = vrot.lane.b32.xlu0 %v17113_v15, %s20506_s29  ;;  %s20550_s29 = smov 80  }
 0xb72   :  { %1406 = vrot.lane.b32.xlu0 %v17092_v1, %s20502_s30 }
 0xbd9   :  { %v1289_v17 = vpop.xlane.xlu0 %1288 }
 0xbda   :  { %16704 = vrcp.f32 %v1289_v17 }
 0xbe1   :  { %v1292_v18 = vpop.xlane.xlu0 %1291 }
 0xbe2   :  { %16706 = vrcp.f32 %v1292_v18 }
 0xbe5   :  { %v1348_v19 = vpop.permute.xlu0 %1347 }
 0xbe6   :  { %v1353_v20 = vsel %vm390_vm2, %v1348_v19, 0 }
 0xbe7   :  { %v16705_v25 = vpop.eup %16704  ;;  %15702 = vmatpush3.bf16.msra.mxu1 %v1353_v20 }
 0xbe8   :  { %v1294_v26 = vmul.f32 %v16705_v25, %v16701_v12  ;;  %15713 = vmatprep.subr.bf16.mxu1 %v16907_v58 }
 0xbe9   :  { %v1407_v34 = vpop.permute.xlu0 %1406 }
 0xbea   :  { %v1297_v28 = vpack.c.bf16 %v1294_v26, %v1294_v26 }
 0xbec   :  { %15698 = vmatmul.mubr.msk.bf16.vlgmr.msra.gmra.mxu0 %vm268_vm3, %v1297_v28 }
 0xbed   :  { %15708 = vmatpush3.bf16.xpose.msra.mxu0 %v1414_v29  ;;  %15709 = vmatprep.mubr.msk.bf16.mxu0 %vm16908_vm1, %v16907_v58 }
 0xbee   :  { %15719 = vmatprep.subr.bf16.mxu0 %v16907_v58 }
 0xbef   :  { %v16707_v30 = vpop.eup %16706 }
 0xbf0   :  { %v1296_v31 = vmul.f32 %v16707_v30, %v16703_v14 }
 0xbf2   :  { %v1298_v33 = vpack.c.bf16 %v1296_v31, %v1296_v31 }
 0xbf4   :  { %15704 = vmatmul.mubr.msk.bf16.vlgmr.msra.gmra.mxu1 %vm268_vm3, %v1298_v33  ;;  %15710 = vmatmul.mubr.msk.bf16.vlgmr.msra.gmra.mxu0 %vm268_vm3, %v1407_v34 }
 0xbf5   :  { %15714 = vmatpush3.bf16.xpose.msra.mxu1 %v1464_v35  ;;  %15715 = vmatprep.mubr.msk.bf16.mxu1 %vm16908_vm1, %v16907_v58 }
 0xbf6   :  { %15725 = vmatprep.subr.bf16.mxu1 %v16907_v58  ;;  %15721 = vmatprep.mubr.msk.bf16.mxu0 %vm16908_vm1, %v16907_v58 }
 0xbfc   :  { %15716 = vmatmul.mubr.msk.bf16.vlgmr.msra.gmra.mxu1 %vm268_vm3, %v1457_v36 }
 0xbfd   :  { %15727 = vmatprep.mubr.msk.bf16.mxu1 %vm16908_vm1, %v16907_v58 }
 0xcac   :  { %v17308_v37 = vpop.f32.mrf.mxu0 }
 0xcae   :  { %v15699_v38 = vpop.f32.mrf.mxu0 }
 0xcb0   :  { %v1344_v40 = vpop.f32.mrf.mxu0 }
 0xcb2   :  { %v15700_v41 = vpop.f32.mrf.mxu0 }
 0xcb4   :  { %v17310_v42 = vpop.f32.mrf.mxu1  ;;  %v1450_v45 = vpop.f32.mrf.mxu0 }
 0xcb5   :  { %v1506_v46 = vsel %vm268_vm3, %v1450_v45, -inf }
 0xcb6   :  { %1507 = vmax.xlane.f32.xlu0 %v1506_v46  ;;  %v15705_v48 = vpop.f32.mrf.mxu1  ;;  %v15711_v50 = vpop.f32.mrf.mxu0 }
 0xcb8   :  { %v1392_v51 = vpop.f32.mrf.mxu1  ;;  %v1453_v52 = vpop.f32.mrf.mxu0 }
 0xcba   :  { %v15706_v54 = vpop.f32.mrf.mxu1  ;;  %v15712_v57 = vpop.f32.mrf.mxu0 }
 0xcbc   :  { %v1500_v59 = vpop.f32.mrf.mxu1 }
 0xcbd   :  { %v1509_v60 = vsel %vm268_vm3, %v1500_v59, -inf }
 0xcbe   :  { %1510 = vmax.xlane.f32.xlu1 %v1509_v60  ;;  %v15717_v61 = vpop.f32.mrf.mxu1 }
 0xcc0   :  { %v1503_v62 = vpop.f32.mrf.mxu1 }
 0xcc2   :  { %v15718_v63 = vpop.f32.mrf.mxu1 }
 0xccf   :  { %1530 = vrot.lane.b32.xlu1 %v17094_v5, %s20502_s30 }
 0xcd3   :  { %1639 = vrot.lane.b32.xlu1 %v17092_v1, %s20500_s18 }
 0xcd7   :  { %1689 = vrot.lane.b32.xlu1 %v17098_v7, %s20500_s18 }
 0xcdb   :  { %1687 = vrot.lane.b32.xlu1 %v17098_v7, %s20498_s19 }
 0xd3f   :  { %v1508_v0 = vpop.xlane.xlu0 %1507 }
 0xd40   :  { %v1512_v3 = vsub.f32 %v1450_v45, %v1508_v0 }
 0xd42   :  { %v1514_v4 = vmul.f32 1.442695, %v1512_v3 }
 0xd44   :  { %16708 = vpow2.f32 %v1514_v4 }
 0xd47   :  { %v1511_v6 = vpop.xlane.xlu1 %1510 }
 0xd48   :  { %v1513_v8 = vsub.f32 %v1500_v59, %v1511_v6 }
 0xd4a   :  { %v1516_v9 = vmul.f32 1.442695, %v1513_v8 }
 0xd4b   :  { %v1531_v10 = vpop.permute.xlu1 %1530 }
 0xd4c   :  { %16710 = vpow2.f32 %v1516_v9  ;;  %v1536_v11 = vsel %vm390_vm2, %v1531_v10, 0 }
 0xd4d   :  { %15720 = vmatpush3.bf16.msra.mxu0 %v1536_v11 }
 0xd4e   :  { %15731 = vmatprep.subr.bf16.mxu0 %v16907_v58 }
 0xd4f   :  { %v1640_v27 = vpop.permute.xlu1 %1639 }
 0xd50   :  { %v1645_v29 = vsel %vm268_vm3, %v1640_v27, 0 }
 0xd51   :  { %v16709_v12 = vpop.eup %16708 }
 0xd52   :  { %v1518_v13 = vsel %vm268_vm3, %v16709_v12, 0.0 }
 0xd53   :  { %1519 = vadd.xlane.f32.xlu0 %v1518_v13  ;;  %v1690_v32 = vpop.permute.xlu1 %1689 }
 0xd54   :  { %v1695_v35 = vsel %vm268_vm3, %v1690_v32, 0 }
 0xd57   :  { %v1688_v36 = vpop.permute.xlu1 %1687 }
 0xd59   :  { %v16711_v14 = vpop.eup %16710 }
 0xd5a   :  { %v1521_v16 = vsel %vm268_vm3, %v16711_v14, 0.0 }
 0xd5b   :  { %1522 = vadd.xlane.f32.xlu0 %v1521_v16 }
 0xd71   :  { %1578 = vrot.lane.b32.xlu0 %v17113_v15, %s20502_s30  ;;  %s20552_s30 = smov 72  }
 0xd75   :  { %1637 = vrot.lane.b32.xlu0 %v17092_v1, %s20498_s19 }
 0xddc   :  { %v1520_v17 = vpop.xlane.xlu0 %1519 }
 0xddd   :  { %16712 = vrcp.f32 %v1520_v17 }
 0xde4   :  { %v1523_v18 = vpop.xlane.xlu0 %1522 }
 0xde5   :  { %16714 = vrcp.f32 %v1523_v18 }
 0xde8   :  { %v1579_v19 = vpop.permute.xlu0 %1578 }
 0xde9   :  { %v1584_v20 = vsel %vm390_vm2, %v1579_v19, 0 }
 0xdea   :  { %v16713_v25 = vpop.eup %16712  ;;  %15726 = vmatpush3.bf16.msra.mxu1 %v1584_v20 }
 0xdeb   :  { %v1525_v26 = vmul.f32 %v16713_v25, %v16709_v12  ;;  %15737 = vmatprep.subr.bf16.mxu1 %v16907_v58 }
 0xdec   :  { %v1638_v34 = vpop.permute.xlu0 %1637 }
 0xded   :  { %v1528_v28 = vpack.c.bf16 %v1525_v26, %v1525_v26 }
 0xdef   :  { %15722 = vmatmul.mubr.msk.bf16.vlgmr.msra.gmra.mxu0 %vm268_vm3, %v1528_v28 }
 0xdf0   :  { %15732 = vmatpush3.bf16.xpose.msra.mxu0 %v1645_v29  ;;  %15733 = vmatprep.mubr.msk.bf16.mxu0 %vm16908_vm1, %v16907_v58 }
 0xdf1   :  { %15743 = vmatprep.subr.bf16.mxu0 %v16907_v58 }
 0xdf2   :  { %v16715_v30 = vpop.eup %16714 }
 0xdf3   :  { %v1527_v31 = vmul.f32 %v16715_v30, %v16711_v14 }
 0xdf5   :  { %v1529_v33 = vpack.c.bf16 %v1527_v31, %v1527_v31 }
 0xdf7   :  { %15728 = vmatmul.mubr.msk.bf16.vlgmr.msra.gmra.mxu1 %vm268_vm3, %v1529_v33  ;;  %15734 = vmatmul.mubr.msk.bf16.vlgmr.msra.gmra.mxu0 %vm268_vm3, %v1638_v34 }
 0xdf8   :  { %15738 = vmatpush3.bf16.xpose.msra.mxu1 %v1695_v35  ;;  %15739 = vmatprep.mubr.msk.bf16.mxu1 %vm16908_vm1, %v16907_v58 }
 0xdf9   :  { %15749 = vmatprep.subr.bf16.mxu1 %v16907_v58  ;;  %15745 = vmatprep.mubr.msk.bf16.mxu0 %vm16908_vm1, %v16907_v58 }
 0xdff   :  { %15740 = vmatmul.mubr.msk.bf16.vlgmr.msra.gmra.mxu1 %vm268_vm3, %v1688_v36 }
 0xe00   :  { %15751 = vmatprep.mubr.msk.bf16.mxu1 %vm16908_vm1, %v16907_v58 }
 0xeaf   :  { %v17348_v38 = vpop.f32.mrf.mxu0 }
 0xeb1   :  { %v15723_v40 = vpop.f32.mrf.mxu0 }
 0xeb3   :  { %v1575_v41 = vpop.f32.mrf.mxu0 }
 0xeb5   :  { %v15724_v45 = vpop.f32.mrf.mxu0 }
 0xeb7   :  { %v17350_v46 = vpop.f32.mrf.mxu1  ;;  %v1681_v48 = vpop.f32.mrf.mxu0 }
 0xeb8   :  { %v1737_v50 = vsel %vm268_vm3, %v1681_v48, -inf }
 0xeb9   :  { %1738 = vmax.xlane.f32.xlu0 %v1737_v50  ;;  %v15729_v51 = vpop.f32.mrf.mxu1  ;;  %v15735_v52 = vpop.f32.mrf.mxu0 }
 0xebb   :  { %v1623_v54 = vpop.f32.mrf.mxu1  ;;  %v1684_v57 = vpop.f32.mrf.mxu0 }
 0xebd   :  { %v15730_v59 = vpop.f32.mrf.mxu1  ;;  %v15736_v60 = vpop.f32.mrf.mxu0 }
 0xebf   :  { %v1731_v61 = vpop.f32.mrf.mxu1 }
 0xec0   :  { %v1740_v62 = vsel %vm268_vm3, %v1731_v61, -inf }
 0xec1   :  { %1741 = vmax.xlane.f32.xlu1 %v1740_v62  ;;  %v15741_v63 = vpop.f32.mrf.mxu1 }
 0xec3   :  { %v1734_v0 = vpop.f32.mrf.mxu1 }
 0xec5   :  { %v15742_v3 = vpop.f32.mrf.mxu1 }
 0xed2   :  { %1761 = vrot.lane.b32.xlu1 %v17094_v5, %s20498_s19 }
 0xed6   :  { %1870 = vrot.lane.b32.xlu1 %v17092_v1, %s20496_s1 }
 0xeda   :  { %1920 = vrot.lane.b32.xlu1 %v17098_v7, %s20496_s1 }
 0xede   :  { %1918 = vrot.lane.b32.xlu1 %v17098_v7, %s20494_s2 }
 0xf42   :  { %v1739_v4 = vpop.xlane.xlu0 %1738 }
 0xf43   :  { %v1743_v6 = vsub.f32 %v1681_v48, %v1739_v4 }
 0xf45   :  { %v1745_v8 = vmul.f32 1.442695, %v1743_v6 }
 0xf47   :  { %16716 = vpow2.f32 %v1745_v8 }
 0xf4a   :  { %v1742_v9 = vpop.xlane.xlu1 %1741 }
 0xf4b   :  { %v1744_v10 = vsub.f32 %v1731_v61, %v1742_v9 }
 0xf4d   :  { %v1747_v11 = vmul.f32 1.442695, %v1744_v10 }
 0xf4e   :  { %v1762_v12 = vpop.permute.xlu1 %1761 }
 0xf4f   :  { %16718 = vpow2.f32 %v1747_v11  ;;  %v1767_v13 = vsel %vm390_vm2, %v1762_v12, 0 }
 0xf50   :  { %15744 = vmatpush3.bf16.msra.mxu0 %v1767_v13 }
 0xf51   :  { %15755 = vmatprep.subr.bf16.mxu0 %v16907_v58 }
 0xf52   :  { %v1871_v28 = vpop.permute.xlu1 %1870 }
 0xf53   :  { %v1876_v30 = vsel %vm268_vm3, %v1871_v28, 0 }
 0xf54   :  { %v16717_v14 = vpop.eup %16716 }
 0xf55   :  { %v1749_v16 = vsel %vm268_vm3, %v16717_v14, 0.0 }
 0xf56   :  { %1750 = vadd.xlane.f32.xlu0 %v1749_v16  ;;  %v1921_v32 = vpop.permute.xlu1 %1920 }
 0xf57   :  { %v1926_v35 = vsel %vm268_vm3, %v1921_v32, 0 }
 0xf5a   :  { %v1919_v36 = vpop.permute.xlu1 %1918 }
 0xf5c   :  { %v16719_v17 = vpop.eup %16718 }
 0xf5d   :  { %v1752_v7 = vsel %vm268_vm3, %v16719_v17, 0.0 }
 0xf5e   :  { %1753 = vadd.xlane.f32.xlu0 %v1752_v7 }
 0xf74   :  { %1809 = vrot.lane.b32.xlu0 %v17113_v15, %s20498_s19  ;;  %s20542_s19 = smov 112  }
 0xf78   :  { %1868 = vrot.lane.b32.xlu0 %v17092_v1, %s20494_s2 }
 0xfdf   :  { %v1751_v18 = vpop.xlane.xlu0 %1750 }
 0xfe0   :  { %16720 = vrcp.f32 %v1751_v18 }
 0xfe7   :  { %v1754_v19 = vpop.xlane.xlu0 %1753 }
 0xfe8   :  { %16722 = vrcp.f32 %v1754_v19 }
 0xfeb   :  { %v1810_v20 = vpop.permute.xlu0 %1809 }
 0xfec   :  { %v1815_v25 = vsel %vm390_vm2, %v1810_v20, 0 }
 0xfed   :  { %v16721_v26 = vpop.eup %16720  ;;  %15750 = vmatpush3.bf16.msra.mxu1 %v1815_v25 }
 0xfee   :  { %v1756_v27 = vmul.f32 %v16721_v26, %v16717_v14  ;;  %15761 = vmatprep.subr.bf16.mxu1 %v16907_v58 }
 0xfef   :  { %v1869_v34 = vpop.permute.xlu0 %1868 }
 0xff0   :  { %v1759_v29 = vpack.c.bf16 %v1756_v27, %v1756_v27 }
 0xff2   :  { %15746 = vmatmul.mubr.msk.bf16.vlgmr.msra.gmra.mxu0 %vm268_vm3, %v1759_v29 }
 0xff3   :  { %15756 = vmatpush3.bf16.xpose.msra.mxu0 %v1876_v30  ;;  %15757 = vmatprep.mubr.msk.bf16.mxu0 %vm16908_vm1, %v16907_v58 }
 0xff4   :  { %15767 = vmatprep.subr.bf16.mxu0 %v16907_v58 }
 0xff5   :  { %v16723_v1 = vpop.eup %16722 }
 0xff6   :  { %v1758_v31 = vmul.f32 %v16723_v1, %v16719_v17 }
 0xff8   :  { %v1760_v33 = vpack.c.bf16 %v1758_v31, %v1758_v31 }
 0xffa   :  { %15752 = vmatmul.mubr.msk.bf16.vlgmr.msra.gmra.mxu1 %vm268_vm3, %v1760_v33  ;;  %15758 = vmatmul.mubr.msk.bf16.vlgmr.msra.gmra.mxu0 %vm268_vm3, %v1869_v34  ;;  %v16244_v33 = vld [vmem:[%s20480_s5 + $0x18] sm:$0xff]   ;;  %v16245_v34 = vld [vmem:[%s20480_s5 + $0x10] sm:$0xff]  }
 0xffb   :  { %15762 = vmatpush3.bf16.xpose.msra.mxu1 %v1926_v35  ;;  %15763 = vmatprep.mubr.msk.bf16.mxu1 %vm16908_vm1, %v16907_v58  ;;  %v16246_v35 = vld [vmem:[%s20480_s5 + $0x8] sm:$0xff]  }
 0xffc   :  { %15773 = vmatprep.subr.bf16.mxu1 %v16907_v58  ;;  %15769 = vmatprep.mubr.msk.bf16.mxu0 %vm16908_vm1, %v16907_v58 }
0x1002   :  { %15764 = vmatmul.mubr.msk.bf16.vlgmr.msra.gmra.mxu1 %vm268_vm3, %v1919_v36  ;;  %v16247_v36 = vld [vmem:[%s20480_s5] sm:$0xff]  }
0x1003   :  { %15775 = vmatprep.mubr.msk.bf16.mxu1 %vm16908_vm1, %v16907_v58 }
0x10b2   :  { %v17388_v40 = vpop.f32.mrf.mxu0 }
0x10b4   :  { %v15747_v41 = vpop.f32.mrf.mxu0 }
0x10b6   :  { %v1806_v45 = vpop.f32.mrf.mxu0 }
0x10b8   :  { %v15748_v48 = vpop.f32.mrf.mxu0 }
0x10ba   :  { %v1851_v50 = vpop.f32.mrf.mxu1  ;;  %v1912_v51 = vpop.f32.mrf.mxu0 }
0x10bb   :  { %v1968_v52 = vsel %vm268_vm3, %v1912_v51, -inf }
0x10bc   :  { %1969 = vmax.xlane.f32.xlu0 %v1968_v52  ;;  %v15753_v54 = vpop.f32.mrf.mxu1  ;;  %v15759_v57 = vpop.f32.mrf.mxu0 }
0x10be   :  { %v1854_v59 = vpop.f32.mrf.mxu1  ;;  %v1915_v60 = vpop.f32.mrf.mxu0 }
0x10c0   :  { %v15754_v61 = vpop.f32.mrf.mxu1  ;;  %v15760_v62 = vpop.f32.mrf.mxu0 }
0x10c2   :  { %v1962_v63 = vpop.f32.mrf.mxu1 }
0x10c3   :  { %v1971_v0 = vsel %vm268_vm3, %v1962_v63, -inf }
0x10c4   :  { %1972 = vmax.xlane.f32.xlu1 %v1971_v0  ;;  %v15765_v3 = vpop.f32.mrf.mxu1 }
0x10c6   :  { %v1965_v4 = vpop.f32.mrf.mxu1 }
0x10c8   :  { %v15766_v6 = vpop.f32.mrf.mxu1 }
0x10d5   :  { %1992 = vrot.lane.b32.xlu1 %v17094_v5, %s20494_s2 }
0x10d9   :  { %704 = vrot.lane.b32.xlu1 %v17188_v49, %s20496_s1 }
0x10dd   :  { %706 = vrot.lane.b32.xlu1 %v17190_v53, %s20496_s1  ;;  %s20543_s1 = smov 40  }
0x10e1   :  { %937 = vrot.lane.b32.xlu1 %v17230_v47, %s20500_s18 }
0x10e5   :  { %1168 = vrot.lane.b32.xlu1 %v17270_v44, %s20504_s0 }
0x10e9   :  { %1399 = vrot.lane.b32.xlu1 %v17310_v42, %s20508_s28 }
0x10ed   :  { %1630 = vrot.lane.b32.xlu1 %v17350_v46, %s20512_s26 }
0x10f1   :  { %1861 = vrot.lane.b32.xlu1 %v1851_v50, %s20516_s24 }
0x1145   :  { %v1970_v5 = vpop.xlane.xlu0 %1969 }
0x1146   :  { %v1974_v8 = vsub.f32 %v1912_v51, %v1970_v5 }
0x1148   :  { %v1976_v49 = vmul.f32 1.442695, %v1974_v8 }
0x114a   :  { %16724 = vpow2.f32 %v1976_v49 }
0x114d   :  { %v1973_v9 = vpop.xlane.xlu1 %1972 }
0x114e   :  { %v1975_v53 = vsub.f32 %v1962_v63, %v1973_v9  ;;  %v13412_v63 = vld [vmem:[%s20481_s6] ss:$0 sm:$0xff] }
0x1150   :  { %v1978_v10 = vmul.f32 1.442695, %v1975_v53 }
0x1151   :  { %v1993_v11 = vpop.permute.xlu1 %1992 }
0x1152   :  { %16726 = vpow2.f32 %v1978_v10  ;;  %v1998_v47 = vsel %vm390_vm2, %v1993_v11, 0 }
0x1153   :  { %15768 = vmatpush3.bf16.msra.mxu0 %v1998_v47 }
0x1154   :  { %15779 = vmatprep.subr.bf16.mxu0 %v16907_v58 }
0x1155   :  { %v705_v44 = vpop.permute.xlu1 %704 }
0x1156   :  { %711 = vst.msk [vmem:[#allocation2] sm:$0xff] %vm710_vm4, %v705_v44 }
0x1157   :  { %v16725_v42 = vpop.eup %16724 }
0x1158   :  { %v1980_v46 = vsel %vm268_vm3, %v16725_v42, 0.0 }
0x1159   :  { %1981 = vadd.xlane.f32.xlu0 %v1980_v46  ;;  %v707_v12 = vpop.permute.xlu1 %706 }
0x115a   :  { %712 = vst.msk [vmem:[#allocation2 + $0x8] sm:$0xff] %vm710_vm4, %v707_v12 }
0x115d   :  { %v938_v13 = vpop.permute.xlu1 %937 }
0x115e   :  { %943 = vst.msk [vmem:[#allocation2 + $0x8] sm:$0xff] %vm941_vm5, %v938_v13 }
0x115f   :  { %v16727_v14 = vpop.eup %16726 }
0x1160   :  { %v1983_v16 = vsel %vm268_vm3, %v16727_v14, 0.0 }
0x1161   :  { %1984 = vadd.xlane.f32.xlu0 %v1983_v16  ;;  %v1169_v17 = vpop.permute.xlu1 %1168  ;;  %v2245_v16 = vld [vmem:[%s20484_s9 + $0x180] sm:$0xff] }
0x1162   :  { %1174 = vst.msk [vmem:[#allocation2 + $0x8] sm:$0xff] %vm1172_vm6, %v1169_v17  ;;  %v2247_v17 = vld [vmem:[%s20484_s9 + $0x1c0] sm:$0xff] }
0x1165   :  { %v1400_v7 = vpop.permute.xlu1 %1399 }
0x1166   :  { %1405 = vst.msk [vmem:[#allocation2 + $0x8] sm:$0xff] %vm1403_vm7, %v1400_v7  ;;  %v2246_v7 = vld [vmem:[%s20484_s9 + $0x188] sm:$0xff] }
0x1169   :  { %v1631_v18 = vpop.permute.xlu1 %1630 }
0x116a   :  { %1636 = vst.msk [vmem:[#allocation2 + $0x8] sm:$0xff] %vm1634_vm8, %v1631_v18  ;;  %v13433_v18 = vcombine.high %v2245_v16, %v2247_v17 }
0x116d   :  { %v1862_v19 = vpop.permute.xlu1 %1861 }
0x116e   :  { %1867 = vst.msk [vmem:[#allocation2 + $0x8] sm:$0xff] %vm1865_vm9, %v1862_v19  ;;  %v2248_v19 = vld [vmem:[%s20484_s9 + $0x1c8] sm:$0xff] }
0x1177   :  { %2040 = vrot.lane.b32.xlu0 %v17113_v15, %s20494_s2  ;;  %s20545_s2 = smov 32  }
0x117b   :  { %935 = vrot.lane.b32.xlu0 %v17228_v43, %s20500_s18 }
0x117f   :  { %1166 = vrot.lane.b32.xlu0 %v17268_v39, %s20504_s0  ;;  %s20551_s0 = smov 8  }
0x1183   :  { %1397 = vrot.lane.b32.xlu0 %v17308_v37, %s20508_s28  ;;  %s20544_s28 = smov 104  }
0x1187   :  { %1628 = vrot.lane.b32.xlu0 %v17348_v38, %s20512_s26  ;;  %s20547_s26 = smov 24  }
0x118b   :  { %1859 = vrot.lane.b32.xlu0 %v17388_v40, %s20516_s24 }
0x11e2   :  { %v1982_v20 = vpop.xlane.xlu0 %1981 }
0x11e3   :  { %16728 = vrcp.f32 %v1982_v20  ;;  %v13432_v20 = vcombine.low %v2245_v16, %v2247_v17 }
0x11ea   :  { %v1985_v25 = vpop.xlane.xlu0 %1984 }
0x11eb   :  { %16730 = vrcp.f32 %v1985_v25  ;;  %v13434_v25 = vcombine.low %v2246_v7, %v2248_v19 }
0x11ee   :  { %v2041_v15 = vpop.permute.xlu0 %2040 }
0x11ef   :  { %v2046_v26 = vsel %vm390_vm2, %v2041_v15, 0  ;;  %v13435_v15 = vcombine.high %v2246_v7, %v2248_v19 }
0x11f0   :  { %v16729_v43 = vpop.eup %16728  ;;  %15774 = vmatpush3.bf16.msra.mxu1 %v2046_v26  ;;  %v2241_v26 = vld [vmem:[%s20484_s9 + $0x100] sm:$0xff] }
0x11f1   :  { %v1987_v27 = vmul.f32 %v16729_v43, %v16725_v42  ;;  %2362 = vmatprep.subr.bf16.mxu1 %v13433_v18  ;;  %v2243_v43 = vld [vmem:[%s20484_s9 + $0x140] sm:$0xff] }
0x11f2   :  { %v936_v39 = vpop.permute.xlu0 %935 }
0x11f3   :  { %942 = vst.msk [vmem:[#allocation2] sm:$0xff] %vm941_vm5, %v936_v39  ;;  %v1990_v37 = vpack.c.bf16 %v1987_v27, %v1987_v27  ;;  %v2242_v27 = vld [vmem:[%s20484_s9 + $0x108] sm:$0xff]  ;;  %v13429_v39 = vcombine.high %v2241_v26, %v2243_v43 }
0x11f5   :  { %15770 = vmatmul.mubr.msk.bf16.vlgmr.msra.gmra.mxu0 %vm268_vm3, %v1990_v37  ;;  %v2244_v37 = vld [vmem:[%s20484_s9 + $0x148] sm:$0xff] }
0x11f6   :  { %v1167_v38 = vpop.permute.xlu0 %1166  ;;  %15787 = vmatprep.mubr.msk.bf16.mxu0 %vm16908_vm1, %v16907_v58  ;;  %15780 = vmatpush3.bf16.msra.mxu0 %v16244_v33  ;;  %v2240_v33 = vld [vmem:[%s20484_s9 + $0xc8] sm:$0xff] }
0x11f7   :  { %1173 = vst.msk [vmem:[#allocation2] sm:$0xff] %vm1172_vm6, %v1167_v38  ;;  %15781 = vmatprep.subr.bf16.mxu0 %v16907_v58  ;;  %v13428_v38 = vcombine.low %v2241_v26, %v2243_v43  ;;  %v2523_v26 = vld [vmem:[%s20484_s9 + $0xd8] sm:$0xff] }
0x11f8   :  { %v16731_v28 = vpop.eup %16730 }
0x11f9   :  { %v1989_v29 = vmul.f32 %v16731_v28, %v16727_v14  ;;  %v13430_v28 = vcombine.low %v2242_v27, %v2244_v37 }
0x11fa   :  { %v1398_v30 = vpop.permute.xlu0 %1397  ;;  %15782 = vmatpush3.bf16.msra.mxu0 %v16245_v34 }
0x11fb   :  { %1404 = vst.msk [vmem:[#allocation2] sm:$0xff] %vm1403_vm7, %v1398_v30  ;;  %v1991_v1 = vpack.c.bf16 %v1989_v29, %v1989_v29  ;;  %15783 = vmatprep.subr.bf16.mxu0 %v16907_v58  ;;  %v13431_v29 = vcombine.high %v2242_v27, %v2244_v37  ;;  %v2237_v30 = vld [vmem:[%s20484_s9 + $0x80] sm:$0xff] }
0x11fd   :  { %15776 = vmatmul.mubr.msk.bf16.vlgmr.msra.gmra.mxu1 %vm268_vm3, %v1991_v1  ;;  %v2239_v1 = vld [vmem:[%s20484_s9 + $0xc0] sm:$0xff] }
0x11fe   :  { %v1629_v31 = vpop.permute.xlu0 %1628  ;;  %2386 = vmatprep.mubr.bf16.mxu1 %v16906_v2  ;;  %15784 = vmatpush3.bf16.msra.mxu0 %v16246_v35  ;;  %v13424_v34 = vcombine.low %v2237_v30, %v2239_v1 }
0x11ff   :  { %1635 = vst.msk [vmem:[#allocation2] sm:$0xff] %vm1634_vm8, %v1629_v31  ;;  %15785 = vmatprep.subr.bf16.mxu0 %v16907_v58  ;;  %2363 = vmatpush1.bf16.msra.mxu1 %v13432_v20  ;;  %v2238_v31 = vld [vmem:[%s20484_s9 + $0x88] sm:$0xff]  ;;  %v2520_v20 = vld [vmem:[%s20484_s9 + $0x90] sm:$0xff] }
0x1200   :  { %2364 = vmatprep.subr.bf16.mxu1 %v13429_v39  ;;  %v13426_v35 = vcombine.low %v2238_v31, %v2240_v33 }
0x1202   :  { %v1860_v32 = vpop.permute.xlu0 %1859  ;;  %15786 = vmatpush3.bf16.msra.mxu0 %v16247_v36  ;;  %v13427_v36 = vcombine.high %v2238_v31, %v2240_v33 }
0x1203   :  { %1866 = vst.msk [vmem:[#allocation2] sm:$0xff] %vm1865_vm9, %v1860_v32  ;;  %2405 = vmatprep.subr.bf16.mxu0 %v13435_v15  ;;  %2365 = vmatpush1.bf16.msra.mxu1 %v13428_v38  ;;  %v13425_v32 = vcombine.high %v2237_v30, %v2239_v1  ;;  %v2521_v15 = vld [vmem:[%s20484_s9 + $0x98] sm:$0xff]  ;;  %v2516_v38 = vld [vmem:[%s20484_s9 + $0x10] sm:$0xff] }
0x1204   :  { %v13445_v37 = vcombine.high %v2521_v15, %v2523_v26  ;;  %v2519_v30 = vld [vmem:[%s20484_s9 + $0x58] sm:$0xff]  ;;  %v13444_v31 = vcombine.low %v2521_v15, %v2523_v26 }
0x1205   :  { %2366 = vmatprep.subr.bf16.mxu1 %v13425_v32 }
0x1207   :  { %2367 = vmatpush1.bf16.msra.mxu1 %v13424_v34 }
0x12b5   :  { %v2034_v40 = vpop.f32.mrf.mxu0 }
0x12b6   :  { %2090 = vrot.lane.b32.xlu0 %v2034_v40, %s20522_s22  ;;  %v2233_v40 = vld [vmem:[%s20484_s9] sm:$0xff] }
0x12b7   :  { %v15771_v41 = vpop.f32.mrf.mxu0 }
0x12b8   :  { %v2235_v41 = vld [vmem:[%s20484_s9 + $0x40] sm:$0xff] }
0x12b9   :  { %v2037_v45 = vpop.f32.mrf.mxu0 }
0x12ba   :  { %v2234_v45 = vld [vmem:[%s20484_s9 + $0x8] sm:$0xff] }
0x12bb   :  { %v15772_v48 = vpop.f32.mrf.mxu0 }
0x12bc   :  { %v13421_v48 = vcombine.high %v2233_v40, %v2235_v41 }
0x12bd   :  { %v2082_v50 = vpop.f32.mrf.mxu1 }
0x12be   :  { %2092 = vrot.lane.b32.xlu1 %v2082_v50, %s20522_s22  ;;  %v2236_v50 = vld [vmem:[%s20484_s9 + $0x48] sm:$0xff]  ;;  %2368 = vmatprep.subr.bf16.mxu1 %v13421_v48  ;;  %v16252_v48 = vld [vmem:[%s20486_s11 + $0x170] sm:$0xff]  }
0x12bf   :  { %v15777_v51 = vpop.f32.mrf.mxu1 }
0x12c0   :  { %v13420_v51 = vcombine.low %v2233_v40, %v2235_v41  ;;  %v16249_v40 = vld [vmem:[%s20486_s11 + $0x1f8] sm:$0xff]  }
0x12c1   :  { %v2085_v52 = vpop.f32.mrf.mxu1  ;;  %v16250_v41 = vld [vmem:[%s20486_s11 + $0x138] sm:$0xff]  }
0x12c2   :  { %v13422_v52 = vcombine.low %v2234_v45, %v2236_v50  ;;  %2369 = vmatpush1.bf16.msra.mxu1 %v13420_v51  ;;  %v16254_v51 = vld [vmem:[%s20486_s11 + $0x130] sm:$0xff]  }
0x12c3   :  { %v15778_v54 = vpop.f32.mrf.mxu1 }
0x12c4   :  { %v13423_v54 = vcombine.high %v2234_v45, %v2236_v50  ;;  %v16251_v45 = vld [vmem:[%s20486_s11 + $0x1b8] sm:$0xff]   ;;  %v16253_v50 = vld [vmem:[%s20486_s11 + $0x1f0] sm:$0xff]  }
0x1328   :  { %v2091_v57 = vpop.permute.xlu0 %2090 }
0x1329   :  { %2097 = vst.msk [vmem:[#allocation2] sm:$0xff] %vm2096_vm10, %v2091_v57  ;;  %v2528_v57 = vld [vmem:[%s20484_s9 + $0x190] sm:$0xff] }
0x1330   :  { %v2093_v59 = vpop.permute.xlu1 %2092  ;;  %v2099_v60 = vld [vmem:[#allocation2] sm:$0xff] }
0x1331   :  { %2098 = vst.msk [vmem:[#allocation2 + $0x8] sm:$0xff] %vm2096_vm10, %v2093_v59  ;;  %v2530_v59 = vld [vmem:[%s20484_s9 + $0x1d0] sm:$0xff] }
0x1338   :  { %v2100_v61 = vld [vmem:[#allocation2 + $0x8] sm:$0xff] }
0x1339   :  { %v2101_v62 = vpack.c.bf16 %v2100_v61, %v2099_v60  ;;  %v2529_v60 = vld [vmem:[%s20484_s9 + $0x198] sm:$0xff]  ;;  %v13450_v61 = vcombine.low %v2528_v57, %v2530_v59 }
0x133b   :  { %15788 = vmatmul.mubr.msk.bf16.vlgmr.msra.gmra.mxu0 %vm207_vm14, %v2101_v62  ;;  %v13451_v62 = vcombine.high %v2528_v57, %v2530_v59  ;;  %v16257_v57 = vld [vmem:[%s20486_s11 + $0x1e8] sm:$0xff]  }
0x133c   :  { %2429 = vmatprep.mubr.bf16.mxu0 %v16906_v2  ;;  %2406 = vmatpush1.bf16.msra.mxu0 %v13434_v25  ;;  %v2522_v25 = vld [vmem:[%s20484_s9 + $0xd0] sm:$0xff]  ;;  %v16258_v59 = vld [vmem:[%s20486_s11 + $0x128] sm:$0xff]  }
0x133d   :  { %2407 = vmatprep.subr.bf16.mxu0 %v13431_v29  ;;  %2642 = vmatprep.subr.bf16.mxu1 %v13451_v62  ;;  %v13443_v39 = vcombine.high %v2520_v20, %v2522_v25  ;;  %v2517_v29 = vld [vmem:[%s20484_s9 + $0x18] sm:$0xff]  ;;  %v13442_v1 = vcombine.low %v2520_v20, %v2522_v25  ;;  %v16261_v62 = vld [vmem:[%s20486_s11 + $0x1e0] sm:$0xff]  }
0x133e   :  { %v13441_v33 = vcombine.high %v2517_v29, %v2519_v30 }
0x1340   :  { %2408 = vmatpush1.bf16.msra.mxu0 %v13430_v28  ;;  %v2518_v28 = vld [vmem:[%s20484_s9 + $0x50] sm:$0xff] }
0x1341   :  { %2409 = vmatprep.subr.bf16.mxu0 %v13427_v36  ;;  %v13439_v32 = vcombine.high %v2516_v38, %v2518_v28  ;;  %v13438_v34 = vcombine.low %v2516_v38, %v2518_v28  ;;  %v16248_v36 = vld [vmem:[%s20486_s11 + $0x178] sm:$0xff]  }
0x1344   :  { %2410 = vmatpush1.bf16.msra.mxu0 %v13426_v35  ;;  %v13440_v35 = vcombine.low %v2517_v29, %v2519_v30 }
0x1345   :  { %2411 = vmatprep.subr.bf16.mxu0 %v13423_v54  ;;  %v16256_v54 = vld [vmem:[%s20486_s11 + $0x168] sm:$0xff]  }
0x1348   :  { %2412 = vmatpush1.bf16.msra.mxu0 %v13422_v52  ;;  %v16255_v52 = vld [vmem:[%s20486_s11 + $0x1b0] sm:$0xff]  }
0x13fb   :  { %v2178_v0 = vpop.f32.mrf.mxu0 }
0x13fc   :  { %v2179_v3 = vadd.f32 %v13412_v63, %v2178_v0 }
0x13fd   :  { %v15789_v4 = vpop.f32.mrf.mxu0 }
0x13fe   :  { %v2185_v6 = vadd.f32 %v2179_v3, %v17076_v56 }
0x13ff   :  { %v2181_v5 = vpop.f32.mrf.mxu0 }
0x1400   :  { %v2182_v8 = vadd.f32 %v13412_v63, %v2181_v5  ;;  %v2189_v49 = vsel %vm207_vm14, %v2185_v6, 0.0  ;;  %v2531_v63 = vld [vmem:[%s20484_s9 + $0x1d8] sm:$0xff] }
0x1401   :  { %2190 = vadd.xlane.f32.xlu0 %v2189_v49  ;;  %v15790_v9 = vpop.f32.mrf.mxu0  ;;  %v13452_v0 = vcombine.low %v2529_v60, %v2531_v63  ;;  %v13453_v3 = vcombine.high %v2529_v60, %v2531_v63  ;;  %v16259_v60 = vld [vmem:[%s20486_s11 + $0x1a8] sm:$0xff]   ;;  %v16262_v63 = vld [vmem:[%s20486_s11 + $0x120] sm:$0xff]  }
0x1402   :  { %v2186_v53 = vadd.f32 %v2182_v8, %v17074_v55 }
0x1403   :  { %2685 = vmatprep.subr.bf16.mxu0 %v13453_v3  ;;  %v16264_v3 = vld [vmem:[%s20486_s11 + $0x158] sm:$0xff]  }
0x1404   :  { %v2192_v10 = vsel %vm207_vm14, %v2186_v53, 0.0 }
0x1405   :  { %2193 = vadd.xlane.f32.xlu1 %v2192_v10 }
0x148a   :  { %v2191_v11 = vpop.xlane.xlu0 %2190 }
0x148b   :  { %v2196_v47 = vmul.f32 0.015625, %v2191_v11  ;;  %v13418_v11 = vld [vmem:[%s20482_s7] ss:$0 sm:$0xff] }
0x148d   :  { %v17469_v44 = vsub.f32 %v2185_v6, %v2196_v47 }
0x148e   :  { %v2194_v42 = vpop.xlane.xlu1 %2193 }
0x148f   :  { %v2197_v46 = vmul.f32 0.015625, %v2194_v42  ;;  %v2200_v56 = vmul.f32 %v17469_v44, %v17469_v44 }
0x1491   :  { %v17473_v12 = vsub.f32 %v2186_v53, %v2197_v46  ;;  %v2202_v13 = vsel %vm207_vm14, %v2200_v56, 0.0  ;;  %v13419_v56 = vld [vmem:[%s20483_s8] ss:$0 sm:$0xff] }
0x1492   :  { %2203 = vadd.xlane.f32.xlu0 %v2202_v13 }
0x1493   :  { %v2201_v55 = vmul.f32 %v17473_v12, %v17473_v12 }
0x1495   :  { %v2205_v14 = vsel %vm207_vm14, %v2201_v55, 0.0  ;;  %v2524_v55 = vld [vmem:[%s20484_s9 + $0x110] sm:$0xff] }
0x1496   :  { %2206 = vadd.xlane.f32.xlu0 %v2205_v14  ;;  %v2525_v14 = vld [vmem:[%s20484_s9 + $0x118] sm:$0xff] }
0x151b   :  { %v2204_v4 = vpop.xlane.xlu0 %2203 }
0x151c   :  { %v2208_v6 = vmul.f32 0.015625, %v2204_v4  ;;  %v16265_v4 = vld [vmem:[%s20486_s11 + $0x1d8] sm:$0xff]  }
0x151e   :  { %v2210_v5 = vadd.f32 1e-05, %v2208_v6  ;;  %v16266_v6 = vld [vmem:[%s20486_s11 + $0x118] sm:$0xff]  }
0x151f   :  { %v2207_v8 = vpop.xlane.xlu0 %2206 }
0x1520   :  { %16732 = vrsqrt.f32 %v2210_v5  ;;  %v2209_v49 = vmul.f32 0.015625, %v2207_v8  ;;  %v16267_v5 = vld [vmem:[%s20486_s11 + $0x198] sm:$0xff]   ;;  %v16268_v8 = vld [vmem:[%s20486_s11 + $0x150] sm:$0xff]  }
0x1522   :  { %v2211_v9 = vadd.f32 1e-05, %v2209_v49  ;;  %v16269_v49 = vld [vmem:[%s20486_s11 + $0x1d0] sm:$0xff]  }
0x1524   :  { %16734 = vrsqrt.f32 %v2211_v9  ;;  %v16270_v9 = vld [vmem:[%s20486_s11 + $0x110] sm:$0xff]  }
0x152d   :  { %v16733_v53 = vpop.eup %16732 }
0x152e   :  { %v2214_v10 = vmul.f32 %v16733_v53, %v17469_v44  ;;  %v2526_v44 = vld [vmem:[%s20484_s9 + $0x150] sm:$0xff] }
0x152f   :  { %v13447_v18 = vcombine.high %v2524_v55, %v2526_v44  ;;  %v13446_v43 = vcombine.low %v2524_v55, %v2526_v44  ;;  %v16271_v53 = vld [vmem:[%s20486_s11 + $0x190] sm:$0xff]   ;;  %v16279_v55 = vld [vmem:[%s20486_s11 + $0x180] sm:$0xff]   ;;  %v16280_v44 = vld [vmem:[%s20486_s11 + $0x78] sm:$0xff]  }
0x1530   :  { %v2222_v42 = vmul.f32 %v13418_v11, %v2214_v10  ;;  %v16272_v10 = vld [vmem:[%s20486_s11 + $0x148] sm:$0xff]  }
0x1531   :  { %v16735_v47 = vpop.eup %16734 }
0x1532   :  { %v2215_v46 = vmul.f32 %v16735_v47, %v17473_v12  ;;  %v2527_v12 = vld [vmem:[%s20484_s9 + $0x158] sm:$0xff]  ;;  %v17559_v16 = vadd.f32 %v13419_v56, %v2222_v42  ;;  %v16274_v47 = vld [vmem:[%s20486_s11 + $0x108] sm:$0xff]  }
0x1533   :  { %v13449_v19 = vcombine.high %v2525_v14, %v2527_v12  ;;  %v13448_v27 = vcombine.low %v2525_v14, %v2527_v12  ;;  %v16275_v42 = vld [vmem:[%s20486_s11 + $0x188] sm:$0xff]   ;;  %v16281_v14 = vld [vmem:[%s20486_s11 + $0xf8] sm:$0xff]  }
0x1534   :  { %v2223_v13 = vmul.f32 %v13418_v11, %v2215_v46  ;;  %v16273_v11 = vld [vmem:[%s20486_s11 + $0x1c8] sm:$0xff]   ;;  %v16276_v46 = vld [vmem:[%s20486_s11 + $0x140] sm:$0xff]  }
0x1536   :  { %v17561_v17 = vadd.f32 %v13419_v56, %v2223_v13  ;;  %v16277_v56 = vld [vmem:[%s20486_s11 + $0x1c0] sm:$0xff]  }
0x1537   :  { %v16278_v13 = vld [vmem:[%s20486_s11 + $0x100] sm:$0xff]  }
0x1538   :  { %v17565_v7 = vpack.c.bf16 %v17561_v17, %v17559_v16 }
0x153a   :  { %13436 = vmatmul.mubr.msk.bf16.vlgmr.msra.gmra.mxu1 %vm207_vm14, %v17565_v7  ;;  %13437 = vmatmul.mubr.msk.bf16.vlgmr.msra.gmra.mxu0 %vm207_vm14, %v17565_v7 }
0x153b   :  { %2643 = vmatpush1.bf16.msra.mxu1 %v13450_v61  ;;  %2686 = vmatpush1.bf16.msra.mxu0 %v13452_v0  ;;  %v16260_v61 = vld [vmem:[%s20486_s11 + $0x160] sm:$0xff]  }
0x153c   :  { %2644 = vmatprep.subr.bf16.mxu1 %v13447_v18  ;;  %2687 = vmatprep.subr.bf16.mxu0 %v13449_v19  ;;  %v16263_v0 = vld [vmem:[%s20486_s11 + $0x1a0] sm:$0xff]  }
0x153d   :  { %2666 = vmatprep.mubr.bf16.mxu1 %v16906_v2  ;;  %2709 = vmatprep.mubr.bf16.mxu0 %v16906_v2 }
0x153f   :  { %2645 = vmatpush1.bf16.msra.mxu1 %v13446_v43  ;;  %2688 = vmatpush1.bf16.msra.mxu0 %v13448_v27  ;;  %v2532_v27 = vld [vmem:[%s20485_s10 + $0x4] sm:$0xf] }
0x1540   :  { %2646 = vmatprep.subr.bf16.mxu1 %v13443_v39  ;;  %2689 = vmatprep.subr.bf16.mxu0 %v13445_v37  ;;  %v2541_v38 = vrot.slane %v2532_v27, %v17056_v21  ;;  %v2549_v28 = vrot.slane %v2532_v27, %v17062_v24  ;;  %v2537_v29 = vrot.slane %v2532_v27, %v17058_v22 }
0x1541   :  { %v2545_v30 = vrot.slane %v2532_v27, %v17060_v23  ;;  %v16287_v27 = vld [vmem:[%s20486_s11 + $0xb0] sm:$0xff]  }
0x1543   :  { %2647 = vmatpush1.bf16.msra.mxu1 %v13442_v1  ;;  %2690 = vmatpush1.bf16.msra.mxu0 %v13444_v31 }
0x1544   :  { %2648 = vmatprep.subr.bf16.mxu1 %v13439_v32  ;;  %2691 = vmatprep.subr.bf16.mxu0 %v13441_v33  ;;  %v17721_v32 = vld [vmem:[%s20485_s10] sm:$0xf] }
0x1545   :  { %v2258_v33 = vrot.slane %v17721_v32, %v17056_v21 }
0x1547   :  { %2649 = vmatpush1.bf16.msra.mxu1 %v13438_v34  ;;  %2692 = vmatpush1.bf16.msra.mxu0 %v13440_v35  ;;  %v2266_v34 = vrot.slane %v17721_v32, %v17062_v24 }
0x1548   :  { %14916 = vmatprep.subr.bf16.mxu1 %v16248_v36  ;;  %14938 = vmatprep.subr.bf16.mxu0 %v16249_v40 }
0x154a   :  { %13454 = vmatmul.mubr.msk.bf16.vlgmr.msra.gmra.mxu1 %vm207_vm14, %v17565_v7  ;;  %13455 = vmatmul.mubr.msk.bf16.vlgmr.msra.gmra.mxu0 %vm207_vm14, %v17565_v7 }
0x154b   :  { %14917 = vmatpush3.bf16.msra.mxu1 %v16250_v41  ;;  %14939 = vmatpush3.bf16.msra.mxu0 %v16251_v45 }
0x154c   :  { %14918 = vmatprep.subr.bf16.mxu1 %v16252_v48  ;;  %14940 = vmatprep.subr.bf16.mxu0 %v16253_v50 }
0x154f   :  { %14919 = vmatpush3.bf16.msra.mxu1 %v16254_v51  ;;  %14941 = vmatpush3.bf16.msra.mxu0 %v16255_v52 }
0x1550   :  { %14920 = vmatprep.subr.bf16.mxu1 %v16256_v54  ;;  %14942 = vmatprep.subr.bf16.mxu0 %v16257_v57 }
0x1553   :  { %14921 = vmatpush3.bf16.msra.mxu1 %v16258_v59  ;;  %14943 = vmatpush3.bf16.msra.mxu0 %v16259_v60 }
0x1554   :  { %14922 = vmatprep.subr.bf16.mxu1 %v16260_v61  ;;  %14944 = vmatprep.subr.bf16.mxu0 %v16261_v62 }
0x1557   :  { %14923 = vmatpush3.bf16.msra.mxu1 %v16262_v63  ;;  %14945 = vmatpush3.bf16.msra.mxu0 %v16263_v0 }
0x1558   :  { %14924 = vmatprep.subr.bf16.mxu1 %v16264_v3  ;;  %14946 = vmatprep.subr.bf16.mxu0 %v16265_v4 }
0x155b   :  { %14925 = vmatpush3.bf16.msra.mxu1 %v16266_v6  ;;  %14947 = vmatpush3.bf16.msra.mxu0 %v16267_v5 }
0x155c   :  { %14926 = vmatprep.subr.bf16.mxu1 %v16268_v8  ;;  %14948 = vmatprep.subr.bf16.mxu0 %v16269_v49 }
0x155f   :  { %14927 = vmatpush3.bf16.msra.mxu1 %v16270_v9  ;;  %14949 = vmatpush3.bf16.msra.mxu0 %v16271_v53 }
0x1560   :  { %14928 = vmatprep.subr.bf16.mxu1 %v16272_v10  ;;  %14950 = vmatprep.subr.bf16.mxu0 %v16273_v11 }
0x1563   :  { %14929 = vmatpush3.bf16.msra.mxu1 %v16274_v47  ;;  %14951 = vmatpush3.bf16.msra.mxu0 %v16275_v42  ;;  %v16282_v42 = vld [vmem:[%s20486_s11 + $0x38] sm:$0xff]  }
0x1564   :  { %14930 = vmatprep.subr.bf16.mxu1 %v16276_v46  ;;  %14952 = vmatprep.subr.bf16.mxu0 %v16277_v56  ;;  %v16283_v46 = vld [vmem:[%s20486_s11 + $0xb8] sm:$0xff]  }
0x1567   :  { %14931 = vmatpush3.bf16.msra.mxu1 %v16278_v13  ;;  %14953 = vmatpush3.bf16.msra.mxu0 %v16279_v55 }
0x1568   :  { %14960 = vmatprep.subr.bf16.mxu1 %v16280_v44  ;;  %14982 = vmatprep.subr.bf16.mxu0 %v16281_v14  ;;  %v16284_v14 = vld [vmem:[%s20486_s11 + $0x70] sm:$0xff]  }
0x15fa   :  { %v17703_v12 = vpop.f32.mrf.mxu1  ;;  %v17705_v18 = vpop.f32.mrf.mxu0 }
0x15fc   :  { %v2390_v19 = vpop.f32.mrf.mxu1  ;;  %v2433_v20 = vpop.f32.mrf.mxu0 }
0x15fd   :  { %v2391_v62 = vadd.f32 %v2390_v19, %v2258_v33  ;;  %v2434_v63 = vadd.f32 %v2433_v20, %v2266_v34  ;;  %v16285_v19 = vld [vmem:[%s20486_s11 + $0xf0] sm:$0xff]  }
0x15fe   :  { %v17707_v25 = vpop.f32.mrf.mxu1  ;;  %v17709_v15 = vpop.f32.mrf.mxu0 }
0x15ff   :  { %v2441_v56 = vmax.f32 %v2391_v62, 0.0  ;;  %v2443_v13 = vmax.f32 %v2434_v63, 0.0  ;;  %v16309_v62 = vld [vmem:[%s20486_s11 + $0xc0] sm:$0xff]  }
0x1600   :  { %v2394_v26 = vpop.f32.mrf.mxu1  ;;  %v2437_v43 = vpop.f32.mrf.mxu0  ;;  %v3356_v63 = vld [vmem:[%s20484_s9 + $0x1a0] sm:$0xff] }
0x1601   :  { %v2395_v50 = vadd.f32 %v2394_v26, %v2258_v33  ;;  %v2438_v51 = vadd.f32 %v2437_v43, %v2266_v34  ;;  %v16286_v43 = vld [vmem:[%s20486_s11 + $0x30] sm:$0xff]   ;;  %v16296_v33 = vld [vmem:[%s20486_s11 + $0x58] sm:$0xff]  }
0x1602   :  { %v16297_v34 = vld [vmem:[%s20486_s11 + $0xd8] sm:$0xff]  }
0x1603   :  { %v2445_v49 = vmax.f32 %v2395_v50, 0.0  ;;  %v2447_v9 = vmax.f32 %v2438_v51, 0.0  ;;  %v16304_v50 = vld [vmem:[%s20486_s11 + $0x48] sm:$0xff]  }
0x1604   :  { %v16305_v51 = vld [vmem:[%s20486_s11 + $0xc8] sm:$0xff]  }
0x1605   :  { %v2449_v20 = vpack.c.bf16 %v2445_v49, %v2441_v56  ;;  %v2451_v26 = vpack.c.bf16 %v2447_v9, %v2443_v13 }
0x160a   :  { %v2668_v39 = vpop.f32.mrf.mxu1  ;;  %v2711_v37 = vpop.f32.mrf.mxu0 }
0x160b   :  { %v2669_v52 = vadd.f32 %v2668_v39, %v2537_v29  ;;  %v2712_v54 = vadd.f32 %v2711_v37, %v2545_v30  ;;  %v16288_v39 = vld [vmem:[%s20486_s11 + $0x68] sm:$0xff]  }
0x160c   :  { %v2670_v1 = vpop.f32.mrf.mxu1  ;;  %v2713_v31 = vpop.f32.mrf.mxu0  ;;  %v16289_v37 = vld [vmem:[%s20486_s11 + $0xe8] sm:$0xff]  }
0x160d   :  { %v2671_v40 = vadd.f32 %v2670_v1, %v2541_v38  ;;  %v2714_v41 = vadd.f32 %v2713_v31, %v2549_v28  ;;  %v2720_v53 = vmax.f32 %v2669_v52, 0.0  ;;  %v2722_v10 = vmax.f32 %v2712_v54, 0.0  ;;  %v16294_v1 = vld [vmem:[%s20486_s11 + $0x20] sm:$0xff]  }
0x160e   :  { %v2672_v35 = vpop.f32.mrf.mxu1  ;;  %v2715_v36 = vpop.f32.mrf.mxu0  ;;  %v16295_v31 = vld [vmem:[%s20486_s11 + $0xa0] sm:$0xff]   ;;  %v2254_v52 = vrot.slane %v17721_v32, %v17058_v22  ;;  %v2262_v54 = vrot.slane %v17721_v32, %v17060_v23 }
0x160f   :  { %v2673_v45 = vadd.f32 %v2672_v35, %v2537_v29  ;;  %v2716_v48 = vadd.f32 %v2715_v36, %v2545_v30  ;;  %v2721_v4 = vmax.f32 %v2671_v40, 0.0  ;;  %v2723_v6 = vmax.f32 %v2714_v41, 0.0  ;;  %v16292_v29 = vld [vmem:[%s20486_s11 + $0x60] sm:$0xff]   ;;  %v16298_v35 = vld [vmem:[%s20486_s11 + $0x18] sm:$0xff]   ;;  %v16300_v40 = vld [vmem:[%s20486_s11 + $0x50] sm:$0xff]  }
0x1610   :  { %v2674_v57 = vpop.f32.mrf.mxu1  ;;  %v2717_v59 = vpop.f32.mrf.mxu0  ;;  %v16293_v30 = vld [vmem:[%s20486_s11 + $0xe0] sm:$0xff]   ;;  %v16299_v36 = vld [vmem:[%s20486_s11 + $0x98] sm:$0xff]   ;;  %v16301_v41 = vld [vmem:[%s20486_s11 + $0xd0] sm:$0xff]  }
0x1611   :  { %v2675_v60 = vadd.f32 %v2674_v57, %v2541_v38  ;;  %v2718_v61 = vadd.f32 %v2717_v59, %v2549_v28  ;;  %v2724_v0 = vmax.f32 %v2673_v45, 0.0  ;;  %v2726_v3 = vmax.f32 %v2716_v48, 0.0  ;;  %v16290_v38 = vld [vmem:[%s20486_s11 + $0x28] sm:$0xff]   ;;  %v16302_v45 = vld [vmem:[%s20486_s11 + $0x10] sm:$0xff]   ;;  %v16308_v32 = vld [vmem:[%s20486_s11 + $0x40] sm:$0xff]  }
0x1612   :  { %v16291_v28 = vld [vmem:[%s20486_s11 + $0xa8] sm:$0xff]   ;;  %v16303_v48 = vld [vmem:[%s20486_s11 + $0x90] sm:$0xff]  }
0x1613   :  { %v2725_v5 = vmax.f32 %v2675_v60, 0.0  ;;  %v2727_v8 = vmax.f32 %v2718_v61, 0.0  ;;  %v2728_v55 = vpack.c.bf16 %v2724_v0, %v2720_v53  ;;  %v2730_v44 = vpack.c.bf16 %v2726_v3, %v2722_v10  ;;  %v16306_v57 = vld [vmem:[%s20486_s11 + $0x8] sm:$0xff]  }
0x1614   :  { %v16307_v59 = vld [vmem:[%s20486_s11 + $0x88] sm:$0xff]   ;;  %v2393_v60 = vadd.f32 %v17707_v25, %v2254_v52  ;;  %v2436_v61 = vadd.f32 %v17709_v15, %v2262_v54  ;;  %v3358_v25 = vld [vmem:[%s20484_s9 + $0x1e0] sm:$0xff]  ;;  %v2389_v3 = vadd.f32 %v17703_v12, %v2254_v52  ;;  %v16317_v52 = vld [vmem:[%s20486_s11 + $0x2f0] sm:$0xff]  }
0x1615   :  { %v2729_v11 = vpack.c.bf16 %v2725_v5, %v2721_v4  ;;  %v2731_v47 = vpack.c.bf16 %v2727_v8, %v2723_v6  ;;  %v3357_v15 = vld [vmem:[%s20484_s9 + $0x1a8] sm:$0xff]  ;;  %v2432_v4 = vadd.f32 %v17705_v18, %v2262_v54  ;;  %v16310_v6 = vld [vmem:[%s20486_s11] sm:$0xff]   ;;  %v13533_v9 = vcombine.high %v3356_v63, %v3358_v25  ;;  %v16318_v54 = vld [vmem:[%s20486_s11 + $0x230] sm:$0xff]  }
0x1616   :  { %v3359_v0 = vld [vmem:[%s20484_s9 + $0x1e8] sm:$0xff]  ;;  %v16311_v5 = vld [vmem:[%s20486_s11 + $0x80] sm:$0xff]   ;;  %v2444_v8 = vmax.f32 %v2393_v60, 0.0  ;;  %v2446_v49 = vmax.f32 %v2436_v61, 0.0 }
0x1617   :  { %3020 = vmatprep.mubr.bf16.mxu1 %v2729_v11  ;;  %3061 = vmatprep.mubr.bf16.mxu0 %v2731_v47  ;;  %v13535_v53 = vcombine.high %v3357_v15, %v3359_v0  ;;  %v3352_v12 = vld [vmem:[%s20484_s9 + $0x120] sm:$0xff]  ;;  %v3353_v10 = vld [vmem:[%s20484_s9 + $0x128] sm:$0xff]  ;;  %v2440_v47 = vmax.f32 %v2389_v3, 0.0  ;;  %v13534_v56 = vcombine.low %v3357_v15, %v3359_v0  ;;  %v16328_v0 = vld [vmem:[%s20486_s11 + $0x258] sm:$0xff]  }
0x1618   :  { %3021 = vmatmul.mubr.bf16.vlgmr.msra.gmra.mxu1 %v2728_v55  ;;  %3062 = vmatmul.mubr.bf16.vlgmr.msra.gmra.mxu0 %v2730_v44  ;;  %v3354_v18 = vld [vmem:[%s20484_s9 + $0x160] sm:$0xff]  ;;  %v3355_v11 = vld [vmem:[%s20484_s9 + $0x168] sm:$0xff]  ;;  %v16329_v3 = vld [vmem:[%s20486_s11 + $0x2d8] sm:$0xff]  }
0x1619   :  { %14961 = vmatpush3.bf16.msra.mxu1 %v16282_v42  ;;  %14983 = vmatpush3.bf16.msra.mxu0 %v16283_v46  ;;  %v2442_v42 = vmax.f32 %v2432_v4, 0.0  ;;  %v13532_v46 = vcombine.low %v3356_v63, %v3358_v25  ;;  %v13529_v13 = vcombine.high %v3352_v12, %v3354_v18  ;;  %v2448_v55 = vpack.c.bf16 %v2444_v8, %v2440_v47  ;;  %v16321_v60 = vld [vmem:[%s20486_s11 + $0x2e8] sm:$0xff]   ;;  %v16325_v63 = vld [vmem:[%s20486_s11 + $0x2e0] sm:$0xff]   ;;  %v16330_v4 = vld [vmem:[%s20486_s11 + $0x218] sm:$0xff]  }
0x161a   :  { %3294 = vmatprep.mubr.bf16.mxu1 %v2449_v20  ;;  %3335 = vmatprep.mubr.bf16.mxu0 %v2451_v26  ;;  %v3350_v20 = vld [vmem:[%s20484_s9 + $0xe0] sm:$0xff]  ;;  %v3349_v26 = vld [vmem:[%s20484_s9 + $0xa8] sm:$0xff]  ;;  %v16333_v8 = vld [vmem:[%s20486_s11 + $0x2d0] sm:$0xff]  }
0x161b   :  { %14962 = vmatprep.subr.bf16.mxu1 %v16284_v14  ;;  %14984 = vmatprep.subr.bf16.mxu0 %v16285_v19  ;;  %v2450_v44 = vpack.c.bf16 %v2446_v49, %v2442_v42  ;;  %v13531_v14 = vcombine.high %v3353_v10, %v3355_v11  ;;  %v3348_v19 = vld [vmem:[%s20484_s9 + $0xa0] sm:$0xff]  ;;  %v16322_v61 = vld [vmem:[%s20486_s11 + $0x228] sm:$0xff]   ;;  %v16334_v49 = vld [vmem:[%s20486_s11 + $0x210] sm:$0xff]  }
0x161c   :  { %v16326_v25 = vld [vmem:[%s20486_s11 + $0x220] sm:$0xff]  }
0x161d   :  { %14963 = vmatpush3.bf16.msra.mxu1 %v16286_v43  ;;  %14985 = vmatpush3.bf16.msra.mxu0 %v16287_v27  ;;  %v3351_v43 = vld [vmem:[%s20484_s9 + $0xe8] sm:$0xff]  ;;  %v13528_v27 = vcombine.low %v3352_v12, %v3354_v18  ;;  %v16327_v15 = vld [vmem:[%s20486_s11 + $0x2a0] sm:$0xff]  }
0x161e   :  { %14964 = vmatprep.subr.bf16.mxu1 %v16288_v39  ;;  %14986 = vmatprep.subr.bf16.mxu0 %v16289_v37  ;;  %v13530_v39 = vcombine.low %v3353_v10, %v3355_v11  ;;  %v13525_v37 = vcombine.high %v3348_v19, %v3350_v20  ;;  %v16337_v12 = vld [vmem:[%s20486_s11 + $0x2c8] sm:$0xff]   ;;  %v16340_v11 = vld [vmem:[%s20486_s11 + $0x240] sm:$0xff]  }
0x161f   :  { %v16338_v18 = vld [vmem:[%s20486_s11 + $0x208] sm:$0xff]   ;;  %v16341_v47 = vld [vmem:[%s20486_s11 + $0x2c0] sm:$0xff]  }
0x1620   :  { %v16339_v10 = vld [vmem:[%s20486_s11 + $0x288] sm:$0xff]   ;;  %v16342_v42 = vld [vmem:[%s20486_s11 + $0x200] sm:$0xff]  }
0x1621   :  { %14965 = vmatpush3.bf16.msra.mxu1 %v16290_v38  ;;  %14987 = vmatpush3.bf16.msra.mxu0 %v16291_v28  ;;  %v13527_v38 = vcombine.high %v3349_v26, %v3351_v43  ;;  %v3344_v28 = vld [vmem:[%s20484_s9 + $0x20] sm:$0xff] }
0x1622   :  { %14966 = vmatprep.subr.bf16.mxu1 %v16292_v29  ;;  %14988 = vmatprep.subr.bf16.mxu0 %v16293_v30  ;;  %v3346_v29 = vld [vmem:[%s20484_s9 + $0x60] sm:$0xff]  ;;  %v3345_v30 = vld [vmem:[%s20484_s9 + $0x28] sm:$0xff] }
0x1625   :  { %14967 = vmatpush3.bf16.msra.mxu1 %v16294_v1  ;;  %14989 = vmatpush3.bf16.msra.mxu0 %v16295_v31  ;;  %v3347_v1 = vld [vmem:[%s20484_s9 + $0x68] sm:$0xff]  ;;  %v13524_v31 = vcombine.low %v3348_v19, %v3350_v20 }
0x1626   :  { %14968 = vmatprep.subr.bf16.mxu1 %v16296_v33  ;;  %14990 = vmatprep.subr.bf16.mxu0 %v16297_v34  ;;  %v13526_v33 = vcombine.low %v3349_v26, %v3351_v43  ;;  %v13521_v34 = vcombine.high %v3344_v28, %v3346_v29 }
0x1629   :  { %14969 = vmatpush3.bf16.msra.mxu1 %v16298_v35  ;;  %14991 = vmatpush3.bf16.msra.mxu0 %v16299_v36  ;;  %v13523_v35 = vcombine.high %v3345_v30, %v3347_v1  ;;  %v13520_v36 = vcombine.low %v3344_v28, %v3346_v29 }
0x162a   :  { %14970 = vmatprep.subr.bf16.mxu1 %v16300_v40  ;;  %14992 = vmatprep.subr.bf16.mxu0 %v16301_v41  ;;  %v13522_v40 = vcombine.low %v3345_v30, %v3347_v1  ;;  %v16312_v41 = vld [vmem:[%s20486_s11 + $0x278] sm:$0xff]  }
0x162d   :  { %14971 = vmatpush3.bf16.msra.mxu1 %v16302_v45  ;;  %14993 = vmatpush3.bf16.msra.mxu0 %v16303_v48  ;;  %v16313_v45 = vld [vmem:[%s20486_s11 + $0x2f8] sm:$0xff]  }
0x162e   :  { %14972 = vmatprep.subr.bf16.mxu1 %v16304_v50  ;;  %14994 = vmatprep.subr.bf16.mxu0 %v16305_v51  ;;  %v16314_v48 = vld [vmem:[%s20486_s11 + $0x238] sm:$0xff]   ;;  %v16316_v51 = vld [vmem:[%s20486_s11 + $0x270] sm:$0xff]  }
0x162f   :  { %v16315_v50 = vld [vmem:[%s20486_s11 + $0x2b8] sm:$0xff]  }
0x1631   :  { %14973 = vmatpush3.bf16.msra.mxu1 %v16306_v57  ;;  %14995 = vmatpush3.bf16.msra.mxu0 %v16307_v59  ;;  %v16319_v57 = vld [vmem:[%s20486_s11 + $0x2b0] sm:$0xff]   ;;  %v16320_v59 = vld [vmem:[%s20486_s11 + $0x268] sm:$0xff]  }
0x1632   :  { %14974 = vmatprep.subr.bf16.mxu1 %v16308_v32  ;;  %14996 = vmatprep.subr.bf16.mxu0 %v16309_v62  ;;  %v16323_v32 = vld [vmem:[%s20486_s11 + $0x2a8] sm:$0xff]   ;;  %v16324_v62 = vld [vmem:[%s20486_s11 + $0x260] sm:$0xff]  }
0x1635   :  { %14975 = vmatpush3.bf16.msra.mxu1 %v16310_v6  ;;  %14997 = vmatpush3.bf16.msra.mxu0 %v16311_v5  ;;  %v16331_v6 = vld [vmem:[%s20486_s11 + $0x298] sm:$0xff]   ;;  %v16332_v5 = vld [vmem:[%s20486_s11 + $0x250] sm:$0xff]  }
0x1636   :  { %3470 = vmatprep.subr.bf16.mxu1 %v13533_v9  ;;  %3513 = vmatprep.subr.bf16.mxu0 %v13535_v53  ;;  %v16335_v9 = vld [vmem:[%s20486_s11 + $0x290] sm:$0xff]   ;;  %v16336_v53 = vld [vmem:[%s20486_s11 + $0x248] sm:$0xff]  }
0x1638   :  { %3295 = vmatmul.mubr.bf16.vlgmr.msra.gmra.mxu1 %v2448_v55  ;;  %3336 = vmatmul.mubr.bf16.vlgmr.msra.gmra.mxu0 %v2450_v44  ;;  %v17988_v55 = vld [vmem:[%s20484_s9 + $0x1b8] sm:$0xff] }
0x1639   :  { %3471 = vmatpush1.bf16.msra.mxu1 %v13532_v46  ;;  %3514 = vmatpush1.bf16.msra.mxu0 %v13534_v56  ;;  %v16343_v46 = vld [vmem:[%s20486_s11 + $0x280] sm:$0xff]   ;;  %v17978_v56 = vld [vmem:[%s20484_s9 + $0x1b0] sm:$0xff] }
0x163a   :  { %3472 = vmatprep.subr.bf16.mxu1 %v13529_v13  ;;  %3515 = vmatprep.subr.bf16.mxu0 %v13531_v14  ;;  %v17983_v13 = vld [vmem:[%s20484_s9 + $0x1f0] sm:$0xff]  ;;  %v17995_v14 = vld [vmem:[%s20484_s9 + $0x1f8] sm:$0xff] }
0x163b   :  { %3494 = vmatprep.mubr.bf16.mxu1 %v16906_v2  ;;  %3537 = vmatprep.mubr.bf16.mxu0 %v16906_v2  ;;  %v13583_v44 = vcombine.high %v17978_v56, %v17983_v13  ;;  %v13582_v19 = vcombine.low %v17978_v56, %v17983_v13  ;;  %v13584_v20 = vcombine.low %v17988_v55, %v17995_v14  ;;  %v3901_v56 = vld [vmem:[%s20484_s9 + $0x38] sm:$0xff] }
0x163c   :  { %v13585_v26 = vcombine.high %v17988_v55, %v17995_v14  ;;  %v3903_v13 = vld [vmem:[%s20484_s9 + $0x78] sm:$0xff] }
0x163d   :  { %3473 = vmatpush1.bf16.msra.mxu1 %v13528_v27  ;;  %3516 = vmatpush1.bf16.msra.mxu0 %v13530_v39 }
0x163e   :  { %3474 = vmatprep.subr.bf16.mxu1 %v13525_v37  ;;  %3517 = vmatprep.subr.bf16.mxu0 %v13527_v38 }
0x1641   :  { %3475 = vmatpush1.bf16.msra.mxu1 %v13524_v31  ;;  %3518 = vmatpush1.bf16.msra.mxu0 %v13526_v33 }
0x1642   :  { %3476 = vmatprep.subr.bf16.mxu1 %v13521_v34  ;;  %3519 = vmatprep.subr.bf16.mxu0 %v13523_v35 }
0x1645   :  { %3477 = vmatpush1.bf16.msra.mxu1 %v13520_v36  ;;  %3520 = vmatpush1.bf16.msra.mxu0 %v13522_v40 }
0x1646   :  { %15004 = vmatprep.subr.bf16.mxu1 %v16312_v41  ;;  %15026 = vmatprep.subr.bf16.mxu0 %v16313_v45 }
0x1648   :  { %13536 = vmatmul.mubr.msk.bf16.vlgmr.msra.gmra.mxu1 %vm207_vm14, %v17565_v7  ;;  %13537 = vmatmul.mubr.msk.bf16.vlgmr.msra.gmra.mxu0 %vm207_vm14, %v17565_v7 }
0x1649   :  { %15005 = vmatpush3.bf16.msra.mxu1 %v16314_v48  ;;  %15027 = vmatpush3.bf16.msra.mxu0 %v16315_v50 }
0x164a   :  { %15006 = vmatprep.subr.bf16.mxu1 %v16316_v51  ;;  %15028 = vmatprep.subr.bf16.mxu0 %v16317_v52 }
0x164d   :  { %15007 = vmatpush3.bf16.msra.mxu1 %v16318_v54  ;;  %15029 = vmatpush3.bf16.msra.mxu0 %v16319_v57 }
0x164e   :  { %15008 = vmatprep.subr.bf16.mxu1 %v16320_v59  ;;  %15030 = vmatprep.subr.bf16.mxu0 %v16321_v60 }
0x1651   :  { %15009 = vmatpush3.bf16.msra.mxu1 %v16322_v61  ;;  %15031 = vmatpush3.bf16.msra.mxu0 %v16323_v32 }
0x1652   :  { %15010 = vmatprep.subr.bf16.mxu1 %v16324_v62  ;;  %15032 = vmatprep.subr.bf16.mxu0 %v16325_v63 }
0x1655   :  { %15011 = vmatpush3.bf16.msra.mxu1 %v16326_v25  ;;  %15033 = vmatpush3.bf16.msra.mxu0 %v16327_v15  ;;  %v3360_v15 = vld [vmem:[%s20485_s10 + $0x8] sm:$0xf] }
0x1656   :  { %15012 = vmatprep.subr.bf16.mxu1 %v16328_v0  ;;  %15034 = vmatprep.subr.bf16.mxu0 %v16329_v3 }
0x1659   :  { %15013 = vmatpush3.bf16.msra.mxu1 %v16330_v4  ;;  %15035 = vmatpush3.bf16.msra.mxu0 %v16331_v6  ;;  %v3369_v4 = vrot.slane %v3360_v15, %v17056_v21  ;;  %v3377_v6 = vrot.slane %v3360_v15, %v17062_v24 }
0x165a   :  { %15014 = vmatprep.subr.bf16.mxu1 %v16332_v5  ;;  %15036 = vmatprep.subr.bf16.mxu0 %v16333_v8  ;;  %v3365_v5 = vrot.slane %v3360_v15, %v17058_v22  ;;  %v3373_v8 = vrot.slane %v3360_v15, %v17060_v23  ;;  %v3900_v15 = vld [vmem:[%s20484_s9 + $0x30] sm:$0xff] }
0x165d   :  { %15015 = vmatpush3.bf16.msra.mxu1 %v16334_v49  ;;  %15037 = vmatpush3.bf16.msra.mxu0 %v16335_v9 }
0x165e   :  { %15016 = vmatprep.subr.bf16.mxu1 %v16336_v53  ;;  %15038 = vmatprep.subr.bf16.mxu0 %v16337_v12 }
0x1661   :  { %15017 = vmatpush3.bf16.msra.mxu1 %v16338_v18  ;;  %15039 = vmatpush3.bf16.msra.mxu0 %v16339_v10 }
0x1662   :  { %15018 = vmatprep.subr.bf16.mxu1 %v16340_v11  ;;  %15040 = vmatprep.subr.bf16.mxu0 %v16341_v47 }
0x1665   :  { %15019 = vmatpush3.bf16.msra.mxu1 %v16342_v42  ;;  %15041 = vmatpush3.bf16.msra.mxu0 %v16343_v46 }
0x1666   :  { %4026 = vmatprep.subr.bf16.mxu1 %v13583_v44  ;;  %4069 = vmatprep.subr.bf16.mxu0 %v13585_v26 }
0x16d8   :  { %v14932_v43 = vpop.f32.mrf.mxu1  ;;  %v14954_v27 = vpop.f32.mrf.mxu0 }
0x16da   :  { %v14933_v39 = vpop.f32.mrf.mxu1  ;;  %v14955_v37 = vpop.f32.mrf.mxu0 }
0x16db   :  { %v14934_v38 = vadd.f32 %v14933_v39, %v14932_v43  ;;  %v14956_v28 = vadd.f32 %v14955_v37, %v14954_v27 }
0x16dc   :  { %v14935_v29 = vpop.f32.mrf.mxu1  ;;  %v14957_v30 = vpop.f32.mrf.mxu0 }
0x16dd   :  { %v3064_v1 = vadd.f32 %v14956_v28, %v14934_v38  ;;  %v3908_v38 = vld [vmem:[%s20484_s9 + $0x130] sm:$0xff] }
0x16de   :  { %v14936_v31 = vpop.f32.mrf.mxu1  ;;  %v14958_v33 = vpop.f32.mrf.mxu0  ;;  %v3910_v28 = vld [vmem:[%s20484_s9 + $0x170] sm:$0xff] }
0x16df   :  { %v14937_v34 = vadd.f32 %v14936_v31, %v14935_v29  ;;  %v14959_v35 = vadd.f32 %v14958_v33, %v14957_v30  ;;  %v3909_v33 = vld [vmem:[%s20484_s9 + $0x138] sm:$0xff] }
0x16e1   :  { %v3067_v36 = vadd.f32 %v14959_v35, %v14937_v34  ;;  %v3911_v34 = vld [vmem:[%s20484_s9 + $0x178] sm:$0xff] }
0x16f8   :  { %v14976_v40 = vpop.f32.mrf.mxu1  ;;  %v14998_v41 = vpop.f32.mrf.mxu0 }
0x16fa   :  { %v14977_v45 = vpop.f32.mrf.mxu1  ;;  %v14999_v48 = vpop.f32.mrf.mxu0 }
0x16fb   :  { %v14978_v50 = vadd.f32 %v14977_v45, %v14976_v40  ;;  %v15000_v51 = vadd.f32 %v14999_v48, %v14998_v41 }
0x16fc   :  { %v14979_v52 = vpop.f32.mrf.mxu1  ;;  %v15001_v54 = vpop.f32.mrf.mxu0 }
0x16fd   :  { %v3297_v57 = vadd.f32 %v14978_v50, %v3064_v1  ;;  %v13579_v50 = vcombine.high %v3908_v38, %v3910_v28 }
0x16fe   :  { %v14980_v59 = vpop.f32.mrf.mxu1  ;;  %v15002_v60 = vpop.f32.mrf.mxu0 }
0x16ff   :  { %v18003_v61 = vadd.f32 %v15000_v51, %v3297_v57  ;;  %v14981_v32 = vadd.f32 %v14980_v59, %v14979_v52  ;;  %v15003_v63 = vadd.f32 %v15002_v60, %v15001_v54  ;;  %v13581_v51 = vcombine.high %v3909_v33, %v3911_v34  ;;  %v3904_v52 = vld [vmem:[%s20484_s9 + $0xb0] sm:$0xff]  ;;  %v3905_v57 = vld [vmem:[%s20484_s9 + $0xb8] sm:$0xff] }
0x1700   :  { %v3906_v54 = vld [vmem:[%s20484_s9 + $0xf0] sm:$0xff]  ;;  %v3907_v59 = vld [vmem:[%s20484_s9 + $0xf8] sm:$0xff]  ;;  %v13578_v60 = vcombine.low %v3908_v38, %v3910_v28 }
0x1701   :  { %v3300_v62 = vadd.f32 %v14981_v32, %v3067_v36  ;;  %v13580_v32 = vcombine.low %v3909_v33, %v3911_v34  ;;  %v13574_v55 = vcombine.low %v3904_v52, %v3906_v54  ;;  %v13576_v14 = vcombine.low %v3905_v57, %v3907_v59  ;;  %v16364_v38 = vld [vmem:[%s20486_s11 + $0x350] sm:$0xff]   ;;  %v16370_v33 = vld [vmem:[%s20486_s11 + $0x308] sm:$0xff]  }
0x1702   :  { %v16365_v28 = vld [vmem:[%s20486_s11 + $0x3d0] sm:$0xff]   ;;  %v16371_v34 = vld [vmem:[%s20486_s11 + $0x388] sm:$0xff]  }
0x1703   :  { %v18005_v25 = vadd.f32 %v15003_v63, %v3300_v62  ;;  %v13575_v62 = vcombine.high %v3904_v52, %v3906_v54  ;;  %v13577_v63 = vcombine.high %v3905_v57, %v3907_v59 }
0x1708   :  { %v3496_v0 = vpop.f32.mrf.mxu1  ;;  %v3539_v3 = vpop.f32.mrf.mxu0 }
0x1709   :  { %v3497_v42 = vadd.f32 %v3496_v0, %v3365_v5  ;;  %v3540_v46 = vadd.f32 %v3539_v3, %v3373_v8  ;;  %v3902_v0 = vld [vmem:[%s20484_s9 + $0x70] sm:$0xff] }
0x170a   :  { %v3498_v49 = vpop.f32.mrf.mxu1  ;;  %v3541_v9 = vpop.f32.mrf.mxu0  ;;  %v13570_v3 = vcombine.low %v3900_v15, %v3902_v0 }
0x170b   :  { %v3499_v18 = vadd.f32 %v3498_v49, %v3369_v4  ;;  %v3542_v10 = vadd.f32 %v3541_v9, %v3377_v6  ;;  %v3548_v35 = vmax.f32 %v3497_v42, 0.0  ;;  %v3550_v36 = vmax.f32 %v3540_v46, 0.0  ;;  %v16347_v49 = vld [vmem:[%s20486_s11 + $0x3b8] sm:$0xff]   ;;  %v16348_v9 = vld [vmem:[%s20486_s11 + $0x370] sm:$0xff]   ;;  %v16356_v42 = vld [vmem:[%s20486_s11 + $0x360] sm:$0xff]  }
0x170c   :  { %v3500_v53 = vpop.f32.mrf.mxu1  ;;  %v3543_v12 = vpop.f32.mrf.mxu0  ;;  %v16357_v46 = vld [vmem:[%s20486_s11 + $0x3e0] sm:$0xff]  }
0x170d   :  { %v3501_v11 = vadd.f32 %v3500_v53, %v3365_v5  ;;  %v3544_v47 = vadd.f32 %v3543_v12, %v3373_v8  ;;  %v3549_v29 = vmax.f32 %v3499_v18, 0.0  ;;  %v3551_v30 = vmax.f32 %v3542_v10, 0.0  ;;  %v16345_v5 = vld [vmem:[%s20486_s11 + $0x3f8] sm:$0xff]   ;;  %v16349_v53 = vld [vmem:[%s20486_s11 + $0x3f0] sm:$0xff]   ;;  %v16353_v10 = vld [vmem:[%s20486_s11 + $0x3e8] sm:$0xff]  }
0x170e   :  { %v3502_v44 = vpop.f32.mrf.mxu1  ;;  %v3545_v26 = vpop.f32.mrf.mxu0  ;;  %v16346_v8 = vld [vmem:[%s20486_s11 + $0x338] sm:$0xff]   ;;  %v16350_v12 = vld [vmem:[%s20486_s11 + $0x330] sm:$0xff]  }
0x170f   :  { %v3503_v43 = vadd.f32 %v3502_v44, %v3369_v4  ;;  %v3546_v27 = vadd.f32 %v3545_v26, %v3377_v6  ;;  %v3552_v39 = vmax.f32 %v3501_v11, 0.0  ;;  %v3554_v37 = vmax.f32 %v3544_v47, 0.0  ;;  %v16344_v6 = vld [vmem:[%s20486_s11 + $0x378] sm:$0xff]   ;;  %v16351_v18 = vld [vmem:[%s20486_s11 + $0x3b0] sm:$0xff]   ;;  %v16354_v11 = vld [vmem:[%s20486_s11 + $0x328] sm:$0xff]  }
0x1710   :  { %v13572_v4 = vcombine.low %v3901_v56, %v3903_v13  ;;  %v16355_v47 = vld [vmem:[%s20486_s11 + $0x3a8] sm:$0xff]   ;;  %v16358_v44 = vld [vmem:[%s20486_s11 + $0x320] sm:$0xff]  }
0x1711   :  { %v3553_v1 = vmax.f32 %v3503_v43, 0.0  ;;  %v3555_v31 = vmax.f32 %v3546_v27, 0.0  ;;  %v3556_v45 = vpack.c.bf16 %v3552_v39, %v3548_v35  ;;  %v3558_v48 = vpack.c.bf16 %v3554_v37, %v3550_v36  ;;  %v16359_v26 = vld [vmem:[%s20486_s11 + $0x3a0] sm:$0xff]   ;;  %v16360_v43 = vld [vmem:[%s20486_s11 + $0x358] sm:$0xff]  }
0x1712   :  { %v16361_v27 = vld [vmem:[%s20486_s11 + $0x3d8] sm:$0xff]   ;;  %v16372_v35 = vld [vmem:[%s20486_s11 + $0x340] sm:$0xff]  }
0x1713   :  { %v3557_v40 = vpack.c.bf16 %v3553_v1, %v3549_v29  ;;  %v3559_v41 = vpack.c.bf16 %v3555_v31, %v3551_v30  ;;  %v16362_v39 = vld [vmem:[%s20486_s11 + $0x318] sm:$0xff]   ;;  %v16366_v29 = vld [vmem:[%s20486_s11 + $0x310] sm:$0xff]   ;;  %v16368_v1 = vld [vmem:[%s20486_s11 + $0x348] sm:$0xff]  }
0x1714   :  { %v16363_v37 = vld [vmem:[%s20486_s11 + $0x398] sm:$0xff]   ;;  %v16367_v30 = vld [vmem:[%s20486_s11 + $0x390] sm:$0xff]   ;;  %v16369_v31 = vld [vmem:[%s20486_s11 + $0x3c8] sm:$0xff]  }
0x1715   :  { %3848 = vmatprep.mubr.bf16.mxu1 %v3557_v40  ;;  %3889 = vmatprep.mubr.bf16.mxu0 %v3559_v41  ;;  %v16373_v36 = vld [vmem:[%s20486_s11 + $0x3c0] sm:$0xff]  }
0x1716   :  { %3849 = vmatmul.mubr.bf16.vlgmr.msra.gmra.mxu1 %v3556_v45  ;;  %3890 = vmatmul.mubr.bf16.vlgmr.msra.gmra.mxu0 %v3558_v48  ;;  %v16374_v40 = vld [vmem:[%s20486_s11 + $0x300] sm:$0xff]  }
0x1717   :  { %4027 = vmatpush1.bf16.msra.mxu1 %v13582_v19  ;;  %4070 = vmatpush1.bf16.msra.mxu0 %v13584_v20  ;;  %v13571_v19 = vcombine.high %v3900_v15, %v3902_v0  ;;  %v13573_v20 = vcombine.high %v3901_v56, %v3903_v13  ;;  %v16375_v41 = vld [vmem:[%s20486_s11 + $0x380] sm:$0xff]  }
0x1718   :  { %4028 = vmatprep.subr.bf16.mxu1 %v13579_v50  ;;  %4071 = vmatprep.subr.bf16.mxu0 %v13581_v51 }
0x1719   :  { %4050 = vmatprep.mubr.bf16.mxu1 %v16906_v2  ;;  %4093 = vmatprep.mubr.bf16.mxu0 %v16906_v2 }
0x171b   :  { %4029 = vmatpush1.bf16.msra.mxu1 %v13578_v60  ;;  %4072 = vmatpush1.bf16.msra.mxu0 %v13580_v32 }
0x171c   :  { %4030 = vmatprep.subr.bf16.mxu1 %v13575_v62  ;;  %4073 = vmatprep.subr.bf16.mxu0 %v13577_v63 }
0x171f   :  { %4031 = vmatpush1.bf16.msra.mxu1 %v13574_v55  ;;  %4074 = vmatpush1.bf16.msra.mxu0 %v13576_v14  ;;  %v3916_v55 = vld [vmem:[%s20485_s10 + $0xc] sm:$0xf] }
0x1720   :  { %4032 = vmatprep.subr.bf16.mxu1 %v13571_v19  ;;  %4075 = vmatprep.subr.bf16.mxu0 %v13573_v20  ;;  %v3925_v20 = vrot.slane %v3916_v55, %v17056_v21 }
0x1723   :  { %4033 = vmatpush1.bf16.msra.mxu1 %v13570_v3  ;;  %4076 = vmatpush1.bf16.msra.mxu0 %v13572_v4  ;;  %v3933_v3 = vrot.slane %v3916_v55, %v17062_v24  ;;  %v3921_v4 = vrot.slane %v3916_v55, %v17058_v22 }
0x1724   :  { %15048 = vmatprep.subr.bf16.mxu1 %v16344_v6  ;;  %15070 = vmatprep.subr.bf16.mxu0 %v16345_v5  ;;  %v3929_v6 = vrot.slane %v3916_v55, %v17060_v23 }
0x1726   :  { %13586 = vmatmul.mubr.msk.bf16.vlgmr.msra.gmra.mxu1 %vm207_vm14, %v17565_v7  ;;  %13587 = vmatmul.mubr.msk.bf16.vlgmr.msra.gmra.mxu0 %vm207_vm14, %v17565_v7  ;;  %v16352_v7 = vld [vmem:[%s20486_s11 + $0x368] sm:$0xff]  }
0x1727   :  { %15049 = vmatpush3.bf16.msra.mxu1 %v16346_v8  ;;  %15071 = vmatpush3.bf16.msra.mxu0 %v16347_v49 }
0x1728   :  { %15050 = vmatprep.subr.bf16.mxu1 %v16348_v9  ;;  %15072 = vmatprep.subr.bf16.mxu0 %v16349_v53 }
0x172b   :  { %15051 = vmatpush3.bf16.msra.mxu1 %v16350_v12  ;;  %15073 = vmatpush3.bf16.msra.mxu0 %v16351_v18 }
0x172c   :  { %15052 = vmatprep.subr.bf16.mxu1 %v16352_v7  ;;  %15074 = vmatprep.subr.bf16.mxu0 %v16353_v10 }
0x172f   :  { %15053 = vmatpush3.bf16.msra.mxu1 %v16354_v11  ;;  %15075 = vmatpush3.bf16.msra.mxu0 %v16355_v47 }
0x1730   :  { %15054 = vmatprep.subr.bf16.mxu1 %v16356_v42  ;;  %15076 = vmatprep.subr.bf16.mxu0 %v16357_v46 }
0x1733   :  { %15055 = vmatpush3.bf16.msra.mxu1 %v16358_v44  ;;  %15077 = vmatpush3.bf16.msra.mxu0 %v16359_v26 }
0x1734   :  { %15056 = vmatprep.subr.bf16.mxu1 %v16360_v43  ;;  %15078 = vmatprep.subr.bf16.mxu0 %v16361_v27 }
0x1737   :  { %15057 = vmatpush3.bf16.msra.mxu1 %v16362_v39  ;;  %15079 = vmatpush3.bf16.msra.mxu0 %v16363_v37 }
0x1738   :  { %15058 = vmatprep.subr.bf16.mxu1 %v16364_v38  ;;  %15080 = vmatprep.subr.bf16.mxu0 %v16365_v28 }
0x173b   :  { %15059 = vmatpush3.bf16.msra.mxu1 %v16366_v29  ;;  %15081 = vmatpush3.bf16.msra.mxu0 %v16367_v30 }
0x173c   :  { %15060 = vmatprep.subr.bf16.mxu1 %v16368_v1  ;;  %15082 = vmatprep.subr.bf16.mxu0 %v16369_v31 }
0x173f   :  { %15061 = vmatpush3.bf16.msra.mxu1 %v16370_v33  ;;  %15083 = vmatpush3.bf16.msra.mxu0 %v16371_v34 }
0x1740   :  { %15062 = vmatprep.subr.bf16.mxu1 %v16372_v35  ;;  %15084 = vmatprep.subr.bf16.mxu0 %v16373_v36 }
0x1743   :  { %15063 = vmatpush3.bf16.msra.mxu1 %v16374_v40  ;;  %15085 = vmatpush3.bf16.msra.mxu0 %v16375_v41 }
0x1744   :  { %15791 = vmatprep.subr.bf16.mxu0 %v16907_v58 }
0x17d6   :  { %v15020_v45 = vpop.f32.mrf.mxu1  ;;  %v15042_v48 = vpop.f32.mrf.mxu0 }
0x17d8   :  { %v15021_v50 = vpop.f32.mrf.mxu1  ;;  %v15043_v51 = vpop.f32.mrf.mxu0 }
0x17d9   :  { %v15022_v52 = vadd.f32 %v15021_v50, %v15020_v45  ;;  %v15044_v54 = vadd.f32 %v15043_v51, %v15042_v48 }
0x17da   :  { %v15023_v57 = vpop.f32.mrf.mxu1  ;;  %v15045_v59 = vpop.f32.mrf.mxu0 }
0x17db   :  { %v3892_v60 = vadd.f32 %v15044_v54, %v15022_v52  ;;  %v13620_v52 = vld [vmem:[%s20487_s12] ss:$0 sm:$0xff] }
0x17dc   :  { %v15024_v32 = vpop.f32.mrf.mxu1  ;;  %v15046_v62 = vpop.f32.mrf.mxu0 }
0x17dd   :  { %v3898_v63 = vadd.f32 %v3892_v60, %v18003_v61  ;;  %v15025_v15 = vadd.f32 %v15024_v32, %v15023_v57  ;;  %v15047_v0 = vadd.f32 %v15046_v62, %v15045_v59 }
0x17df   :  { %v3895_v56 = vadd.f32 %v15047_v0, %v15025_v15 }
0x17e1   :  { %v3899_v13 = vadd.f32 %v3895_v56, %v18005_v25 }
0x17e6   :  { %v4052_v14 = vpop.f32.mrf.mxu1  ;;  %v4095_v19 = vpop.f32.mrf.mxu0 }
0x17e7   :  { %v4053_v18 = vadd.f32 %v4052_v14, %v3921_v4  ;;  %v4096_v7 = vadd.f32 %v4095_v19, %v3929_v6 }
0x17e8   :  { %v4054_v61 = vpop.f32.mrf.mxu1  ;;  %v4097_v5 = vpop.f32.mrf.mxu0 }
0x17e9   :  { %v4055_v9 = vadd.f32 %v4054_v61, %v3925_v20  ;;  %v4098_v25 = vadd.f32 %v4097_v5, %v3933_v3  ;;  %v4104_v37 = vmax.f32 %v4053_v18, 0.0  ;;  %v4106_v38 = vmax.f32 %v4096_v7, 0.0  ;;  %v16385_v18 = vld [vmem:[%s20478_s3 + $0x40] ss:$8 sps:$4 sm:$0xff]  }
0x17ea   :  { %v4056_v8 = vpop.f32.mrf.mxu1  ;;  %v4099_v49 = vpop.f32.mrf.mxu0 }
0x17eb   :  { %v4057_v53 = vadd.f32 %v4056_v8, %v3921_v4  ;;  %v4100_v12 = vadd.f32 %v4099_v49, %v3929_v6  ;;  %v4105_v26 = vmax.f32 %v4055_v9, 0.0  ;;  %v4107_v43 = vmax.f32 %v4098_v25, 0.0  ;;  %v16376_v8 = vld [vmem:[%s20478_s3 + $0x70] ss:$8 sps:$4 sm:$0xff]   ;;  %v16381_v49 = vld [vmem:[%s20478_s3 + $0x64] ss:$8 sps:$4 sm:$0xff]  }
0x17ec   :  { %v4058_v10 = vpop.f32.mrf.mxu1  ;;  %v4101_v11 = vpop.f32.mrf.mxu0  ;;  %v16379_v9 = vld [vmem:[%s20478_s3 + $0x60] ss:$8 sps:$4 sm:$0xff]   ;;  %v16384_v25 = vld [vmem:[%s20478_s3 + $0x54] ss:$8 sps:$4 sm:$0xff]  }
0x17ed   :  { %v4059_v47 = vadd.f32 %v4058_v10, %v3925_v20  ;;  %v4102_v42 = vadd.f32 %v4101_v11, %v3933_v3  ;;  %v4108_v46 = vmax.f32 %v4057_v53, 0.0  ;;  %v4110_v44 = vmax.f32 %v4100_v12, 0.0  ;;  %v16382_v53 = vld [vmem:[%s20478_s3 + $0x50] ss:$8 sps:$4 sm:$0xff]   ;;  %v16387_v12 = vld [vmem:[%s20478_s3 + $0x44] ss:$8 sps:$4 sm:$0xff]  }
0x17ef   :  { %v4109_v27 = vmax.f32 %v4059_v47, 0.0  ;;  %v4111_v39 = vmax.f32 %v4102_v42, 0.0  ;;  %v4112_v30 = vpack.c.bf16 %v4108_v46, %v4104_v37  ;;  %v4114_v1 = vpack.c.bf16 %v4110_v44, %v4106_v38  ;;  %v13622_v38 = vld [vmem:[%s20489_s14] ss:$0 sm:$0xff] }
0x17f1   :  { %v4113_v28 = vpack.c.bf16 %v4109_v27, %v4105_v26  ;;  %v4115_v29 = vpack.c.bf16 %v4111_v39, %v4107_v43  ;;  %v13621_v43 = vld [vmem:[%s20488_s13] ss:$0 sm:$0xff] }
0x17f3   :  { %4404 = vmatprep.mubr.bf16.mxu1 %v4113_v28  ;;  %4445 = vmatprep.mubr.bf16.mxu0 %v4115_v29 }
0x17f4   :  { %4405 = vmatmul.mubr.bf16.vlgmr.msra.gmra.mxu1 %v4112_v30  ;;  %4446 = vmatmul.mubr.bf16.vlgmr.msra.gmra.mxu0 %v4114_v1 }
0x17f5   :  { %4609 = vmatprep.mubr.bf16.mxu1 %v16906_v2  ;;  %15793 = vmatprep.mubr.msk.bf16.mxu0 %vm16908_vm1, %v16907_v58 }
0x18b4   :  { %v15064_v31 = vpop.f32.mrf.mxu1  ;;  %v15086_v33 = vpop.f32.mrf.mxu0 }
0x18b6   :  { %v15065_v34 = vpop.f32.mrf.mxu1  ;;  %v15087_v35 = vpop.f32.mrf.mxu0 }
0x18b7   :  { %v15066_v36 = vadd.f32 %v15065_v34, %v15064_v31  ;;  %v15088_v40 = vadd.f32 %v15087_v35, %v15086_v33  ;;  %v13631_v31 = vld [vmem:[%s20479_s4 + $0x2] sm:$0x3] }
0x18b8   :  { %v15067_v41 = vpop.f32.mrf.mxu1  ;;  %v15089_v45 = vpop.f32.mrf.mxu0  ;;  %v4527_v33 = vrot.slane %v13631_v31, %v17058_v22 }
0x18b9   :  { %v4448_v48 = vadd.f32 %v15088_v40, %v15066_v36 }
0x18ba   :  { %v15068_v50 = vpop.f32.mrf.mxu1  ;;  %v15090_v51 = vpop.f32.mrf.mxu0 }
0x18bb   :  { %v4454_v54 = vadd.f32 %v4448_v48, %v3898_v63  ;;  %v15069_v57 = vadd.f32 %v15068_v50, %v15067_v41  ;;  %v15091_v59 = vadd.f32 %v15090_v51, %v15089_v45  ;;  %v4531_v50 = vrot.slane %v13631_v31, %v17056_v21 }
0x18bd   :  { %v4451_v60 = vadd.f32 %v15091_v59, %v15069_v57  ;;  %v4463_v32 = vadd.f32 %v13620_v52, %v4454_v54 }
0x18bf   :  { %v4455_v62 = vadd.f32 %v4451_v60, %v3899_v13  ;;  %v4465_v15 = vadd.f32 %v4463_v32, %v17559_v16 }
0x18c1   :  { %v4469_v0 = vsel %vm207_vm14, %v4465_v15, 0.0  ;;  %v4464_v56 = vadd.f32 %v13620_v52, %v4455_v62 }
0x18c2   :  { %4470 = vadd.xlane.f32.xlu1 %v4469_v0 }
0x18c3   :  { %v4466_v55 = vadd.f32 %v4464_v56, %v17561_v17  ;;  %v16378_v17 = vld [vmem:[%s20478_s3 + $0x74] ss:$8 sps:$4 sm:$0xff]  }
0x18c4   :  { %4585 = vmatprep.subr.bf16.mxu1 %v16378_v17 }
0x18c5   :  { %v4472_v14 = vsel %vm207_vm14, %v4466_v55, 0.0  ;;  %4586 = vmatpush1.bf16.msra.mxu1 %v16376_v8 }
0x18c6   :  { %4473 = vadd.xlane.f32.xlu0 %v4472_v14  ;;  %4587 = vmatprep.subr.bf16.mxu1 %v16381_v49 }
0x18c9   :  { %4588 = vmatpush1.bf16.msra.mxu1 %v16379_v9 }
0x18ca   :  { %4589 = vmatprep.subr.bf16.mxu1 %v16384_v25 }
0x18cd   :  { %4590 = vmatpush1.bf16.msra.mxu1 %v16382_v53 }
0x18ce   :  { %4591 = vmatprep.subr.bf16.mxu1 %v16387_v12 }
0x18d1   :  { %4592 = vmatpush1.bf16.msra.mxu1 %v16385_v18 }
0x18d2   :  { %15797 = vmatprep.subr.bf16.mxu1 %v16907_v58 }
0x194b   :  { %v4471_v19 = vpop.xlane.xlu1 %4470 }
0x194c   :  { %v4475_v20 = vmul.f32 0.015625, %v4471_v19 }
0x194e   :  { %v4477_v3 = vsub.f32 %v4465_v15, %v4475_v20 }
0x194f   :  { %v4474_v63 = vpop.xlane.xlu0 %4473 }
0x1950   :  { %v4476_v4 = vmul.f32 0.015625, %v4474_v63  ;;  %v4479_v6 = vmul.f32 %v4477_v3, %v4477_v3 }
0x1952   :  { %v4478_v61 = vsub.f32 %v4466_v55, %v4476_v4  ;;  %v4481_v13 = vsel %vm207_vm14, %v4479_v6, 0.0 }
0x1953   :  { %4482 = vadd.xlane.f32.xlu1 %v4481_v13 }
0x1954   :  { %v4480_v16 = vmul.f32 %v4478_v61, %v4478_v61 }
0x1956   :  { %v4484_v5 = vsel %vm207_vm14, %v4480_v16, 0.0 }
0x1957   :  { %4485 = vadd.xlane.f32.xlu0 %v4484_v5 }
0x19dc   :  { %v4483_v7 = vpop.xlane.xlu1 %4482 }
0x19dd   :  { %v4487_v10 = vmul.f32 0.015625, %v4483_v7 }
0x19df   :  { %v4489_v11 = vadd.f32 1e-05, %v4487_v10 }
0x19e0   :  { %v4486_v47 = vpop.xlane.xlu0 %4485 }
0x19e1   :  { %16736 = vrsqrt.f32 %v4489_v11  ;;  %v4488_v42 = vmul.f32 0.015625, %v4486_v47 }
0x19e3   :  { %v4490_v46 = vadd.f32 1e-05, %v4488_v42 }
0x19e5   :  { %16738 = vrsqrt.f32 %v4490_v46 }
0x19ee   :  { %v16737_v44 = vpop.eup %16736 }
0x19ef   :  { %v4493_v26 = vmul.f32 %v16737_v44, %v4477_v3 }
0x19f1   :  { %v4501_v37 = vmul.f32 %v13621_v43, %v4493_v26 }
0x19f2   :  { %v16739_v27 = vpop.eup %16738 }
0x19f3   :  { %v4494_v39 = vmul.f32 %v16739_v27, %v4478_v61  ;;  %v18211_v29 = vadd.f32 %v13622_v38, %v4501_v37 }
0x19f5   :  { %v4502_v28 = vmul.f32 %v13621_v43, %v4494_v39 }
0x19f7   :  { %v18213_v30 = vadd.f32 %v13622_v38, %v4502_v28 }
0x19f9   :  { %v4511_v1 = vpack.c.bf16 %v18213_v30, %v18211_v29 }
0x19fb   :  { %13640 = vmatmul.mubr.msk.bf16.vlgmr.msra.gmra.mxu1 %vm207_vm14, %v4511_v1 }
0x19fc   :  { %15799 = vmatprep.mubr.msk.bf16.mxu1 %vm16908_vm1, %v16907_v58 }
0x1abb   :  { %v4611_v34 = vpop.f32.mrf.mxu1 }
0x1abc   :  { %v4612_v35 = vadd.f32 %v4611_v34, %v4527_v33 }
0x1abd   :  { %v4613_v36 = vpop.f32.mrf.mxu1 }
0x1abe   :  { %v18224_v40 = vpack.c.bf16 %v4612_v35, %v4612_v35  ;;  %v4614_v52 = vadd.f32 %v4613_v36, %v4531_v50 }
0x1abf   :  { %v4615_v41 = vpop.f32.mrf.mxu1 }
0x1ac0   :  { %v4616_v45 = vadd.f32 %v4615_v41, %v4527_v33  ;;  %4632 = vrot.lane.b32.xlu1 %v18224_v40, %s20520_s21  ;;  %v18235_v60 = vpack.c.bf16 %v4614_v52, %v4614_v52 }
0x1ac1   :  { %v4617_v57 = vpop.f32.mrf.mxu1 }
0x1ac2   :  { %v18228_v48 = vpack.c.bf16 %v4616_v45, %v4616_v45  ;;  %v4618_v32 = vadd.f32 %v4617_v57, %v4531_v50  ;;  %v4756_v0 = vsel %vm390_vm2, %v18235_v60, 0 }
0x1ac4   :  { %4680 = vrot.lane.b32.xlu0 %v18228_v48, %s20520_s21  ;;  %v18239_v15 = vpack.c.bf16 %v4618_v32, %v4618_v32  ;;  %s20554_s21 = smov 64  }
0x1ac6   :  { %v4802_v56 = vsel %vm390_vm2, %v18239_v15, 0 }
0x1b32   :  { %v4633_v51 = vpop.permute.xlu1 %4632 }
0x1b33   :  { %v4638_v54 = vsel %vm268_vm3, %v4633_v51, 0 }
0x1b34   :  { %15792 = vmatpush3.bf16.xpose.msra.mxu0 %v4638_v54 }
0x1b35   :  { %15803 = vmatprep.subr.bf16.mxu0 %v16907_v58 }
0x1b36   :  { %v4681_v59 = vpop.permute.xlu0 %4680 }
0x1b37   :  { %v4686_v62 = vsel %vm268_vm3, %v4681_v59, 0 }
0x1b38   :  { %15798 = vmatpush3.bf16.xpose.msra.mxu1 %v4686_v62 }
0x1b39   :  { %15809 = vmatprep.subr.bf16.mxu1 %v16907_v58 }
0x1b3b   :  { %15794 = vmatmul.mubr.msk.bf16.vlgmr.msra.gmra.mxu0 %vm268_vm3, %v18224_v40 }
0x1b3c   :  { %15804 = vmatpush3.bf16.msra.mxu0 %v4756_v0  ;;  %15805 = vmatprep.mubr.msk.bf16.mxu0 %vm16908_vm1, %v16907_v58 }
0x1b3d   :  { %15815 = vmatprep.subr.bf16.mxu0 %v16907_v58 }
0x1b3f   :  { %15800 = vmatmul.mubr.msk.bf16.vlgmr.msra.gmra.mxu1 %vm268_vm3, %v18228_v48 }
0x1b40   :  { %15810 = vmatpush3.bf16.msra.mxu1 %v4802_v56  ;;  %15811 = vmatprep.mubr.msk.bf16.mxu1 %vm16908_vm1, %v16907_v58 }
0x1b41   :  { %15821 = vmatprep.subr.bf16.mxu1 %v16907_v58 }
0x1bfb   :  { %v4674_v55 = vpop.f32.mrf.mxu0 }
0x1bfc   :  { %v4728_v14 = vsel %vm268_vm3, %v4674_v55, -inf }
0x1bfd   :  { %4729 = vmax.xlane.f32.xlu1 %v4728_v14  ;;  %v15795_v19 = vpop.f32.mrf.mxu0 }
0x1bff   :  { %v4677_v20 = vpop.f32.mrf.mxu0  ;;  %v4722_v3 = vpop.f32.mrf.mxu1 }
0x1c00   :  { %v4731_v63 = vsel %vm268_vm3, %v4722_v3, -inf }
0x1c01   :  { %4732 = vmax.xlane.f32.xlu0 %v4731_v63  ;;  %v15796_v4 = vpop.f32.mrf.mxu0  ;;  %v15801_v6 = vpop.f32.mrf.mxu1 }
0x1c03   :  { %v4725_v61 = vpop.f32.mrf.mxu1 }
0x1c05   :  { %v15802_v13 = vpop.f32.mrf.mxu1 }
0x1c0e   :  { %4848 = vrot.lane.b32.xlu1 %v18224_v40, %s20522_s22 }
0x1c86   :  { %v4730_v16 = vpop.xlane.xlu1 %4729 }
0x1c87   :  { %v4734_v5 = vsub.f32 %v4674_v55, %v4730_v16 }
0x1c89   :  { %v4736_v17 = vmul.f32 1.442695, %v4734_v5 }
0x1c8a   :  { %v4733_v8 = vpop.xlane.xlu0 %4732  ;;  %v4849_v7 = vpop.permute.xlu1 %4848 }
0x1c8b   :  { %16740 = vpow2.f32 %v4736_v17  ;;  %v4735_v49 = vsub.f32 %v4722_v3, %v4733_v8  ;;  %v4854_v26 = vsel %vm268_vm3, %v4849_v7, 0 }
0x1c8d   :  { %v4738_v9 = vmul.f32 1.442695, %v4735_v49 }
0x1c8f   :  { %16742 = vpow2.f32 %v4738_v9 }
0x1c98   :  { %v16741_v25 = vpop.eup %16740 }
0x1c99   :  { %v4740_v53 = vsel %vm268_vm3, %v16741_v25, 0.0 }
0x1c9a   :  { %4741 = vadd.xlane.f32.xlu1 %v4740_v53 }
0x1c9c   :  { %v16743_v12 = vpop.eup %16742 }
0x1c9d   :  { %v4743_v18 = vsel %vm268_vm3, %v16743_v12, 0.0 }
0x1c9e   :  { %4744 = vadd.xlane.f32.xlu0 %v4743_v18 }
0x1cab   :  { %4846 = vrot.lane.b32.xlu1 %v18224_v40, %s20518_s23 }
0x1caf   :  { %4896 = vrot.lane.b32.xlu1 %v18228_v48, %s20518_s23 }
0x1cb4   :  { %4898 = vrot.lane.b32.xlu0 %v18228_v48, %s20522_s22  ;;  %s20556_s22 = smov 48  }
0x1d23   :  { %v4742_v10 = vpop.xlane.xlu1 %4741 }
0x1d24   :  { %16744 = vrcp.f32 %v4742_v10 }
0x1d27   :  { %v4745_v11 = vpop.xlane.xlu0 %4744  ;;  %v4847_v38 = vpop.permute.xlu1 %4846 }
0x1d28   :  { %16746 = vrcp.f32 %v4745_v11 }
0x1d2b   :  { %v4899_v27 = vpop.permute.xlu0 %4898  ;;  %v4897_v28 = vpop.permute.xlu1 %4896 }
0x1d2c   :  { %v4904_v37 = vsel %vm268_vm3, %v4899_v27, 0 }
0x1d31   :  { %v16745_v47 = vpop.eup %16744 }
0x1d32   :  { %v4747_v42 = vmul.f32 %v16745_v47, %v16741_v25 }
0x1d34   :  { %v4750_v46 = vpack.c.bf16 %v4747_v42, %v4747_v42 }
0x1d35   :  { %v16747_v44 = vpop.eup %16746 }
0x1d36   :  { %15806 = vmatmul.mubr.msk.bf16.vlgmr.msra.gmra.mxu0 %vm268_vm3, %v4750_v46  ;;  %v4749_v43 = vmul.f32 %v16747_v44, %v16743_v12 }
0x1d37   :  { %15816 = vmatpush3.bf16.xpose.msra.mxu0 %v4854_v26  ;;  %15817 = vmatprep.mubr.msk.bf16.mxu0 %vm16908_vm1, %v16907_v58 }
0x1d38   :  { %v4751_v39 = vpack.c.bf16 %v4749_v43, %v4749_v43  ;;  %15827 = vmatprep.subr.bf16.mxu0 %v16907_v58 }
0x1d3a   :  { %15812 = vmatmul.mubr.msk.bf16.vlgmr.msra.gmra.mxu1 %vm268_vm3, %v4751_v39 }
0x1d3b   :  { %15822 = vmatpush3.bf16.xpose.msra.mxu1 %v4904_v37  ;;  %15823 = vmatprep.mubr.msk.bf16.mxu1 %vm16908_vm1, %v16907_v58 }
0x1d3c   :  { %15833 = vmatprep.subr.bf16.mxu1 %v16907_v58 }
0x1d3e   :  { %15818 = vmatmul.mubr.msk.bf16.vlgmr.msra.gmra.mxu0 %vm268_vm3, %v4847_v38 }
0x1d3f   :  { %15829 = vmatprep.mubr.msk.bf16.mxu0 %vm16908_vm1, %v16907_v58 }
0x1d42   :  { %15824 = vmatmul.mubr.msk.bf16.vlgmr.msra.gmra.mxu1 %vm268_vm3, %v4897_v28 }
0x1d43   :  { %15835 = vmatprep.mubr.msk.bf16.mxu1 %vm16908_vm1, %v16907_v58 }
0x1df6   :  { %v4792_v1 = vpop.f32.mrf.mxu0 }
0x1df7   :  { %4844 = vst.msk [vmem:[#allocation2] sm:$0xff] %vm268_vm3, %v4792_v1 }
0x1df8   :  { %v15807_v31 = vpop.f32.mrf.mxu0 }
0x1dfa   :  { %v4795_v33 = vpop.f32.mrf.mxu0  ;;  %v4838_v34 = vpop.f32.mrf.mxu1 }
0x1dfb   :  { %4845 = vst.msk [vmem:[#allocation2 + $0x8] sm:$0xff] %vm268_vm3, %v4838_v34 }
0x1dfc   :  { %v15808_v35 = vpop.f32.mrf.mxu0  ;;  %v15813_v36 = vpop.f32.mrf.mxu1 }
0x1dfe   :  { %v4841_v41 = vpop.f32.mrf.mxu1  ;;  %v4890_v45 = vpop.f32.mrf.mxu0 }
0x1dff   :  { %v4946_v50 = vsel %vm268_vm3, %v4890_v45, -inf }
0x1e00   :  { %v15814_v51 = vpop.f32.mrf.mxu1  ;;  %4947 = vmax.xlane.f32.xlu0 %v4946_v50  ;;  %v15819_v52 = vpop.f32.mrf.mxu0 }
0x1e02   :  { %v4893_v54 = vpop.f32.mrf.mxu0  ;;  %v4940_v57 = vpop.f32.mrf.mxu1 }
0x1e03   :  { %v4949_v59 = vsel %vm268_vm3, %v4940_v57, -inf }
0x1e04   :  { %4950 = vmax.xlane.f32.xlu1 %v4949_v59  ;;  %v15820_v32 = vpop.f32.mrf.mxu0  ;;  %v15825_v62 = vpop.f32.mrf.mxu1 }
0x1e06   :  { %v4943_v0 = vpop.f32.mrf.mxu1 }
0x1e08   :  { %v15826_v56 = vpop.f32.mrf.mxu1 }
0x1e15   :  { %4970 = vrot.lane.b32.xlu1 %v18235_v60, %s20518_s23 }
0x1e19   :  { %5078 = vrot.lane.b32.xlu1 %v18224_v40, %s20516_s24 }
0x1e1d   :  { %5128 = vrot.lane.b32.xlu1 %v18228_v48, %s20516_s24 }
0x1e21   :  { %5126 = vrot.lane.b32.xlu1 %v18228_v48, %s20542_s19 }
0x1e89   :  { %v4948_v55 = vpop.xlane.xlu0 %4947 }
0x1e8a   :  { %v4952_v14 = vsub.f32 %v4890_v45, %v4948_v55 }
0x1e8c   :  { %v4954_v19 = vmul.f32 1.442695, %v4952_v14 }
0x1e8d   :  { %v4951_v20 = vpop.xlane.xlu1 %4950 }
0x1e8e   :  { %16748 = vpow2.f32 %v4954_v19  ;;  %v4953_v3 = vsub.f32 %v4940_v57, %v4951_v20 }
0x1e90   :  { %v4956_v63 = vmul.f32 1.442695, %v4953_v3 }
0x1e91   :  { %v4971_v4 = vpop.permute.xlu1 %4970 }
0x1e92   :  { %16750 = vpow2.f32 %v4956_v63  ;;  %v4976_v6 = vsel %vm390_vm2, %v4971_v4, 0 }
0x1e93   :  { %15828 = vmatpush3.bf16.msra.mxu0 %v4976_v6 }
0x1e94   :  { %15839 = vmatprep.subr.bf16.mxu0 %v16907_v58 }
0x1e95   :  { %v5079_v53 = vpop.permute.xlu1 %5078 }
0x1e96   :  { %v5084_v10 = vsel %vm268_vm3, %v5079_v53, 0 }
0x1e99   :  { %v5129_v47 = vpop.permute.xlu1 %5128 }
0x1e9a   :  { %v5134_v46 = vsel %vm268_vm3, %v5129_v47, 0 }
0x1e9b   :  { %v16749_v61 = vpop.eup %16748 }
0x1e9c   :  { %v4958_v13 = vsel %vm268_vm3, %v16749_v61, 0.0 }
0x1e9d   :  { %4959 = vadd.xlane.f32.xlu0 %v4958_v13  ;;  %v5127_v26 = vpop.permute.xlu1 %5126 }
0x1e9f   :  { %v16751_v16 = vpop.eup %16750 }
0x1ea0   :  { %v4961_v5 = vsel %vm268_vm3, %v16751_v16, 0.0 }
0x1ea1   :  { %4962 = vadd.xlane.f32.xlu0 %v4961_v5 }
0x1eb7   :  { %5018 = vrot.lane.b32.xlu0 %v18239_v15, %s20518_s23 }
0x1ebb   :  { %5076 = vrot.lane.b32.xlu0 %v18224_v40, %s20542_s19 }
0x1f26   :  { %v4960_v17 = vpop.xlane.xlu0 %4959 }
0x1f27   :  { %16752 = vrcp.f32 %v4960_v17 }
0x1f2a   :  { %v4963_v8 = vpop.xlane.xlu0 %4962 }
0x1f2b   :  { %16754 = vrcp.f32 %v4963_v8 }
0x1f2e   :  { %v5019_v49 = vpop.permute.xlu0 %5018 }
0x1f2f   :  { %v5024_v9 = vsel %vm390_vm2, %v5019_v49, 0 }
0x1f30   :  { %15834 = vmatpush3.bf16.msra.mxu1 %v5024_v9 }
0x1f31   :  { %15845 = vmatprep.subr.bf16.mxu1 %v16907_v58 }
0x1f32   :  { %v5077_v44 = vpop.permute.xlu0 %5076 }
0x1f34   :  { %v16753_v25 = vpop.eup %16752 }
0x1f35   :  { %v4965_v12 = vmul.f32 %v16753_v25, %v16749_v61 }
0x1f37   :  { %v4968_v18 = vpack.c.bf16 %v4965_v12, %v4965_v12 }
0x1f38   :  { %v16755_v7 = vpop.eup %16754 }
0x1f39   :  { %v4967_v11 = vmul.f32 %v16755_v7, %v16751_v16  ;;  %15830 = vmatmul.mubr.msk.bf16.vlgmr.msra.gmra.mxu0 %vm268_vm3, %v4968_v18 }
0x1f3a   :  { %15840 = vmatpush3.bf16.xpose.msra.mxu0 %v5084_v10  ;;  %15841 = vmatprep.mubr.msk.bf16.mxu0 %vm16908_vm1, %v16907_v58 }
0x1f3b   :  { %v4969_v42 = vpack.c.bf16 %v4967_v11, %v4967_v11  ;;  %15851 = vmatprep.subr.bf16.mxu0 %v16907_v58 }
0x1f3d   :  { %15836 = vmatmul.mubr.msk.bf16.vlgmr.msra.gmra.mxu1 %vm268_vm3, %v4969_v42 }
0x1f3e   :  { %15846 = vmatpush3.bf16.xpose.msra.mxu1 %v5134_v46  ;;  %15847 = vmatprep.mubr.msk.bf16.mxu1 %vm16908_vm1, %v16907_v58 }
0x1f3f   :  { %15857 = vmatprep.subr.bf16.mxu1 %v16907_v58 }
0x1f41   :  { %15842 = vmatmul.mubr.msk.bf16.vlgmr.msra.gmra.mxu0 %vm268_vm3, %v5077_v44 }
0x1f42   :  { %15853 = vmatprep.mubr.msk.bf16.mxu0 %vm16908_vm1, %v16907_v58 }
0x1f45   :  { %15848 = vmatmul.mubr.msk.bf16.vlgmr.msra.gmra.mxu1 %vm268_vm3, %v5127_v26 }
0x1f46   :  { %15859 = vmatprep.mubr.msk.bf16.mxu1 %vm16908_vm1, %v16907_v58 }
0x1ff9   :  { %v18321_v43 = vpop.f32.mrf.mxu0 }
0x1ffb   :  { %v15831_v27 = vpop.f32.mrf.mxu0 }
0x1ffd   :  { %v5015_v39 = vpop.f32.mrf.mxu0  ;;  %v18323_v37 = vpop.f32.mrf.mxu1 }
0x1fff   :  { %v15832_v38 = vpop.f32.mrf.mxu0  ;;  %v15837_v28 = vpop.f32.mrf.mxu1 }
0x2001   :  { %v5063_v1 = vpop.f32.mrf.mxu1  ;;  %v5120_v31 = vpop.f32.mrf.mxu0 }
0x2002   :  { %v5176_v33 = vsel %vm268_vm3, %v5120_v31, -inf }
0x2003   :  { %v15838_v34 = vpop.f32.mrf.mxu1  ;;  %5177 = vmax.xlane.f32.xlu0 %v5176_v33  ;;  %v15843_v35 = vpop.f32.mrf.mxu0 }
0x2005   :  { %v5123_v36 = vpop.f32.mrf.mxu0  ;;  %v5170_v41 = vpop.f32.mrf.mxu1 }
0x2006   :  { %v5179_v45 = vsel %vm268_vm3, %v5170_v41, -inf }
0x2007   :  { %5180 = vmax.xlane.f32.xlu1 %v5179_v45  ;;  %v15844_v50 = vpop.f32.mrf.mxu0  ;;  %v15849_v51 = vpop.f32.mrf.mxu1 }
0x2009   :  { %v5173_v52 = vpop.f32.mrf.mxu1 }
0x200b   :  { %v15850_v54 = vpop.f32.mrf.mxu1 }
0x2018   :  { %5200 = vrot.lane.b32.xlu1 %v18235_v60, %s20542_s19 }
0x201c   :  { %5308 = vrot.lane.b32.xlu1 %v18224_v40, %s20543_s1 }
0x2020   :  { %5358 = vrot.lane.b32.xlu1 %v18228_v48, %s20543_s1 }
0x2024   :  { %5356 = vrot.lane.b32.xlu1 %v18228_v48, %s20544_s28 }
0x208c   :  { %v5178_v57 = vpop.xlane.xlu0 %5177 }
0x208d   :  { %v5182_v59 = vsub.f32 %v5120_v31, %v5178_v57 }
0x208f   :  { %v5184_v32 = vmul.f32 1.442695, %v5182_v59 }
0x2090   :  { %v5181_v62 = vpop.xlane.xlu1 %5180 }
0x2091   :  { %16756 = vpow2.f32 %v5184_v32  ;;  %v5183_v0 = vsub.f32 %v5170_v41, %v5181_v62 }
0x2093   :  { %v5186_v56 = vmul.f32 1.442695, %v5183_v0 }
0x2094   :  { %v5201_v55 = vpop.permute.xlu1 %5200 }
0x2095   :  { %16758 = vpow2.f32 %v5186_v56  ;;  %v5206_v14 = vsel %vm390_vm2, %v5201_v55, 0 }
0x2096   :  { %15852 = vmatpush3.bf16.msra.mxu0 %v5206_v14 }
0x2097   :  { %15863 = vmatprep.subr.bf16.mxu0 %v16907_v58 }
0x2098   :  { %v5309_v5 = vpop.permute.xlu1 %5308 }
0x2099   :  { %v5314_v9 = vsel %vm268_vm3, %v5309_v5, 0 }
0x209c   :  { %v5359_v53 = vpop.permute.xlu1 %5358 }
0x209d   :  { %v5364_v18 = vsel %vm268_vm3, %v5359_v53, 0 }
0x209e   :  { %v16757_v19 = vpop.eup %16756 }
0x209f   :  { %v5188_v20 = vsel %vm268_vm3, %v16757_v19, 0.0 }
0x20a0   :  { %5189 = vadd.xlane.f32.xlu0 %v5188_v20  ;;  %v5357_v10 = vpop.permute.xlu1 %5356 }
0x20a2   :  { %v16759_v3 = vpop.eup %16758 }
0x20a3   :  { %v5191_v63 = vsel %vm268_vm3, %v16759_v3, 0.0 }
0x20a4   :  { %5192 = vadd.xlane.f32.xlu0 %v5191_v63 }
0x20ba   :  { %5248 = vrot.lane.b32.xlu0 %v18239_v15, %s20542_s19 }
0x20be   :  { %5306 = vrot.lane.b32.xlu0 %v18224_v40, %s20544_s28 }
0x2129   :  { %v5190_v4 = vpop.xlane.xlu0 %5189 }
0x212a   :  { %16760 = vrcp.f32 %v5190_v4 }
0x212d   :  { %v5193_v6 = vpop.xlane.xlu0 %5192 }
0x212e   :  { %16762 = vrcp.f32 %v5193_v6 }
0x2131   :  { %v5249_v61 = vpop.permute.xlu0 %5248 }
0x2132   :  { %v5254_v13 = vsel %vm390_vm2, %v5249_v61, 0 }
0x2133   :  { %15858 = vmatpush3.bf16.msra.mxu1 %v5254_v13 }
0x2134   :  { %15869 = vmatprep.subr.bf16.mxu1 %v16907_v58 }
0x2135   :  { %v5307_v7 = vpop.permute.xlu0 %5306 }
0x2137   :  { %v16761_v16 = vpop.eup %16760 }
0x2138   :  { %v5195_v17 = vmul.f32 %v16761_v16, %v16757_v19 }
0x213a   :  { %v5198_v8 = vpack.c.bf16 %v5195_v17, %v5195_v17 }
0x213b   :  { %v16763_v49 = vpop.eup %16762 }
0x213c   :  { %v5197_v25 = vmul.f32 %v16763_v49, %v16759_v3  ;;  %15854 = vmatmul.mubr.msk.bf16.vlgmr.msra.gmra.mxu0 %vm268_vm3, %v5198_v8 }
0x213d   :  { %15864 = vmatpush3.bf16.xpose.msra.mxu0 %v5314_v9  ;;  %15865 = vmatprep.mubr.msk.bf16.mxu0 %vm16908_vm1, %v16907_v58 }
0x213e   :  { %v5199_v12 = vpack.c.bf16 %v5197_v25, %v5197_v25  ;;  %15875 = vmatprep.subr.bf16.mxu0 %v16907_v58 }
0x2140   :  { %15860 = vmatmul.mubr.msk.bf16.vlgmr.msra.gmra.mxu1 %vm268_vm3, %v5199_v12 }
0x2141   :  { %15870 = vmatpush3.bf16.xpose.msra.mxu1 %v5364_v18  ;;  %15871 = vmatprep.mubr.msk.bf16.mxu1 %vm16908_vm1, %v16907_v58 }
0x2142   :  { %15881 = vmatprep.subr.bf16.mxu1 %v16907_v58 }
0x2144   :  { %15866 = vmatmul.mubr.msk.bf16.vlgmr.msra.gmra.mxu0 %vm268_vm3, %v5307_v7 }
0x2145   :  { %15877 = vmatprep.mubr.msk.bf16.mxu0 %vm16908_vm1, %v16907_v58 }
0x2148   :  { %15872 = vmatmul.mubr.msk.bf16.vlgmr.msra.gmra.mxu1 %vm268_vm3, %v5357_v10 }
0x2149   :  { %15883 = vmatprep.mubr.msk.bf16.mxu1 %vm16908_vm1, %v16907_v58 }
0x21fc   :  { %v18361_v11 = vpop.f32.mrf.mxu0 }
0x21fe   :  { %v15855_v47 = vpop.f32.mrf.mxu0 }
0x2200   :  { %v5245_v42 = vpop.f32.mrf.mxu0  ;;  %v18363_v46 = vpop.f32.mrf.mxu1 }
0x2202   :  { %v15856_v44 = vpop.f32.mrf.mxu0  ;;  %v15861_v26 = vpop.f32.mrf.mxu1 }
0x2204   :  { %v5293_v27 = vpop.f32.mrf.mxu1  ;;  %v5350_v39 = vpop.f32.mrf.mxu0 }
0x2205   :  { %v5406_v38 = vsel %vm268_vm3, %v5350_v39, -inf }
0x2206   :  { %v15862_v28 = vpop.f32.mrf.mxu1  ;;  %5407 = vmax.xlane.f32.xlu0 %v5406_v38  ;;  %v15867_v1 = vpop.f32.mrf.mxu0 }
0x2208   :  { %v5353_v31 = vpop.f32.mrf.mxu0  ;;  %v5400_v33 = vpop.f32.mrf.mxu1 }
0x2209   :  { %v5409_v34 = vsel %vm268_vm3, %v5400_v33, -inf }
0x220a   :  { %5410 = vmax.xlane.f32.xlu1 %v5409_v34  ;;  %v15868_v35 = vpop.f32.mrf.mxu0  ;;  %v15873_v36 = vpop.f32.mrf.mxu1 }
0x220c   :  { %v5403_v41 = vpop.f32.mrf.mxu1 }
0x220e   :  { %v15874_v45 = vpop.f32.mrf.mxu1 }
0x221b   :  { %5430 = vrot.lane.b32.xlu1 %v18235_v60, %s20544_s28 }
0x221f   :  { %5538 = vrot.lane.b32.xlu1 %v18224_v40, %s20545_s2 }
0x2223   :  { %5588 = vrot.lane.b32.xlu1 %v18228_v48, %s20545_s2 }
0x2227   :  { %5586 = vrot.lane.b32.xlu1 %v18228_v48, %s20546_s25 }
0x228f   :  { %v5408_v50 = vpop.xlane.xlu0 %5407 }
0x2290   :  { %v5412_v51 = vsub.f32 %v5350_v39, %v5408_v50 }
0x2292   :  { %v5414_v52 = vmul.f32 1.442695, %v5412_v51 }
0x2293   :  { %v5411_v54 = vpop.xlane.xlu1 %5410 }
0x2294   :  { %16764 = vpow2.f32 %v5414_v52  ;;  %v5413_v57 = vsub.f32 %v5400_v33, %v5411_v54 }
0x2296   :  { %v5416_v59 = vmul.f32 1.442695, %v5413_v57 }
0x2297   :  { %v5431_v32 = vpop.permute.xlu1 %5430 }
0x2298   :  { %16766 = vpow2.f32 %v5416_v59  ;;  %v5436_v62 = vsel %vm390_vm2, %v5431_v32, 0 }
0x2299   :  { %15876 = vmatpush3.bf16.msra.mxu0 %v5436_v62 }
0x229a   :  { %15887 = vmatprep.subr.bf16.mxu0 %v16907_v58 }
0x229b   :  { %v5539_v6 = vpop.permute.xlu1 %5538 }
0x229c   :  { %v5544_v5 = vsel %vm268_vm3, %v5539_v6, 0 }
0x229f   :  { %v5589_v8 = vpop.permute.xlu1 %5588 }
0x22a0   :  { %v5594_v9 = vsel %vm268_vm3, %v5589_v8, 0 }
0x22a1   :  { %v16765_v0 = vpop.eup %16764 }
0x22a2   :  { %v5418_v56 = vsel %vm268_vm3, %v16765_v0, 0.0 }
0x22a3   :  { %5419 = vadd.xlane.f32.xlu0 %v5418_v56  ;;  %v5587_v53 = vpop.permute.xlu1 %5586 }
0x22a5   :  { %v16767_v55 = vpop.eup %16766 }
0x22a6   :  { %v5421_v14 = vsel %vm268_vm3, %v16767_v55, 0.0 }
0x22a7   :  { %5422 = vadd.xlane.f32.xlu0 %v5421_v14 }
0x22bd   :  { %5478 = vrot.lane.b32.xlu0 %v18239_v15, %s20544_s28 }
0x22c1   :  { %5536 = vrot.lane.b32.xlu0 %v18224_v40, %s20546_s25 }
0x232c   :  { %v5420_v19 = vpop.xlane.xlu0 %5419 }
0x232d   :  { %16768 = vrcp.f32 %v5420_v19 }
0x2330   :  { %v5423_v20 = vpop.xlane.xlu0 %5422 }
0x2331   :  { %16770 = vrcp.f32 %v5423_v20 }
0x2334   :  { %v5479_v3 = vpop.permute.xlu0 %5478 }
0x2335   :  { %v5484_v63 = vsel %vm390_vm2, %v5479_v3, 0 }
0x2336   :  { %15882 = vmatpush3.bf16.msra.mxu1 %v5484_v63 }
0x2337   :  { %15893 = vmatprep.subr.bf16.mxu1 %v16907_v58 }
0x2338   :  { %v5537_v25 = vpop.permute.xlu0 %5536 }
0x233a   :  { %v16769_v4 = vpop.eup %16768 }
0x233b   :  { %v5425_v61 = vmul.f32 %v16769_v4, %v16765_v0 }
0x233d   :  { %v5428_v13 = vpack.c.bf16 %v5425_v61, %v5425_v61 }
0x233e   :  { %v16771_v16 = vpop.eup %16770 }
0x233f   :  { %v5427_v17 = vmul.f32 %v16771_v16, %v16767_v55  ;;  %15878 = vmatmul.mubr.msk.bf16.vlgmr.msra.gmra.mxu0 %vm268_vm3, %v5428_v13 }
0x2340   :  { %15888 = vmatpush3.bf16.xpose.msra.mxu0 %v5544_v5  ;;  %15889 = vmatprep.mubr.msk.bf16.mxu0 %vm16908_vm1, %v16907_v58 }
0x2341   :  { %v5429_v49 = vpack.c.bf16 %v5427_v17, %v5427_v17  ;;  %15899 = vmatprep.subr.bf16.mxu0 %v16907_v58 }
0x2343   :  { %15884 = vmatmul.mubr.msk.bf16.vlgmr.msra.gmra.mxu1 %vm268_vm3, %v5429_v49 }
0x2344   :  { %15894 = vmatpush3.bf16.xpose.msra.mxu1 %v5594_v9  ;;  %15895 = vmatprep.mubr.msk.bf16.mxu1 %vm16908_vm1, %v16907_v58 }
0x2345   :  { %15905 = vmatprep.subr.bf16.mxu1 %v16907_v58 }
0x2347   :  { %15890 = vmatmul.mubr.msk.bf16.vlgmr.msra.gmra.mxu0 %vm268_vm3, %v5537_v25 }
0x2348   :  { %15901 = vmatprep.mubr.msk.bf16.mxu0 %vm16908_vm1, %v16907_v58 }
0x234b   :  { %15896 = vmatmul.mubr.msk.bf16.vlgmr.msra.gmra.mxu1 %vm268_vm3, %v5587_v53 }
0x234c   :  { %15907 = vmatprep.mubr.msk.bf16.mxu1 %vm16908_vm1, %v16907_v58 }
0x23ff   :  { %v18401_v12 = vpop.f32.mrf.mxu0 }
0x2401   :  { %v15879_v18 = vpop.f32.mrf.mxu0 }
0x2403   :  { %v5475_v7 = vpop.f32.mrf.mxu0  ;;  %v18403_v10 = vpop.f32.mrf.mxu1 }
0x2405   :  { %v15880_v47 = vpop.f32.mrf.mxu0  ;;  %v15885_v42 = vpop.f32.mrf.mxu1 }
0x2407   :  { %v5523_v44 = vpop.f32.mrf.mxu1  ;;  %v5580_v26 = vpop.f32.mrf.mxu0 }
0x2408   :  { %v5636_v27 = vsel %vm268_vm3, %v5580_v26, -inf }
0x2409   :  { %v15886_v39 = vpop.f32.mrf.mxu1  ;;  %5637 = vmax.xlane.f32.xlu0 %v5636_v27  ;;  %v15891_v38 = vpop.f32.mrf.mxu0 }
0x240b   :  { %v5583_v28 = vpop.f32.mrf.mxu0  ;;  %v5630_v1 = vpop.f32.mrf.mxu1 }
0x240c   :  { %v5639_v31 = vsel %vm268_vm3, %v5630_v1, -inf }
0x240d   :  { %5640 = vmax.xlane.f32.xlu1 %v5639_v31  ;;  %v15892_v33 = vpop.f32.mrf.mxu0  ;;  %v15897_v34 = vpop.f32.mrf.mxu1 }
0x240f   :  { %v5633_v35 = vpop.f32.mrf.mxu1 }
0x2411   :  { %v15898_v36 = vpop.f32.mrf.mxu1 }
0x241e   :  { %5660 = vrot.lane.b32.xlu1 %v18235_v60, %s20546_s25 }
0x2422   :  { %5768 = vrot.lane.b32.xlu1 %v18224_v40, %s20547_s26 }
0x2426   :  { %5818 = vrot.lane.b32.xlu1 %v18228_v48, %s20547_s26 }
0x242a   :  { %5816 = vrot.lane.b32.xlu1 %v18228_v48, %s20548_s27 }
0x2492   :  { %v5638_v41 = vpop.xlane.xlu0 %5637 }
0x2493   :  { %v5642_v45 = vsub.f32 %v5580_v26, %v5638_v41 }
0x2495   :  { %v5644_v50 = vmul.f32 1.442695, %v5642_v45 }
0x2496   :  { %v5641_v51 = vpop.xlane.xlu1 %5640 }
0x2497   :  { %16772 = vpow2.f32 %v5644_v50  ;;  %v5643_v52 = vsub.f32 %v5630_v1, %v5641_v51 }
0x2499   :  { %v5646_v54 = vmul.f32 1.442695, %v5643_v52 }
0x249a   :  { %v5661_v57 = vpop.permute.xlu1 %5660 }
0x249b   :  { %16774 = vpow2.f32 %v5646_v54  ;;  %v5666_v59 = vsel %vm390_vm2, %v5661_v57, 0 }
0x249c   :  { %15900 = vmatpush3.bf16.msra.mxu0 %v5666_v59 }
0x249d   :  { %15911 = vmatprep.subr.bf16.mxu0 %v16907_v58 }
0x249e   :  { %v5769_v63 = vpop.permute.xlu1 %5768 }
0x249f   :  { %v5774_v13 = vsel %vm268_vm3, %v5769_v63, 0 }
0x24a2   :  { %v5819_v5 = vpop.permute.xlu1 %5818 }
0x24a3   :  { %v5824_v8 = vsel %vm268_vm3, %v5819_v5, 0 }
0x24a4   :  { %v16773_v32 = vpop.eup %16772 }
0x24a5   :  { %v5648_v62 = vsel %vm268_vm3, %v16773_v32, 0.0 }
0x24a6   :  { %5649 = vadd.xlane.f32.xlu0 %v5648_v62  ;;  %v5817_v9 = vpop.permute.xlu1 %5816 }
0x24a8   :  { %v16775_v0 = vpop.eup %16774 }
0x24a9   :  { %v5651_v56 = vsel %vm268_vm3, %v16775_v0, 0.0 }
0x24aa   :  { %5652 = vadd.xlane.f32.xlu0 %v5651_v56 }
0x24c0   :  { %5708 = vrot.lane.b32.xlu0 %v18239_v15, %s20546_s25 }
0x24c4   :  { %5766 = vrot.lane.b32.xlu0 %v18224_v40, %s20548_s27 }
0x252f   :  { %v5650_v55 = vpop.xlane.xlu0 %5649 }
0x2530   :  { %16776 = vrcp.f32 %v5650_v55 }
0x2533   :  { %v5653_v14 = vpop.xlane.xlu0 %5652 }
0x2534   :  { %16778 = vrcp.f32 %v5653_v14 }
0x2537   :  { %v5709_v19 = vpop.permute.xlu0 %5708 }
0x2538   :  { %v5714_v20 = vsel %vm390_vm2, %v5709_v19, 0 }
0x2539   :  { %15906 = vmatpush3.bf16.msra.mxu1 %v5714_v20 }
0x253a   :  { %15917 = vmatprep.subr.bf16.mxu1 %v16907_v58 }
0x253b   :  { %v5767_v49 = vpop.permute.xlu0 %5766 }
0x253d   :  { %v16777_v3 = vpop.eup %16776 }
0x253e   :  { %v5655_v4 = vmul.f32 %v16777_v3, %v16773_v32 }
0x2540   :  { %v5658_v6 = vpack.c.bf16 %v5655_v4, %v5655_v4 }
0x2541   :  { %v16779_v61 = vpop.eup %16778 }
0x2542   :  { %v5657_v16 = vmul.f32 %v16779_v61, %v16775_v0  ;;  %15902 = vmatmul.mubr.msk.bf16.vlgmr.msra.gmra.mxu0 %vm268_vm3, %v5658_v6 }
0x2543   :  { %15912 = vmatpush3.bf16.xpose.msra.mxu0 %v5774_v13  ;;  %15913 = vmatprep.mubr.msk.bf16.mxu0 %vm16908_vm1, %v16907_v58 }
0x2544   :  { %v5659_v17 = vpack.c.bf16 %v5657_v16, %v5657_v16  ;;  %15923 = vmatprep.subr.bf16.mxu0 %v16907_v58 }
0x2546   :  { %15908 = vmatmul.mubr.msk.bf16.vlgmr.msra.gmra.mxu1 %vm268_vm3, %v5659_v17 }
0x2547   :  { %15918 = vmatpush3.bf16.xpose.msra.mxu1 %v5824_v8  ;;  %15919 = vmatprep.mubr.msk.bf16.mxu1 %vm16908_vm1, %v16907_v58 }
0x2548   :  { %15929 = vmatprep.subr.bf16.mxu1 %v16907_v58 }
0x254a   :  { %15914 = vmatmul.mubr.msk.bf16.vlgmr.msra.gmra.mxu0 %vm268_vm3, %v5767_v49 }
0x254b   :  { %15925 = vmatprep.mubr.msk.bf16.mxu0 %vm16908_vm1, %v16907_v58 }
0x254e   :  { %15920 = vmatmul.mubr.msk.bf16.vlgmr.msra.gmra.mxu1 %vm268_vm3, %v5817_v9 }
0x254f   :  { %15931 = vmatprep.mubr.msk.bf16.mxu1 %vm16908_vm1, %v16907_v58 }
0x2602   :  { %v18441_v25 = vpop.f32.mrf.mxu0 }
0x2604   :  { %v15903_v53 = vpop.f32.mrf.mxu0 }
0x2606   :  { %v5705_v18 = vpop.f32.mrf.mxu0  ;;  %v18443_v7 = vpop.f32.mrf.mxu1 }
0x2608   :  { %v15904_v47 = vpop.f32.mrf.mxu0  ;;  %v15909_v42 = vpop.f32.mrf.mxu1 }
0x260a   :  { %v5753_v44 = vpop.f32.mrf.mxu1  ;;  %v5810_v26 = vpop.f32.mrf.mxu0 }
0x260b   :  { %v5866_v27 = vsel %vm268_vm3, %v5810_v26, -inf }
0x260c   :  { %v15910_v39 = vpop.f32.mrf.mxu1  ;;  %5867 = vmax.xlane.f32.xlu0 %v5866_v27  ;;  %v15915_v38 = vpop.f32.mrf.mxu0 }
0x260e   :  { %v5813_v28 = vpop.f32.mrf.mxu0  ;;  %v5860_v1 = vpop.f32.mrf.mxu1 }
0x260f   :  { %v5869_v31 = vsel %vm268_vm3, %v5860_v1, -inf }
0x2610   :  { %5870 = vmax.xlane.f32.xlu1 %v5869_v31  ;;  %v15916_v33 = vpop.f32.mrf.mxu0  ;;  %v15921_v34 = vpop.f32.mrf.mxu1 }
0x2612   :  { %v5863_v35 = vpop.f32.mrf.mxu1 }
0x2614   :  { %v15922_v36 = vpop.f32.mrf.mxu1 }
0x2621   :  { %5890 = vrot.lane.b32.xlu1 %v18235_v60, %s20548_s27 }
0x2625   :  { %5998 = vrot.lane.b32.xlu1 %v18224_v40, %s20549_s20 }
0x2629   :  { %6048 = vrot.lane.b32.xlu1 %v18228_v48, %s20549_s20 }
0x262d   :  { %6046 = vrot.lane.b32.xlu1 %v18228_v48, %s20550_s29 }
0x2695   :  { %v5868_v41 = vpop.xlane.xlu0 %5867 }
0x2696   :  { %v5872_v45 = vsub.f32 %v5810_v26, %v5868_v41 }
0x2698   :  { %v5874_v50 = vmul.f32 1.442695, %v5872_v45 }
0x2699   :  { %v5871_v51 = vpop.xlane.xlu1 %5870 }
0x269a   :  { %16780 = vpow2.f32 %v5874_v50  ;;  %v5873_v52 = vsub.f32 %v5860_v1, %v5871_v51 }
0x269c   :  { %v5876_v54 = vmul.f32 1.442695, %v5873_v52 }
0x269d   :  { %v5891_v57 = vpop.permute.xlu1 %5890 }
0x269e   :  { %16782 = vpow2.f32 %v5876_v54  ;;  %v5896_v59 = vsel %vm390_vm2, %v5891_v57, 0 }
0x269f   :  { %15924 = vmatpush3.bf16.msra.mxu0 %v5896_v59 }
0x26a0   :  { %15935 = vmatprep.subr.bf16.mxu0 %v16907_v58 }
0x26a1   :  { %v5999_v63 = vpop.permute.xlu1 %5998 }
0x26a2   :  { %v6004_v13 = vsel %vm268_vm3, %v5999_v63, 0 }
0x26a5   :  { %v6049_v5 = vpop.permute.xlu1 %6048 }
0x26a6   :  { %v6054_v8 = vsel %vm268_vm3, %v6049_v5, 0 }
0x26a7   :  { %v16781_v32 = vpop.eup %16780 }
0x26a8   :  { %v5878_v62 = vsel %vm268_vm3, %v16781_v32, 0.0 }
0x26a9   :  { %5879 = vadd.xlane.f32.xlu0 %v5878_v62  ;;  %v6047_v9 = vpop.permute.xlu1 %6046 }
0x26ab   :  { %v16783_v0 = vpop.eup %16782 }
0x26ac   :  { %v5881_v56 = vsel %vm268_vm3, %v16783_v0, 0.0 }
0x26ad   :  { %5882 = vadd.xlane.f32.xlu0 %v5881_v56 }
0x26c3   :  { %5938 = vrot.lane.b32.xlu0 %v18239_v15, %s20548_s27 }
0x26c7   :  { %5996 = vrot.lane.b32.xlu0 %v18224_v40, %s20550_s29 }
0x2732   :  { %v5880_v55 = vpop.xlane.xlu0 %5879 }
0x2733   :  { %16784 = vrcp.f32 %v5880_v55 }
0x2736   :  { %v5883_v14 = vpop.xlane.xlu0 %5882 }
0x2737   :  { %16786 = vrcp.f32 %v5883_v14 }
0x273a   :  { %v5939_v19 = vpop.permute.xlu0 %5938 }
0x273b   :  { %v5944_v20 = vsel %vm390_vm2, %v5939_v19, 0 }
0x273c   :  { %15930 = vmatpush3.bf16.msra.mxu1 %v5944_v20 }
0x273d   :  { %15941 = vmatprep.subr.bf16.mxu1 %v16907_v58 }
0x273e   :  { %v5997_v49 = vpop.permute.xlu0 %5996 }
0x2740   :  { %v16785_v3 = vpop.eup %16784 }
0x2741   :  { %v5885_v4 = vmul.f32 %v16785_v3, %v16781_v32 }
0x2743   :  { %v5888_v6 = vpack.c.bf16 %v5885_v4, %v5885_v4 }
0x2744   :  { %v16787_v61 = vpop.eup %16786 }
0x2745   :  { %v5887_v16 = vmul.f32 %v16787_v61, %v16783_v0  ;;  %15926 = vmatmul.mubr.msk.bf16.vlgmr.msra.gmra.mxu0 %vm268_vm3, %v5888_v6 }
0x2746   :  { %15936 = vmatpush3.bf16.xpose.msra.mxu0 %v6004_v13  ;;  %15937 = vmatprep.mubr.msk.bf16.mxu0 %vm16908_vm1, %v16907_v58 }
0x2747   :  { %v5889_v17 = vpack.c.bf16 %v5887_v16, %v5887_v16  ;;  %15947 = vmatprep.subr.bf16.mxu0 %v16907_v58 }
0x2749   :  { %15932 = vmatmul.mubr.msk.bf16.vlgmr.msra.gmra.mxu1 %vm268_vm3, %v5889_v17 }
0x274a   :  { %15942 = vmatpush3.bf16.xpose.msra.mxu1 %v6054_v8  ;;  %15943 = vmatprep.mubr.msk.bf16.mxu1 %vm16908_vm1, %v16907_v58 }
0x274b   :  { %15953 = vmatprep.subr.bf16.mxu1 %v16907_v58 }
0x274d   :  { %15938 = vmatmul.mubr.msk.bf16.vlgmr.msra.gmra.mxu0 %vm268_vm3, %v5997_v49 }
0x274e   :  { %15949 = vmatprep.mubr.msk.bf16.mxu0 %vm16908_vm1, %v16907_v58 }
0x2751   :  { %15944 = vmatmul.mubr.msk.bf16.vlgmr.msra.gmra.mxu1 %vm268_vm3, %v6047_v9 }
0x2752   :  { %15955 = vmatprep.mubr.msk.bf16.mxu1 %vm16908_vm1, %v16907_v58 }
0x2805   :  { %v18481_v53 = vpop.f32.mrf.mxu0 }
0x2807   :  { %v15927_v18 = vpop.f32.mrf.mxu0 }
0x2809   :  { %v5935_v47 = vpop.f32.mrf.mxu0  ;;  %v18483_v42 = vpop.f32.mrf.mxu1 }
0x280b   :  { %v15928_v44 = vpop.f32.mrf.mxu0  ;;  %v15933_v26 = vpop.f32.mrf.mxu1 }
0x280d   :  { %v5983_v27 = vpop.f32.mrf.mxu1  ;;  %v6040_v39 = vpop.f32.mrf.mxu0 }
0x280e   :  { %v6096_v38 = vsel %vm268_vm3, %v6040_v39, -inf }
0x280f   :  { %v15934_v28 = vpop.f32.mrf.mxu1  ;;  %6097 = vmax.xlane.f32.xlu0 %v6096_v38  ;;  %v15939_v1 = vpop.f32.mrf.mxu0 }
0x2811   :  { %v6043_v31 = vpop.f32.mrf.mxu0  ;;  %v6090_v33 = vpop.f32.mrf.mxu1 }
0x2812   :  { %v6099_v34 = vsel %vm268_vm3, %v6090_v33, -inf }
0x2813   :  { %6100 = vmax.xlane.f32.xlu1 %v6099_v34  ;;  %v15940_v35 = vpop.f32.mrf.mxu0  ;;  %v15945_v36 = vpop.f32.mrf.mxu1 }
0x2815   :  { %v6093_v41 = vpop.f32.mrf.mxu1 }
0x2817   :  { %v15946_v45 = vpop.f32.mrf.mxu1 }
0x2824   :  { %6120 = vrot.lane.b32.xlu1 %v18235_v60, %s20550_s29 }
0x2828   :  { %6228 = vrot.lane.b32.xlu1 %v18224_v40, %s20551_s0 }
0x282c   :  { %6278 = vrot.lane.b32.xlu1 %v18228_v48, %s20551_s0 }
0x2830   :  { %6276 = vrot.lane.b32.xlu1 %v18228_v48, %s20552_s30 }
0x2898   :  { %v6098_v50 = vpop.xlane.xlu0 %6097 }
0x2899   :  { %v6102_v51 = vsub.f32 %v6040_v39, %v6098_v50 }
0x289b   :  { %v6104_v52 = vmul.f32 1.442695, %v6102_v51 }
0x289c   :  { %v6101_v54 = vpop.xlane.xlu1 %6100 }
0x289d   :  { %16788 = vpow2.f32 %v6104_v52  ;;  %v6103_v57 = vsub.f32 %v6090_v33, %v6101_v54 }
0x289f   :  { %v6106_v59 = vmul.f32 1.442695, %v6103_v57 }
0x28a0   :  { %v6121_v32 = vpop.permute.xlu1 %6120 }
0x28a1   :  { %16790 = vpow2.f32 %v6106_v59  ;;  %v6126_v62 = vsel %vm390_vm2, %v6121_v32, 0 }
0x28a2   :  { %15948 = vmatpush3.bf16.msra.mxu0 %v6126_v62 }
0x28a3   :  { %15959 = vmatprep.subr.bf16.mxu0 %v16907_v58 }
0x28a4   :  { %v6229_v4 = vpop.permute.xlu1 %6228 }
0x28a5   :  { %v6234_v16 = vsel %vm268_vm3, %v6229_v4, 0 }
0x28aa   :  { %v16789_v0 = vpop.eup %16788 }
0x28ab   :  { %v6108_v56 = vsel %vm268_vm3, %v16789_v0, 0.0 }
0x28ac   :  { %6109 = vadd.xlane.f32.xlu0 %v6108_v56 }
0x28ae   :  { %v16791_v55 = vpop.eup %16790 }
0x28af   :  { %v6111_v48 = vsel %vm268_vm3, %v16791_v55, 0.0 }
0x28b0   :  { %6112 = vadd.xlane.f32.xlu0 %v6111_v48 }
0x28c6   :  { %6168 = vrot.lane.b32.xlu0 %v18239_v15, %s20550_s29 }
0x28ca   :  { %6226 = vrot.lane.b32.xlu0 %v18224_v40, %s20552_s30  ;;  %v6279_v40 = vpop.permute.xlu1 %6278 }
0x28cb   :  { %v6284_v8 = vsel %vm268_vm3, %v6279_v40, 0 }
0x28ce   :  { %v6277_v9 = vpop.permute.xlu1 %6276 }
0x2935   :  { %v6110_v14 = vpop.xlane.xlu0 %6109 }
0x2936   :  { %16792 = vrcp.f32 %v6110_v14 }
0x2939   :  { %v6113_v19 = vpop.xlane.xlu0 %6112 }
0x293a   :  { %16794 = vrcp.f32 %v6113_v19 }
0x293d   :  { %v6169_v20 = vpop.permute.xlu0 %6168 }
0x293e   :  { %v6174_v3 = vsel %vm390_vm2, %v6169_v20, 0 }
0x293f   :  { %15954 = vmatpush3.bf16.msra.mxu1 %v6174_v3 }
0x2940   :  { %15965 = vmatprep.subr.bf16.mxu1 %v16907_v58 }
0x2941   :  { %v6227_v49 = vpop.permute.xlu0 %6226 }
0x2943   :  { %v16793_v63 = vpop.eup %16792 }
0x2944   :  { %v6115_v6 = vmul.f32 %v16793_v63, %v16789_v0 }
0x2946   :  { %v6118_v61 = vpack.c.bf16 %v6115_v6, %v6115_v6 }
0x2947   :  { %v16795_v13 = vpop.eup %16794 }
0x2948   :  { %v6117_v5 = vmul.f32 %v16795_v13, %v16791_v55  ;;  %15950 = vmatmul.mubr.msk.bf16.vlgmr.msra.gmra.mxu0 %vm268_vm3, %v6118_v61 }
0x2949   :  { %15960 = vmatpush3.bf16.xpose.msra.mxu0 %v6234_v16  ;;  %15961 = vmatprep.mubr.msk.bf16.mxu0 %vm16908_vm1, %v16907_v58 }
0x294a   :  { %v6119_v17 = vpack.c.bf16 %v6117_v5, %v6117_v5  ;;  %15971 = vmatprep.subr.bf16.mxu0 %v16907_v58 }
0x294c   :  { %15956 = vmatmul.mubr.msk.bf16.vlgmr.msra.gmra.mxu1 %vm268_vm3, %v6119_v17  ;;  %v16388_v17 = vld [vmem:[%s20480_s5 + $0x38] sm:$0xff]  }
0x294d   :  { %15966 = vmatpush3.bf16.xpose.msra.mxu1 %v6284_v8  ;;  %15967 = vmatprep.mubr.msk.bf16.mxu1 %vm16908_vm1, %v16907_v58  ;;  %v16389_v8 = vld [vmem:[%s20480_s5 + $0x30] sm:$0xff]  }
0x294e   :  { %15977 = vmatprep.subr.bf16.mxu1 %v16907_v58 }
0x2950   :  { %15962 = vmatmul.mubr.msk.bf16.vlgmr.msra.gmra.mxu0 %vm268_vm3, %v6227_v49  ;;  %v16390_v49 = vld [vmem:[%s20480_s5 + $0x28] sm:$0xff]  }
0x2951   :  { %15973 = vmatprep.mubr.msk.bf16.mxu0 %vm16908_vm1, %v16907_v58 }
0x2954   :  { %15968 = vmatmul.mubr.msk.bf16.vlgmr.msra.gmra.mxu1 %vm268_vm3, %v6277_v9  ;;  %v16391_v9 = vld [vmem:[%s20480_s5 + $0x20] sm:$0xff]  }
0x2955   :  { %15979 = vmatprep.mubr.msk.bf16.mxu1 %vm16908_vm1, %v16907_v58 }
0x2a08   :  { %v18521_v18 = vpop.f32.mrf.mxu0 }
0x2a0a   :  { %v15951_v47 = vpop.f32.mrf.mxu0 }
0x2a0c   :  { %v6165_v44 = vpop.f32.mrf.mxu0  ;;  %v6210_v26 = vpop.f32.mrf.mxu1 }
0x2a0e   :  { %v15952_v27 = vpop.f32.mrf.mxu0  ;;  %v15957_v39 = vpop.f32.mrf.mxu1 }
0x2a10   :  { %v6213_v38 = vpop.f32.mrf.mxu1  ;;  %v6270_v28 = vpop.f32.mrf.mxu0 }
0x2a11   :  { %v6326_v1 = vsel %vm268_vm3, %v6270_v28, -inf }
0x2a12   :  { %v15958_v31 = vpop.f32.mrf.mxu1  ;;  %6327 = vmax.xlane.f32.xlu0 %v6326_v1  ;;  %v15963_v33 = vpop.f32.mrf.mxu0 }
0x2a14   :  { %v6273_v34 = vpop.f32.mrf.mxu0  ;;  %v6320_v35 = vpop.f32.mrf.mxu1 }
0x2a15   :  { %v6329_v36 = vsel %vm268_vm3, %v6320_v35, -inf }
0x2a16   :  { %6330 = vmax.xlane.f32.xlu1 %v6329_v36  ;;  %v15964_v41 = vpop.f32.mrf.mxu0  ;;  %v15969_v45 = vpop.f32.mrf.mxu1  ;;  %v13686_v36 = vld [vmem:[%s20481_s6 + $0x1] ss:$0 sm:$0xff] }
0x2a18   :  { %v6323_v50 = vpop.f32.mrf.mxu1 }
0x2a1a   :  { %v15970_v51 = vpop.f32.mrf.mxu1 }
0x2a27   :  { %6350 = vrot.lane.b32.xlu1 %v18235_v60, %s20552_s30 }
0x2a2b   :  { %5068 = vrot.lane.b32.xlu1 %v18321_v43, %s20551_s0 }
0x2a2f   :  { %5070 = vrot.lane.b32.xlu1 %v18323_v37, %s20551_s0 }
0x2a33   :  { %5300 = vrot.lane.b32.xlu1 %v18363_v46, %s20549_s20 }
0x2a37   :  { %5530 = vrot.lane.b32.xlu1 %v18403_v10, %s20547_s26 }
0x2a3b   :  { %5760 = vrot.lane.b32.xlu1 %v18443_v7, %s20545_s2 }
0x2a3f   :  { %5990 = vrot.lane.b32.xlu1 %v18483_v42, %s20543_s1 }
0x2a43   :  { %6220 = vrot.lane.b32.xlu1 %v6210_v26, %s20516_s24 }
0x2a9b   :  { %v6328_v60 = vpop.xlane.xlu0 %6327 }
0x2a9c   :  { %v6332_v52 = vsub.f32 %v6270_v28, %v6328_v60 }
0x2a9e   :  { %v6334_v43 = vmul.f32 1.442695, %v6332_v52 }
0x2a9f   :  { %v6331_v54 = vpop.xlane.xlu1 %6330 }
0x2aa0   :  { %16796 = vpow2.f32 %v6334_v43  ;;  %v6333_v37 = vsub.f32 %v6320_v35, %v6331_v54 }
0x2aa2   :  { %v6336_v57 = vmul.f32 1.442695, %v6333_v37 }
0x2aa3   :  { %v6351_v59 = vpop.permute.xlu1 %6350 }
0x2aa4   :  { %16798 = vpow2.f32 %v6336_v57  ;;  %v6356_v46 = vsel %vm390_vm2, %v6351_v59, 0 }
0x2aa5   :  { %15972 = vmatpush3.bf16.msra.mxu0 %v6356_v46 }
0x2aa6   :  { %15983 = vmatprep.subr.bf16.mxu0 %v16907_v58 }
0x2aa7   :  { %v5069_v10 = vpop.permute.xlu1 %5068 }
0x2aa8   :  { %5074 = vst.msk [vmem:[#allocation2] sm:$0xff] %vm710_vm4, %v5069_v10 }
0x2aab   :  { %v5071_v7 = vpop.permute.xlu1 %5070 }
0x2aac   :  { %5075 = vst.msk [vmem:[#allocation2 + $0x8] sm:$0xff] %vm710_vm4, %v5071_v7 }
0x2aad   :  { %v16797_v42 = vpop.eup %16796 }
0x2aae   :  { %v6338_v32 = vsel %vm268_vm3, %v16797_v42, 0.0 }
0x2aaf   :  { %v5301_v62 = vpop.permute.xlu1 %5300  ;;  %6339 = vadd.xlane.f32.xlu0 %v6338_v32 }
0x2ab0   :  { %5305 = vst.msk [vmem:[#allocation2 + $0x8] sm:$0xff] %vm941_vm5, %v5301_v62 }
0x2ab1   :  { %v16799_v0 = vpop.eup %16798 }
0x2ab2   :  { %v6341_v56 = vsel %vm268_vm3, %v16799_v0, 0.0 }
0x2ab3   :  { %v5531_v55 = vpop.permute.xlu1 %5530  ;;  %6342 = vadd.xlane.f32.xlu0 %v6341_v56  ;;  %v13708_v56 = vld [vmem:[%s20484_s9 + $0x380] sm:$0xff] }
0x2ab4   :  { %5535 = vst.msk [vmem:[#allocation2 + $0x8] sm:$0xff] %vm1172_vm6, %v5531_v55  ;;  %v13710_v55 = vld [vmem:[%s20484_s9 + $0x3c0] sm:$0xff] }
0x2ab7   :  { %v5761_v48 = vpop.permute.xlu1 %5760 }
0x2ab8   :  { %5765 = vst.msk [vmem:[#allocation2 + $0x8] sm:$0xff] %vm1403_vm7, %v5761_v48  ;;  %v13709_v48 = vld [vmem:[%s20484_s9 + $0x388] sm:$0xff] }
0x2abb   :  { %v5991_v14 = vpop.permute.xlu1 %5990 }
0x2abc   :  { %5995 = vst.msk [vmem:[#allocation2 + $0x8] sm:$0xff] %vm1634_vm8, %v5991_v14  ;;  %v13726_v14 = vcombine.high %v13708_v56, %v13710_v55 }
0x2abf   :  { %v6221_v19 = vpop.permute.xlu1 %6220 }
0x2ac0   :  { %6225 = vst.msk [vmem:[#allocation2 + $0x8] sm:$0xff] %vm1865_vm9, %v6221_v19  ;;  %v13711_v19 = vld [vmem:[%s20484_s9 + $0x3c8] sm:$0xff] }
0x2ac9   :  { %6398 = vrot.lane.b32.xlu0 %v18239_v15, %s20552_s30 }
0x2acd   :  { %5298 = vrot.lane.b32.xlu0 %v18361_v11, %s20549_s20 }
0x2ad1   :  { %5528 = vrot.lane.b32.xlu0 %v18401_v12, %s20547_s26 }
0x2ad5   :  { %5758 = vrot.lane.b32.xlu0 %v18441_v25, %s20545_s2 }
0x2ad9   :  { %5988 = vrot.lane.b32.xlu0 %v18481_v53, %s20543_s1 }
0x2add   :  { %6218 = vrot.lane.b32.xlu0 %v18521_v18, %s20516_s24  ;;  %s20553_s24 = smov 56  }
0x2b38   :  { %v6340_v20 = vpop.xlane.xlu0 %6339 }
0x2b39   :  { %16800 = vrcp.f32 %v6340_v20  ;;  %v13725_v20 = vcombine.low %v13708_v56, %v13710_v55 }
0x2b3c   :  { %v6343_v3 = vpop.xlane.xlu0 %6342 }
0x2b3d   :  { %16802 = vrcp.f32 %v6343_v3  ;;  %v13727_v3 = vcombine.low %v13709_v48, %v13711_v19 }
0x2b40   :  { %v6399_v15 = vpop.permute.xlu0 %6398 }
0x2b41   :  { %v6404_v63 = vsel %vm390_vm2, %v6399_v15, 0  ;;  %v13728_v15 = vcombine.high %v13709_v48, %v13711_v19 }
0x2b42   :  { %15978 = vmatpush3.bf16.msra.mxu1 %v6404_v63  ;;  %v13704_v63 = vld [vmem:[%s20484_s9 + $0x300] sm:$0xff] }
0x2b43   :  { %6724 = vmatprep.subr.bf16.mxu1 %v13726_v14 }
0x2b44   :  { %v5299_v11 = vpop.permute.xlu0 %5298 }
0x2b45   :  { %5304 = vst.msk [vmem:[#allocation2] sm:$0xff] %vm941_vm5, %v5299_v11  ;;  %v13706_v11 = vld [vmem:[%s20484_s9 + $0x340] sm:$0xff] }
0x2b46   :  { %v16801_v12 = vpop.eup %16800 }
0x2b47   :  { %v6345_v4 = vmul.f32 %v16801_v12, %v16797_v42  ;;  %v13705_v12 = vld [vmem:[%s20484_s9 + $0x308] sm:$0xff] }
0x2b48   :  { %v5529_v25 = vpop.permute.xlu0 %5528 }
0x2b49   :  { %v6348_v6 = vpack.c.bf16 %v6345_v4, %v6345_v4  ;;  %5534 = vst.msk [vmem:[#allocation2] sm:$0xff] %vm1172_vm6, %v5529_v25  ;;  %v13722_v4 = vcombine.high %v13704_v63, %v13706_v11  ;;  %v13707_v25 = vld [vmem:[%s20484_s9 + $0x348] sm:$0xff] }
0x2b4a   :  { %v16803_v53 = vpop.eup %16802 }
0x2b4b   :  { %v6347_v61 = vmul.f32 %v16803_v53, %v16799_v0  ;;  %15974 = vmatmul.mubr.msk.bf16.vlgmr.msra.gmra.mxu0 %vm268_vm3, %v6348_v6  ;;  %v13721_v6 = vcombine.low %v13704_v63, %v13706_v11  ;;  %v13723_v53 = vcombine.low %v13705_v12, %v13707_v25  ;;  %v13802_v63 = vld [vmem:[%s20484_s9 + $0x2d8] sm:$0xff] }
0x2b4c   :  { %v5759_v13 = vpop.permute.xlu0 %5758  ;;  %15991 = vmatprep.mubr.msk.bf16.mxu0 %vm16908_vm1, %v16907_v58  ;;  %15984 = vmatpush3.bf16.msra.mxu0 %v16388_v17  ;;  %v13703_v17 = vld [vmem:[%s20484_s9 + $0x2c8] sm:$0xff] }
0x2b4d   :  { %v6349_v16 = vpack.c.bf16 %v6347_v61, %v6347_v61  ;;  %5764 = vst.msk [vmem:[#allocation2] sm:$0xff] %vm1403_vm7, %v5759_v13  ;;  %15985 = vmatprep.subr.bf16.mxu0 %v16907_v58  ;;  %v13724_v61 = vcombine.high %v13705_v12, %v13707_v25  ;;  %v13700_v13 = vld [vmem:[%s20484_s9 + $0x280] sm:$0xff] }
0x2b4f   :  { %15980 = vmatmul.mubr.msk.bf16.vlgmr.msra.gmra.mxu1 %vm268_vm3, %v6349_v16  ;;  %v13702_v16 = vld [vmem:[%s20484_s9 + $0x2c0] sm:$0xff] }
0x2b50   :  { %v5989_v5 = vpop.permute.xlu0 %5988  ;;  %6748 = vmatprep.mubr.bf16.mxu1 %v16906_v2  ;;  %15986 = vmatpush3.bf16.msra.mxu0 %v16389_v8  ;;  %v13717_v8 = vcombine.low %v13700_v13, %v13702_v16 }
0x2b51   :  { %5994 = vst.msk [vmem:[#allocation2] sm:$0xff] %vm1634_vm8, %v5989_v5  ;;  %15987 = vmatprep.subr.bf16.mxu0 %v16907_v58  ;;  %6725 = vmatpush1.bf16.msra.mxu1 %v13725_v20  ;;  %v13701_v5 = vld [vmem:[%s20484_s9 + $0x288] sm:$0xff]  ;;  %v13799_v20 = vld [vmem:[%s20484_s9 + $0x290] sm:$0xff] }
0x2b52   :  { %6726 = vmatprep.subr.bf16.mxu1 %v13722_v4 }
0x2b54   :  { %v6219_v40 = vpop.permute.xlu0 %6218  ;;  %15988 = vmatpush3.bf16.msra.mxu0 %v16390_v49  ;;  %v13719_v49 = vcombine.low %v13701_v5, %v13703_v17 }
0x2b55   :  { %6224 = vst.msk [vmem:[#allocation2] sm:$0xff] %vm1865_vm9, %v6219_v40  ;;  %15989 = vmatprep.subr.bf16.mxu0 %v16907_v58  ;;  %6727 = vmatpush1.bf16.msra.mxu1 %v13721_v6  ;;  %v13718_v40 = vcombine.high %v13700_v13, %v13702_v16  ;;  %v13795_v6 = vld [vmem:[%s20484_s9 + $0x210] sm:$0xff]  ;;  %v13798_v13 = vld [vmem:[%s20484_s9 + $0x258] sm:$0xff] }
0x2b57   :  { %6728 = vmatprep.subr.bf16.mxu1 %v13718_v40 }
0x2b58   :  { %15990 = vmatpush3.bf16.msra.mxu0 %v16391_v9  ;;  %v13720_v9 = vcombine.high %v13701_v5, %v13703_v17 }
0x2b59   :  { %6767 = vmatprep.subr.bf16.mxu0 %v13728_v15  ;;  %6729 = vmatpush1.bf16.msra.mxu1 %v13717_v8  ;;  %v13800_v15 = vld [vmem:[%s20484_s9 + $0x298] sm:$0xff] }
0x2b5a   :  { %v13819_v25 = vcombine.high %v13800_v15, %v13802_v63  ;;  %v13818_v5 = vcombine.low %v13800_v15, %v13802_v63 }
0x2c0b   :  { %v6392_v18 = vpop.f32.mrf.mxu0 }
0x2c0c   :  { %6448 = vrot.lane.b32.xlu0 %v6392_v18, %s20553_s24  ;;  %v13696_v18 = vld [vmem:[%s20484_s9 + $0x200] sm:$0xff] }
0x2c0d   :  { %v15975_v47 = vpop.f32.mrf.mxu0 }
0x2c0e   :  { %v13698_v47 = vld [vmem:[%s20484_s9 + $0x240] sm:$0xff] }
0x2c0f   :  { %v6395_v44 = vpop.f32.mrf.mxu0  ;;  %v6440_v26 = vpop.f32.mrf.mxu1 }
0x2c10   :  { %6450 = vrot.lane.b32.xlu1 %v6440_v26, %s20553_s24  ;;  %v13697_v44 = vld [vmem:[%s20484_s9 + $0x208] sm:$0xff]  ;;  %v13714_v26 = vcombine.high %v13696_v18, %v13698_v47 }
0x2c11   :  { %v15976_v27 = vpop.f32.mrf.mxu0  ;;  %v15981_v39 = vpop.f32.mrf.mxu1 }
0x2c12   :  { %v13699_v27 = vld [vmem:[%s20484_s9 + $0x248] sm:$0xff]  ;;  %v13713_v39 = vcombine.low %v13696_v18, %v13698_v47  ;;  %6730 = vmatprep.subr.bf16.mxu1 %v13714_v26  ;;  %v16393_v18 = vld [vmem:[%s20486_s11 + $0x5f8] sm:$0xff]   ;;  %v16396_v26 = vld [vmem:[%s20486_s11 + $0x570] sm:$0xff]  }
0x2c13   :  { %v6443_v38 = vpop.f32.mrf.mxu1  ;;  %v16394_v47 = vld [vmem:[%s20486_s11 + $0x538] sm:$0xff]  }
0x2c14   :  { %v13715_v38 = vcombine.low %v13697_v44, %v13699_v27  ;;  %6731 = vmatpush1.bf16.msra.mxu1 %v13713_v39  ;;  %v16398_v39 = vld [vmem:[%s20486_s11 + $0x530] sm:$0xff]  }
0x2c15   :  { %v15982_v28 = vpop.f32.mrf.mxu1 }
0x2c16   :  { %v13716_v28 = vcombine.high %v13697_v44, %v13699_v27  ;;  %v16395_v44 = vld [vmem:[%s20486_s11 + $0x5b8] sm:$0xff]   ;;  %v16397_v27 = vld [vmem:[%s20486_s11 + $0x5f0] sm:$0xff]  }
0x2c7e   :  { %v6449_v1 = vpop.permute.xlu0 %6448 }
0x2c7f   :  { %6454 = vst.msk [vmem:[#allocation2] sm:$0xff] %vm2096_vm10, %v6449_v1  ;;  %v13807_v1 = vld [vmem:[%s20484_s9 + $0x390] sm:$0xff] }
0x2c82   :  { %v6451_v31 = vpop.permute.xlu1 %6450 }
0x2c83   :  { %6455 = vst.msk [vmem:[#allocation2 + $0x8] sm:$0xff] %vm2096_vm10, %v6451_v31  ;;  %v13809_v31 = vld [vmem:[%s20484_s9 + $0x3d0] sm:$0xff] }
0x2c86   :  { %v6456_v33 = vld [vmem:[#allocation2] sm:$0xff] }
0x2c8a   :  { %v6457_v34 = vld [vmem:[#allocation2 + $0x8] sm:$0xff] }
0x2c8b   :  { %v6458_v35 = vpack.c.bf16 %v6457_v34, %v6456_v33  ;;  %v13808_v33 = vld [vmem:[%s20484_s9 + $0x398] sm:$0xff]  ;;  %v13824_v34 = vcombine.low %v13807_v1, %v13809_v31 }
0x2c8d   :  { %15992 = vmatmul.mubr.msk.bf16.vlgmr.msra.gmra.mxu0 %vm207_vm14, %v6458_v35  ;;  %v13825_v35 = vcombine.high %v13807_v1, %v13809_v31  ;;  %v16401_v1 = vld [vmem:[%s20486_s11 + $0x5e8] sm:$0xff]  }
0x2c8e   :  { %6791 = vmatprep.mubr.bf16.mxu0 %v16906_v2  ;;  %6768 = vmatpush1.bf16.msra.mxu0 %v13727_v3  ;;  %v13801_v3 = vld [vmem:[%s20484_s9 + $0x2d0] sm:$0xff]  ;;  %v16402_v31 = vld [vmem:[%s20486_s11 + $0x528] sm:$0xff]  }
0x2c8f   :  { %6769 = vmatprep.subr.bf16.mxu0 %v13724_v61  ;;  %7005 = vmatprep.subr.bf16.mxu1 %v13825_v35  ;;  %v13817_v4 = vcombine.high %v13799_v20, %v13801_v3  ;;  %v13796_v61 = vld [vmem:[%s20484_s9 + $0x218] sm:$0xff]  ;;  %v13816_v16 = vcombine.low %v13799_v20, %v13801_v3  ;;  %v16405_v35 = vld [vmem:[%s20486_s11 + $0x5e0] sm:$0xff]  }
0x2c90   :  { %v13815_v17 = vcombine.high %v13796_v61, %v13798_v13 }
0x2c92   :  { %6770 = vmatpush1.bf16.msra.mxu0 %v13723_v53  ;;  %v13797_v53 = vld [vmem:[%s20484_s9 + $0x250] sm:$0xff] }
0x2c93   :  { %6771 = vmatprep.subr.bf16.mxu0 %v13720_v9  ;;  %v13813_v40 = vcombine.high %v13795_v6, %v13797_v53  ;;  %v13812_v8 = vcombine.low %v13795_v6, %v13797_v53  ;;  %v16392_v9 = vld [vmem:[%s20486_s11 + $0x578] sm:$0xff]  }
0x2c96   :  { %6772 = vmatpush1.bf16.msra.mxu0 %v13719_v49  ;;  %v13814_v49 = vcombine.low %v13796_v61, %v13798_v13 }
0x2c97   :  { %6773 = vmatprep.subr.bf16.mxu0 %v13716_v28  ;;  %v16400_v28 = vld [vmem:[%s20486_s11 + $0x568] sm:$0xff]  }
0x2c9a   :  { %6774 = vmatpush1.bf16.msra.mxu0 %v13715_v38  ;;  %v16399_v38 = vld [vmem:[%s20486_s11 + $0x5b0] sm:$0xff]  }
0x2d4d   :  { %v6537_v41 = vpop.f32.mrf.mxu0 }
0x2d4e   :  { %v6538_v45 = vadd.f32 %v13686_v36, %v6537_v41 }
0x2d4f   :  { %v15993_v50 = vpop.f32.mrf.mxu0 }
0x2d50   :  { %v6544_v51 = vadd.f32 %v6538_v45, %v18211_v29 }
0x2d51   :  { %v6540_v60 = vpop.f32.mrf.mxu0 }
0x2d52   :  { %v6541_v52 = vadd.f32 %v13686_v36, %v6540_v60  ;;  %v6550_v43 = vsel %vm207_vm14, %v6544_v51, 0.0  ;;  %v13810_v36 = vld [vmem:[%s20484_s9 + $0x3d8] sm:$0xff] }
0x2d53   :  { %6551 = vadd.xlane.f32.xlu0 %v6550_v43  ;;  %v15994_v54 = vpop.f32.mrf.mxu0  ;;  %v13826_v41 = vcombine.low %v13808_v33, %v13810_v36  ;;  %v13827_v45 = vcombine.high %v13808_v33, %v13810_v36  ;;  %v16403_v33 = vld [vmem:[%s20486_s11 + $0x5a8] sm:$0xff]   ;;  %v16406_v36 = vld [vmem:[%s20486_s11 + $0x520] sm:$0xff]  }
0x2d54   :  { %v6545_v37 = vadd.f32 %v6541_v52, %v18213_v30 }
0x2d55   :  { %7048 = vmatprep.subr.bf16.mxu0 %v13827_v45  ;;  %v16408_v45 = vld [vmem:[%s20486_s11 + $0x558] sm:$0xff]  }
0x2d56   :  { %v6553_v57 = vsel %vm207_vm14, %v6545_v37, 0.0 }
0x2d57   :  { %6554 = vadd.xlane.f32.xlu1 %v6553_v57 }
0x2ddc   :  { %v6552_v59 = vpop.xlane.xlu0 %6551 }
0x2ddd   :  { %v6556_v46 = vmul.f32 0.015625, %v6552_v59  ;;  %v13694_v59 = vld [vmem:[%s20482_s7 + $0x1] ss:$0 sm:$0xff] }
0x2ddf   :  { %v18602_v10 = vsub.f32 %v6544_v51, %v6556_v46 }
0x2de0   :  { %v6555_v7 = vpop.xlane.xlu1 %6554 }
0x2de1   :  { %v6557_v42 = vmul.f32 0.015625, %v6555_v7  ;;  %v6560_v29 = vmul.f32 %v18602_v10, %v18602_v10 }
0x2de3   :  { %v18606_v32 = vsub.f32 %v6545_v37, %v6557_v42  ;;  %v6562_v62 = vsel %vm207_vm14, %v6560_v29, 0.0  ;;  %v13695_v29 = vld [vmem:[%s20483_s8 + $0x1] ss:$0 sm:$0xff] }
0x2de4   :  { %6563 = vadd.xlane.f32.xlu0 %v6562_v62 }
0x2de5   :  { %v6561_v30 = vmul.f32 %v18606_v32, %v18606_v32 }
0x2de7   :  { %v6565_v0 = vsel %vm207_vm14, %v6561_v30, 0.0  ;;  %v13803_v30 = vld [vmem:[%s20484_s9 + $0x310] sm:$0xff] }
0x2de8   :  { %6566 = vadd.xlane.f32.xlu0 %v6565_v0  ;;  %v13804_v0 = vld [vmem:[%s20484_s9 + $0x318] sm:$0xff] }
0x2e6d   :  { %v6564_v50 = vpop.xlane.xlu0 %6563 }
0x2e6e   :  { %v6568_v51 = vmul.f32 0.015625, %v6564_v50  ;;  %v16409_v50 = vld [vmem:[%s20486_s11 + $0x5d8] sm:$0xff]  }
0x2e70   :  { %v6570_v60 = vadd.f32 1e-05, %v6568_v51  ;;  %v16410_v51 = vld [vmem:[%s20486_s11 + $0x518] sm:$0xff]  }
0x2e71   :  { %v6567_v52 = vpop.xlane.xlu0 %6566 }
0x2e72   :  { %16804 = vrsqrt.f32 %v6570_v60  ;;  %v6569_v43 = vmul.f32 0.015625, %v6567_v52  ;;  %v16411_v60 = vld [vmem:[%s20486_s11 + $0x598] sm:$0xff]   ;;  %v16412_v52 = vld [vmem:[%s20486_s11 + $0x550] sm:$0xff]  }
0x2e74   :  { %v6571_v54 = vadd.f32 1e-05, %v6569_v43  ;;  %v16413_v43 = vld [vmem:[%s20486_s11 + $0x5d0] sm:$0xff]  }
0x2e76   :  { %16806 = vrsqrt.f32 %v6571_v54  ;;  %v16414_v54 = vld [vmem:[%s20486_s11 + $0x510] sm:$0xff]  }
0x2e7f   :  { %v16805_v37 = vpop.eup %16804 }
0x2e80   :  { %v6574_v57 = vmul.f32 %v16805_v37, %v18602_v10  ;;  %v13805_v10 = vld [vmem:[%s20484_s9 + $0x350] sm:$0xff] }
0x2e81   :  { %v13821_v14 = vcombine.high %v13803_v30, %v13805_v10  ;;  %v13820_v11 = vcombine.low %v13803_v30, %v13805_v10  ;;  %v16415_v37 = vld [vmem:[%s20486_s11 + $0x590] sm:$0xff]   ;;  %v16423_v30 = vld [vmem:[%s20486_s11 + $0x580] sm:$0xff]   ;;  %v16424_v10 = vld [vmem:[%s20486_s11 + $0x478] sm:$0xff]  }
0x2e82   :  { %v6582_v7 = vmul.f32 %v13694_v59, %v6574_v57  ;;  %v16416_v57 = vld [vmem:[%s20486_s11 + $0x548] sm:$0xff]  }
0x2e83   :  { %v16807_v46 = vpop.eup %16806 }
0x2e84   :  { %v6575_v42 = vmul.f32 %v16807_v46, %v18606_v32  ;;  %v13806_v32 = vld [vmem:[%s20484_s9 + $0x358] sm:$0xff]  ;;  %v18692_v56 = vadd.f32 %v13695_v29, %v6582_v7  ;;  %v16418_v46 = vld [vmem:[%s20486_s11 + $0x508] sm:$0xff]  }
0x2e85   :  { %v13823_v19 = vcombine.high %v13804_v0, %v13806_v32  ;;  %v13822_v12 = vcombine.low %v13804_v0, %v13806_v32  ;;  %v16419_v7 = vld [vmem:[%s20486_s11 + $0x588] sm:$0xff]   ;;  %v16425_v0 = vld [vmem:[%s20486_s11 + $0x4f8] sm:$0xff]  }
0x2e86   :  { %v6583_v62 = vmul.f32 %v13694_v59, %v6575_v42  ;;  %v16417_v59 = vld [vmem:[%s20486_s11 + $0x5c8] sm:$0xff]   ;;  %v16420_v42 = vld [vmem:[%s20486_s11 + $0x540] sm:$0xff]  }
0x2e88   :  { %v18694_v55 = vadd.f32 %v13695_v29, %v6583_v62  ;;  %v16421_v29 = vld [vmem:[%s20486_s11 + $0x5c0] sm:$0xff]  }
0x2e89   :  { %v16422_v62 = vld [vmem:[%s20486_s11 + $0x500] sm:$0xff]  }
0x2e8a   :  { %v18698_v48 = vpack.c.bf16 %v18694_v55, %v18692_v56 }
0x2e8c   :  { %13729 = vmatmul.mubr.msk.bf16.vlgmr.msra.gmra.mxu1 %vm207_vm14, %v18698_v48  ;;  %13730 = vmatmul.mubr.msk.bf16.vlgmr.msra.gmra.mxu0 %vm207_vm14, %v18698_v48 }
0x2e8d   :  { %7006 = vmatpush1.bf16.msra.mxu1 %v13824_v34  ;;  %7049 = vmatpush1.bf16.msra.mxu0 %v13826_v41  ;;  %v16404_v34 = vld [vmem:[%s20486_s11 + $0x560] sm:$0xff]  }
0x2e8e   :  { %7007 = vmatprep.subr.bf16.mxu1 %v13821_v14  ;;  %7050 = vmatprep.subr.bf16.mxu0 %v13823_v19  ;;  %v16407_v41 = vld [vmem:[%s20486_s11 + $0x5a0] sm:$0xff]  }
0x2e8f   :  { %7029 = vmatprep.mubr.bf16.mxu1 %v16906_v2  ;;  %7072 = vmatprep.mubr.bf16.mxu0 %v16906_v2 }
0x2e91   :  { %7008 = vmatpush1.bf16.msra.mxu1 %v13820_v11  ;;  %7051 = vmatpush1.bf16.msra.mxu0 %v13822_v12  ;;  %v13811_v12 = vld [vmem:[%s20485_s10 + $0x14] sm:$0xf] }
0x2e92   :  { %7009 = vmatprep.subr.bf16.mxu1 %v13817_v4  ;;  %7052 = vmatprep.subr.bf16.mxu0 %v13819_v25  ;;  %v6904_v6 = vrot.slane %v13811_v12, %v17056_v21  ;;  %v6912_v53 = vrot.slane %v13811_v12, %v17062_v24  ;;  %v6900_v61 = vrot.slane %v13811_v12, %v17058_v22 }
0x2e93   :  { %v6908_v13 = vrot.slane %v13811_v12, %v17060_v23  ;;  %v16431_v12 = vld [vmem:[%s20486_s11 + $0x4b0] sm:$0xff]  }
0x2e95   :  { %7010 = vmatpush1.bf16.msra.mxu1 %v13816_v16  ;;  %7053 = vmatpush1.bf16.msra.mxu0 %v13818_v5 }
0x2e96   :  { %7011 = vmatprep.subr.bf16.mxu1 %v13813_v40  ;;  %7054 = vmatprep.subr.bf16.mxu0 %v13815_v17  ;;  %v18854_v40 = vld [vmem:[%s20485_s10 + $0x10] sm:$0xf] }
0x2e97   :  { %v6620_v17 = vrot.slane %v18854_v40, %v17056_v21 }
0x2e99   :  { %7012 = vmatpush1.bf16.msra.mxu1 %v13812_v8  ;;  %7055 = vmatpush1.bf16.msra.mxu0 %v13814_v49  ;;  %v6628_v8 = vrot.slane %v18854_v40, %v17062_v24 }
0x2e9a   :  { %15161 = vmatprep.subr.bf16.mxu1 %v16392_v9  ;;  %15183 = vmatprep.subr.bf16.mxu0 %v16393_v18 }
0x2e9c   :  { %13828 = vmatmul.mubr.msk.bf16.vlgmr.msra.gmra.mxu1 %vm207_vm14, %v18698_v48  ;;  %13829 = vmatmul.mubr.msk.bf16.vlgmr.msra.gmra.mxu0 %vm207_vm14, %v18698_v48 }
0x2e9d   :  { %15162 = vmatpush3.bf16.msra.mxu1 %v16394_v47  ;;  %15184 = vmatpush3.bf16.msra.mxu0 %v16395_v44 }
0x2e9e   :  { %15163 = vmatprep.subr.bf16.mxu1 %v16396_v26  ;;  %15185 = vmatprep.subr.bf16.mxu0 %v16397_v27 }
0x2ea1   :  { %15164 = vmatpush3.bf16.msra.mxu1 %v16398_v39  ;;  %15186 = vmatpush3.bf16.msra.mxu0 %v16399_v38 }
0x2ea2   :  { %15165 = vmatprep.subr.bf16.mxu1 %v16400_v28  ;;  %15187 = vmatprep.subr.bf16.mxu0 %v16401_v1 }
0x2ea5   :  { %15166 = vmatpush3.bf16.msra.mxu1 %v16402_v31  ;;  %15188 = vmatpush3.bf16.msra.mxu0 %v16403_v33 }
0x2ea6   :  { %15167 = vmatprep.subr.bf16.mxu1 %v16404_v34  ;;  %15189 = vmatprep.subr.bf16.mxu0 %v16405_v35 }
0x2ea9   :  { %15168 = vmatpush3.bf16.msra.mxu1 %v16406_v36  ;;  %15190 = vmatpush3.bf16.msra.mxu0 %v16407_v41 }
0x2eaa   :  { %15169 = vmatprep.subr.bf16.mxu1 %v16408_v45  ;;  %15191 = vmatprep.subr.bf16.mxu0 %v16409_v50 }
0x2ead   :  { %15170 = vmatpush3.bf16.msra.mxu1 %v16410_v51  ;;  %15192 = vmatpush3.bf16.msra.mxu0 %v16411_v60 }
0x2eae   :  { %15171 = vmatprep.subr.bf16.mxu1 %v16412_v52  ;;  %15193 = vmatprep.subr.bf16.mxu0 %v16413_v43 }
0x2eb1   :  { %15172 = vmatpush3.bf16.msra.mxu1 %v16414_v54  ;;  %15194 = vmatpush3.bf16.msra.mxu0 %v16415_v37 }
0x2eb2   :  { %15173 = vmatprep.subr.bf16.mxu1 %v16416_v57  ;;  %15195 = vmatprep.subr.bf16.mxu0 %v16417_v59 }
0x2eb5   :  { %15174 = vmatpush3.bf16.msra.mxu1 %v16418_v46  ;;  %15196 = vmatpush3.bf16.msra.mxu0 %v16419_v7  ;;  %v16426_v7 = vld [vmem:[%s20486_s11 + $0x438] sm:$0xff]  }
0x2eb6   :  { %15175 = vmatprep.subr.bf16.mxu1 %v16420_v42  ;;  %15197 = vmatprep.subr.bf16.mxu0 %v16421_v29  ;;  %v16427_v42 = vld [vmem:[%s20486_s11 + $0x4b8] sm:$0xff]  }
0x2eb9   :  { %15176 = vmatpush3.bf16.msra.mxu1 %v16422_v62  ;;  %15198 = vmatpush3.bf16.msra.mxu0 %v16423_v30 }
0x2eba   :  { %15205 = vmatprep.subr.bf16.mxu1 %v16424_v10  ;;  %15227 = vmatprep.subr.bf16.mxu0 %v16425_v0  ;;  %v16428_v0 = vld [vmem:[%s20486_s11 + $0x470] sm:$0xff]  }
0x2f4c   :  { %v18836_v32 = vpop.f32.mrf.mxu1  ;;  %v18838_v14 = vpop.f32.mrf.mxu0 }
0x2f4e   :  { %v6752_v19 = vpop.f32.mrf.mxu1  ;;  %v6795_v20 = vpop.f32.mrf.mxu0 }
0x2f4f   :  { %v6753_v35 = vadd.f32 %v6752_v19, %v6620_v17  ;;  %v6796_v36 = vadd.f32 %v6795_v20, %v6628_v8  ;;  %v16429_v19 = vld [vmem:[%s20486_s11 + $0x4f0] sm:$0xff]  }
0x2f50   :  { %v18840_v3 = vpop.f32.mrf.mxu1  ;;  %v18842_v15 = vpop.f32.mrf.mxu0 }
0x2f51   :  { %v6803_v29 = vmax.f32 %v6753_v35, 0.0  ;;  %v6805_v62 = vmax.f32 %v6796_v36, 0.0  ;;  %v16453_v35 = vld [vmem:[%s20486_s11 + $0x4c0] sm:$0xff]  }
0x2f52   :  { %v6756_v63 = vpop.f32.mrf.mxu1  ;;  %v6799_v11 = vpop.f32.mrf.mxu0  ;;  %v13970_v36 = vld [vmem:[%s20484_s9 + $0x3a0] sm:$0xff] }
0x2f53   :  { %v6757_v27 = vadd.f32 %v6756_v63, %v6620_v17  ;;  %v6800_v39 = vadd.f32 %v6799_v11, %v6628_v8  ;;  %v16430_v11 = vld [vmem:[%s20486_s11 + $0x430] sm:$0xff]   ;;  %v16440_v17 = vld [vmem:[%s20486_s11 + $0x458] sm:$0xff]  }
0x2f54   :  { %v16441_v8 = vld [vmem:[%s20486_s11 + $0x4d8] sm:$0xff]  }
0x2f55   :  { %v6807_v43 = vmax.f32 %v6757_v27, 0.0  ;;  %v6809_v54 = vmax.f32 %v6800_v39, 0.0  ;;  %v16448_v27 = vld [vmem:[%s20486_s11 + $0x448] sm:$0xff]  }
0x2f56   :  { %v16449_v39 = vld [vmem:[%s20486_s11 + $0x4c8] sm:$0xff]  }
0x2f57   :  { %v6811_v20 = vpack.c.bf16 %v6807_v43, %v6803_v29  ;;  %v6813_v63 = vpack.c.bf16 %v6809_v54, %v6805_v62 }
0x2f5c   :  { %v7031_v4 = vpop.f32.mrf.mxu1  ;;  %v7074_v25 = vpop.f32.mrf.mxu0 }
0x2f5d   :  { %v7032_v38 = vadd.f32 %v7031_v4, %v6900_v61  ;;  %v7075_v28 = vadd.f32 %v7074_v25, %v6908_v13  ;;  %v16432_v4 = vld [vmem:[%s20486_s11 + $0x468] sm:$0xff]  }
0x2f5e   :  { %v7033_v16 = vpop.f32.mrf.mxu1  ;;  %v7076_v5 = vpop.f32.mrf.mxu0  ;;  %v16433_v25 = vld [vmem:[%s20486_s11 + $0x4e8] sm:$0xff]  }
0x2f5f   :  { %v7034_v18 = vadd.f32 %v7033_v16, %v6904_v6  ;;  %v7077_v47 = vadd.f32 %v7076_v5, %v6912_v53  ;;  %v7083_v37 = vmax.f32 %v7032_v38, 0.0  ;;  %v7085_v57 = vmax.f32 %v7075_v28, 0.0  ;;  %v16438_v16 = vld [vmem:[%s20486_s11 + $0x420] sm:$0xff]  }
0x2f60   :  { %v7035_v49 = vpop.f32.mrf.mxu1  ;;  %v7078_v9 = vpop.f32.mrf.mxu0  ;;  %v16439_v5 = vld [vmem:[%s20486_s11 + $0x4a0] sm:$0xff]   ;;  %v6616_v38 = vrot.slane %v18854_v40, %v17058_v22  ;;  %v6624_v28 = vrot.slane %v18854_v40, %v17060_v23 }
0x2f61   :  { %v7036_v44 = vadd.f32 %v7035_v49, %v6900_v61  ;;  %v7079_v26 = vadd.f32 %v7078_v9, %v6908_v13  ;;  %v7084_v50 = vmax.f32 %v7034_v18, 0.0  ;;  %v7086_v51 = vmax.f32 %v7077_v47, 0.0  ;;  %v16436_v61 = vld [vmem:[%s20486_s11 + $0x460] sm:$0xff]   ;;  %v16442_v49 = vld [vmem:[%s20486_s11 + $0x418] sm:$0xff]   ;;  %v16444_v18 = vld [vmem:[%s20486_s11 + $0x450] sm:$0xff]  }
0x2f62   :  { %v7037_v1 = vpop.f32.mrf.mxu1  ;;  %v7080_v31 = vpop.f32.mrf.mxu0  ;;  %v16437_v13 = vld [vmem:[%s20486_s11 + $0x4e0] sm:$0xff]   ;;  %v16443_v9 = vld [vmem:[%s20486_s11 + $0x498] sm:$0xff]   ;;  %v16445_v47 = vld [vmem:[%s20486_s11 + $0x4d0] sm:$0xff]  }
0x2f63   :  { %v7038_v33 = vadd.f32 %v7037_v1, %v6904_v6  ;;  %v7081_v34 = vadd.f32 %v7080_v31, %v6912_v53  ;;  %v7087_v41 = vmax.f32 %v7036_v44, 0.0  ;;  %v7089_v45 = vmax.f32 %v7079_v26, 0.0  ;;  %v16434_v6 = vld [vmem:[%s20486_s11 + $0x428] sm:$0xff]   ;;  %v16446_v44 = vld [vmem:[%s20486_s11 + $0x410] sm:$0xff]   ;;  %v16452_v40 = vld [vmem:[%s20486_s11 + $0x440] sm:$0xff]  }
0x2f64   :  { %v16435_v53 = vld [vmem:[%s20486_s11 + $0x4a8] sm:$0xff]   ;;  %v16447_v26 = vld [vmem:[%s20486_s11 + $0x490] sm:$0xff]  }
0x2f65   :  { %v7088_v60 = vmax.f32 %v7038_v33, 0.0  ;;  %v7090_v52 = vmax.f32 %v7081_v34, 0.0  ;;  %v7091_v30 = vpack.c.bf16 %v7087_v41, %v7083_v37  ;;  %v7093_v10 = vpack.c.bf16 %v7089_v45, %v7085_v57  ;;  %v16450_v1 = vld [vmem:[%s20486_s11 + $0x408] sm:$0xff]  }
0x2f66   :  { %v16451_v31 = vld [vmem:[%s20486_s11 + $0x488] sm:$0xff]   ;;  %v6755_v33 = vadd.f32 %v18840_v3, %v6616_v38  ;;  %v6798_v34 = vadd.f32 %v18842_v15, %v6624_v28  ;;  %v13972_v3 = vld [vmem:[%s20484_s9 + $0x3e0] sm:$0xff]  ;;  %v6751_v45 = vadd.f32 %v18836_v32, %v6616_v38  ;;  %v16461_v38 = vld [vmem:[%s20486_s11 + $0x6f0] sm:$0xff]  }
0x2f67   :  { %v7092_v59 = vpack.c.bf16 %v7088_v60, %v7084_v50  ;;  %v7094_v46 = vpack.c.bf16 %v7090_v52, %v7086_v51  ;;  %v13971_v15 = vld [vmem:[%s20484_s9 + $0x3a8] sm:$0xff]  ;;  %v6794_v50 = vadd.f32 %v18838_v14, %v6624_v28  ;;  %v16454_v51 = vld [vmem:[%s20486_s11 + $0x400] sm:$0xff]   ;;  %v13988_v54 = vcombine.high %v13970_v36, %v13972_v3  ;;  %v16462_v28 = vld [vmem:[%s20486_s11 + $0x630] sm:$0xff]  }
0x2f68   :  { %v13973_v41 = vld [vmem:[%s20484_s9 + $0x3e8] sm:$0xff]  ;;  %v16455_v60 = vld [vmem:[%s20486_s11 + $0x480] sm:$0xff]   ;;  %v6806_v52 = vmax.f32 %v6755_v33, 0.0  ;;  %v6808_v43 = vmax.f32 %v6798_v34, 0.0 }
0x2f69   :  { %7383 = vmatprep.mubr.bf16.mxu1 %v7092_v59  ;;  %7424 = vmatprep.mubr.bf16.mxu0 %v7094_v46  ;;  %v13990_v37 = vcombine.high %v13971_v15, %v13973_v41  ;;  %v13966_v32 = vld [vmem:[%s20484_s9 + $0x320] sm:$0xff]  ;;  %v13967_v57 = vld [vmem:[%s20484_s9 + $0x328] sm:$0xff]  ;;  %v6802_v46 = vmax.f32 %v6751_v45, 0.0  ;;  %v13989_v29 = vcombine.low %v13971_v15, %v13973_v41  ;;  %v16472_v41 = vld [vmem:[%s20486_s11 + $0x658] sm:$0xff]  }
0x2f6a   :  { %7384 = vmatmul.mubr.bf16.vlgmr.msra.gmra.mxu1 %v7091_v30  ;;  %7425 = vmatmul.mubr.bf16.vlgmr.msra.gmra.mxu0 %v7093_v10  ;;  %v13968_v14 = vld [vmem:[%s20484_s9 + $0x360] sm:$0xff]  ;;  %v13969_v59 = vld [vmem:[%s20484_s9 + $0x368] sm:$0xff]  ;;  %v16473_v45 = vld [vmem:[%s20486_s11 + $0x6d8] sm:$0xff]  }
0x2f6b   :  { %15206 = vmatpush3.bf16.msra.mxu1 %v16426_v7  ;;  %15228 = vmatpush3.bf16.msra.mxu0 %v16427_v42  ;;  %v6804_v7 = vmax.f32 %v6794_v50, 0.0  ;;  %v13987_v42 = vcombine.low %v13970_v36, %v13972_v3  ;;  %v13984_v62 = vcombine.high %v13966_v32, %v13968_v14  ;;  %v6810_v30 = vpack.c.bf16 %v6806_v52, %v6802_v46  ;;  %v16465_v33 = vld [vmem:[%s20486_s11 + $0x6e8] sm:$0xff]   ;;  %v16469_v36 = vld [vmem:[%s20486_s11 + $0x6e0] sm:$0xff]   ;;  %v16474_v50 = vld [vmem:[%s20486_s11 + $0x618] sm:$0xff]  }
0x2f6c   :  { %7657 = vmatprep.mubr.bf16.mxu1 %v6811_v20  ;;  %7698 = vmatprep.mubr.bf16.mxu0 %v6813_v63  ;;  %v13964_v20 = vld [vmem:[%s20484_s9 + $0x2e0] sm:$0xff]  ;;  %v13963_v63 = vld [vmem:[%s20484_s9 + $0x2a8] sm:$0xff]  ;;  %v16477_v52 = vld [vmem:[%s20486_s11 + $0x6d0] sm:$0xff]  }
0x2f6d   :  { %15207 = vmatprep.subr.bf16.mxu1 %v16428_v0  ;;  %15229 = vmatprep.subr.bf16.mxu0 %v16429_v19  ;;  %v6812_v10 = vpack.c.bf16 %v6808_v43, %v6804_v7  ;;  %v13986_v0 = vcombine.high %v13967_v57, %v13969_v59  ;;  %v13962_v19 = vld [vmem:[%s20484_s9 + $0x2a0] sm:$0xff]  ;;  %v16466_v34 = vld [vmem:[%s20486_s11 + $0x628] sm:$0xff]   ;;  %v16478_v43 = vld [vmem:[%s20486_s11 + $0x610] sm:$0xff]  }
0x2f6e   :  { %v16470_v3 = vld [vmem:[%s20486_s11 + $0x620] sm:$0xff]  }
0x2f6f   :  { %15208 = vmatpush3.bf16.msra.mxu1 %v16430_v11  ;;  %15230 = vmatpush3.bf16.msra.mxu0 %v16431_v12  ;;  %v13965_v11 = vld [vmem:[%s20484_s9 + $0x2e8] sm:$0xff]  ;;  %v13983_v12 = vcombine.low %v13966_v32, %v13968_v14  ;;  %v16471_v15 = vld [vmem:[%s20486_s11 + $0x6a0] sm:$0xff]  }
0x2f70   :  { %15209 = vmatprep.subr.bf16.mxu1 %v16432_v4  ;;  %15231 = vmatprep.subr.bf16.mxu0 %v16433_v25  ;;  %v13985_v4 = vcombine.low %v13967_v57, %v13969_v59  ;;  %v13980_v25 = vcombine.high %v13962_v19, %v13964_v20  ;;  %v16481_v32 = vld [vmem:[%s20486_s11 + $0x6c8] sm:$0xff]   ;;  %v16484_v59 = vld [vmem:[%s20486_s11 + $0x640] sm:$0xff]  }
0x2f71   :  { %v16482_v14 = vld [vmem:[%s20486_s11 + $0x608] sm:$0xff]   ;;  %v16485_v46 = vld [vmem:[%s20486_s11 + $0x6c0] sm:$0xff]  }
0x2f72   :  { %v16483_v57 = vld [vmem:[%s20486_s11 + $0x688] sm:$0xff]   ;;  %v16486_v7 = vld [vmem:[%s20486_s11 + $0x600] sm:$0xff]  }
0x2f73   :  { %15210 = vmatpush3.bf16.msra.mxu1 %v16434_v6  ;;  %15232 = vmatpush3.bf16.msra.mxu0 %v16435_v53  ;;  %v13982_v6 = vcombine.high %v13963_v63, %v13965_v11  ;;  %v13958_v53 = vld [vmem:[%s20484_s9 + $0x220] sm:$0xff] }
0x2f74   :  { %15211 = vmatprep.subr.bf16.mxu1 %v16436_v61  ;;  %15233 = vmatprep.subr.bf16.mxu0 %v16437_v13  ;;  %v13960_v61 = vld [vmem:[%s20484_s9 + $0x260] sm:$0xff]  ;;  %v13959_v13 = vld [vmem:[%s20484_s9 + $0x228] sm:$0xff] }
0x2f77   :  { %15212 = vmatpush3.bf16.msra.mxu1 %v16438_v16  ;;  %15234 = vmatpush3.bf16.msra.mxu0 %v16439_v5  ;;  %v13961_v16 = vld [vmem:[%s20484_s9 + $0x268] sm:$0xff]  ;;  %v13979_v5 = vcombine.low %v13962_v19, %v13964_v20 }
0x2f78   :  { %15213 = vmatprep.subr.bf16.mxu1 %v16440_v17  ;;  %15235 = vmatprep.subr.bf16.mxu0 %v16441_v8  ;;  %v13981_v17 = vcombine.low %v13963_v63, %v13965_v11  ;;  %v13976_v8 = vcombine.high %v13958_v53, %v13960_v61 }
0x2f7b   :  { %15214 = vmatpush3.bf16.msra.mxu1 %v16442_v49  ;;  %15236 = vmatpush3.bf16.msra.mxu0 %v16443_v9  ;;  %v13978_v49 = vcombine.high %v13959_v13, %v13961_v16  ;;  %v13975_v9 = vcombine.low %v13958_v53, %v13960_v61 }
0x2f7c   :  { %15215 = vmatprep.subr.bf16.mxu1 %v16444_v18  ;;  %15237 = vmatprep.subr.bf16.mxu0 %v16445_v47  ;;  %v13977_v18 = vcombine.low %v13959_v13, %v13961_v16  ;;  %v16456_v47 = vld [vmem:[%s20486_s11 + $0x678] sm:$0xff]  }
0x2f7f   :  { %15216 = vmatpush3.bf16.msra.mxu1 %v16446_v44  ;;  %15238 = vmatpush3.bf16.msra.mxu0 %v16447_v26  ;;  %v16457_v44 = vld [vmem:[%s20486_s11 + $0x6f8] sm:$0xff]  }
0x2f80   :  { %15217 = vmatprep.subr.bf16.mxu1 %v16448_v27  ;;  %15239 = vmatprep.subr.bf16.mxu0 %v16449_v39  ;;  %v16458_v26 = vld [vmem:[%s20486_s11 + $0x638] sm:$0xff]   ;;  %v16460_v39 = vld [vmem:[%s20486_s11 + $0x670] sm:$0xff]  }
0x2f81   :  { %v16459_v27 = vld [vmem:[%s20486_s11 + $0x6b8] sm:$0xff]  }
0x2f83   :  { %15218 = vmatpush3.bf16.msra.mxu1 %v16450_v1  ;;  %15240 = vmatpush3.bf16.msra.mxu0 %v16451_v31  ;;  %v16463_v1 = vld [vmem:[%s20486_s11 + $0x6b0] sm:$0xff]   ;;  %v16464_v31 = vld [vmem:[%s20486_s11 + $0x668] sm:$0xff]  }
0x2f84   :  { %15219 = vmatprep.subr.bf16.mxu1 %v16452_v40  ;;  %15241 = vmatprep.subr.bf16.mxu0 %v16453_v35  ;;  %v16467_v40 = vld [vmem:[%s20486_s11 + $0x6a8] sm:$0xff]   ;;  %v16468_v35 = vld [vmem:[%s20486_s11 + $0x660] sm:$0xff]  }
0x2f87   :  { %15220 = vmatpush3.bf16.msra.mxu1 %v16454_v51  ;;  %15242 = vmatpush3.bf16.msra.mxu0 %v16455_v60  ;;  %v16475_v51 = vld [vmem:[%s20486_s11 + $0x698] sm:$0xff]   ;;  %v16476_v60 = vld [vmem:[%s20486_s11 + $0x650] sm:$0xff]  }
0x2f88   :  { %7833 = vmatprep.subr.bf16.mxu1 %v13988_v54  ;;  %7876 = vmatprep.subr.bf16.mxu0 %v13990_v37  ;;  %v16479_v54 = vld [vmem:[%s20486_s11 + $0x690] sm:$0xff]   ;;  %v16480_v37 = vld [vmem:[%s20486_s11 + $0x648] sm:$0xff]  }
0x2f8a   :  { %7658 = vmatmul.mubr.bf16.vlgmr.msra.gmra.mxu1 %v6810_v30  ;;  %7699 = vmatmul.mubr.bf16.vlgmr.msra.gmra.mxu0 %v6812_v10  ;;  %v19121_v30 = vld [vmem:[%s20484_s9 + $0x3b8] sm:$0xff] }
0x2f8b   :  { %7834 = vmatpush1.bf16.msra.mxu1 %v13987_v42  ;;  %7877 = vmatpush1.bf16.msra.mxu0 %v13989_v29  ;;  %v16487_v42 = vld [vmem:[%s20486_s11 + $0x680] sm:$0xff]   ;;  %v19111_v29 = vld [vmem:[%s20484_s9 + $0x3b0] sm:$0xff] }
0x2f8c   :  { %7835 = vmatprep.subr.bf16.mxu1 %v13984_v62  ;;  %7878 = vmatprep.subr.bf16.mxu0 %v13986_v0  ;;  %v19116_v62 = vld [vmem:[%s20484_s9 + $0x3f0] sm:$0xff]  ;;  %v19128_v0 = vld [vmem:[%s20484_s9 + $0x3f8] sm:$0xff] }
0x2f8d   :  { %7857 = vmatprep.mubr.bf16.mxu1 %v16906_v2  ;;  %7900 = vmatprep.mubr.bf16.mxu0 %v16906_v2  ;;  %v14119_v10 = vcombine.high %v19111_v29, %v19116_v62  ;;  %v14118_v19 = vcombine.low %v19111_v29, %v19116_v62  ;;  %v14120_v20 = vcombine.low %v19121_v30, %v19128_v0  ;;  %v14090_v29 = vld [vmem:[%s20484_s9 + $0x238] sm:$0xff] }
0x2f8e   :  { %v14121_v63 = vcombine.high %v19121_v30, %v19128_v0  ;;  %v14092_v62 = vld [vmem:[%s20484_s9 + $0x278] sm:$0xff] }
0x2f8f   :  { %7836 = vmatpush1.bf16.msra.mxu1 %v13983_v12  ;;  %7879 = vmatpush1.bf16.msra.mxu0 %v13985_v4 }
0x2f90   :  { %7837 = vmatprep.subr.bf16.mxu1 %v13980_v25  ;;  %7880 = vmatprep.subr.bf16.mxu0 %v13982_v6 }
0x2f93   :  { %7838 = vmatpush1.bf16.msra.mxu1 %v13979_v5  ;;  %7881 = vmatpush1.bf16.msra.mxu0 %v13981_v17 }
0x2f94   :  { %7839 = vmatprep.subr.bf16.mxu1 %v13976_v8  ;;  %7882 = vmatprep.subr.bf16.mxu0 %v13978_v49 }
0x2f97   :  { %7840 = vmatpush1.bf16.msra.mxu1 %v13975_v9  ;;  %7883 = vmatpush1.bf16.msra.mxu0 %v13977_v18 }
0x2f98   :  { %15249 = vmatprep.subr.bf16.mxu1 %v16456_v47  ;;  %15271 = vmatprep.subr.bf16.mxu0 %v16457_v44 }
0x2f9a   :  { %13991 = vmatmul.mubr.msk.bf16.vlgmr.msra.gmra.mxu1 %vm207_vm14, %v18698_v48  ;;  %13992 = vmatmul.mubr.msk.bf16.vlgmr.msra.gmra.mxu0 %vm207_vm14, %v18698_v48 }
0x2f9b   :  { %15250 = vmatpush3.bf16.msra.mxu1 %v16458_v26  ;;  %15272 = vmatpush3.bf16.msra.mxu0 %v16459_v27 }
0x2f9c   :  { %15251 = vmatprep.subr.bf16.mxu1 %v16460_v39  ;;  %15273 = vmatprep.subr.bf16.mxu0 %v16461_v38 }
0x2f9f   :  { %15252 = vmatpush3.bf16.msra.mxu1 %v16462_v28  ;;  %15274 = vmatpush3.bf16.msra.mxu0 %v16463_v1 }
0x2fa0   :  { %15253 = vmatprep.subr.bf16.mxu1 %v16464_v31  ;;  %15275 = vmatprep.subr.bf16.mxu0 %v16465_v33 }
0x2fa3   :  { %15254 = vmatpush3.bf16.msra.mxu1 %v16466_v34  ;;  %15276 = vmatpush3.bf16.msra.mxu0 %v16467_v40 }
0x2fa4   :  { %15255 = vmatprep.subr.bf16.mxu1 %v16468_v35  ;;  %15277 = vmatprep.subr.bf16.mxu0 %v16469_v36 }
0x2fa7   :  { %15256 = vmatpush3.bf16.msra.mxu1 %v16470_v3  ;;  %15278 = vmatpush3.bf16.msra.mxu0 %v16471_v15  ;;  %v13974_v15 = vld [vmem:[%s20485_s10 + $0x18] sm:$0xf] }
0x2fa8   :  { %15257 = vmatprep.subr.bf16.mxu1 %v16472_v41  ;;  %15279 = vmatprep.subr.bf16.mxu0 %v16473_v45 }
0x2fab   :  { %15258 = vmatpush3.bf16.msra.mxu1 %v16474_v50  ;;  %15280 = vmatpush3.bf16.msra.mxu0 %v16475_v51  ;;  %v7732_v50 = vrot.slane %v13974_v15, %v17056_v21  ;;  %v7740_v51 = vrot.slane %v13974_v15, %v17062_v24 }
0x2fac   :  { %15259 = vmatprep.subr.bf16.mxu1 %v16476_v60  ;;  %15281 = vmatprep.subr.bf16.mxu0 %v16477_v52  ;;  %v7728_v60 = vrot.slane %v13974_v15, %v17058_v22  ;;  %v7736_v52 = vrot.slane %v13974_v15, %v17060_v23  ;;  %v14089_v15 = vld [vmem:[%s20484_s9 + $0x230] sm:$0xff] }
0x2faf   :  { %15260 = vmatpush3.bf16.msra.mxu1 %v16478_v43  ;;  %15282 = vmatpush3.bf16.msra.mxu0 %v16479_v54 }
0x2fb0   :  { %15261 = vmatprep.subr.bf16.mxu1 %v16480_v37  ;;  %15283 = vmatprep.subr.bf16.mxu0 %v16481_v32 }
0x2fb3   :  { %15262 = vmatpush3.bf16.msra.mxu1 %v16482_v14  ;;  %15284 = vmatpush3.bf16.msra.mxu0 %v16483_v57 }
0x2fb4   :  { %15263 = vmatprep.subr.bf16.mxu1 %v16484_v59  ;;  %15285 = vmatprep.subr.bf16.mxu0 %v16485_v46 }
0x2fb7   :  { %15264 = vmatpush3.bf16.msra.mxu1 %v16486_v7  ;;  %15286 = vmatpush3.bf16.msra.mxu0 %v16487_v42 }
0x2fb8   :  { %8389 = vmatprep.subr.bf16.mxu1 %v14119_v10  ;;  %8432 = vmatprep.subr.bf16.mxu0 %v14121_v63 }
0x302a   :  { %v15177_v11 = vpop.f32.mrf.mxu1  ;;  %v15199_v12 = vpop.f32.mrf.mxu0 }
0x302c   :  { %v15178_v4 = vpop.f32.mrf.mxu1  ;;  %v15200_v25 = vpop.f32.mrf.mxu0 }
0x302d   :  { %v15179_v6 = vadd.f32 %v15178_v4, %v15177_v11  ;;  %v15201_v53 = vadd.f32 %v15200_v25, %v15199_v12 }
0x302e   :  { %v15180_v61 = vpop.f32.mrf.mxu1  ;;  %v15202_v13 = vpop.f32.mrf.mxu0 }
0x302f   :  { %v7427_v16 = vadd.f32 %v15201_v53, %v15179_v6  ;;  %v14097_v6 = vld [vmem:[%s20484_s9 + $0x330] sm:$0xff] }
0x3030   :  { %v15181_v5 = vpop.f32.mrf.mxu1  ;;  %v15203_v17 = vpop.f32.mrf.mxu0  ;;  %v14099_v53 = vld [vmem:[%s20484_s9 + $0x370] sm:$0xff] }
0x3031   :  { %v15182_v8 = vadd.f32 %v15181_v5, %v15180_v61  ;;  %v15204_v49 = vadd.f32 %v15203_v17, %v15202_v13  ;;  %v14098_v17 = vld [vmem:[%s20484_s9 + $0x338] sm:$0xff] }
0x3033   :  { %v7430_v9 = vadd.f32 %v15204_v49, %v15182_v8  ;;  %v14100_v8 = vld [vmem:[%s20484_s9 + $0x378] sm:$0xff] }
0x304a   :  { %v15221_v18 = vpop.f32.mrf.mxu1  ;;  %v15243_v47 = vpop.f32.mrf.mxu0 }
0x304c   :  { %v15222_v44 = vpop.f32.mrf.mxu1  ;;  %v15244_v26 = vpop.f32.mrf.mxu0 }
0x304d   :  { %v15223_v27 = vadd.f32 %v15222_v44, %v15221_v18  ;;  %v15245_v39 = vadd.f32 %v15244_v26, %v15243_v47 }
0x304e   :  { %v15224_v38 = vpop.f32.mrf.mxu1  ;;  %v15246_v28 = vpop.f32.mrf.mxu0 }
0x304f   :  { %v7660_v1 = vadd.f32 %v15223_v27, %v7427_v16  ;;  %v14115_v27 = vcombine.high %v14097_v6, %v14099_v53 }
0x3050   :  { %v15225_v31 = vpop.f32.mrf.mxu1  ;;  %v15247_v33 = vpop.f32.mrf.mxu0 }
0x3051   :  { %v19136_v34 = vadd.f32 %v15245_v39, %v7660_v1  ;;  %v15226_v40 = vadd.f32 %v15225_v31, %v15224_v38  ;;  %v15248_v36 = vadd.f32 %v15247_v33, %v15246_v28  ;;  %v14117_v39 = vcombine.high %v14098_v17, %v14100_v8  ;;  %v14093_v38 = vld [vmem:[%s20484_s9 + $0x2b0] sm:$0xff]  ;;  %v14094_v1 = vld [vmem:[%s20484_s9 + $0x2b8] sm:$0xff] }
0x3052   :  { %v14095_v28 = vld [vmem:[%s20484_s9 + $0x2f0] sm:$0xff]  ;;  %v14096_v31 = vld [vmem:[%s20484_s9 + $0x2f8] sm:$0xff]  ;;  %v14114_v33 = vcombine.low %v14097_v6, %v14099_v53 }
0x3053   :  { %v7663_v35 = vadd.f32 %v15226_v40, %v7430_v9  ;;  %v14116_v40 = vcombine.low %v14098_v17, %v14100_v8  ;;  %v14110_v30 = vcombine.low %v14093_v38, %v14095_v28  ;;  %v14112_v0 = vcombine.low %v14094_v1, %v14096_v31  ;;  %v16508_v6 = vld [vmem:[%s20486_s11 + $0x750] sm:$0xff]   ;;  %v16514_v17 = vld [vmem:[%s20486_s11 + $0x708] sm:$0xff]  }
0x3054   :  { %v16509_v53 = vld [vmem:[%s20486_s11 + $0x7d0] sm:$0xff]   ;;  %v16515_v8 = vld [vmem:[%s20486_s11 + $0x788] sm:$0xff]  }
0x3055   :  { %v19138_v3 = vadd.f32 %v15248_v36, %v7663_v35  ;;  %v14111_v35 = vcombine.high %v14093_v38, %v14095_v28  ;;  %v14113_v36 = vcombine.high %v14094_v1, %v14096_v31 }
0x305a   :  { %v7859_v41 = vpop.f32.mrf.mxu1  ;;  %v7902_v45 = vpop.f32.mrf.mxu0 }
0x305b   :  { %v7860_v7 = vadd.f32 %v7859_v41, %v7728_v60  ;;  %v7903_v42 = vadd.f32 %v7902_v45, %v7736_v52  ;;  %v14091_v41 = vld [vmem:[%s20484_s9 + $0x270] sm:$0xff] }
0x305c   :  { %v7861_v43 = vpop.f32.mrf.mxu1  ;;  %v7904_v54 = vpop.f32.mrf.mxu0  ;;  %v14106_v45 = vcombine.low %v14089_v15, %v14091_v41 }
0x305d   :  { %v7862_v14 = vadd.f32 %v7861_v43, %v7732_v50  ;;  %v7905_v57 = vadd.f32 %v7904_v54, %v7740_v51  ;;  %v7911_v49 = vmax.f32 %v7860_v7, 0.0  ;;  %v7913_v9 = vmax.f32 %v7903_v42, 0.0  ;;  %v16491_v43 = vld [vmem:[%s20486_s11 + $0x7b8] sm:$0xff]   ;;  %v16492_v54 = vld [vmem:[%s20486_s11 + $0x770] sm:$0xff]   ;;  %v16500_v7 = vld [vmem:[%s20486_s11 + $0x760] sm:$0xff]  }
0x305e   :  { %v7863_v37 = vpop.f32.mrf.mxu1  ;;  %v7906_v32 = vpop.f32.mrf.mxu0  ;;  %v16501_v42 = vld [vmem:[%s20486_s11 + $0x7e0] sm:$0xff]  }
0x305f   :  { %v7864_v59 = vadd.f32 %v7863_v37, %v7728_v60  ;;  %v7907_v46 = vadd.f32 %v7906_v32, %v7736_v52  ;;  %v7912_v61 = vmax.f32 %v7862_v14, 0.0  ;;  %v7914_v13 = vmax.f32 %v7905_v57, 0.0  ;;  %v16489_v60 = vld [vmem:[%s20486_s11 + $0x7f8] sm:$0xff]   ;;  %v16493_v37 = vld [vmem:[%s20486_s11 + $0x7f0] sm:$0xff]   ;;  %v16497_v57 = vld [vmem:[%s20486_s11 + $0x7e8] sm:$0xff]  }
0x3060   :  { %v7865_v10 = vpop.f32.mrf.mxu1  ;;  %v7908_v63 = vpop.f32.mrf.mxu0  ;;  %v16490_v52 = vld [vmem:[%s20486_s11 + $0x738] sm:$0xff]   ;;  %v16494_v32 = vld [vmem:[%s20486_s11 + $0x730] sm:$0xff]  }
0x3061   :  { %v7866_v11 = vadd.f32 %v7865_v10, %v7732_v50  ;;  %v7909_v12 = vadd.f32 %v7908_v63, %v7740_v51  ;;  %v7915_v4 = vmax.f32 %v7864_v59, 0.0  ;;  %v7917_v25 = vmax.f32 %v7907_v46, 0.0  ;;  %v16488_v51 = vld [vmem:[%s20486_s11 + $0x778] sm:$0xff]   ;;  %v16495_v14 = vld [vmem:[%s20486_s11 + $0x7b0] sm:$0xff]   ;;  %v16498_v59 = vld [vmem:[%s20486_s11 + $0x728] sm:$0xff]  }
0x3062   :  { %v14108_v50 = vcombine.low %v14090_v29, %v14092_v62  ;;  %v16499_v46 = vld [vmem:[%s20486_s11 + $0x7a8] sm:$0xff]   ;;  %v16502_v10 = vld [vmem:[%s20486_s11 + $0x720] sm:$0xff]  }
0x3063   :  { %v7916_v16 = vmax.f32 %v7866_v11, 0.0  ;;  %v7918_v5 = vmax.f32 %v7909_v12, 0.0  ;;  %v7919_v44 = vpack.c.bf16 %v7915_v4, %v7911_v49  ;;  %v7921_v26 = vpack.c.bf16 %v7917_v25, %v7913_v9  ;;  %v16503_v63 = vld [vmem:[%s20486_s11 + $0x7a0] sm:$0xff]   ;;  %v16504_v11 = vld [vmem:[%s20486_s11 + $0x758] sm:$0xff]  }
0x3064   :  { %v16505_v12 = vld [vmem:[%s20486_s11 + $0x7d8] sm:$0xff]   ;;  %v16516_v49 = vld [vmem:[%s20486_s11 + $0x740] sm:$0xff]  }
0x3065   :  { %v7920_v18 = vpack.c.bf16 %v7916_v16, %v7912_v61  ;;  %v7922_v47 = vpack.c.bf16 %v7918_v5, %v7914_v13  ;;  %v16506_v4 = vld [vmem:[%s20486_s11 + $0x718] sm:$0xff]   ;;  %v16510_v61 = vld [vmem:[%s20486_s11 + $0x710] sm:$0xff]   ;;  %v16512_v16 = vld [vmem:[%s20486_s11 + $0x748] sm:$0xff]  }
0x3066   :  { %v16507_v25 = vld [vmem:[%s20486_s11 + $0x798] sm:$0xff]   ;;  %v16511_v13 = vld [vmem:[%s20486_s11 + $0x790] sm:$0xff]   ;;  %v16513_v5 = vld [vmem:[%s20486_s11 + $0x7c8] sm:$0xff]  }
0x3067   :  { %8211 = vmatprep.mubr.bf16.mxu1 %v7920_v18  ;;  %8252 = vmatprep.mubr.bf16.mxu0 %v7922_v47  ;;  %v16517_v9 = vld [vmem:[%s20486_s11 + $0x7c0] sm:$0xff]  }
0x3068   :  { %8212 = vmatmul.mubr.bf16.vlgmr.msra.gmra.mxu1 %v7919_v44  ;;  %8253 = vmatmul.mubr.bf16.vlgmr.msra.gmra.mxu0 %v7921_v26  ;;  %v16518_v18 = vld [vmem:[%s20486_s11 + $0x700] sm:$0xff]  }
0x3069   :  { %8390 = vmatpush1.bf16.msra.mxu1 %v14118_v19  ;;  %8433 = vmatpush1.bf16.msra.mxu0 %v14120_v20  ;;  %v14107_v19 = vcombine.high %v14089_v15, %v14091_v41  ;;  %v14109_v20 = vcombine.high %v14090_v29, %v14092_v62  ;;  %v16519_v47 = vld [vmem:[%s20486_s11 + $0x780] sm:$0xff]  }
0x306a   :  { %8391 = vmatprep.subr.bf16.mxu1 %v14115_v27  ;;  %8434 = vmatprep.subr.bf16.mxu0 %v14117_v39 }
0x306b   :  { %8413 = vmatprep.mubr.bf16.mxu1 %v16906_v2  ;;  %8456 = vmatprep.mubr.bf16.mxu0 %v16906_v2 }
0x306d   :  { %8392 = vmatpush1.bf16.msra.mxu1 %v14114_v33  ;;  %8435 = vmatpush1.bf16.msra.mxu0 %v14116_v40 }
0x306e   :  { %8393 = vmatprep.subr.bf16.mxu1 %v14111_v35  ;;  %8436 = vmatprep.subr.bf16.mxu0 %v14113_v36 }
0x3071   :  { %8394 = vmatpush1.bf16.msra.mxu1 %v14110_v30  ;;  %8437 = vmatpush1.bf16.msra.mxu0 %v14112_v0  ;;  %v14105_v30 = vld [vmem:[%s20485_s10 + $0x1c] sm:$0xf] }
0x3072   :  { %8395 = vmatprep.subr.bf16.mxu1 %v14107_v19  ;;  %8438 = vmatprep.subr.bf16.mxu0 %v14109_v20  ;;  %v8288_v20 = vrot.slane %v14105_v30, %v17056_v21 }
0x3075   :  { %8396 = vmatpush1.bf16.msra.mxu1 %v14106_v45  ;;  %8439 = vmatpush1.bf16.msra.mxu0 %v14108_v50  ;;  %v8296_v45 = vrot.slane %v14105_v30, %v17062_v24  ;;  %v8284_v50 = vrot.slane %v14105_v30, %v17058_v22 }
0x3076   :  { %15293 = vmatprep.subr.bf16.mxu1 %v16488_v51  ;;  %15315 = vmatprep.subr.bf16.mxu0 %v16489_v60  ;;  %v8292_v51 = vrot.slane %v14105_v30, %v17060_v23 }
0x3078   :  { %14122 = vmatmul.mubr.msk.bf16.vlgmr.msra.gmra.mxu1 %vm207_vm14, %v18698_v48  ;;  %14123 = vmatmul.mubr.msk.bf16.vlgmr.msra.gmra.mxu0 %vm207_vm14, %v18698_v48  ;;  %v16496_v48 = vld [vmem:[%s20486_s11 + $0x768] sm:$0xff]  }
0x3079   :  { %15294 = vmatpush3.bf16.msra.mxu1 %v16490_v52  ;;  %15316 = vmatpush3.bf16.msra.mxu0 %v16491_v43 }
0x307a   :  { %15295 = vmatprep.subr.bf16.mxu1 %v16492_v54  ;;  %15317 = vmatprep.subr.bf16.mxu0 %v16493_v37 }
0x307d   :  { %15296 = vmatpush3.bf16.msra.mxu1 %v16494_v32  ;;  %15318 = vmatpush3.bf16.msra.mxu0 %v16495_v14 }
0x307e   :  { %15297 = vmatprep.subr.bf16.mxu1 %v16496_v48  ;;  %15319 = vmatprep.subr.bf16.mxu0 %v16497_v57 }
0x3081   :  { %15298 = vmatpush3.bf16.msra.mxu1 %v16498_v59  ;;  %15320 = vmatpush3.bf16.msra.mxu0 %v16499_v46 }
0x3082   :  { %15299 = vmatprep.subr.bf16.mxu1 %v16500_v7  ;;  %15321 = vmatprep.subr.bf16.mxu0 %v16501_v42 }
0x3085   :  { %15300 = vmatpush3.bf16.msra.mxu1 %v16502_v10  ;;  %15322 = vmatpush3.bf16.msra.mxu0 %v16503_v63 }
0x3086   :  { %15301 = vmatprep.subr.bf16.mxu1 %v16504_v11  ;;  %15323 = vmatprep.subr.bf16.mxu0 %v16505_v12 }
0x3089   :  { %15302 = vmatpush3.bf16.msra.mxu1 %v16506_v4  ;;  %15324 = vmatpush3.bf16.msra.mxu0 %v16507_v25 }
0x308a   :  { %15303 = vmatprep.subr.bf16.mxu1 %v16508_v6  ;;  %15325 = vmatprep.subr.bf16.mxu0 %v16509_v53 }
0x308d   :  { %15304 = vmatpush3.bf16.msra.mxu1 %v16510_v61  ;;  %15326 = vmatpush3.bf16.msra.mxu0 %v16511_v13 }
0x308e   :  { %15305 = vmatprep.subr.bf16.mxu1 %v16512_v16  ;;  %15327 = vmatprep.subr.bf16.mxu0 %v16513_v5 }
0x3091   :  { %15306 = vmatpush3.bf16.msra.mxu1 %v16514_v17  ;;  %15328 = vmatpush3.bf16.msra.mxu0 %v16515_v8 }
0x3092   :  { %15307 = vmatprep.subr.bf16.mxu1 %v16516_v49  ;;  %15329 = vmatprep.subr.bf16.mxu0 %v16517_v9 }
0x3095   :  { %15308 = vmatpush3.bf16.msra.mxu1 %v16518_v18  ;;  %15330 = vmatpush3.bf16.msra.mxu0 %v16519_v47 }
0x3096   :  { %15995 = vmatprep.subr.bf16.mxu0 %v16907_v58 }
0x3128   :  { %v15265_v44 = vpop.f32.mrf.mxu1  ;;  %v15287_v26 = vpop.f32.mrf.mxu0 }
0x312a   :  { %v15266_v27 = vpop.f32.mrf.mxu1  ;;  %v15288_v39 = vpop.f32.mrf.mxu0 }
0x312b   :  { %v15267_v38 = vadd.f32 %v15266_v27, %v15265_v44  ;;  %v15289_v28 = vadd.f32 %v15288_v39, %v15287_v26 }
0x312c   :  { %v15268_v1 = vpop.f32.mrf.mxu1  ;;  %v15290_v31 = vpop.f32.mrf.mxu0 }
0x312d   :  { %v8255_v33 = vadd.f32 %v15289_v28, %v15267_v38  ;;  %v14221_v38 = vld [vmem:[%s20487_s12 + $0x1] ss:$0 sm:$0xff] }
0x312e   :  { %v15269_v40 = vpop.f32.mrf.mxu1  ;;  %v15291_v35 = vpop.f32.mrf.mxu0 }
0x312f   :  { %v8261_v36 = vadd.f32 %v8255_v33, %v19136_v34  ;;  %v15270_v15 = vadd.f32 %v15269_v40, %v15268_v1  ;;  %v15292_v41 = vadd.f32 %v15291_v35, %v15290_v31 }
0x3131   :  { %v8258_v29 = vadd.f32 %v15292_v41, %v15270_v15 }
0x3133   :  { %v8262_v62 = vadd.f32 %v8258_v29, %v19138_v3 }
0x3138   :  { %v8415_v0 = vpop.f32.mrf.mxu1  ;;  %v8458_v19 = vpop.f32.mrf.mxu0 }
0x3139   :  { %v8416_v14 = vadd.f32 %v8415_v0, %v8284_v50  ;;  %v8459_v48 = vadd.f32 %v8458_v19, %v8292_v51 }
0x313a   :  { %v8417_v34 = vpop.f32.mrf.mxu1  ;;  %v8460_v60 = vpop.f32.mrf.mxu0 }
0x313b   :  { %v8418_v54 = vadd.f32 %v8417_v34, %v8288_v20  ;;  %v8461_v3 = vadd.f32 %v8460_v60, %v8296_v45  ;;  %v8467_v25 = vmax.f32 %v8416_v14, 0.0  ;;  %v8469_v6 = vmax.f32 %v8459_v48, 0.0  ;;  %v16531_v14 = vld [vmem:[%s20478_s3 + $0x84] ss:$8 sps:$4 sm:$0xff]  }
0x313c   :  { %v8419_v52 = vpop.f32.mrf.mxu1  ;;  %v8462_v43 = vpop.f32.mrf.mxu0 }
0x313d   :  { %v8420_v37 = vadd.f32 %v8419_v52, %v8284_v50  ;;  %v8463_v32 = vadd.f32 %v8462_v43, %v8292_v51  ;;  %v8468_v63 = vmax.f32 %v8418_v54, 0.0  ;;  %v8470_v11 = vmax.f32 %v8461_v3, 0.0  ;;  %v16520_v52 = vld [vmem:[%s20478_s3 + $0xb0] ss:$8 sps:$4 sm:$0xff]   ;;  %v16525_v43 = vld [vmem:[%s20478_s3 + $0xa4] ss:$8 sps:$4 sm:$0xff]  }
0x313e   :  { %v8421_v57 = vpop.f32.mrf.mxu1  ;;  %v8464_v59 = vpop.f32.mrf.mxu0  ;;  %v16523_v54 = vld [vmem:[%s20478_s3 + $0xa0] ss:$8 sps:$4 sm:$0xff]   ;;  %v16528_v3 = vld [vmem:[%s20478_s3 + $0x94] ss:$8 sps:$4 sm:$0xff]  }
0x313f   :  { %v8422_v46 = vadd.f32 %v8421_v57, %v8288_v20  ;;  %v8465_v7 = vadd.f32 %v8464_v59, %v8296_v45  ;;  %v8471_v42 = vmax.f32 %v8420_v37, 0.0  ;;  %v8473_v10 = vmax.f32 %v8463_v32, 0.0  ;;  %v16526_v37 = vld [vmem:[%s20478_s3 + $0x90] ss:$8 sps:$4 sm:$0xff]   ;;  %v16529_v32 = vld [vmem:[%s20478_s3 + $0x80] ss:$8 sps:$4 sm:$0xff]  }
0x3141   :  { %v8472_v12 = vmax.f32 %v8422_v46, 0.0  ;;  %v8474_v4 = vmax.f32 %v8465_v7, 0.0  ;;  %v8475_v13 = vpack.c.bf16 %v8471_v42, %v8467_v25  ;;  %v8477_v16 = vpack.c.bf16 %v8473_v10, %v8469_v6  ;;  %v14225_v6 = vld [vmem:[%s20489_s14 + $0x1] ss:$0 sm:$0xff] }
0x3143   :  { %v8476_v53 = vpack.c.bf16 %v8472_v12, %v8468_v63  ;;  %v8478_v61 = vpack.c.bf16 %v8474_v4, %v8470_v11  ;;  %v14224_v11 = vld [vmem:[%s20488_s13 + $0x1] ss:$0 sm:$0xff] }
0x3145   :  { %8767 = vmatprep.mubr.bf16.mxu1 %v8476_v53  ;;  %8808 = vmatprep.mubr.bf16.mxu0 %v8478_v61 }
0x3146   :  { %8768 = vmatmul.mubr.bf16.vlgmr.msra.gmra.mxu1 %v8475_v13  ;;  %8809 = vmatmul.mubr.bf16.vlgmr.msra.gmra.mxu0 %v8477_v16 }
0x3147   :  { %8975 = vmatprep.mubr.bf16.mxu1 %v16906_v2  ;;  %15997 = vmatprep.mubr.msk.bf16.mxu0 %vm16908_vm1, %v16907_v58 }
0x3206   :  { %v15309_v5 = vpop.f32.mrf.mxu1  ;;  %v15331_v17 = vpop.f32.mrf.mxu0 }
0x3208   :  { %v15310_v8 = vpop.f32.mrf.mxu1  ;;  %v15332_v49 = vpop.f32.mrf.mxu0 }
0x3209   :  { %v15311_v9 = vadd.f32 %v15310_v8, %v15309_v5  ;;  %v15333_v18 = vadd.f32 %v15332_v49, %v15331_v17  ;;  %v14234_v5 = vld [vmem:[%s20479_s4 + $0x4] sm:$0x3]  ;;  %s20555_s4 = smov 120  }
0x320a   :  { %v15312_v47 = vpop.f32.mrf.mxu1  ;;  %v15334_v44 = vpop.f32.mrf.mxu0  ;;  %v8893_v17 = vrot.slane %v14234_v5, %v17058_v22 }
0x320b   :  { %v8811_v26 = vadd.f32 %v15333_v18, %v15311_v9 }
0x320c   :  { %v15313_v27 = vpop.f32.mrf.mxu1  ;;  %v15335_v39 = vpop.f32.mrf.mxu0 }
0x320d   :  { %v8817_v28 = vadd.f32 %v8811_v26, %v8261_v36  ;;  %v15314_v1 = vadd.f32 %v15313_v27, %v15312_v47  ;;  %v15336_v31 = vadd.f32 %v15335_v39, %v15334_v44  ;;  %v8897_v27 = vrot.slane %v14234_v5, %v17056_v21 }
0x320f   :  { %v8814_v33 = vadd.f32 %v15336_v31, %v15314_v1  ;;  %v8827_v40 = vadd.f32 %v14221_v38, %v8817_v28 }
0x3211   :  { %v8818_v35 = vadd.f32 %v8814_v33, %v8262_v62  ;;  %v8829_v15 = vadd.f32 %v8827_v40, %v18692_v56 }
0x3213   :  { %v8835_v41 = vsel %vm207_vm14, %v8829_v15, 0.0  ;;  %v8828_v29 = vadd.f32 %v14221_v38, %v8818_v35 }
0x3214   :  { %8836 = vadd.xlane.f32.xlu1 %v8835_v41 }
0x3215   :  { %v8830_v30 = vadd.f32 %v8828_v29, %v18694_v55  ;;  %v16522_v55 = vld [vmem:[%s20478_s3 + $0xb4] ss:$8 sps:$4 sm:$0xff]  }
0x3216   :  { %8951 = vmatprep.subr.bf16.mxu1 %v16522_v55 }
0x3217   :  { %v8838_v0 = vsel %vm207_vm14, %v8830_v30, 0.0  ;;  %8952 = vmatpush1.bf16.msra.mxu1 %v16520_v52 }
0x3218   :  { %8839 = vadd.xlane.f32.xlu0 %v8838_v0  ;;  %8953 = vmatprep.subr.bf16.mxu1 %v16525_v43 }
0x321b   :  { %8954 = vmatpush1.bf16.msra.mxu1 %v16523_v54 }
0x321c   :  { %8955 = vmatprep.subr.bf16.mxu1 %v16528_v3 }
0x321f   :  { %8956 = vmatpush1.bf16.msra.mxu1 %v16526_v37 }
0x3220   :  { %8957 = vmatprep.subr.bf16.mxu1 %v16531_v14 }
0x3223   :  { %8958 = vmatpush1.bf16.msra.mxu1 %v16529_v32 }
0x3224   :  { %16001 = vmatprep.subr.bf16.mxu1 %v16907_v58 }
0x329d   :  { %v8837_v19 = vpop.xlane.xlu1 %8836 }
0x329e   :  { %v8841_v20 = vmul.f32 0.015625, %v8837_v19 }
0x32a0   :  { %v8843_v45 = vsub.f32 %v8829_v15, %v8841_v20 }
0x32a1   :  { %v8840_v36 = vpop.xlane.xlu0 %8839 }
0x32a2   :  { %v8842_v50 = vmul.f32 0.015625, %v8840_v36  ;;  %v8845_v51 = vmul.f32 %v8843_v45, %v8843_v45 }
0x32a4   :  { %v8844_v34 = vsub.f32 %v8830_v30, %v8842_v50  ;;  %v8847_v62 = vsel %vm207_vm14, %v8845_v51, 0.0 }
0x32a5   :  { %8848 = vadd.xlane.f32.xlu1 %v8847_v62 }
0x32a6   :  { %v8846_v56 = vmul.f32 %v8844_v34, %v8844_v34 }
0x32a8   :  { %v8850_v60 = vsel %vm207_vm14, %v8846_v56, 0.0 }
0x32a9   :  { %8851 = vadd.xlane.f32.xlu0 %v8850_v60 }
0x332e   :  { %v8849_v48 = vpop.xlane.xlu1 %8848 }
0x332f   :  { %v8853_v57 = vmul.f32 0.015625, %v8849_v48 }
0x3331   :  { %v8855_v59 = vadd.f32 1e-05, %v8853_v57 }
0x3332   :  { %v8852_v46 = vpop.xlane.xlu0 %8851 }
0x3333   :  { %16808 = vrsqrt.f32 %v8855_v59  ;;  %v8854_v7 = vmul.f32 0.015625, %v8852_v46 }
0x3335   :  { %v8856_v42 = vadd.f32 1e-05, %v8854_v7 }
0x3337   :  { %16810 = vrsqrt.f32 %v8856_v42 }
0x3340   :  { %v16809_v10 = vpop.eup %16808 }
0x3341   :  { %v8859_v63 = vmul.f32 %v16809_v10, %v8843_v45 }
0x3343   :  { %v8867_v4 = vmul.f32 %v14224_v11, %v8859_v63 }
0x3344   :  { %v16811_v12 = vpop.eup %16810 }
0x3345   :  { %v8860_v25 = vmul.f32 %v16811_v12, %v8844_v34  ;;  %v19344_v61 = vadd.f32 %v14225_v6, %v8867_v4 }
0x3347   :  { %v8868_v53 = vmul.f32 %v14224_v11, %v8860_v25 }
0x3349   :  { %v19346_v13 = vadd.f32 %v14225_v6, %v8868_v53 }
0x334b   :  { %v8877_v16 = vpack.c.bf16 %v19346_v13, %v19344_v61 }
0x334d   :  { %14243 = vmatmul.mubr.msk.bf16.vlgmr.msra.gmra.mxu1 %vm207_vm14, %v8877_v16 }
0x334e   :  { %16003 = vmatprep.mubr.msk.bf16.mxu1 %vm16908_vm1, %v16907_v58 }
0x340d   :  { %v8977_v8 = vpop.f32.mrf.mxu1 }
0x340e   :  { %v8978_v49 = vadd.f32 %v8977_v8, %v8893_v17 }
0x340f   :  { %v8979_v9 = vpop.f32.mrf.mxu1 }
0x3410   :  { %v19357_v18 = vpack.c.bf16 %v8978_v49, %v8978_v49  ;;  %v8980_v38 = vadd.f32 %v8979_v9, %v8897_v27 }
0x3411   :  { %v8981_v47 = vpop.f32.mrf.mxu1 }
0x3412   :  { %v8982_v44 = vadd.f32 %v8981_v47, %v8893_v17  ;;  %8998 = vrot.lane.b32.xlu1 %v19357_v18, %s20554_s21  ;;  %v19368_v33 = vpack.c.bf16 %v8980_v38, %v8980_v38 }
0x3413   :  { %v8983_v1 = vpop.f32.mrf.mxu1 }
0x3414   :  { %v19361_v26 = vpack.c.bf16 %v8982_v44, %v8982_v44  ;;  %v8984_v40 = vadd.f32 %v8983_v1, %v8897_v27  ;;  %v9122_v41 = vsel %vm390_vm2, %v19368_v33, 0 }
0x3416   :  { %9046 = vrot.lane.b32.xlu0 %v19361_v26, %s20554_s21  ;;  %v19372_v15 = vpack.c.bf16 %v8984_v40, %v8984_v40 }
0x3418   :  { %v9168_v29 = vsel %vm390_vm2, %v19372_v15, 0 }
0x3484   :  { %v8999_v39 = vpop.permute.xlu1 %8998 }
0x3485   :  { %v9004_v28 = vsel %vm268_vm3, %v8999_v39, 0 }
0x3486   :  { %15996 = vmatpush3.bf16.xpose.msra.mxu0 %v9004_v28 }
0x3487   :  { %16007 = vmatprep.subr.bf16.mxu0 %v16907_v58 }
0x3488   :  { %v9047_v31 = vpop.permute.xlu0 %9046 }
0x3489   :  { %v9052_v35 = vsel %vm268_vm3, %v9047_v31, 0 }
0x348a   :  { %16002 = vmatpush3.bf16.xpose.msra.mxu1 %v9052_v35 }
0x348b   :  { %16013 = vmatprep.subr.bf16.mxu1 %v16907_v58 }
0x348d   :  { %15998 = vmatmul.mubr.msk.bf16.vlgmr.msra.gmra.mxu0 %vm268_vm3, %v19357_v18 }
0x348e   :  { %16008 = vmatpush3.bf16.msra.mxu0 %v9122_v41  ;;  %16009 = vmatprep.mubr.msk.bf16.mxu0 %vm16908_vm1, %v16907_v58 }
0x348f   :  { %16019 = vmatprep.subr.bf16.mxu0 %v16907_v58 }
0x3491   :  { %16004 = vmatmul.mubr.msk.bf16.vlgmr.msra.gmra.mxu1 %vm268_vm3, %v19361_v26 }
0x3492   :  { %16014 = vmatpush3.bf16.msra.mxu1 %v9168_v29  ;;  %16015 = vmatprep.mubr.msk.bf16.mxu1 %vm16908_vm1, %v16907_v58 }
0x3493   :  { %16025 = vmatprep.subr.bf16.mxu1 %v16907_v58 }
0x354d   :  { %v9040_v30 = vpop.f32.mrf.mxu0 }
0x354e   :  { %v9094_v0 = vsel %vm268_vm3, %v9040_v30, -inf }
0x354f   :  { %9095 = vmax.xlane.f32.xlu1 %v9094_v0  ;;  %v15999_v19 = vpop.f32.mrf.mxu0 }
0x3551   :  { %v9043_v20 = vpop.f32.mrf.mxu0  ;;  %v9088_v45 = vpop.f32.mrf.mxu1 }
0x3552   :  { %v9097_v36 = vsel %vm268_vm3, %v9088_v45, -inf }
0x3553   :  { %9098 = vmax.xlane.f32.xlu0 %v9097_v36  ;;  %v16000_v50 = vpop.f32.mrf.mxu0  ;;  %v16005_v51 = vpop.f32.mrf.mxu1 }
0x3555   :  { %v9091_v34 = vpop.f32.mrf.mxu1 }
0x3557   :  { %v16006_v62 = vpop.f32.mrf.mxu1 }
0x3560   :  { %9214 = vrot.lane.b32.xlu1 %v19357_v18, %s20553_s24 }
0x35d8   :  { %v9096_v56 = vpop.xlane.xlu1 %9095 }
0x35d9   :  { %v9100_v60 = vsub.f32 %v9040_v30, %v9096_v56 }
0x35db   :  { %v9102_v55 = vmul.f32 1.442695, %v9100_v60 }
0x35dc   :  { %v9099_v52 = vpop.xlane.xlu0 %9098  ;;  %v9215_v48 = vpop.permute.xlu1 %9214 }
0x35dd   :  { %16812 = vpow2.f32 %v9102_v55  ;;  %v9101_v43 = vsub.f32 %v9088_v45, %v9099_v52  ;;  %v9220_v63 = vsel %vm268_vm3, %v9215_v48, 0 }
0x35df   :  { %v9104_v54 = vmul.f32 1.442695, %v9101_v43 }
0x35e1   :  { %16814 = vpow2.f32 %v9104_v54 }
0x35ea   :  { %v16813_v3 = vpop.eup %16812 }
0x35eb   :  { %v9106_v37 = vsel %vm268_vm3, %v16813_v3, 0.0 }
0x35ec   :  { %9107 = vadd.xlane.f32.xlu1 %v9106_v37 }
0x35ee   :  { %v16815_v32 = vpop.eup %16814 }
0x35ef   :  { %v9109_v14 = vsel %vm268_vm3, %v16815_v32, 0.0 }
0x35f0   :  { %9110 = vadd.xlane.f32.xlu0 %v9109_v14 }
0x35fd   :  { %9212 = vrot.lane.b32.xlu1 %v19357_v18, %s20555_s4 }
0x3601   :  { %9262 = vrot.lane.b32.xlu1 %v19361_v26, %s20555_s4 }
0x3606   :  { %9264 = vrot.lane.b32.xlu0 %v19361_v26, %s20553_s24 }
0x3675   :  { %v9108_v57 = vpop.xlane.xlu1 %9107 }
0x3676   :  { %16816 = vrcp.f32 %v9108_v57 }
0x3679   :  { %v9111_v59 = vpop.xlane.xlu0 %9110  ;;  %v9213_v6 = vpop.permute.xlu1 %9212 }
0x367a   :  { %16818 = vrcp.f32 %v9111_v59 }
0x367d   :  { %v9265_v12 = vpop.permute.xlu0 %9264  ;;  %v9263_v53 = vpop.permute.xlu1 %9262 }
0x367e   :  { %v9270_v25 = vsel %vm268_vm3, %v9265_v12, 0 }
0x3683   :  { %v16817_v46 = vpop.eup %16816 }
0x3684   :  { %v9113_v7 = vmul.f32 %v16817_v46, %v16813_v3 }
0x3686   :  { %v9116_v42 = vpack.c.bf16 %v9113_v7, %v9113_v7 }
0x3687   :  { %v16819_v10 = vpop.eup %16818 }
0x3688   :  { %v9115_v11 = vmul.f32 %v16819_v10, %v16815_v32  ;;  %16010 = vmatmul.mubr.msk.bf16.vlgmr.msra.gmra.mxu0 %vm268_vm3, %v9116_v42 }
0x3689   :  { %16020 = vmatpush3.bf16.xpose.msra.mxu0 %v9220_v63  ;;  %16021 = vmatprep.mubr.msk.bf16.mxu0 %vm16908_vm1, %v16907_v58 }
0x368a   :  { %v9117_v4 = vpack.c.bf16 %v9115_v11, %v9115_v11  ;;  %16031 = vmatprep.subr.bf16.mxu0 %v16907_v58 }
0x368c   :  { %16016 = vmatmul.mubr.msk.bf16.vlgmr.msra.gmra.mxu1 %vm268_vm3, %v9117_v4 }
0x368d   :  { %16026 = vmatpush3.bf16.xpose.msra.mxu1 %v9270_v25  ;;  %16027 = vmatprep.mubr.msk.bf16.mxu1 %vm16908_vm1, %v16907_v58 }
0x368e   :  { %16037 = vmatprep.subr.bf16.mxu1 %v16907_v58 }
0x3690   :  { %16022 = vmatmul.mubr.msk.bf16.vlgmr.msra.gmra.mxu0 %vm268_vm3, %v9213_v6 }
0x3691   :  { %16033 = vmatprep.mubr.msk.bf16.mxu0 %vm16908_vm1, %v16907_v58 }
0x3694   :  { %16028 = vmatmul.mubr.msk.bf16.vlgmr.msra.gmra.mxu1 %vm268_vm3, %v9263_v53 }
0x3695   :  { %16039 = vmatprep.mubr.msk.bf16.mxu1 %vm16908_vm1, %v16907_v58 }
0x3748   :  { %v9158_v16 = vpop.f32.mrf.mxu0 }
0x3749   :  { %9210 = vst.msk [vmem:[#allocation2] sm:$0xff] %vm268_vm3, %v9158_v16 }
0x374a   :  { %v16011_v5 = vpop.f32.mrf.mxu0 }
0x374c   :  { %v9161_v17 = vpop.f32.mrf.mxu0  ;;  %v9204_v8 = vpop.f32.mrf.mxu1 }
0x374d   :  { %9211 = vst.msk [vmem:[#allocation2 + $0x8] sm:$0xff] %vm268_vm3, %v9204_v8 }
0x374e   :  { %v16012_v49 = vpop.f32.mrf.mxu0  ;;  %v16017_v9 = vpop.f32.mrf.mxu1 }
0x3750   :  { %v9207_v47 = vpop.f32.mrf.mxu1  ;;  %v9256_v44 = vpop.f32.mrf.mxu0 }
0x3751   :  { %v9312_v27 = vsel %vm268_vm3, %v9256_v44, -inf }
0x3752   :  { %v16018_v39 = vpop.f32.mrf.mxu1  ;;  %9313 = vmax.xlane.f32.xlu0 %v9312_v27  ;;  %v16023_v38 = vpop.f32.mrf.mxu0 }
0x3754   :  { %v9259_v28 = vpop.f32.mrf.mxu0  ;;  %v9306_v1 = vpop.f32.mrf.mxu1 }
0x3755   :  { %v9315_v31 = vsel %vm268_vm3, %v9306_v1, -inf }
0x3756   :  { %9316 = vmax.xlane.f32.xlu1 %v9315_v31  ;;  %v16024_v40 = vpop.f32.mrf.mxu0  ;;  %v16029_v35 = vpop.f32.mrf.mxu1 }
0x3758   :  { %v9309_v41 = vpop.f32.mrf.mxu1 }
0x375a   :  { %v16030_v29 = vpop.f32.mrf.mxu1 }
0x3767   :  { %9336 = vrot.lane.b32.xlu1 %v19368_v33, %s20555_s4 }
0x376b   :  { %9444 = vrot.lane.b32.xlu1 %v19357_v18, %s20556_s22 }
0x376f   :  { %9494 = vrot.lane.b32.xlu1 %v19361_v26, %s20556_s22 }
0x3773   :  { %9492 = vrot.lane.b32.xlu1 %v19361_v26, %s20542_s19 }
0x37db   :  { %v9314_v30 = vpop.xlane.xlu0 %9313 }
0x37dc   :  { %v9318_v0 = vsub.f32 %v9256_v44, %v9314_v30 }
0x37de   :  { %v9320_v19 = vmul.f32 1.442695, %v9318_v0 }
0x37df   :  { %v9317_v20 = vpop.xlane.xlu1 %9316 }
0x37e0   :  { %16820 = vpow2.f32 %v9320_v19  ;;  %v9319_v45 = vsub.f32 %v9306_v1, %v9317_v20 }
0x37e2   :  { %v9322_v36 = vmul.f32 1.442695, %v9319_v45 }
0x37e3   :  { %v9337_v50 = vpop.permute.xlu1 %9336 }
0x37e4   :  { %16822 = vpow2.f32 %v9322_v36  ;;  %v9342_v51 = vsel %vm390_vm2, %v9337_v50, 0 }
0x37e5   :  { %16032 = vmatpush3.bf16.msra.mxu0 %v9342_v51 }
0x37e6   :  { %16043 = vmatprep.subr.bf16.mxu0 %v16907_v58 }
0x37e7   :  { %v9445_v37 = vpop.permute.xlu1 %9444 }
0x37e8   :  { %v9450_v57 = vsel %vm268_vm3, %v9445_v37, 0 }
0x37eb   :  { %v9495_v46 = vpop.permute.xlu1 %9494 }
0x37ec   :  { %v9500_v42 = vsel %vm268_vm3, %v9495_v46, 0 }
0x37ed   :  { %v16821_v34 = vpop.eup %16820 }
0x37ee   :  { %v9324_v62 = vsel %vm268_vm3, %v16821_v34, 0.0 }
0x37ef   :  { %9325 = vadd.xlane.f32.xlu0 %v9324_v62  ;;  %v9493_v63 = vpop.permute.xlu1 %9492 }
0x37f1   :  { %v16823_v56 = vpop.eup %16822 }
0x37f2   :  { %v9327_v60 = vsel %vm268_vm3, %v16823_v56, 0.0 }
0x37f3   :  { %9328 = vadd.xlane.f32.xlu0 %v9327_v60 }
0x3809   :  { %9384 = vrot.lane.b32.xlu0 %v19372_v15, %s20555_s4 }
0x380d   :  { %9442 = vrot.lane.b32.xlu0 %v19357_v18, %s20542_s19 }
0x3878   :  { %v9326_v55 = vpop.xlane.xlu0 %9325 }
0x3879   :  { %16824 = vrcp.f32 %v9326_v55 }
0x387c   :  { %v9329_v52 = vpop.xlane.xlu0 %9328 }
0x387d   :  { %16826 = vrcp.f32 %v9329_v52 }
0x3880   :  { %v9385_v43 = vpop.permute.xlu0 %9384 }
0x3881   :  { %v9390_v54 = vsel %vm390_vm2, %v9385_v43, 0 }
0x3882   :  { %16038 = vmatpush3.bf16.msra.mxu1 %v9390_v54 }
0x3883   :  { %16049 = vmatprep.subr.bf16.mxu1 %v16907_v58 }
0x3884   :  { %v9443_v10 = vpop.permute.xlu0 %9442 }
0x3886   :  { %v16825_v3 = vpop.eup %16824 }
0x3887   :  { %v9331_v32 = vmul.f32 %v16825_v3, %v16821_v34 }
0x3889   :  { %v9334_v14 = vpack.c.bf16 %v9331_v32, %v9331_v32 }
0x388a   :  { %v16827_v48 = vpop.eup %16826 }
0x388b   :  { %v9333_v59 = vmul.f32 %v16827_v48, %v16823_v56  ;;  %16034 = vmatmul.mubr.msk.bf16.vlgmr.msra.gmra.mxu0 %vm268_vm3, %v9334_v14 }
0x388c   :  { %16044 = vmatpush3.bf16.xpose.msra.mxu0 %v9450_v57  ;;  %16045 = vmatprep.mubr.msk.bf16.mxu0 %vm16908_vm1, %v16907_v58 }
0x388d   :  { %v9335_v7 = vpack.c.bf16 %v9333_v59, %v9333_v59  ;;  %16055 = vmatprep.subr.bf16.mxu0 %v16907_v58 }
0x388f   :  { %16040 = vmatmul.mubr.msk.bf16.vlgmr.msra.gmra.mxu1 %vm268_vm3, %v9335_v7 }
0x3890   :  { %16050 = vmatpush3.bf16.xpose.msra.mxu1 %v9500_v42  ;;  %16051 = vmatprep.mubr.msk.bf16.mxu1 %vm16908_vm1, %v16907_v58 }
0x3891   :  { %16061 = vmatprep.subr.bf16.mxu1 %v16907_v58 }
0x3893   :  { %16046 = vmatmul.mubr.msk.bf16.vlgmr.msra.gmra.mxu0 %vm268_vm3, %v9443_v10 }
0x3894   :  { %16057 = vmatprep.mubr.msk.bf16.mxu0 %vm16908_vm1, %v16907_v58 }
0x3897   :  { %16052 = vmatmul.mubr.msk.bf16.vlgmr.msra.gmra.mxu1 %vm268_vm3, %v9493_v63 }
0x3898   :  { %16063 = vmatprep.mubr.msk.bf16.mxu1 %vm16908_vm1, %v16907_v58 }
0x394b   :  { %v19454_v11 = vpop.f32.mrf.mxu0 }
0x394d   :  { %v16035_v12 = vpop.f32.mrf.mxu0 }
0x394f   :  { %v9381_v4 = vpop.f32.mrf.mxu0  ;;  %v19456_v25 = vpop.f32.mrf.mxu1 }
0x3951   :  { %v16036_v6 = vpop.f32.mrf.mxu0  ;;  %v16041_v53 = vpop.f32.mrf.mxu1 }
0x3953   :  { %v9429_v16 = vpop.f32.mrf.mxu1  ;;  %v9486_v5 = vpop.f32.mrf.mxu0 }
0x3954   :  { %v9542_v17 = vsel %vm268_vm3, %v9486_v5, -inf }
0x3955   :  { %v16042_v8 = vpop.f32.mrf.mxu1  ;;  %9543 = vmax.xlane.f32.xlu0 %v9542_v17  ;;  %v16047_v49 = vpop.f32.mrf.mxu0 }
0x3957   :  { %v9489_v9 = vpop.f32.mrf.mxu0  ;;  %v9536_v47 = vpop.f32.mrf.mxu1 }
0x3958   :  { %v9545_v44 = vsel %vm268_vm3, %v9536_v47, -inf }
0x3959   :  { %9546 = vmax.xlane.f32.xlu1 %v9545_v44  ;;  %v16048_v27 = vpop.f32.mrf.mxu0  ;;  %v16053_v39 = vpop.f32.mrf.mxu1 }
0x395b   :  { %v9539_v38 = vpop.f32.mrf.mxu1 }
0x395d   :  { %v16054_v28 = vpop.f32.mrf.mxu1 }
0x396a   :  { %9566 = vrot.lane.b32.xlu1 %v19368_v33, %s20542_s19 }
0x396e   :  { %9674 = vrot.lane.b32.xlu1 %v19357_v18, %s20543_s1 }
0x3972   :  { %9724 = vrot.lane.b32.xlu1 %v19361_v26, %s20543_s1 }
0x3976   :  { %9722 = vrot.lane.b32.xlu1 %v19361_v26, %s20544_s28 }
0x39de   :  { %v9544_v1 = vpop.xlane.xlu0 %9543 }
0x39df   :  { %v9548_v31 = vsub.f32 %v9486_v5, %v9544_v1 }
0x39e1   :  { %v9550_v40 = vmul.f32 1.442695, %v9548_v31 }
0x39e2   :  { %v9547_v35 = vpop.xlane.xlu1 %9546 }
0x39e3   :  { %16828 = vpow2.f32 %v9550_v40  ;;  %v9549_v41 = vsub.f32 %v9536_v47, %v9547_v35 }
0x39e5   :  { %v9552_v29 = vmul.f32 1.442695, %v9549_v41 }
0x39e6   :  { %v9567_v30 = vpop.permute.xlu1 %9566 }
0x39e7   :  { %16830 = vpow2.f32 %v9552_v29  ;;  %v9572_v0 = vsel %vm390_vm2, %v9567_v30, 0 }
0x39e8   :  { %16056 = vmatpush3.bf16.msra.mxu0 %v9572_v0 }
0x39e9   :  { %16067 = vmatprep.subr.bf16.mxu0 %v16907_v58 }
0x39ea   :  { %v9675_v60 = vpop.permute.xlu1 %9674 }
0x39eb   :  { %v9680_v54 = vsel %vm268_vm3, %v9675_v60, 0 }
0x39ee   :  { %v9725_v37 = vpop.permute.xlu1 %9724 }
0x39ef   :  { %v9730_v14 = vsel %vm268_vm3, %v9725_v37, 0 }
0x39f0   :  { %v16829_v19 = vpop.eup %16828 }
0x39f1   :  { %v9554_v20 = vsel %vm268_vm3, %v16829_v19, 0.0 }
0x39f2   :  { %9555 = vadd.xlane.f32.xlu0 %v9554_v20  ;;  %v9723_v57 = vpop.permute.xlu1 %9722 }
0x39f4   :  { %v16831_v45 = vpop.eup %16830 }
0x39f5   :  { %v9557_v36 = vsel %vm268_vm3, %v16831_v45, 0.0 }
0x39f6   :  { %9558 = vadd.xlane.f32.xlu0 %v9557_v36 }
0x3a0c   :  { %9614 = vrot.lane.b32.xlu0 %v19372_v15, %s20542_s19  ;;  %s20557_s19 = smov 72  }
0x3a10   :  { %9672 = vrot.lane.b32.xlu0 %v19357_v18, %s20544_s28 }
0x3a7b   :  { %v9556_v50 = vpop.xlane.xlu0 %9555 }
0x3a7c   :  { %16832 = vrcp.f32 %v9556_v50 }
0x3a7f   :  { %v9559_v51 = vpop.xlane.xlu0 %9558 }
0x3a80   :  { %16834 = vrcp.f32 %v9559_v51 }
0x3a83   :  { %v9615_v34 = vpop.permute.xlu0 %9614 }
0x3a84   :  { %v9620_v62 = vsel %vm390_vm2, %v9615_v34, 0 }
0x3a85   :  { %16062 = vmatpush3.bf16.msra.mxu1 %v9620_v62 }
0x3a86   :  { %16073 = vmatprep.subr.bf16.mxu1 %v16907_v58 }
0x3a87   :  { %v9673_v48 = vpop.permute.xlu0 %9672 }
0x3a89   :  { %v16833_v56 = vpop.eup %16832 }
0x3a8a   :  { %v9561_v55 = vmul.f32 %v16833_v56, %v16829_v19 }
0x3a8c   :  { %v9564_v52 = vpack.c.bf16 %v9561_v55, %v9561_v55 }
0x3a8d   :  { %v16835_v43 = vpop.eup %16834 }
0x3a8e   :  { %v9563_v3 = vmul.f32 %v16835_v43, %v16831_v45  ;;  %16058 = vmatmul.mubr.msk.bf16.vlgmr.msra.gmra.mxu0 %vm268_vm3, %v9564_v52 }
0x3a8f   :  { %16068 = vmatpush3.bf16.xpose.msra.mxu0 %v9680_v54  ;;  %16069 = vmatprep.mubr.msk.bf16.mxu0 %vm16908_vm1, %v16907_v58 }
0x3a90   :  { %v9565_v32 = vpack.c.bf16 %v9563_v3, %v9563_v3  ;;  %16079 = vmatprep.subr.bf16.mxu0 %v16907_v58 }
0x3a92   :  { %16064 = vmatmul.mubr.msk.bf16.vlgmr.msra.gmra.mxu1 %vm268_vm3, %v9565_v32 }
0x3a93   :  { %16074 = vmatpush3.bf16.xpose.msra.mxu1 %v9730_v14  ;;  %16075 = vmatprep.mubr.msk.bf16.mxu1 %vm16908_vm1, %v16907_v58 }
0x3a94   :  { %16085 = vmatprep.subr.bf16.mxu1 %v16907_v58 }
0x3a96   :  { %16070 = vmatmul.mubr.msk.bf16.vlgmr.msra.gmra.mxu0 %vm268_vm3, %v9673_v48 }
0x3a97   :  { %16081 = vmatprep.mubr.msk.bf16.mxu0 %vm16908_vm1, %v16907_v58 }
0x3a9a   :  { %16076 = vmatmul.mubr.msk.bf16.vlgmr.msra.gmra.mxu1 %vm268_vm3, %v9723_v57 }
0x3a9b   :  { %16087 = vmatprep.mubr.msk.bf16.mxu1 %vm16908_vm1, %v16907_v58 }
0x3b4e   :  { %v19494_v59 = vpop.f32.mrf.mxu0 }
0x3b50   :  { %v16059_v46 = vpop.f32.mrf.mxu0 }
0x3b52   :  { %v9611_v7 = vpop.f32.mrf.mxu0  ;;  %v19496_v42 = vpop.f32.mrf.mxu1 }
0x3b54   :  { %v16060_v10 = vpop.f32.mrf.mxu0  ;;  %v16065_v63 = vpop.f32.mrf.mxu1 }
0x3b56   :  { %v9659_v12 = vpop.f32.mrf.mxu1  ;;  %v9716_v4 = vpop.f32.mrf.mxu0 }
0x3b57   :  { %v9772_v6 = vsel %vm268_vm3, %v9716_v4, -inf }
0x3b58   :  { %v16066_v53 = vpop.f32.mrf.mxu1  ;;  %9773 = vmax.xlane.f32.xlu0 %v9772_v6  ;;  %v16071_v16 = vpop.f32.mrf.mxu0 }
0x3b5a   :  { %v9719_v5 = vpop.f32.mrf.mxu0  ;;  %v9766_v17 = vpop.f32.mrf.mxu1 }
0x3b5b   :  { %v9775_v8 = vsel %vm268_vm3, %v9766_v17, -inf }
0x3b5c   :  { %9776 = vmax.xlane.f32.xlu1 %v9775_v8  ;;  %v16072_v49 = vpop.f32.mrf.mxu0  ;;  %v16077_v9 = vpop.f32.mrf.mxu1 }
0x3b5e   :  { %v9769_v47 = vpop.f32.mrf.mxu1 }
0x3b60   :  { %v16078_v44 = vpop.f32.mrf.mxu1 }
0x3b6d   :  { %9796 = vrot.lane.b32.xlu1 %v19368_v33, %s20544_s28 }
0x3b71   :  { %9904 = vrot.lane.b32.xlu1 %v19357_v18, %s20545_s2 }
0x3b75   :  { %9954 = vrot.lane.b32.xlu1 %v19361_v26, %s20545_s2 }
0x3b79   :  { %9952 = vrot.lane.b32.xlu1 %v19361_v26, %s20546_s25 }
0x3be1   :  { %v9774_v27 = vpop.xlane.xlu0 %9773 }
0x3be2   :  { %v9778_v39 = vsub.f32 %v9716_v4, %v9774_v27 }
0x3be4   :  { %v9780_v38 = vmul.f32 1.442695, %v9778_v39 }
0x3be5   :  { %v9777_v28 = vpop.xlane.xlu1 %9776 }
0x3be6   :  { %16836 = vpow2.f32 %v9780_v38  ;;  %v9779_v1 = vsub.f32 %v9766_v17, %v9777_v28 }
0x3be8   :  { %v9782_v31 = vmul.f32 1.442695, %v9779_v1 }
0x3be9   :  { %v9797_v40 = vpop.permute.xlu1 %9796 }
0x3bea   :  { %16838 = vpow2.f32 %v9782_v31  ;;  %v9802_v35 = vsel %vm390_vm2, %v9797_v40, 0 }
0x3beb   :  { %16080 = vmatpush3.bf16.msra.mxu0 %v9802_v35 }
0x3bec   :  { %16091 = vmatprep.subr.bf16.mxu0 %v16907_v58 }
0x3bed   :  { %v9905_v51 = vpop.permute.xlu1 %9904 }
0x3bee   :  { %v9910_v60 = vsel %vm268_vm3, %v9905_v51, 0 }
0x3bf1   :  { %v9955_v52 = vpop.permute.xlu1 %9954 }
0x3bf2   :  { %v9960_v54 = vsel %vm268_vm3, %v9955_v52, 0 }
0x3bf3   :  { %v16837_v41 = vpop.eup %16836 }
0x3bf4   :  { %v9784_v29 = vsel %vm268_vm3, %v16837_v41, 0.0 }
0x3bf5   :  { %9785 = vadd.xlane.f32.xlu0 %v9784_v29  ;;  %v9953_v37 = vpop.permute.xlu1 %9952 }
0x3bf7   :  { %v16839_v30 = vpop.eup %16838 }
0x3bf8   :  { %v9787_v0 = vsel %vm268_vm3, %v16839_v30, 0.0 }
0x3bf9   :  { %9788 = vadd.xlane.f32.xlu0 %v9787_v0 }
0x3c0f   :  { %9844 = vrot.lane.b32.xlu0 %v19372_v15, %s20544_s28 }
0x3c13   :  { %9902 = vrot.lane.b32.xlu0 %v19357_v18, %s20546_s25 }
0x3c7e   :  { %v9786_v19 = vpop.xlane.xlu0 %9785 }
0x3c7f   :  { %16840 = vrcp.f32 %v9786_v19 }
0x3c82   :  { %v9789_v20 = vpop.xlane.xlu0 %9788 }
0x3c83   :  { %16842 = vrcp.f32 %v9789_v20 }
0x3c86   :  { %v9845_v45 = vpop.permute.xlu0 %9844 }
0x3c87   :  { %v9850_v36 = vsel %vm390_vm2, %v9845_v45, 0 }
0x3c88   :  { %16086 = vmatpush3.bf16.msra.mxu1 %v9850_v36 }
0x3c89   :  { %16097 = vmatprep.subr.bf16.mxu1 %v16907_v58 }
0x3c8a   :  { %v9903_v3 = vpop.permute.xlu0 %9902 }
0x3c8c   :  { %v16841_v50 = vpop.eup %16840 }
0x3c8d   :  { %v9791_v34 = vmul.f32 %v16841_v50, %v16837_v41 }
0x3c8f   :  { %v9794_v62 = vpack.c.bf16 %v9791_v34, %v9791_v34 }
0x3c90   :  { %v16843_v56 = vpop.eup %16842 }
0x3c91   :  { %v9793_v55 = vmul.f32 %v16843_v56, %v16839_v30  ;;  %16082 = vmatmul.mubr.msk.bf16.vlgmr.msra.gmra.mxu0 %vm268_vm3, %v9794_v62 }
0x3c92   :  { %16092 = vmatpush3.bf16.xpose.msra.mxu0 %v9910_v60  ;;  %16093 = vmatprep.mubr.msk.bf16.mxu0 %vm16908_vm1, %v16907_v58 }
0x3c93   :  { %v9795_v43 = vpack.c.bf16 %v9793_v55, %v9793_v55  ;;  %16103 = vmatprep.subr.bf16.mxu0 %v16907_v58 }
0x3c95   :  { %16088 = vmatmul.mubr.msk.bf16.vlgmr.msra.gmra.mxu1 %vm268_vm3, %v9795_v43 }
0x3c96   :  { %16098 = vmatpush3.bf16.xpose.msra.mxu1 %v9960_v54  ;;  %16099 = vmatprep.mubr.msk.bf16.mxu1 %vm16908_vm1, %v16907_v58 }
0x3c97   :  { %16109 = vmatprep.subr.bf16.mxu1 %v16907_v58 }
0x3c99   :  { %16094 = vmatmul.mubr.msk.bf16.vlgmr.msra.gmra.mxu0 %vm268_vm3, %v9903_v3 }
0x3c9a   :  { %16105 = vmatprep.mubr.msk.bf16.mxu0 %vm16908_vm1, %v16907_v58 }
0x3c9d   :  { %16100 = vmatmul.mubr.msk.bf16.vlgmr.msra.gmra.mxu1 %vm268_vm3, %v9953_v37 }
0x3c9e   :  { %16111 = vmatprep.mubr.msk.bf16.mxu1 %vm16908_vm1, %v16907_v58 }
0x3d51   :  { %v19534_v32 = vpop.f32.mrf.mxu0 }
0x3d53   :  { %v16083_v14 = vpop.f32.mrf.mxu0 }
0x3d55   :  { %v9841_v48 = vpop.f32.mrf.mxu0  ;;  %v19536_v57 = vpop.f32.mrf.mxu1 }
0x3d57   :  { %v16084_v46 = vpop.f32.mrf.mxu0  ;;  %v16089_v7 = vpop.f32.mrf.mxu1 }
0x3d59   :  { %v9889_v10 = vpop.f32.mrf.mxu1  ;;  %v9946_v63 = vpop.f32.mrf.mxu0 }
0x3d5a   :  { %v10002_v12 = vsel %vm268_vm3, %v9946_v63, -inf }
0x3d5b   :  { %v16090_v4 = vpop.f32.mrf.mxu1  ;;  %10003 = vmax.xlane.f32.xlu0 %v10002_v12  ;;  %v16095_v6 = vpop.f32.mrf.mxu0 }
0x3d5d   :  { %v9949_v53 = vpop.f32.mrf.mxu0  ;;  %v9996_v16 = vpop.f32.mrf.mxu1 }
0x3d5e   :  { %v10005_v5 = vsel %vm268_vm3, %v9996_v16, -inf }
0x3d5f   :  { %10006 = vmax.xlane.f32.xlu1 %v10005_v5  ;;  %v16096_v17 = vpop.f32.mrf.mxu0  ;;  %v16101_v8 = vpop.f32.mrf.mxu1 }
0x3d61   :  { %v9999_v49 = vpop.f32.mrf.mxu1 }
0x3d63   :  { %v16102_v9 = vpop.f32.mrf.mxu1 }
0x3d70   :  { %10026 = vrot.lane.b32.xlu1 %v19368_v33, %s20546_s25 }
0x3d74   :  { %10134 = vrot.lane.b32.xlu1 %v19357_v18, %s20547_s26 }
0x3d78   :  { %10184 = vrot.lane.b32.xlu1 %v19361_v26, %s20547_s26 }
0x3d7c   :  { %10182 = vrot.lane.b32.xlu1 %v19361_v26, %s20548_s27 }
0x3de4   :  { %v10004_v47 = vpop.xlane.xlu0 %10003 }
0x3de5   :  { %v10008_v44 = vsub.f32 %v9946_v63, %v10004_v47 }
0x3de7   :  { %v10010_v27 = vmul.f32 1.442695, %v10008_v44 }
0x3de8   :  { %v10007_v39 = vpop.xlane.xlu1 %10006 }
0x3de9   :  { %16844 = vpow2.f32 %v10010_v27  ;;  %v10009_v38 = vsub.f32 %v9996_v16, %v10007_v39 }
0x3deb   :  { %v10012_v28 = vmul.f32 1.442695, %v10009_v38 }
0x3dec   :  { %v10027_v1 = vpop.permute.xlu1 %10026 }
0x3ded   :  { %16846 = vpow2.f32 %v10012_v28  ;;  %v10032_v31 = vsel %vm390_vm2, %v10027_v1, 0 }
0x3dee   :  { %16104 = vmatpush3.bf16.msra.mxu0 %v10032_v31 }
0x3def   :  { %16115 = vmatprep.subr.bf16.mxu0 %v16907_v58 }
0x3df0   :  { %v10135_v36 = vpop.permute.xlu1 %10134 }
0x3df1   :  { %v10140_v62 = vsel %vm268_vm3, %v10135_v36, 0 }
0x3df4   :  { %v10185_v60 = vpop.permute.xlu1 %10184 }
0x3df5   :  { %v10190_v52 = vsel %vm268_vm3, %v10185_v60, 0 }
0x3df6   :  { %v16845_v40 = vpop.eup %16844 }
0x3df7   :  { %v10014_v35 = vsel %vm268_vm3, %v16845_v40, 0.0 }
0x3df8   :  { %10015 = vadd.xlane.f32.xlu0 %v10014_v35  ;;  %v10183_v54 = vpop.permute.xlu1 %10182 }
0x3dfa   :  { %v16847_v41 = vpop.eup %16846 }
0x3dfb   :  { %v10017_v29 = vsel %vm268_vm3, %v16847_v41, 0.0 }
0x3dfc   :  { %10018 = vadd.xlane.f32.xlu0 %v10017_v29 }
0x3e12   :  { %10074 = vrot.lane.b32.xlu0 %v19372_v15, %s20546_s25 }
0x3e16   :  { %10132 = vrot.lane.b32.xlu0 %v19357_v18, %s20548_s27 }
0x3e81   :  { %v10016_v30 = vpop.xlane.xlu0 %10015 }
0x3e82   :  { %16848 = vrcp.f32 %v10016_v30 }
0x3e85   :  { %v10019_v0 = vpop.xlane.xlu0 %10018 }
0x3e86   :  { %16850 = vrcp.f32 %v10019_v0 }
0x3e89   :  { %v10075_v19 = vpop.permute.xlu0 %10074 }
0x3e8a   :  { %v10080_v20 = vsel %vm390_vm2, %v10075_v19, 0 }
0x3e8b   :  { %16110 = vmatpush3.bf16.msra.mxu1 %v10080_v20 }
0x3e8c   :  { %16121 = vmatprep.subr.bf16.mxu1 %v16907_v58 }
0x3e8d   :  { %v10133_v43 = vpop.permute.xlu0 %10132 }
0x3e8f   :  { %v16849_v45 = vpop.eup %16848 }
0x3e90   :  { %v10021_v50 = vmul.f32 %v16849_v45, %v16845_v40 }
0x3e92   :  { %v10024_v51 = vpack.c.bf16 %v10021_v50, %v10021_v50 }
0x3e93   :  { %v16851_v34 = vpop.eup %16850 }
0x3e94   :  { %v10023_v56 = vmul.f32 %v16851_v34, %v16847_v41  ;;  %16106 = vmatmul.mubr.msk.bf16.vlgmr.msra.gmra.mxu0 %vm268_vm3, %v10024_v51 }
0x3e95   :  { %16116 = vmatpush3.bf16.xpose.msra.mxu0 %v10140_v62  ;;  %16117 = vmatprep.mubr.msk.bf16.mxu0 %vm16908_vm1, %v16907_v58 }
0x3e96   :  { %v10025_v55 = vpack.c.bf16 %v10023_v56, %v10023_v56  ;;  %16127 = vmatprep.subr.bf16.mxu0 %v16907_v58 }
0x3e98   :  { %16112 = vmatmul.mubr.msk.bf16.vlgmr.msra.gmra.mxu1 %vm268_vm3, %v10025_v55 }
0x3e99   :  { %16122 = vmatpush3.bf16.xpose.msra.mxu1 %v10190_v52  ;;  %16123 = vmatprep.mubr.msk.bf16.mxu1 %vm16908_vm1, %v16907_v58 }
0x3e9a   :  { %16133 = vmatprep.subr.bf16.mxu1 %v16907_v58 }
0x3e9c   :  { %16118 = vmatmul.mubr.msk.bf16.vlgmr.msra.gmra.mxu0 %vm268_vm3, %v10133_v43 }
0x3e9d   :  { %16129 = vmatprep.mubr.msk.bf16.mxu0 %vm16908_vm1, %v16907_v58 }
0x3ea0   :  { %16124 = vmatmul.mubr.msk.bf16.vlgmr.msra.gmra.mxu1 %vm268_vm3, %v10183_v54 }
0x3ea1   :  { %16135 = vmatprep.mubr.msk.bf16.mxu1 %vm16908_vm1, %v16907_v58 }
0x3f54   :  { %v19574_v3 = vpop.f32.mrf.mxu0 }
0x3f56   :  { %v16107_v37 = vpop.f32.mrf.mxu0 }
0x3f58   :  { %v10071_v14 = vpop.f32.mrf.mxu0  ;;  %v19576_v48 = vpop.f32.mrf.mxu1 }
0x3f5a   :  { %v16108_v46 = vpop.f32.mrf.mxu0  ;;  %v16113_v7 = vpop.f32.mrf.mxu1 }
0x3f5c   :  { %v10119_v10 = vpop.f32.mrf.mxu1  ;;  %v10176_v63 = vpop.f32.mrf.mxu0 }
0x3f5d   :  { %v10232_v12 = vsel %vm268_vm3, %v10176_v63, -inf }
0x3f5e   :  { %v16114_v4 = vpop.f32.mrf.mxu1  ;;  %10233 = vmax.xlane.f32.xlu0 %v10232_v12  ;;  %v16119_v6 = vpop.f32.mrf.mxu0 }
0x3f60   :  { %v10179_v53 = vpop.f32.mrf.mxu0  ;;  %v10226_v16 = vpop.f32.mrf.mxu1 }
0x3f61   :  { %v10235_v5 = vsel %vm268_vm3, %v10226_v16, -inf }
0x3f62   :  { %10236 = vmax.xlane.f32.xlu1 %v10235_v5  ;;  %v16120_v17 = vpop.f32.mrf.mxu0  ;;  %v16125_v8 = vpop.f32.mrf.mxu1 }
0x3f64   :  { %v10229_v49 = vpop.f32.mrf.mxu1 }
0x3f66   :  { %v16126_v9 = vpop.f32.mrf.mxu1 }
0x3f73   :  { %10256 = vrot.lane.b32.xlu1 %v19368_v33, %s20548_s27 }
0x3f77   :  { %10364 = vrot.lane.b32.xlu1 %v19357_v18, %s20549_s20 }
0x3f7b   :  { %10414 = vrot.lane.b32.xlu1 %v19361_v26, %s20549_s20 }
0x3f7f   :  { %10412 = vrot.lane.b32.xlu1 %v19361_v26, %s20550_s29 }
0x3fe7   :  { %v10234_v47 = vpop.xlane.xlu0 %10233 }
0x3fe8   :  { %v10238_v44 = vsub.f32 %v10176_v63, %v10234_v47 }
0x3fea   :  { %v10240_v27 = vmul.f32 1.442695, %v10238_v44 }
0x3feb   :  { %v10237_v39 = vpop.xlane.xlu1 %10236 }
0x3fec   :  { %16852 = vpow2.f32 %v10240_v27  ;;  %v10239_v38 = vsub.f32 %v10226_v16, %v10237_v39 }
0x3fee   :  { %v10242_v28 = vmul.f32 1.442695, %v10239_v38 }
0x3fef   :  { %v10257_v1 = vpop.permute.xlu1 %10256 }
0x3ff0   :  { %16854 = vpow2.f32 %v10242_v28  ;;  %v10262_v31 = vsel %vm390_vm2, %v10257_v1, 0 }
0x3ff1   :  { %16128 = vmatpush3.bf16.msra.mxu0 %v10262_v31 }
0x3ff2   :  { %16139 = vmatprep.subr.bf16.mxu0 %v16907_v58 }
0x3ff3   :  { %v10365_v36 = vpop.permute.xlu1 %10364 }
0x3ff4   :  { %v10370_v62 = vsel %vm268_vm3, %v10365_v36, 0 }
0x3ff7   :  { %v10415_v60 = vpop.permute.xlu1 %10414 }
0x3ff8   :  { %v10420_v52 = vsel %vm268_vm3, %v10415_v60, 0 }
0x3ff9   :  { %v16853_v40 = vpop.eup %16852 }
0x3ffa   :  { %v10244_v35 = vsel %vm268_vm3, %v16853_v40, 0.0 }
0x3ffb   :  { %10245 = vadd.xlane.f32.xlu0 %v10244_v35  ;;  %v10413_v54 = vpop.permute.xlu1 %10412 }
0x3ffd   :  { %v16855_v41 = vpop.eup %16854 }
0x3ffe   :  { %v10247_v29 = vsel %vm268_vm3, %v16855_v41, 0.0 }
0x3fff   :  { %10248 = vadd.xlane.f32.xlu0 %v10247_v29 }
0x4015   :  { %10304 = vrot.lane.b32.xlu0 %v19372_v15, %s20548_s27 }
0x4019   :  { %10362 = vrot.lane.b32.xlu0 %v19357_v18, %s20550_s29 }
0x4084   :  { %v10246_v30 = vpop.xlane.xlu0 %10245 }
0x4085   :  { %16856 = vrcp.f32 %v10246_v30 }
0x4088   :  { %v10249_v0 = vpop.xlane.xlu0 %10248 }
0x4089   :  { %16858 = vrcp.f32 %v10249_v0 }
0x408c   :  { %v10305_v19 = vpop.permute.xlu0 %10304 }
0x408d   :  { %v10310_v20 = vsel %vm390_vm2, %v10305_v19, 0 }
0x408e   :  { %16134 = vmatpush3.bf16.msra.mxu1 %v10310_v20 }
0x408f   :  { %16145 = vmatprep.subr.bf16.mxu1 %v16907_v58 }
0x4090   :  { %v10363_v43 = vpop.permute.xlu0 %10362 }
0x4092   :  { %v16857_v45 = vpop.eup %16856 }
0x4093   :  { %v10251_v50 = vmul.f32 %v16857_v45, %v16853_v40 }
0x4095   :  { %v10254_v51 = vpack.c.bf16 %v10251_v50, %v10251_v50 }
0x4096   :  { %v16859_v34 = vpop.eup %16858 }
0x4097   :  { %v10253_v56 = vmul.f32 %v16859_v34, %v16855_v41  ;;  %16130 = vmatmul.mubr.msk.bf16.vlgmr.msra.gmra.mxu0 %vm268_vm3, %v10254_v51 }
0x4098   :  { %16140 = vmatpush3.bf16.xpose.msra.mxu0 %v10370_v62  ;;  %16141 = vmatprep.mubr.msk.bf16.mxu0 %vm16908_vm1, %v16907_v58 }
0x4099   :  { %v10255_v55 = vpack.c.bf16 %v10253_v56, %v10253_v56  ;;  %16151 = vmatprep.subr.bf16.mxu0 %v16907_v58 }
0x409b   :  { %16136 = vmatmul.mubr.msk.bf16.vlgmr.msra.gmra.mxu1 %vm268_vm3, %v10255_v55 }
0x409c   :  { %16146 = vmatpush3.bf16.xpose.msra.mxu1 %v10420_v52  ;;  %16147 = vmatprep.mubr.msk.bf16.mxu1 %vm16908_vm1, %v16907_v58 }
0x409d   :  { %16157 = vmatprep.subr.bf16.mxu1 %v16907_v58 }
0x409f   :  { %16142 = vmatmul.mubr.msk.bf16.vlgmr.msra.gmra.mxu0 %vm268_vm3, %v10363_v43 }
0x40a0   :  { %16153 = vmatprep.mubr.msk.bf16.mxu0 %vm16908_vm1, %v16907_v58 }
0x40a3   :  { %16148 = vmatmul.mubr.msk.bf16.vlgmr.msra.gmra.mxu1 %vm268_vm3, %v10413_v54 }
0x40a4   :  { %16159 = vmatprep.mubr.msk.bf16.mxu1 %vm16908_vm1, %v16907_v58 }
0x4157   :  { %v19614_v37 = vpop.f32.mrf.mxu0 }
0x4159   :  { %v16131_v14 = vpop.f32.mrf.mxu0 }
0x415b   :  { %v10301_v46 = vpop.f32.mrf.mxu0  ;;  %v19616_v7 = vpop.f32.mrf.mxu1 }
0x415d   :  { %v16132_v10 = vpop.f32.mrf.mxu0  ;;  %v16137_v63 = vpop.f32.mrf.mxu1 }
0x415f   :  { %v10349_v12 = vpop.f32.mrf.mxu1  ;;  %v10406_v4 = vpop.f32.mrf.mxu0 }
0x4160   :  { %v10462_v6 = vsel %vm268_vm3, %v10406_v4, -inf }
0x4161   :  { %v16138_v53 = vpop.f32.mrf.mxu1  ;;  %10463 = vmax.xlane.f32.xlu0 %v10462_v6  ;;  %v16143_v16 = vpop.f32.mrf.mxu0 }
0x4163   :  { %v10409_v5 = vpop.f32.mrf.mxu0  ;;  %v10456_v17 = vpop.f32.mrf.mxu1 }
0x4164   :  { %v10465_v8 = vsel %vm268_vm3, %v10456_v17, -inf }
0x4165   :  { %10466 = vmax.xlane.f32.xlu1 %v10465_v8  ;;  %v16144_v49 = vpop.f32.mrf.mxu0  ;;  %v16149_v9 = vpop.f32.mrf.mxu1 }
0x4167   :  { %v10459_v47 = vpop.f32.mrf.mxu1 }
0x4169   :  { %v16150_v44 = vpop.f32.mrf.mxu1 }
0x4176   :  { %10486 = vrot.lane.b32.xlu1 %v19368_v33, %s20550_s29 }
0x417a   :  { %10594 = vrot.lane.b32.xlu1 %v19357_v18, %s20551_s0 }
0x417e   :  { %10644 = vrot.lane.b32.xlu1 %v19361_v26, %s20551_s0 }
0x4182   :  { %10642 = vrot.lane.b32.xlu1 %v19361_v26, %s20557_s19 }
0x41ea   :  { %v10464_v27 = vpop.xlane.xlu0 %10463 }
0x41eb   :  { %v10468_v39 = vsub.f32 %v10406_v4, %v10464_v27 }
0x41ed   :  { %v10470_v38 = vmul.f32 1.442695, %v10468_v39 }
0x41ee   :  { %v10467_v28 = vpop.xlane.xlu1 %10466 }
0x41ef   :  { %16860 = vpow2.f32 %v10470_v38  ;;  %v10469_v1 = vsub.f32 %v10456_v17, %v10467_v28 }
0x41f1   :  { %v10472_v31 = vmul.f32 1.442695, %v10469_v1 }
0x41f2   :  { %v10487_v40 = vpop.permute.xlu1 %10486 }
0x41f3   :  { %16862 = vpow2.f32 %v10472_v31  ;;  %v10492_v35 = vsel %vm390_vm2, %v10487_v40, 0 }
0x41f4   :  { %16152 = vmatpush3.bf16.msra.mxu0 %v10492_v35 }
0x41f5   :  { %16163 = vmatprep.subr.bf16.mxu0 %v16907_v58 }
0x41f6   :  { %v10595_v50 = vpop.permute.xlu1 %10594 }
0x41f7   :  { %v10600_v56 = vsel %vm268_vm3, %v10595_v50, 0 }
0x41fc   :  { %v16861_v41 = vpop.eup %16860 }
0x41fd   :  { %v10474_v29 = vsel %vm268_vm3, %v16861_v41, 0.0 }
0x41fe   :  { %10475 = vadd.xlane.f32.xlu0 %v10474_v29 }
0x4200   :  { %v16863_v30 = vpop.eup %16862 }
0x4201   :  { %v10477_v26 = vsel %vm268_vm3, %v16863_v30, 0.0 }
0x4202   :  { %10478 = vadd.xlane.f32.xlu0 %v10477_v26 }
0x4218   :  { %10534 = vrot.lane.b32.xlu0 %v19372_v15, %s20550_s29  ;;  %s20561_s29 = sld [smem:[#allocation11_spill]] }
0x421c   :  { %10592 = vrot.lane.b32.xlu0 %v19357_v18, %s20557_s19  ;;  %v10645_v18 = vpop.permute.xlu1 %10644 }
0x421d   :  { %v10650_v52 = vsel %vm268_vm3, %v10645_v18, 0 }
0x4220   :  { %v10643_v54 = vpop.permute.xlu1 %10642 }
0x4287   :  { %v10476_v0 = vpop.xlane.xlu0 %10475 }
0x4288   :  { %16864 = vrcp.f32 %v10476_v0 }
0x428b   :  { %v10479_v19 = vpop.xlane.xlu0 %10478 }
0x428c   :  { %16866 = vrcp.f32 %v10479_v19 }
0x428f   :  { %v10535_v20 = vpop.permute.xlu0 %10534 }
0x4290   :  { %v10540_v45 = vsel %vm390_vm2, %v10535_v20, 0 }
0x4291   :  { %16158 = vmatpush3.bf16.msra.mxu1 %v10540_v45 }
0x4292   :  { %16169 = vmatprep.subr.bf16.mxu1 %v16907_v58 }
0x4293   :  { %v10593_v43 = vpop.permute.xlu0 %10592 }
0x4295   :  { %v16865_v36 = vpop.eup %16864 }
0x4296   :  { %v10481_v51 = vmul.f32 %v16865_v36, %v16861_v41 }
0x4298   :  { %v10484_v34 = vpack.c.bf16 %v10481_v51, %v10481_v51 }
0x4299   :  { %v16867_v62 = vpop.eup %16866 }
0x429a   :  { %v10483_v60 = vmul.f32 %v16867_v62, %v16863_v30  ;;  %16154 = vmatmul.mubr.msk.bf16.vlgmr.msra.gmra.mxu0 %vm268_vm3, %v10484_v34 }
0x429b   :  { %16164 = vmatpush3.bf16.xpose.msra.mxu0 %v10600_v56  ;;  %16165 = vmatprep.mubr.msk.bf16.mxu0 %vm16908_vm1, %v16907_v58 }
0x429c   :  { %v10485_v55 = vpack.c.bf16 %v10483_v60, %v10483_v60  ;;  %16175 = vmatprep.subr.bf16.mxu0 %v16907_v58 }
0x429e   :  { %16160 = vmatmul.mubr.msk.bf16.vlgmr.msra.gmra.mxu1 %vm268_vm3, %v10485_v55 }
0x429f   :  { %16170 = vmatpush3.bf16.xpose.msra.mxu1 %v10650_v52  ;;  %16171 = vmatprep.mubr.msk.bf16.mxu1 %vm16908_vm1, %v16907_v58 }
0x42a0   :  { %16181 = vmatprep.subr.bf16.mxu1 %v16907_v58 }
0x42a2   :  { %16166 = vmatmul.mubr.msk.bf16.vlgmr.msra.gmra.mxu0 %vm268_vm3, %v10593_v43 }
0x42a3   :  { %16177 = vmatprep.mubr.msk.bf16.mxu0 %vm16908_vm1, %v16907_v58 }
0x42a6   :  { %16172 = vmatmul.mubr.msk.bf16.vlgmr.msra.gmra.mxu1 %vm268_vm3, %v10643_v54 }
0x42a7   :  { %16183 = vmatprep.mubr.msk.bf16.mxu1 %vm16908_vm1, %v16907_v58 }
0x435a   :  { %v19654_v14 = vpop.f32.mrf.mxu0 }
0x435c   :  { %v16155_v46 = vpop.f32.mrf.mxu0 }
0x435e   :  { %v10531_v10 = vpop.f32.mrf.mxu0  ;;  %v10576_v63 = vpop.f32.mrf.mxu1 }
0x4360   :  { %v16156_v12 = vpop.f32.mrf.mxu0  ;;  %v16161_v4 = vpop.f32.mrf.mxu1 }
0x4362   :  { %v10579_v6 = vpop.f32.mrf.mxu1  ;;  %v10636_v53 = vpop.f32.mrf.mxu0 }
0x4363   :  { %v10692_v16 = vsel %vm268_vm3, %v10636_v53, -inf }
0x4364   :  { %v16162_v5 = vpop.f32.mrf.mxu1  ;;  %10693 = vmax.xlane.f32.xlu0 %v10692_v16  ;;  %v16167_v17 = vpop.f32.mrf.mxu0 }
0x4366   :  { %v10639_v8 = vpop.f32.mrf.mxu0  ;;  %v10686_v49 = vpop.f32.mrf.mxu1 }
0x4367   :  { %v10695_v9 = vsel %vm268_vm3, %v10686_v49, -inf }
0x4368   :  { %10696 = vmax.xlane.f32.xlu1 %v10695_v9  ;;  %v16168_v47 = vpop.f32.mrf.mxu0  ;;  %v16173_v44 = vpop.f32.mrf.mxu1 }
0x436a   :  { %v10689_v27 = vpop.f32.mrf.mxu1 }
0x436c   :  { %v16174_v39 = vpop.f32.mrf.mxu1 }
0x4379   :  { %10716 = vrot.lane.b32.xlu1 %v19368_v33, %s20557_s19 }
0x437d   :  { %9434 = vrot.lane.b32.xlu1 %v19454_v11, %s20551_s0 }
0x4381   :  { %9436 = vrot.lane.b32.xlu1 %v19456_v25, %s20551_s0  ;;  %s20562_s0 = sld [smem:[#allocation12_spill]] }
0x4385   :  { %9666 = vrot.lane.b32.xlu1 %v19496_v42, %s20549_s20 }
0x4389   :  { %9896 = vrot.lane.b32.xlu1 %v19536_v57, %s20547_s26 }
0x438d   :  { %10126 = vrot.lane.b32.xlu1 %v19576_v48, %s20545_s2 }
0x4391   :  { %10356 = vrot.lane.b32.xlu1 %v19616_v7, %s20543_s1 }
0x4395   :  { %10586 = vrot.lane.b32.xlu1 %v10576_v63, %s20556_s22 }
0x43ed   :  { %v10694_v33 = vpop.xlane.xlu0 %10693 }
0x43ee   :  { %v10698_v38 = vsub.f32 %v10636_v53, %v10694_v33 }
0x43f0   :  { %v10700_v11 = vmul.f32 1.442695, %v10698_v38 }
0x43f1   :  { %v10697_v28 = vpop.xlane.xlu1 %10696 }
0x43f2   :  { %16868 = vpow2.f32 %v10700_v11  ;;  %v10699_v25 = vsub.f32 %v10686_v49, %v10697_v28 }
0x43f4   :  { %v10702_v1 = vmul.f32 1.442695, %v10699_v25 }
0x43f5   :  { %v10717_v31 = vpop.permute.xlu1 %10716 }
0x43f6   :  { %16870 = vpow2.f32 %v10702_v1  ;;  %v10722_v42 = vsel %vm390_vm2, %v10717_v31, 0 }
0x43f7   :  { %16176 = vmatpush3.bf16.msra.mxu0 %v10722_v42 }
0x43f8   :  { %16187 = vmatprep.subr.bf16.mxu0 %v16907_v58 }
0x43f9   :  { %v9435_v57 = vpop.permute.xlu1 %9434 }
0x43fa   :  { %9440 = vst.msk [vmem:[#allocation2] sm:$0xff] %vm710_vm4, %v9435_v57 }
0x43fd   :  { %v9437_v48 = vpop.permute.xlu1 %9436 }
0x43fe   :  { %9441 = vst.msk [vmem:[#allocation2 + $0x8] sm:$0xff] %vm710_vm4, %v9437_v48 }
0x43ff   :  { %v16869_v7 = vpop.eup %16868 }
0x4400   :  { %v10704_v40 = vsel %vm268_vm3, %v16869_v7, 0.0 }
0x4401   :  { %v9667_v35 = vpop.permute.xlu1 %9666  ;;  %10705 = vadd.xlane.f32.xlu0 %v10704_v40 }
0x4402   :  { %9671 = vst.msk [vmem:[#allocation2 + $0x8] sm:$0xff] %vm941_vm5, %v9667_v35 }
0x4403   :  { %v16871_v41 = vpop.eup %16870 }
0x4404   :  { %v10707_v29 = vsel %vm268_vm3, %v16871_v41, 0.0 }
0x4405   :  { %v9897_v30 = vpop.permute.xlu1 %9896  ;;  %10708 = vadd.xlane.f32.xlu0 %v10707_v29  ;;  %v14311_v29 = vld [vmem:[%s20484_s9 + $0x580] sm:$0xff] }
0x4406   :  { %9901 = vst.msk [vmem:[#allocation2 + $0x8] sm:$0xff] %vm1172_vm6, %v9897_v30  ;;  %v14313_v30 = vld [vmem:[%s20484_s9 + $0x5c0] sm:$0xff] }
0x4409   :  { %v10127_v26 = vpop.permute.xlu1 %10126 }
0x440a   :  { %10131 = vst.msk [vmem:[#allocation2 + $0x8] sm:$0xff] %vm1403_vm7, %v10127_v26  ;;  %v14312_v26 = vld [vmem:[%s20484_s9 + $0x588] sm:$0xff] }
0x440d   :  { %v10357_v0 = vpop.permute.xlu1 %10356 }
0x440e   :  { %10361 = vst.msk [vmem:[#allocation2 + $0x8] sm:$0xff] %vm1634_vm8, %v10357_v0  ;;  %v14329_v0 = vcombine.high %v14311_v29, %v14313_v30 }
0x4411   :  { %v10587_v19 = vpop.permute.xlu1 %10586 }
0x4412   :  { %10591 = vst.msk [vmem:[#allocation2 + $0x8] sm:$0xff] %vm1865_vm9, %v10587_v19  ;;  %v14314_v19 = vld [vmem:[%s20484_s9 + $0x5c8] sm:$0xff] }
0x441b   :  { %10764 = vrot.lane.b32.xlu0 %v19372_v15, %s20557_s19 }
0x441f   :  { %9664 = vrot.lane.b32.xlu0 %v19494_v59, %s20549_s20 }
0x4423   :  { %9894 = vrot.lane.b32.xlu0 %v19534_v32, %s20547_s26  ;;  %s20560_s26 = sld [smem:[#allocation10_spill]] }
0x4427   :  { %10124 = vrot.lane.b32.xlu0 %v19574_v3, %s20545_s2  ;;  %s20558_s2 = sld [smem:[#allocation8_spill]] }
0x442b   :  { %10354 = vrot.lane.b32.xlu0 %v19614_v37, %s20543_s1 }
0x442d   :  { %v16532_v55 = vld [vmem:[%s20558_s2 + $0x58] sm:$0xff]   ;;  %v16533_v52 = vld [vmem:[%s20558_s2 + $0x50] sm:$0xff]   ;;  %v16534_v43 = vld [vmem:[%s20558_s2 + $0x48] sm:$0xff]  }
0x442e   :  { %v16535_v54 = vld [vmem:[%s20558_s2 + $0x40] sm:$0xff]  }
0x442f   :  { %10584 = vrot.lane.b32.xlu0 %v19654_v14, %s20556_s22 }
0x448a   :  { %v10706_v20 = vpop.xlane.xlu0 %10705 }
0x448b   :  { %16872 = vrcp.f32 %v10706_v20  ;;  %v14328_v20 = vcombine.low %v14311_v29, %v14313_v30 }
0x448e   :  { %v10709_v45 = vpop.xlane.xlu0 %10708 }
0x448f   :  { %16874 = vrcp.f32 %v10709_v45  ;;  %v14330_v45 = vcombine.low %v14312_v26, %v14314_v19 }
0x4492   :  { %v10765_v15 = vpop.permute.xlu0 %10764 }
0x4493   :  { %v10770_v36 = vsel %vm390_vm2, %v10765_v15, 0  ;;  %v14331_v15 = vcombine.high %v14312_v26, %v14314_v19 }
0x4494   :  { %16182 = vmatpush3.bf16.msra.mxu1 %v10770_v36  ;;  %v14307_v36 = vld [vmem:[%s20484_s9 + $0x500] sm:$0xff] }
0x4495   :  { %11090 = vmatprep.subr.bf16.mxu1 %v14329_v0 }
0x4496   :  { %v9665_v59 = vpop.permute.xlu0 %9664 }
0x4497   :  { %9670 = vst.msk [vmem:[#allocation2] sm:$0xff] %vm941_vm5, %v9665_v59  ;;  %v14309_v59 = vld [vmem:[%s20484_s9 + $0x540] sm:$0xff] }
0x4498   :  { %v16873_v32 = vpop.eup %16872 }
0x4499   :  { %v10711_v50 = vmul.f32 %v16873_v32, %v16869_v7  ;;  %v14308_v32 = vld [vmem:[%s20484_s9 + $0x508] sm:$0xff] }
0x449a   :  { %v9895_v3 = vpop.permute.xlu0 %9894 }
0x449b   :  { %v10714_v51 = vpack.c.bf16 %v10711_v50, %v10711_v50  ;;  %9900 = vst.msk [vmem:[#allocation2] sm:$0xff] %vm1172_vm6, %v9895_v3  ;;  %v14325_v50 = vcombine.high %v14307_v36, %v14309_v59  ;;  %v14310_v3 = vld [vmem:[%s20484_s9 + $0x548] sm:$0xff] }
0x449c   :  { %v16875_v37 = vpop.eup %16874 }
0x449d   :  { %v10713_v34 = vmul.f32 %v16875_v37, %v16871_v41  ;;  %16178 = vmatmul.mubr.msk.bf16.vlgmr.msra.gmra.mxu0 %vm268_vm3, %v10714_v51  ;;  %v14324_v51 = vcombine.low %v14307_v36, %v14309_v59  ;;  %v14326_v37 = vcombine.low %v14308_v32, %v14310_v3  ;;  %v14405_v36 = vld [vmem:[%s20484_s9 + $0x4d8] sm:$0xff] }
0x449e   :  { %v10125_v62 = vpop.permute.xlu0 %10124  ;;  %16195 = vmatprep.mubr.msk.bf16.mxu0 %vm16908_vm1, %v16907_v58  ;;  %16188 = vmatpush3.bf16.msra.mxu0 %v16532_v55  ;;  %v14306_v55 = vld [vmem:[%s20484_s9 + $0x4c8] sm:$0xff] }
0x449f   :  { %v10715_v56 = vpack.c.bf16 %v10713_v34, %v10713_v34  ;;  %10130 = vst.msk [vmem:[#allocation2] sm:$0xff] %vm1403_vm7, %v10125_v62  ;;  %16189 = vmatprep.subr.bf16.mxu0 %v16907_v58  ;;  %v14327_v34 = vcombine.high %v14308_v32, %v14310_v3  ;;  %v14303_v62 = vld [vmem:[%s20484_s9 + $0x480] sm:$0xff] }
0x44a1   :  { %16184 = vmatmul.mubr.msk.bf16.vlgmr.msra.gmra.mxu1 %vm268_vm3, %v10715_v56  ;;  %v14305_v56 = vld [vmem:[%s20484_s9 + $0x4c0] sm:$0xff] }
0x44a2   :  { %v10355_v60 = vpop.permute.xlu0 %10354  ;;  %11114 = vmatprep.mubr.bf16.mxu1 %v16906_v2  ;;  %16190 = vmatpush3.bf16.msra.mxu0 %v16533_v52  ;;  %v14320_v52 = vcombine.low %v14303_v62, %v14305_v56 }
0x44a3   :  { %10360 = vst.msk [vmem:[#allocation2] sm:$0xff] %vm1634_vm8, %v10355_v60  ;;  %16191 = vmatprep.subr.bf16.mxu0 %v16907_v58  ;;  %11091 = vmatpush1.bf16.msra.mxu1 %v14328_v20  ;;  %v14304_v60 = vld [vmem:[%s20484_s9 + $0x488] sm:$0xff]  ;;  %v14402_v20 = vld [vmem:[%s20484_s9 + $0x490] sm:$0xff] }
0x44a4   :  { %11092 = vmatprep.subr.bf16.mxu1 %v14325_v50 }
0x44a6   :  { %v10585_v18 = vpop.permute.xlu0 %10584  ;;  %16192 = vmatpush3.bf16.msra.mxu0 %v16534_v43  ;;  %v14322_v43 = vcombine.low %v14304_v60, %v14306_v55 }
0x44a7   :  { %10590 = vst.msk [vmem:[#allocation2] sm:$0xff] %vm1865_vm9, %v10585_v18  ;;  %16193 = vmatprep.subr.bf16.mxu0 %v16907_v58  ;;  %11093 = vmatpush1.bf16.msra.mxu1 %v14324_v51  ;;  %v14321_v18 = vcombine.high %v14303_v62, %v14305_v56  ;;  %v14398_v51 = vld [vmem:[%s20484_s9 + $0x410] sm:$0xff]  ;;  %v14401_v62 = vld [vmem:[%s20484_s9 + $0x458] sm:$0xff] }
0x44a9   :  { %11094 = vmatprep.subr.bf16.mxu1 %v14321_v18 }
0x44aa   :  { %16194 = vmatpush3.bf16.msra.mxu0 %v16535_v54  ;;  %v14323_v54 = vcombine.high %v14304_v60, %v14306_v55 }
0x44ab   :  { %11133 = vmatprep.subr.bf16.mxu0 %v14331_v15  ;;  %11095 = vmatpush1.bf16.msra.mxu1 %v14320_v52  ;;  %v14403_v15 = vld [vmem:[%s20484_s9 + $0x498] sm:$0xff] }
0x44ac   :  { %v14422_v3 = vcombine.high %v14403_v15, %v14405_v36  ;;  %v14421_v60 = vcombine.low %v14403_v15, %v14405_v36 }
0x455d   :  { %v10758_v14 = vpop.f32.mrf.mxu0 }
0x455e   :  { %10814 = vrot.lane.b32.xlu0 %v10758_v14, %s20553_s24  ;;  %v14299_v14 = vld [vmem:[%s20484_s9 + $0x400] sm:$0xff] }
0x455f   :  { %v16179_v46 = vpop.f32.mrf.mxu0 }
0x4560   :  { %v14301_v46 = vld [vmem:[%s20484_s9 + $0x440] sm:$0xff] }
0x4561   :  { %v10761_v10 = vpop.f32.mrf.mxu0  ;;  %v10806_v63 = vpop.f32.mrf.mxu1 }
0x4562   :  { %10816 = vrot.lane.b32.xlu1 %v10806_v63, %s20553_s24  ;;  %s20559_s24 = sld [smem:[#allocation9_spill]]  ;;  %v14300_v10 = vld [vmem:[%s20484_s9 + $0x408] sm:$0xff]  ;;  %v14317_v63 = vcombine.high %v14299_v14, %v14301_v46 }
0x4563   :  { %v16180_v12 = vpop.f32.mrf.mxu0  ;;  %v16185_v4 = vpop.f32.mrf.mxu1 }
0x4564   :  { %v14302_v12 = vld [vmem:[%s20484_s9 + $0x448] sm:$0xff]  ;;  %v14316_v4 = vcombine.low %v14299_v14, %v14301_v46  ;;  %11096 = vmatprep.subr.bf16.mxu1 %v14317_v63  ;;  %v16537_v14 = vld [vmem:[%s20486_s11 + $0x9f8] sm:$0xff]   ;;  %v16540_v63 = vld [vmem:[%s20486_s11 + $0x970] sm:$0xff]  }
0x4565   :  { %v10809_v6 = vpop.f32.mrf.mxu1  ;;  %v16538_v46 = vld [vmem:[%s20486_s11 + $0x938] sm:$0xff]  }
0x4566   :  { %v14318_v6 = vcombine.low %v14300_v10, %v14302_v12  ;;  %11097 = vmatpush1.bf16.msra.mxu1 %v14316_v4  ;;  %v16542_v4 = vld [vmem:[%s20486_s11 + $0x930] sm:$0xff]  }
0x4567   :  { %v16186_v53 = vpop.f32.mrf.mxu1 }
0x4568   :  { %v14289_v9 = vld [vmem:[%s20559_s24 + $0x2] ss:$0 sm:$0xff]  ;;  %v14319_v53 = vcombine.high %v14300_v10, %v14302_v12  ;;  %v16539_v10 = vld [vmem:[%s20486_s11 + $0x9b8] sm:$0xff]   ;;  %v16541_v12 = vld [vmem:[%s20486_s11 + $0x9f0] sm:$0xff]  }
0x45d0   :  { %v10815_v16 = vpop.permute.xlu0 %10814 }
0x45d1   :  { %10820 = vst.msk [vmem:[#allocation2] sm:$0xff] %vm2096_vm10, %v10815_v16  ;;  %v14410_v16 = vld [vmem:[%s20484_s9 + $0x590] sm:$0xff] }
0x45d4   :  { %v10817_v5 = vpop.permute.xlu1 %10816 }
0x45d5   :  { %10821 = vst.msk [vmem:[#allocation2 + $0x8] sm:$0xff] %vm2096_vm10, %v10817_v5  ;;  %v14412_v5 = vld [vmem:[%s20484_s9 + $0x5d0] sm:$0xff] }
0x45d8   :  { %v10822_v17 = vld [vmem:[#allocation2] sm:$0xff] }
0x45dc   :  { %v10823_v8 = vld [vmem:[#allocation2 + $0x8] sm:$0xff] }
0x45dd   :  { %v10824_v49 = vpack.c.bf16 %v10823_v8, %v10822_v17  ;;  %v14411_v17 = vld [vmem:[%s20484_s9 + $0x598] sm:$0xff]  ;;  %v14427_v8 = vcombine.low %v14410_v16, %v14412_v5 }
0x45df   :  { %16196 = vmatmul.mubr.msk.bf16.vlgmr.msra.gmra.mxu0 %vm207_vm14, %v10824_v49  ;;  %v14428_v49 = vcombine.high %v14410_v16, %v14412_v5  ;;  %v16545_v16 = vld [vmem:[%s20486_s11 + $0x9e8] sm:$0xff]  }
0x45e0   :  { %11157 = vmatprep.mubr.bf16.mxu0 %v16906_v2  ;;  %11134 = vmatpush1.bf16.msra.mxu0 %v14330_v45  ;;  %v14404_v45 = vld [vmem:[%s20484_s9 + $0x4d0] sm:$0xff]  ;;  %v16546_v5 = vld [vmem:[%s20486_s11 + $0x928] sm:$0xff]  }
0x45e1   :  { %11135 = vmatprep.subr.bf16.mxu0 %v14327_v34  ;;  %11371 = vmatprep.subr.bf16.mxu1 %v14428_v49  ;;  %v14420_v50 = vcombine.high %v14402_v20, %v14404_v45  ;;  %v14399_v34 = vld [vmem:[%s20484_s9 + $0x418] sm:$0xff]  ;;  %v14419_v56 = vcombine.low %v14402_v20, %v14404_v45  ;;  %v16549_v49 = vld [vmem:[%s20486_s11 + $0x9e0] sm:$0xff]  }
0x45e2   :  { %v14418_v55 = vcombine.high %v14399_v34, %v14401_v62 }
0x45e4   :  { %11136 = vmatpush1.bf16.msra.mxu0 %v14326_v37  ;;  %v14400_v37 = vld [vmem:[%s20484_s9 + $0x450] sm:$0xff] }
0x45e5   :  { %11137 = vmatprep.subr.bf16.mxu0 %v14323_v54  ;;  %v14416_v18 = vcombine.high %v14398_v51, %v14400_v37  ;;  %v14415_v52 = vcombine.low %v14398_v51, %v14400_v37  ;;  %v16536_v54 = vld [vmem:[%s20486_s11 + $0x978] sm:$0xff]  }
0x45e8   :  { %11138 = vmatpush1.bf16.msra.mxu0 %v14322_v43  ;;  %v14417_v43 = vcombine.low %v14399_v34, %v14401_v62 }
0x45e9   :  { %11139 = vmatprep.subr.bf16.mxu0 %v14319_v53  ;;  %v16544_v53 = vld [vmem:[%s20486_s11 + $0x968] sm:$0xff]  }
0x45ec   :  { %11140 = vmatpush1.bf16.msra.mxu0 %v14318_v6  ;;  %v16543_v6 = vld [vmem:[%s20486_s11 + $0x9b0] sm:$0xff]  }
0x469f   :  { %v10903_v47 = vpop.f32.mrf.mxu0 }
0x46a0   :  { %v10904_v44 = vadd.f32 %v14289_v9, %v10903_v47 }
0x46a1   :  { %v16197_v27 = vpop.f32.mrf.mxu0 }
0x46a2   :  { %v10910_v39 = vadd.f32 %v10904_v44, %v19344_v61 }
0x46a3   :  { %v10906_v33 = vpop.f32.mrf.mxu0 }
0x46a4   :  { %v10907_v38 = vadd.f32 %v14289_v9, %v10906_v33  ;;  %v10916_v11 = vsel %vm207_vm14, %v10910_v39, 0.0  ;;  %v14413_v9 = vld [vmem:[%s20484_s9 + $0x5d8] sm:$0xff] }
0x46a5   :  { %10917 = vadd.xlane.f32.xlu0 %v10916_v11  ;;  %v16198_v28 = vpop.f32.mrf.mxu0  ;;  %v14429_v47 = vcombine.low %v14411_v17, %v14413_v9  ;;  %v14430_v44 = vcombine.high %v14411_v17, %v14413_v9  ;;  %v16547_v17 = vld [vmem:[%s20486_s11 + $0x9a8] sm:$0xff]   ;;  %v16550_v9 = vld [vmem:[%s20486_s11 + $0x920] sm:$0xff]  }
0x46a6   :  { %v10911_v25 = vadd.f32 %v10907_v38, %v19346_v13 }
0x46a7   :  { %11414 = vmatprep.subr.bf16.mxu0 %v14430_v44  ;;  %v16552_v44 = vld [vmem:[%s20486_s11 + $0x958] sm:$0xff]  }
0x46a8   :  { %v10919_v1 = vsel %vm207_vm14, %v10911_v25, 0.0 }
0x46a9   :  { %10920 = vadd.xlane.f32.xlu1 %v10919_v1 }
0x472e   :  { %v10918_v31 = vpop.xlane.xlu0 %10917 }
0x472f   :  { %v10922_v42 = vmul.f32 0.015625, %v10918_v31  ;;  %v14297_v31 = vld [vmem:[%s20560_s26 + $0x2] ss:$0 sm:$0xff] }
0x4731   :  { %v19735_v57 = vsub.f32 %v10910_v39, %v10922_v42 }
0x4732   :  { %v10921_v48 = vpop.xlane.xlu1 %10920 }
0x4733   :  { %v10923_v7 = vmul.f32 0.015625, %v10921_v48  ;;  %v10926_v61 = vmul.f32 %v19735_v57, %v19735_v57 }
0x4735   :  { %v19739_v40 = vsub.f32 %v10911_v25, %v10923_v7  ;;  %v10928_v35 = vsel %vm207_vm14, %v10926_v61, 0.0  ;;  %v14298_v61 = vld [vmem:[%s20561_s29 + $0x2] ss:$0 sm:$0xff] }
0x4736   :  { %10929 = vadd.xlane.f32.xlu0 %v10928_v35 }
0x4737   :  { %v10927_v13 = vmul.f32 %v19739_v40, %v19739_v40 }
0x4739   :  { %v10931_v41 = vsel %vm207_vm14, %v10927_v13, 0.0  ;;  %v14406_v13 = vld [vmem:[%s20484_s9 + $0x510] sm:$0xff] }
0x473a   :  { %10932 = vadd.xlane.f32.xlu0 %v10931_v41  ;;  %v14407_v41 = vld [vmem:[%s20484_s9 + $0x518] sm:$0xff] }
0x47bf   :  { %v10930_v27 = vpop.xlane.xlu0 %10929 }
0x47c0   :  { %v10934_v39 = vmul.f32 0.015625, %v10930_v27  ;;  %v16553_v27 = vld [vmem:[%s20486_s11 + $0x9d8] sm:$0xff]  }
0x47c2   :  { %v10936_v33 = vadd.f32 1e-05, %v10934_v39  ;;  %v16554_v39 = vld [vmem:[%s20486_s11 + $0x918] sm:$0xff]  }
0x47c3   :  { %v10933_v38 = vpop.xlane.xlu0 %10932 }
0x47c4   :  { %16876 = vrsqrt.f32 %v10936_v33  ;;  %v10935_v11 = vmul.f32 0.015625, %v10933_v38  ;;  %v16555_v33 = vld [vmem:[%s20486_s11 + $0x998] sm:$0xff]   ;;  %v16556_v38 = vld [vmem:[%s20486_s11 + $0x950] sm:$0xff]  }
0x47c6   :  { %v10937_v28 = vadd.f32 1e-05, %v10935_v11  ;;  %v16557_v11 = vld [vmem:[%s20486_s11 + $0x9d0] sm:$0xff]  }
0x47c8   :  { %16878 = vrsqrt.f32 %v10937_v28  ;;  %v16558_v28 = vld [vmem:[%s20486_s11 + $0x910] sm:$0xff]  }
0x47d1   :  { %v16877_v25 = vpop.eup %16876 }
0x47d2   :  { %v10940_v1 = vmul.f32 %v16877_v25, %v19735_v57  ;;  %v14408_v57 = vld [vmem:[%s20484_s9 + $0x550] sm:$0xff] }
0x47d3   :  { %v14424_v0 = vcombine.high %v14406_v13, %v14408_v57  ;;  %v14423_v59 = vcombine.low %v14406_v13, %v14408_v57  ;;  %v16559_v25 = vld [vmem:[%s20486_s11 + $0x990] sm:$0xff]   ;;  %v16567_v13 = vld [vmem:[%s20486_s11 + $0x980] sm:$0xff]   ;;  %v16568_v57 = vld [vmem:[%s20486_s11 + $0x878] sm:$0xff]  }
0x47d4   :  { %v10948_v48 = vmul.f32 %v14297_v31, %v10940_v1  ;;  %v16560_v1 = vld [vmem:[%s20486_s11 + $0x948] sm:$0xff]  }
0x47d5   :  { %v16879_v42 = vpop.eup %16878 }
0x47d6   :  { %v10941_v7 = vmul.f32 %v16879_v42, %v19739_v40  ;;  %v14409_v40 = vld [vmem:[%s20484_s9 + $0x558] sm:$0xff]  ;;  %v19825_v29 = vadd.f32 %v14298_v61, %v10948_v48  ;;  %v16562_v42 = vld [vmem:[%s20486_s11 + $0x908] sm:$0xff]  }
0x47d7   :  { %v14426_v19 = vcombine.high %v14407_v41, %v14409_v40  ;;  %v14425_v32 = vcombine.low %v14407_v41, %v14409_v40  ;;  %v16563_v48 = vld [vmem:[%s20486_s11 + $0x988] sm:$0xff]   ;;  %v16569_v41 = vld [vmem:[%s20486_s11 + $0x8f8] sm:$0xff]  }
0x47d8   :  { %v10949_v35 = vmul.f32 %v14297_v31, %v10941_v7  ;;  %v16561_v31 = vld [vmem:[%s20486_s11 + $0x9c8] sm:$0xff]   ;;  %v16564_v7 = vld [vmem:[%s20486_s11 + $0x940] sm:$0xff]  }
0x47da   :  { %v19827_v30 = vadd.f32 %v14298_v61, %v10949_v35  ;;  %v16565_v61 = vld [vmem:[%s20486_s11 + $0x9c0] sm:$0xff]  }
0x47db   :  { %v16566_v35 = vld [vmem:[%s20486_s11 + $0x900] sm:$0xff]  }
0x47dc   :  { %v19831_v26 = vpack.c.bf16 %v19827_v30, %v19825_v29 }
0x47de   :  { %14332 = vmatmul.mubr.msk.bf16.vlgmr.msra.gmra.mxu1 %vm207_vm14, %v19831_v26  ;;  %14333 = vmatmul.mubr.msk.bf16.vlgmr.msra.gmra.mxu0 %vm207_vm14, %v19831_v26 }
0x47df   :  { %11372 = vmatpush1.bf16.msra.mxu1 %v14427_v8  ;;  %11415 = vmatpush1.bf16.msra.mxu0 %v14429_v47  ;;  %v16548_v8 = vld [vmem:[%s20486_s11 + $0x960] sm:$0xff]  }
0x47e0   :  { %11373 = vmatprep.subr.bf16.mxu1 %v14424_v0  ;;  %11416 = vmatprep.subr.bf16.mxu0 %v14426_v19  ;;  %v16551_v47 = vld [vmem:[%s20486_s11 + $0x9a0] sm:$0xff]  }
0x47e1   :  { %11395 = vmatprep.mubr.bf16.mxu1 %v16906_v2  ;;  %11438 = vmatprep.mubr.bf16.mxu0 %v16906_v2 }
0x47e3   :  { %11374 = vmatpush1.bf16.msra.mxu1 %v14423_v59  ;;  %11417 = vmatpush1.bf16.msra.mxu0 %v14425_v32  ;;  %v14414_v32 = vld [vmem:[%s20485_s10 + $0x24] sm:$0xf] }
0x47e4   :  { %11375 = vmatprep.subr.bf16.mxu1 %v14420_v50  ;;  %11418 = vmatprep.subr.bf16.mxu0 %v14422_v3  ;;  %v11270_v51 = vrot.slane %v14414_v32, %v17056_v21  ;;  %v11278_v37 = vrot.slane %v14414_v32, %v17062_v24  ;;  %v11266_v34 = vrot.slane %v14414_v32, %v17058_v22 }
0x47e5   :  { %v11274_v62 = vrot.slane %v14414_v32, %v17060_v23  ;;  %v16575_v32 = vld [vmem:[%s20486_s11 + $0x8b0] sm:$0xff]  }
0x47e7   :  { %11376 = vmatpush1.bf16.msra.mxu1 %v14419_v56  ;;  %11419 = vmatpush1.bf16.msra.mxu0 %v14421_v60 }
0x47e8   :  { %11377 = vmatprep.subr.bf16.mxu1 %v14416_v18  ;;  %11420 = vmatprep.subr.bf16.mxu0 %v14418_v55  ;;  %v19987_v18 = vld [vmem:[%s20485_s10 + $0x20] sm:$0xf] }
0x47e9   :  { %v10986_v55 = vrot.slane %v19987_v18, %v17056_v21 }
0x47eb   :  { %11378 = vmatpush1.bf16.msra.mxu1 %v14415_v52  ;;  %11421 = vmatpush1.bf16.msra.mxu0 %v14417_v43  ;;  %v10994_v52 = vrot.slane %v19987_v18, %v17062_v24 }
0x47ec   :  { %15406 = vmatprep.subr.bf16.mxu1 %v16536_v54  ;;  %15428 = vmatprep.subr.bf16.mxu0 %v16537_v14 }
0x47ee   :  { %14431 = vmatmul.mubr.msk.bf16.vlgmr.msra.gmra.mxu1 %vm207_vm14, %v19831_v26  ;;  %14432 = vmatmul.mubr.msk.bf16.vlgmr.msra.gmra.mxu0 %vm207_vm14, %v19831_v26 }
0x47ef   :  { %15407 = vmatpush3.bf16.msra.mxu1 %v16538_v46  ;;  %15429 = vmatpush3.bf16.msra.mxu0 %v16539_v10 }
0x47f0   :  { %15408 = vmatprep.subr.bf16.mxu1 %v16540_v63  ;;  %15430 = vmatprep.subr.bf16.mxu0 %v16541_v12 }
0x47f3   :  { %15409 = vmatpush3.bf16.msra.mxu1 %v16542_v4  ;;  %15431 = vmatpush3.bf16.msra.mxu0 %v16543_v6 }
0x47f4   :  { %15410 = vmatprep.subr.bf16.mxu1 %v16544_v53  ;;  %15432 = vmatprep.subr.bf16.mxu0 %v16545_v16 }
0x47f7   :  { %15411 = vmatpush3.bf16.msra.mxu1 %v16546_v5  ;;  %15433 = vmatpush3.bf16.msra.mxu0 %v16547_v17 }
0x47f8   :  { %15412 = vmatprep.subr.bf16.mxu1 %v16548_v8  ;;  %15434 = vmatprep.subr.bf16.mxu0 %v16549_v49 }
0x47fb   :  { %15413 = vmatpush3.bf16.msra.mxu1 %v16550_v9  ;;  %15435 = vmatpush3.bf16.msra.mxu0 %v16551_v47 }
0x47fc   :  { %15414 = vmatprep.subr.bf16.mxu1 %v16552_v44  ;;  %15436 = vmatprep.subr.bf16.mxu0 %v16553_v27 }
0x47ff   :  { %15415 = vmatpush3.bf16.msra.mxu1 %v16554_v39  ;;  %15437 = vmatpush3.bf16.msra.mxu0 %v16555_v33 }
0x4800   :  { %15416 = vmatprep.subr.bf16.mxu1 %v16556_v38  ;;  %15438 = vmatprep.subr.bf16.mxu0 %v16557_v11 }
0x4803   :  { %15417 = vmatpush3.bf16.msra.mxu1 %v16558_v28  ;;  %15439 = vmatpush3.bf16.msra.mxu0 %v16559_v25 }
0x4804   :  { %15418 = vmatprep.subr.bf16.mxu1 %v16560_v1  ;;  %15440 = vmatprep.subr.bf16.mxu0 %v16561_v31 }
0x4807   :  { %15419 = vmatpush3.bf16.msra.mxu1 %v16562_v42  ;;  %15441 = vmatpush3.bf16.msra.mxu0 %v16563_v48  ;;  %v16570_v48 = vld [vmem:[%s20486_s11 + $0x838] sm:$0xff]  }
0x4808   :  { %15420 = vmatprep.subr.bf16.mxu1 %v16564_v7  ;;  %15442 = vmatprep.subr.bf16.mxu0 %v16565_v61  ;;  %v16571_v7 = vld [vmem:[%s20486_s11 + $0x8b8] sm:$0xff]  }
0x480b   :  { %15421 = vmatpush3.bf16.msra.mxu1 %v16566_v35  ;;  %15443 = vmatpush3.bf16.msra.mxu0 %v16567_v13 }
0x480c   :  { %15450 = vmatprep.subr.bf16.mxu1 %v16568_v57  ;;  %15472 = vmatprep.subr.bf16.mxu0 %v16569_v41  ;;  %v16572_v41 = vld [vmem:[%s20486_s11 + $0x870] sm:$0xff]  }
0x489e   :  { %v19969_v40 = vpop.f32.mrf.mxu1  ;;  %v19971_v0 = vpop.f32.mrf.mxu0 }
0x48a0   :  { %v11118_v19 = vpop.f32.mrf.mxu1  ;;  %v11161_v20 = vpop.f32.mrf.mxu0 }
0x48a1   :  { %v11119_v49 = vadd.f32 %v11118_v19, %v10986_v55  ;;  %v11162_v9 = vadd.f32 %v11161_v20, %v10994_v52  ;;  %v16573_v19 = vld [vmem:[%s20486_s11 + $0x8f0] sm:$0xff]  }
0x48a2   :  { %v19973_v45 = vpop.f32.mrf.mxu1  ;;  %v19975_v15 = vpop.f32.mrf.mxu0 }
0x48a3   :  { %v11169_v61 = vmax.f32 %v11119_v49, 0.0  ;;  %v11171_v35 = vmax.f32 %v11162_v9, 0.0  ;;  %v16597_v49 = vld [vmem:[%s20486_s11 + $0x8c0] sm:$0xff]  }
0x48a4   :  { %v11122_v36 = vpop.f32.mrf.mxu1  ;;  %v11165_v59 = vpop.f32.mrf.mxu0  ;;  %v14573_v9 = vld [vmem:[%s20484_s9 + $0x5a0] sm:$0xff] }
0x48a5   :  { %v11123_v12 = vadd.f32 %v11122_v36, %v10986_v55  ;;  %v11166_v4 = vadd.f32 %v11165_v59, %v10994_v52  ;;  %v16574_v59 = vld [vmem:[%s20486_s11 + $0x830] sm:$0xff]   ;;  %v16584_v55 = vld [vmem:[%s20486_s11 + $0x858] sm:$0xff]  }
0x48a6   :  { %v16585_v52 = vld [vmem:[%s20486_s11 + $0x8d8] sm:$0xff]  }
0x48a7   :  { %v11173_v11 = vmax.f32 %v11123_v12, 0.0  ;;  %v11175_v28 = vmax.f32 %v11166_v4, 0.0  ;;  %v16592_v12 = vld [vmem:[%s20486_s11 + $0x848] sm:$0xff]  }
0x48a8   :  { %v16593_v4 = vld [vmem:[%s20486_s11 + $0x8c8] sm:$0xff]  }
0x48a9   :  { %v11177_v20 = vpack.c.bf16 %v11173_v11, %v11169_v61  ;;  %v11179_v36 = vpack.c.bf16 %v11175_v28, %v11171_v35 }
0x48ae   :  { %v11397_v50 = vpop.f32.mrf.mxu1  ;;  %v11440_v3 = vpop.f32.mrf.mxu0 }
0x48af   :  { %v11398_v6 = vadd.f32 %v11397_v50, %v11266_v34  ;;  %v11441_v53 = vadd.f32 %v11440_v3, %v11274_v62  ;;  %v16576_v50 = vld [vmem:[%s20486_s11 + $0x868] sm:$0xff]  }
0x48b0   :  { %v11399_v56 = vpop.f32.mrf.mxu1  ;;  %v11442_v60 = vpop.f32.mrf.mxu0  ;;  %v16577_v3 = vld [vmem:[%s20486_s11 + $0x8e8] sm:$0xff]  }
0x48b1   :  { %v11400_v14 = vadd.f32 %v11399_v56, %v11270_v51  ;;  %v11443_v46 = vadd.f32 %v11442_v60, %v11278_v37  ;;  %v11449_v25 = vmax.f32 %v11398_v6, 0.0  ;;  %v11451_v1 = vmax.f32 %v11441_v53, 0.0  ;;  %v16582_v56 = vld [vmem:[%s20486_s11 + $0x820] sm:$0xff]  }
0x48b2   :  { %v11401_v43 = vpop.f32.mrf.mxu1  ;;  %v11444_v54 = vpop.f32.mrf.mxu0  ;;  %v16583_v60 = vld [vmem:[%s20486_s11 + $0x8a0] sm:$0xff]   ;;  %v10982_v6 = vrot.slane %v19987_v18, %v17058_v22  ;;  %v10990_v53 = vrot.slane %v19987_v18, %v17060_v23 }
0x48b3   :  { %v11402_v10 = vadd.f32 %v11401_v43, %v11266_v34  ;;  %v11445_v63 = vadd.f32 %v11444_v54, %v11274_v62  ;;  %v11450_v27 = vmax.f32 %v11400_v14, 0.0  ;;  %v11452_v39 = vmax.f32 %v11443_v46, 0.0  ;;  %v16580_v34 = vld [vmem:[%s20486_s11 + $0x860] sm:$0xff]   ;;  %v16586_v43 = vld [vmem:[%s20486_s11 + $0x818] sm:$0xff]   ;;  %v16588_v14 = vld [vmem:[%s20486_s11 + $0x850] sm:$0xff]  }
0x48b4   :  { %v11403_v16 = vpop.f32.mrf.mxu1  ;;  %v11446_v5 = vpop.f32.mrf.mxu0  ;;  %v16581_v62 = vld [vmem:[%s20486_s11 + $0x8e0] sm:$0xff]   ;;  %v16587_v54 = vld [vmem:[%s20486_s11 + $0x898] sm:$0xff]   ;;  %v16589_v46 = vld [vmem:[%s20486_s11 + $0x8d0] sm:$0xff]  }
0x48b5   :  { %v11404_v17 = vadd.f32 %v11403_v16, %v11270_v51  ;;  %v11447_v8 = vadd.f32 %v11446_v5, %v11278_v37  ;;  %v11453_v47 = vmax.f32 %v11402_v10, 0.0  ;;  %v11455_v44 = vmax.f32 %v11445_v63, 0.0  ;;  %v16578_v51 = vld [vmem:[%s20486_s11 + $0x828] sm:$0xff]   ;;  %v16590_v10 = vld [vmem:[%s20486_s11 + $0x810] sm:$0xff]   ;;  %v16596_v18 = vld [vmem:[%s20486_s11 + $0x840] sm:$0xff]  }
0x48b6   :  { %v16579_v37 = vld [vmem:[%s20486_s11 + $0x8a8] sm:$0xff]   ;;  %v16591_v63 = vld [vmem:[%s20486_s11 + $0x890] sm:$0xff]  }
0x48b7   :  { %v11454_v33 = vmax.f32 %v11404_v17, 0.0  ;;  %v11456_v38 = vmax.f32 %v11447_v8, 0.0  ;;  %v11457_v13 = vpack.c.bf16 %v11453_v47, %v11449_v25  ;;  %v11459_v57 = vpack.c.bf16 %v11455_v44, %v11451_v1  ;;  %v16594_v16 = vld [vmem:[%s20486_s11 + $0x808] sm:$0xff]  }
0x48b8   :  { %v16595_v5 = vld [vmem:[%s20486_s11 + $0x888] sm:$0xff]   ;;  %v11121_v17 = vadd.f32 %v19973_v45, %v10982_v6  ;;  %v11164_v8 = vadd.f32 %v19975_v15, %v10990_v53  ;;  %v14575_v45 = vld [vmem:[%s20484_s9 + $0x5e0] sm:$0xff]  ;;  %v11117_v44 = vadd.f32 %v19969_v40, %v10982_v6  ;;  %v16605_v6 = vld [vmem:[%s20486_s11 + $0xaf0] sm:$0xff]  }
0x48b9   :  { %v11458_v31 = vpack.c.bf16 %v11454_v33, %v11450_v27  ;;  %v11460_v42 = vpack.c.bf16 %v11456_v38, %v11452_v39  ;;  %v14574_v15 = vld [vmem:[%s20484_s9 + $0x5a8] sm:$0xff]  ;;  %v11160_v27 = vadd.f32 %v19971_v0, %v10990_v53  ;;  %v16598_v39 = vld [vmem:[%s20486_s11 + $0x800] sm:$0xff]   ;;  %v14591_v28 = vcombine.high %v14573_v9, %v14575_v45  ;;  %v16606_v53 = vld [vmem:[%s20486_s11 + $0xa30] sm:$0xff]  }
0x48ba   :  { %v14576_v47 = vld [vmem:[%s20484_s9 + $0x5e8] sm:$0xff]  ;;  %v16599_v33 = vld [vmem:[%s20486_s11 + $0x880] sm:$0xff]   ;;  %v11172_v38 = vmax.f32 %v11121_v17, 0.0  ;;  %v11174_v11 = vmax.f32 %v11164_v8, 0.0 }
0x48bb   :  { %11749 = vmatprep.mubr.bf16.mxu1 %v11458_v31  ;;  %11790 = vmatprep.mubr.bf16.mxu0 %v11460_v42  ;;  %v14593_v25 = vcombine.high %v14574_v15, %v14576_v47  ;;  %v14569_v40 = vld [vmem:[%s20484_s9 + $0x520] sm:$0xff]  ;;  %v14570_v1 = vld [vmem:[%s20484_s9 + $0x528] sm:$0xff]  ;;  %v11168_v42 = vmax.f32 %v11117_v44, 0.0  ;;  %v14592_v61 = vcombine.low %v14574_v15, %v14576_v47  ;;  %v16616_v47 = vld [vmem:[%s20486_s11 + $0xa58] sm:$0xff]  }
0x48bc   :  { %11750 = vmatmul.mubr.bf16.vlgmr.msra.gmra.mxu1 %v11457_v13  ;;  %11791 = vmatmul.mubr.bf16.vlgmr.msra.gmra.mxu0 %v11459_v57  ;;  %v14571_v0 = vld [vmem:[%s20484_s9 + $0x560] sm:$0xff]  ;;  %v14572_v31 = vld [vmem:[%s20484_s9 + $0x568] sm:$0xff]  ;;  %v16617_v44 = vld [vmem:[%s20486_s11 + $0xad8] sm:$0xff]  }
0x48bd   :  { %15451 = vmatpush3.bf16.msra.mxu1 %v16570_v48  ;;  %15473 = vmatpush3.bf16.msra.mxu0 %v16571_v7  ;;  %v11170_v48 = vmax.f32 %v11160_v27, 0.0  ;;  %v14590_v7 = vcombine.low %v14573_v9, %v14575_v45  ;;  %v14587_v35 = vcombine.high %v14569_v40, %v14571_v0  ;;  %v11176_v13 = vpack.c.bf16 %v11172_v38, %v11168_v42  ;;  %v16609_v17 = vld [vmem:[%s20486_s11 + $0xae8] sm:$0xff]   ;;  %v16613_v9 = vld [vmem:[%s20486_s11 + $0xae0] sm:$0xff]   ;;  %v16618_v27 = vld [vmem:[%s20486_s11 + $0xa18] sm:$0xff]  }
0x48be   :  { %12023 = vmatprep.mubr.bf16.mxu1 %v11177_v20  ;;  %12064 = vmatprep.mubr.bf16.mxu0 %v11179_v36  ;;  %v14567_v20 = vld [vmem:[%s20484_s9 + $0x4e0] sm:$0xff]  ;;  %v14566_v36 = vld [vmem:[%s20484_s9 + $0x4a8] sm:$0xff]  ;;  %v16621_v38 = vld [vmem:[%s20486_s11 + $0xad0] sm:$0xff]  }
0x48bf   :  { %15452 = vmatprep.subr.bf16.mxu1 %v16572_v41  ;;  %15474 = vmatprep.subr.bf16.mxu0 %v16573_v19  ;;  %v11178_v57 = vpack.c.bf16 %v11174_v11, %v11170_v48  ;;  %v14589_v41 = vcombine.high %v14570_v1, %v14572_v31  ;;  %v14565_v19 = vld [vmem:[%s20484_s9 + $0x4a0] sm:$0xff]  ;;  %v16610_v8 = vld [vmem:[%s20486_s11 + $0xa28] sm:$0xff]   ;;  %v16622_v11 = vld [vmem:[%s20486_s11 + $0xa10] sm:$0xff]  }
0x48c0   :  { %v16614_v45 = vld [vmem:[%s20486_s11 + $0xa20] sm:$0xff]  }
0x48c1   :  { %15453 = vmatpush3.bf16.msra.mxu1 %v16574_v59  ;;  %15475 = vmatpush3.bf16.msra.mxu0 %v16575_v32  ;;  %v14568_v59 = vld [vmem:[%s20484_s9 + $0x4e8] sm:$0xff]  ;;  %v14586_v32 = vcombine.low %v14569_v40, %v14571_v0  ;;  %v16615_v15 = vld [vmem:[%s20486_s11 + $0xaa0] sm:$0xff]  }
0x48c2   :  { %15454 = vmatprep.subr.bf16.mxu1 %v16576_v50  ;;  %15476 = vmatprep.subr.bf16.mxu0 %v16577_v3  ;;  %v14588_v50 = vcombine.low %v14570_v1, %v14572_v31  ;;  %v14583_v3 = vcombine.high %v14565_v19, %v14567_v20  ;;  %v16625_v40 = vld [vmem:[%s20486_s11 + $0xac8] sm:$0xff]   ;;  %v16628_v31 = vld [vmem:[%s20486_s11 + $0xa40] sm:$0xff]  }
0x48c3   :  { %v16626_v0 = vld [vmem:[%s20486_s11 + $0xa08] sm:$0xff]   ;;  %v16629_v42 = vld [vmem:[%s20486_s11 + $0xac0] sm:$0xff]  }
0x48c4   :  { %v16627_v1 = vld [vmem:[%s20486_s11 + $0xa88] sm:$0xff]   ;;  %v16630_v48 = vld [vmem:[%s20486_s11 + $0xa00] sm:$0xff]  }
0x48c5   :  { %15455 = vmatpush3.bf16.msra.mxu1 %v16578_v51  ;;  %15477 = vmatpush3.bf16.msra.mxu0 %v16579_v37  ;;  %v14585_v51 = vcombine.high %v14566_v36, %v14568_v59  ;;  %v14561_v37 = vld [vmem:[%s20484_s9 + $0x420] sm:$0xff] }
0x48c6   :  { %15456 = vmatprep.subr.bf16.mxu1 %v16580_v34  ;;  %15478 = vmatprep.subr.bf16.mxu0 %v16581_v62  ;;  %v14563_v34 = vld [vmem:[%s20484_s9 + $0x460] sm:$0xff]  ;;  %v14562_v62 = vld [vmem:[%s20484_s9 + $0x428] sm:$0xff] }
0x48c9   :  { %15457 = vmatpush3.bf16.msra.mxu1 %v16582_v56  ;;  %15479 = vmatpush3.bf16.msra.mxu0 %v16583_v60  ;;  %v14564_v56 = vld [vmem:[%s20484_s9 + $0x468] sm:$0xff]  ;;  %v14582_v60 = vcombine.low %v14565_v19, %v14567_v20 }
0x48ca   :  { %15458 = vmatprep.subr.bf16.mxu1 %v16584_v55  ;;  %15480 = vmatprep.subr.bf16.mxu0 %v16585_v52  ;;  %v14584_v55 = vcombine.low %v14566_v36, %v14568_v59  ;;  %v14579_v52 = vcombine.high %v14561_v37, %v14563_v34 }
0x48cd   :  { %15459 = vmatpush3.bf16.msra.mxu1 %v16586_v43  ;;  %15481 = vmatpush3.bf16.msra.mxu0 %v16587_v54  ;;  %v14581_v43 = vcombine.high %v14562_v62, %v14564_v56  ;;  %v14578_v54 = vcombine.low %v14561_v37, %v14563_v34 }
0x48ce   :  { %15460 = vmatprep.subr.bf16.mxu1 %v16588_v14  ;;  %15482 = vmatprep.subr.bf16.mxu0 %v16589_v46  ;;  %v14580_v14 = vcombine.low %v14562_v62, %v14564_v56  ;;  %v16600_v46 = vld [vmem:[%s20486_s11 + $0xa78] sm:$0xff]  }
0x48d1   :  { %15461 = vmatpush3.bf16.msra.mxu1 %v16590_v10  ;;  %15483 = vmatpush3.bf16.msra.mxu0 %v16591_v63  ;;  %v16601_v10 = vld [vmem:[%s20486_s11 + $0xaf8] sm:$0xff]  }
0x48d2   :  { %15462 = vmatprep.subr.bf16.mxu1 %v16592_v12  ;;  %15484 = vmatprep.subr.bf16.mxu0 %v16593_v4  ;;  %v16602_v63 = vld [vmem:[%s20486_s11 + $0xa38] sm:$0xff]   ;;  %v16604_v4 = vld [vmem:[%s20486_s11 + $0xa70] sm:$0xff]  }
0x48d3   :  { %v16603_v12 = vld [vmem:[%s20486_s11 + $0xab8] sm:$0xff]  }
0x48d5   :  { %15463 = vmatpush3.bf16.msra.mxu1 %v16594_v16  ;;  %15485 = vmatpush3.bf16.msra.mxu0 %v16595_v5  ;;  %v16607_v16 = vld [vmem:[%s20486_s11 + $0xab0] sm:$0xff]   ;;  %v16608_v5 = vld [vmem:[%s20486_s11 + $0xa68] sm:$0xff]  }
0x48d6   :  { %15464 = vmatprep.subr.bf16.mxu1 %v16596_v18  ;;  %15486 = vmatprep.subr.bf16.mxu0 %v16597_v49  ;;  %v16611_v18 = vld [vmem:[%s20486_s11 + $0xaa8] sm:$0xff]   ;;  %v16612_v49 = vld [vmem:[%s20486_s11 + $0xa60] sm:$0xff]  }
0x48d9   :  { %15465 = vmatpush3.bf16.msra.mxu1 %v16598_v39  ;;  %15487 = vmatpush3.bf16.msra.mxu0 %v16599_v33  ;;  %v16619_v39 = vld [vmem:[%s20486_s11 + $0xa98] sm:$0xff]   ;;  %v16620_v33 = vld [vmem:[%s20486_s11 + $0xa50] sm:$0xff]  }
0x48da   :  { %12199 = vmatprep.subr.bf16.mxu1 %v14591_v28  ;;  %12242 = vmatprep.subr.bf16.mxu0 %v14593_v25  ;;  %v16623_v28 = vld [vmem:[%s20486_s11 + $0xa90] sm:$0xff]   ;;  %v16624_v25 = vld [vmem:[%s20486_s11 + $0xa48] sm:$0xff]  }
0x48dc   :  { %12024 = vmatmul.mubr.bf16.vlgmr.msra.gmra.mxu1 %v11176_v13  ;;  %12065 = vmatmul.mubr.bf16.vlgmr.msra.gmra.mxu0 %v11178_v57  ;;  %v20254_v13 = vld [vmem:[%s20484_s9 + $0x5b8] sm:$0xff] }
0x48dd   :  { %12200 = vmatpush1.bf16.msra.mxu1 %v14590_v7  ;;  %12243 = vmatpush1.bf16.msra.mxu0 %v14592_v61  ;;  %v16631_v7 = vld [vmem:[%s20486_s11 + $0xa80] sm:$0xff]   ;;  %v20244_v61 = vld [vmem:[%s20484_s9 + $0x5b0] sm:$0xff] }
0x48de   :  { %12201 = vmatprep.subr.bf16.mxu1 %v14587_v35  ;;  %12244 = vmatprep.subr.bf16.mxu0 %v14589_v41  ;;  %v20249_v35 = vld [vmem:[%s20484_s9 + $0x5f0] sm:$0xff]  ;;  %v20261_v41 = vld [vmem:[%s20484_s9 + $0x5f8] sm:$0xff] }
0x48df   :  { %12223 = vmatprep.mubr.bf16.mxu1 %v16906_v2  ;;  %12266 = vmatprep.mubr.bf16.mxu0 %v16906_v2  ;;  %v14722_v57 = vcombine.high %v20244_v61, %v20249_v35  ;;  %v14721_v19 = vcombine.low %v20244_v61, %v20249_v35  ;;  %v14723_v20 = vcombine.low %v20254_v13, %v20261_v41  ;;  %v14693_v61 = vld [vmem:[%s20484_s9 + $0x438] sm:$0xff] }
0x48e0   :  { %v14724_v36 = vcombine.high %v20254_v13, %v20261_v41  ;;  %v14695_v35 = vld [vmem:[%s20484_s9 + $0x478] sm:$0xff] }
0x48e1   :  { %12202 = vmatpush1.bf16.msra.mxu1 %v14586_v32  ;;  %12245 = vmatpush1.bf16.msra.mxu0 %v14588_v50 }
0x48e2   :  { %12203 = vmatprep.subr.bf16.mxu1 %v14583_v3  ;;  %12246 = vmatprep.subr.bf16.mxu0 %v14585_v51 }
0x48e5   :  { %12204 = vmatpush1.bf16.msra.mxu1 %v14582_v60  ;;  %12247 = vmatpush1.bf16.msra.mxu0 %v14584_v55 }
0x48e6   :  { %12205 = vmatprep.subr.bf16.mxu1 %v14579_v52  ;;  %12248 = vmatprep.subr.bf16.mxu0 %v14581_v43 }
0x48e9   :  { %12206 = vmatpush1.bf16.msra.mxu1 %v14578_v54  ;;  %12249 = vmatpush1.bf16.msra.mxu0 %v14580_v14 }
0x48ea   :  { %15494 = vmatprep.subr.bf16.mxu1 %v16600_v46  ;;  %15516 = vmatprep.subr.bf16.mxu0 %v16601_v10 }
0x48ec   :  { %14594 = vmatmul.mubr.msk.bf16.vlgmr.msra.gmra.mxu1 %vm207_vm14, %v19831_v26  ;;  %14595 = vmatmul.mubr.msk.bf16.vlgmr.msra.gmra.mxu0 %vm207_vm14, %v19831_v26 }
0x48ed   :  { %15495 = vmatpush3.bf16.msra.mxu1 %v16602_v63  ;;  %15517 = vmatpush3.bf16.msra.mxu0 %v16603_v12 }
0x48ee   :  { %15496 = vmatprep.subr.bf16.mxu1 %v16604_v4  ;;  %15518 = vmatprep.subr.bf16.mxu0 %v16605_v6 }
0x48f1   :  { %15497 = vmatpush3.bf16.msra.mxu1 %v16606_v53  ;;  %15519 = vmatpush3.bf16.msra.mxu0 %v16607_v16 }
0x48f2   :  { %15498 = vmatprep.subr.bf16.mxu1 %v16608_v5  ;;  %15520 = vmatprep.subr.bf16.mxu0 %v16609_v17 }
0x48f5   :  { %15499 = vmatpush3.bf16.msra.mxu1 %v16610_v8  ;;  %15521 = vmatpush3.bf16.msra.mxu0 %v16611_v18 }
0x48f6   :  { %15500 = vmatprep.subr.bf16.mxu1 %v16612_v49  ;;  %15522 = vmatprep.subr.bf16.mxu0 %v16613_v9 }
0x48f9   :  { %15501 = vmatpush3.bf16.msra.mxu1 %v16614_v45  ;;  %15523 = vmatpush3.bf16.msra.mxu0 %v16615_v15  ;;  %v14577_v15 = vld [vmem:[%s20485_s10 + $0x28] sm:$0xf] }
0x48fa   :  { %15502 = vmatprep.subr.bf16.mxu1 %v16616_v47  ;;  %15524 = vmatprep.subr.bf16.mxu0 %v16617_v44 }
0x48fd   :  { %15503 = vmatpush3.bf16.msra.mxu1 %v16618_v27  ;;  %15525 = vmatpush3.bf16.msra.mxu0 %v16619_v39  ;;  %v12098_v27 = vrot.slane %v14577_v15, %v17056_v21  ;;  %v12106_v39 = vrot.slane %v14577_v15, %v17062_v24 }
0x48fe   :  { %15504 = vmatprep.subr.bf16.mxu1 %v16620_v33  ;;  %15526 = vmatprep.subr.bf16.mxu0 %v16621_v38  ;;  %v12094_v33 = vrot.slane %v14577_v15, %v17058_v22  ;;  %v12102_v38 = vrot.slane %v14577_v15, %v17060_v23  ;;  %v14692_v15 = vld [vmem:[%s20484_s9 + $0x430] sm:$0xff] }
0x4901   :  { %15505 = vmatpush3.bf16.msra.mxu1 %v16622_v11  ;;  %15527 = vmatpush3.bf16.msra.mxu0 %v16623_v28 }
0x4902   :  { %15506 = vmatprep.subr.bf16.mxu1 %v16624_v25  ;;  %15528 = vmatprep.subr.bf16.mxu0 %v16625_v40 }
0x4905   :  { %15507 = vmatpush3.bf16.msra.mxu1 %v16626_v0  ;;  %15529 = vmatpush3.bf16.msra.mxu0 %v16627_v1 }
0x4906   :  { %15508 = vmatprep.subr.bf16.mxu1 %v16628_v31  ;;  %15530 = vmatprep.subr.bf16.mxu0 %v16629_v42 }
0x4909   :  { %15509 = vmatpush3.bf16.msra.mxu1 %v16630_v48  ;;  %15531 = vmatpush3.bf16.msra.mxu0 %v16631_v7 }
0x490a   :  { %12755 = vmatprep.subr.bf16.mxu1 %v14722_v57  ;;  %12798 = vmatprep.subr.bf16.mxu0 %v14724_v36 }
0x497c   :  { %v15422_v59 = vpop.f32.mrf.mxu1  ;;  %v15444_v32 = vpop.f32.mrf.mxu0 }
0x497e   :  { %v15423_v50 = vpop.f32.mrf.mxu1  ;;  %v15445_v3 = vpop.f32.mrf.mxu0 }
0x497f   :  { %v15424_v51 = vadd.f32 %v15423_v50, %v15422_v59  ;;  %v15446_v37 = vadd.f32 %v15445_v3, %v15444_v32 }
0x4980   :  { %v15425_v34 = vpop.f32.mrf.mxu1  ;;  %v15447_v62 = vpop.f32.mrf.mxu0 }
0x4981   :  { %v11793_v56 = vadd.f32 %v15446_v37, %v15424_v51  ;;  %v14700_v51 = vld [vmem:[%s20484_s9 + $0x530] sm:$0xff] }
0x4982   :  { %v15426_v60 = vpop.f32.mrf.mxu1  ;;  %v15448_v55 = vpop.f32.mrf.mxu0  ;;  %v14702_v37 = vld [vmem:[%s20484_s9 + $0x570] sm:$0xff] }
0x4983   :  { %v15427_v52 = vadd.f32 %v15426_v60, %v15425_v34  ;;  %v15449_v43 = vadd.f32 %v15448_v55, %v15447_v62  ;;  %v14701_v55 = vld [vmem:[%s20484_s9 + $0x538] sm:$0xff] }
0x4985   :  { %v11796_v54 = vadd.f32 %v15449_v43, %v15427_v52  ;;  %v14703_v52 = vld [vmem:[%s20484_s9 + $0x578] sm:$0xff] }
0x499c   :  { %v15466_v14 = vpop.f32.mrf.mxu1  ;;  %v15488_v46 = vpop.f32.mrf.mxu0 }
0x499e   :  { %v15467_v10 = vpop.f32.mrf.mxu1  ;;  %v15489_v63 = vpop.f32.mrf.mxu0 }
0x499f   :  { %v15468_v12 = vadd.f32 %v15467_v10, %v15466_v14  ;;  %v15490_v4 = vadd.f32 %v15489_v63, %v15488_v46 }
0x49a0   :  { %v15469_v6 = vpop.f32.mrf.mxu1  ;;  %v15491_v53 = vpop.f32.mrf.mxu0 }
0x49a1   :  { %v12026_v16 = vadd.f32 %v15468_v12, %v11793_v56  ;;  %v14718_v12 = vcombine.high %v14700_v51, %v14702_v37 }
0x49a2   :  { %v15470_v5 = vpop.f32.mrf.mxu1  ;;  %v15492_v17 = vpop.f32.mrf.mxu0 }
0x49a3   :  { %v20269_v8 = vadd.f32 %v15490_v4, %v12026_v16  ;;  %v15471_v18 = vadd.f32 %v15470_v5, %v15469_v6  ;;  %v15493_v49 = vadd.f32 %v15492_v17, %v15491_v53  ;;  %v14720_v4 = vcombine.high %v14701_v55, %v14703_v52  ;;  %v14696_v6 = vld [vmem:[%s20484_s9 + $0x4b0] sm:$0xff]  ;;  %v14697_v16 = vld [vmem:[%s20484_s9 + $0x4b8] sm:$0xff] }
0x49a4   :  { %v14698_v53 = vld [vmem:[%s20484_s9 + $0x4f0] sm:$0xff]  ;;  %v14699_v5 = vld [vmem:[%s20484_s9 + $0x4f8] sm:$0xff]  ;;  %v14717_v17 = vcombine.low %v14700_v51, %v14702_v37 }
0x49a5   :  { %v12029_v9 = vadd.f32 %v15471_v18, %v11796_v54  ;;  %v14719_v18 = vcombine.low %v14701_v55, %v14703_v52  ;;  %v14713_v13 = vcombine.low %v14696_v6, %v14698_v53  ;;  %v14715_v41 = vcombine.low %v14697_v16, %v14699_v5  ;;  %v16653_v51 = vld [vmem:[%s20486_s11 + $0xbd0] sm:$0xff]   ;;  %v16659_v55 = vld [vmem:[%s20486_s11 + $0xb88] sm:$0xff]   ;;  %v16660_v52 = vld [vmem:[%s20486_s11 + $0xb40] sm:$0xff]  }
0x49a6   :  { %v16654_v37 = vld [vmem:[%s20486_s11 + $0xb10] sm:$0xff]  }
0x49a7   :  { %v20271_v45 = vadd.f32 %v15493_v49, %v12029_v9  ;;  %v14714_v49 = vcombine.high %v14696_v6, %v14698_v53  ;;  %v14716_v9 = vcombine.high %v14697_v16, %v14699_v5 }
0x49ac   :  { %v12225_v47 = vpop.f32.mrf.mxu1  ;;  %v12268_v44 = vpop.f32.mrf.mxu0 }
0x49ad   :  { %v12226_v48 = vadd.f32 %v12225_v47, %v12094_v33  ;;  %v12269_v7 = vadd.f32 %v12268_v44, %v12102_v38  ;;  %v14694_v47 = vld [vmem:[%s20484_s9 + $0x470] sm:$0xff]  ;;  %s16924_s9 = smov [#allocation3]  }
0x49ae   :  { %v12227_v11 = vpop.f32.mrf.mxu1  ;;  %v12270_v28 = vpop.f32.mrf.mxu0  ;;  %v14709_v44 = vcombine.low %v14692_v15, %v14694_v47  ;;  %s13359_s17 = sshll.u32 %s16924_s9, 4  ;;  %s13360_s17 = int_to_ptr.vmem [resolvable:$true] %s13359_s17 }
0x49af   :  { %v12228_v0 = vadd.f32 %v12227_v11, %v12098_v27  ;;  %v12271_v1 = vadd.f32 %v12270_v28, %v12106_v39  ;;  %v12277_v43 = vmax.f32 %v12226_v48, 0.0  ;;  %v12279_v54 = vmax.f32 %v12269_v7, 0.0  ;;  %v16636_v11 = vld [vmem:[%s20486_s11 + $0xb70] sm:$0xff]   ;;  %v16645_v48 = vld [vmem:[%s20486_s11 + $0xbe0] sm:$0xff]   ;;  %s16884_s21 = scalar_lea.vmem %s13360_s17, 32  ;;  %p16889_p1 = scmp.lt.s32.totalorder %s13360_s17, %s13360_s17 }
0x49b0   :  { %v12229_v25 = vpop.f32.mrf.mxu1  ;;  %v12272_v40 = vpop.f32.mrf.mxu0  ;;  %v16637_v28 = vld [vmem:[%s20486_s11 + $0xbf0] sm:$0xff]   ;;  %v16646_v7 = vld [vmem:[%s20486_s11 + $0xb20] sm:$0xff]   ;;  %p16885_p0 = scmp.ne.s32.totalorder %s13360_s17, %s16884_s21  ;;  %p16890_p2 = scmp.lt.s32.totalorder %s16884_s21, %s16884_s21 }
0x49b1   :  { %v12230_v31 = vadd.f32 %v12229_v25, %v12094_v33  ;;  %v12273_v42 = vadd.f32 %v12272_v40, %v12102_v38  ;;  %v12278_v34 = vmax.f32 %v12228_v0, 0.0  ;;  %v12280_v62 = vmax.f32 %v12271_v1, 0.0  ;;  %v16634_v33 = vld [vmem:[%s20486_s11 + $0xb38] sm:$0xff]   ;;  %v16638_v25 = vld [vmem:[%s20486_s11 + $0xb30] sm:$0xff]   ;;  %v16641_v0 = vld [vmem:[%s20486_s11 + $0xbe8] sm:$0xff]  }
0x49b2   :  { %v12231_v57 = vpop.f32.mrf.mxu1  ;;  %v12274_v36 = vpop.f32.mrf.mxu0  ;;  %v16635_v38 = vld [vmem:[%s20486_s11 + $0xbb8] sm:$0xff]   ;;  %v16639_v40 = vld [vmem:[%s20486_s11 + $0xbb0] sm:$0xff]   ;;  %v16642_v1 = vld [vmem:[%s20486_s11 + $0xb28] sm:$0xff]   ;;  %p16891_p3 = por %p16890_p2, %p16889_p1 }
0x49b3   :  { %v12232_v59 = vadd.f32 %v12231_v57, %v12098_v27  ;;  %v12275_v32 = vadd.f32 %v12274_v36, %v12106_v39  ;;  %v12281_v50 = vmax.f32 %v12230_v31, 0.0  ;;  %v12283_v3 = vmax.f32 %v12273_v42, 0.0  ;;  %v16632_v39 = vld [vmem:[%s20486_s11 + $0xb78] sm:$0xff]   ;;  %v16643_v31 = vld [vmem:[%s20486_s11 + $0xba8] sm:$0xff]   ;;  %v16644_v42 = vld [vmem:[%s20486_s11 + $0xb60] sm:$0xff]  }
0x49b4   :  { %v14711_v27 = vcombine.low %v14693_v61, %v14695_v35  ;;  %v16647_v57 = vld [vmem:[%s20486_s11 + $0xba0] sm:$0xff]   ;;  %v16648_v36 = vld [vmem:[%s20486_s11 + $0xb58] sm:$0xff]   ;;  %p16892_p4 = pnand %p16891_p3, %p16885_p0 }
0x49b5   :  { %v12282_v56 = vmax.f32 %v12232_v59, 0.0  ;;  %v12284_v60 = vmax.f32 %v12275_v32, 0.0  ;;  %v12285_v10 = vpack.c.bf16 %v12281_v50, %v12277_v43  ;;  %v12287_v63 = vpack.c.bf16 %v12283_v3, %v12279_v54  ;;  %v16649_v59 = vld [vmem:[%s20486_s11 + $0xbd8] sm:$0xff]   ;;  %v16652_v3 = vld [vmem:[%s20486_s11 + $0xb50] sm:$0xff]   ;;  %v16661_v43 = vld [vmem:[%s20486_s11 + $0xbc0] sm:$0xff]  }
0x49b6   :  { %v16650_v32 = vld [vmem:[%s20486_s11 + $0xb18] sm:$0xff]   ;;  %v16662_v54 = vld [vmem:[%s20486_s11 + $0xb00] sm:$0xff]  }
0x49b7   :  { %v12286_v14 = vpack.c.bf16 %v12282_v56, %v12278_v34  ;;  %v12288_v46 = vpack.c.bf16 %v12284_v60, %v12280_v62  ;;  %v16651_v50 = vld [vmem:[%s20486_s11 + $0xb98] sm:$0xff]   ;;  %v16655_v34 = vld [vmem:[%s20486_s11 + $0xb90] sm:$0xff]   ;;  %v16656_v62 = vld [vmem:[%s20486_s11 + $0xb48] sm:$0xff]  }
0x49b8   :  { %v16657_v56 = vld [vmem:[%s20486_s11 + $0xbc8] sm:$0xff]  }
0x49b9   :  { %12577 = vmatprep.mubr.bf16.mxu1 %v12286_v14  ;;  %12618 = vmatprep.mubr.bf16.mxu0 %v12288_v46  ;;  %v16658_v60 = vld [vmem:[%s20486_s11 + $0xb08] sm:$0xff]   ;;  %v16663_v14 = vld [vmem:[%s20486_s11 + $0xb80] sm:$0xff]  }
0x49ba   :  { %12578 = vmatmul.mubr.bf16.vlgmr.msra.gmra.mxu1 %v12285_v10  ;;  %12619 = vmatmul.mubr.bf16.vlgmr.msra.gmra.mxu0 %v12287_v63 }
0x49bb   :  { %12756 = vmatpush1.bf16.msra.mxu1 %v14721_v19  ;;  %12799 = vmatpush1.bf16.msra.mxu0 %v14723_v20  ;;  %v14710_v19 = vcombine.high %v14692_v15, %v14694_v47  ;;  %v14712_v20 = vcombine.high %v14693_v61, %v14695_v35  ;;  %v14708_v35 = vld [vmem:[%s20485_s10 + $0x2c] sm:$0xf] }
0x49bc   :  { %12757 = vmatprep.subr.bf16.mxu1 %v14718_v12  ;;  %12800 = vmatprep.subr.bf16.mxu0 %v14720_v4 }
0x49bd   :  { %12779 = vmatprep.mubr.bf16.mxu1 %v16906_v2  ;;  %12822 = vmatprep.mubr.bf16.mxu0 %v16906_v2  ;;  %v16633_v2 = vld [vmem:[%s20486_s11 + $0xbf8] sm:$0xff]  }
0x49bf   :  { %12758 = vmatpush1.bf16.msra.mxu1 %v14717_v17  ;;  %12801 = vmatpush1.bf16.msra.mxu0 %v14719_v18 }
0x49c0   :  { %12759 = vmatprep.subr.bf16.mxu1 %v14714_v49  ;;  %12802 = vmatprep.subr.bf16.mxu0 %v14716_v9 }
0x49c3   :  { %12760 = vmatpush1.bf16.msra.mxu1 %v14713_v13  ;;  %12803 = vmatpush1.bf16.msra.mxu0 %v14715_v41 }
0x49c4   :  { %12761 = vmatprep.subr.bf16.mxu1 %v14710_v19  ;;  %12804 = vmatprep.subr.bf16.mxu0 %v14712_v20  ;;  %v12654_v19 = vrot.slane %v14708_v35, %v17056_v21  ;;  %v12662_v20 = vrot.slane %v14708_v35, %v17062_v24 }
0x49c7   :  { %12762 = vmatpush1.bf16.msra.mxu1 %v14709_v44  ;;  %12805 = vmatpush1.bf16.msra.mxu0 %v14711_v27  ;;  %v12650_v44 = vrot.slane %v14708_v35, %v17058_v22  ;;  %v12658_v27 = vrot.slane %v14708_v35, %v17060_v23 }
0x49c8   :  { %15538 = vmatprep.subr.bf16.mxu1 %v16632_v39  ;;  %15560 = vmatprep.subr.bf16.mxu0 %v16633_v2 }
0x49ca   :  { %14725 = vmatmul.mubr.msk.bf16.vlgmr.msra.gmra.mxu1 %vm207_vm14, %v19831_v26  ;;  %14726 = vmatmul.mubr.msk.bf16.vlgmr.msra.gmra.mxu0 %vm207_vm14, %v19831_v26  ;;  %v16640_v26 = vld [vmem:[%s20486_s11 + $0xb68] sm:$0xff]  }
0x49cb   :  { %15539 = vmatpush3.bf16.msra.mxu1 %v16634_v33  ;;  %15561 = vmatpush3.bf16.msra.mxu0 %v16635_v38 }
0x49cc   :  { %15540 = vmatprep.subr.bf16.mxu1 %v16636_v11  ;;  %15562 = vmatprep.subr.bf16.mxu0 %v16637_v28 }
0x49cf   :  { %15541 = vmatpush3.bf16.msra.mxu1 %v16638_v25  ;;  %15563 = vmatpush3.bf16.msra.mxu0 %v16639_v40 }
0x49d0   :  { %15542 = vmatprep.subr.bf16.mxu1 %v16640_v26  ;;  %15564 = vmatprep.subr.bf16.mxu0 %v16641_v0 }
0x49d3   :  { %15543 = vmatpush3.bf16.msra.mxu1 %v16642_v1  ;;  %15565 = vmatpush3.bf16.msra.mxu0 %v16643_v31 }
0x49d4   :  { %15544 = vmatprep.subr.bf16.mxu1 %v16644_v42  ;;  %15566 = vmatprep.subr.bf16.mxu0 %v16645_v48 }
0x49d7   :  { %15545 = vmatpush3.bf16.msra.mxu1 %v16646_v7  ;;  %15567 = vmatpush3.bf16.msra.mxu0 %v16647_v57 }
0x49d8   :  { %15546 = vmatprep.subr.bf16.mxu1 %v16648_v36  ;;  %15568 = vmatprep.subr.bf16.mxu0 %v16649_v59 }
0x49db   :  { %15547 = vmatpush3.bf16.msra.mxu1 %v16650_v32  ;;  %15569 = vmatpush3.bf16.msra.mxu0 %v16651_v50 }
0x49dc   :  { %15548 = vmatprep.subr.bf16.mxu1 %v16652_v3  ;;  %15570 = vmatprep.subr.bf16.mxu0 %v16653_v51 }
0x49df   :  { %15549 = vmatpush3.bf16.msra.mxu1 %v16654_v37  ;;  %15571 = vmatpush3.bf16.msra.mxu0 %v16655_v34 }
0x49e0   :  { %15550 = vmatprep.subr.bf16.mxu1 %v16656_v62  ;;  %15572 = vmatprep.subr.bf16.mxu0 %v16657_v56 }
0x49e3   :  { %15551 = vmatpush3.bf16.msra.mxu1 %v16658_v60  ;;  %15573 = vmatpush3.bf16.msra.mxu0 %v16659_v55 }
0x49e4   :  { %15552 = vmatprep.subr.bf16.mxu1 %v16660_v52  ;;  %15574 = vmatprep.subr.bf16.mxu0 %v16661_v43 }
0x49e7   :  { %15553 = vmatpush3.bf16.msra.mxu1 %v16662_v54  ;;  %15575 = vmatpush3.bf16.msra.mxu0 %v16663_v14  ;;  %v14824_v14 = vld [vmem:[%s20487_s12 + $0x2] ss:$0 sm:$0xff] }
0x49e8   :  { %16199 = vmatprep.subr.bf16.mxu1 %v16907_v58 }
0x4a7a   :  { %v15510_v46 = vpop.f32.mrf.mxu1  ;;  %v15532_v10 = vpop.f32.mrf.mxu0 }
0x4a7c   :  { %v15511_v63 = vpop.f32.mrf.mxu1  ;;  %v15533_v12 = vpop.f32.mrf.mxu0 }
0x4a7d   :  { %v15512_v4 = vadd.f32 %v15511_v63, %v15510_v46  ;;  %v15534_v6 = vadd.f32 %v15533_v12, %v15532_v10 }
0x4a7e   :  { %v15513_v53 = vpop.f32.mrf.mxu1  ;;  %v15535_v16 = vpop.f32.mrf.mxu0 }
0x4a7f   :  { %v12621_v5 = vadd.f32 %v15534_v6, %v15512_v4 }
0x4a80   :  { %v15514_v17 = vpop.f32.mrf.mxu1  ;;  %v15536_v18 = vpop.f32.mrf.mxu0 }
0x4a81   :  { %v12627_v49 = vadd.f32 %v12621_v5, %v20269_v8  ;;  %v15515_v9 = vadd.f32 %v15514_v17, %v15513_v53  ;;  %v15537_v15 = vadd.f32 %v15536_v18, %v15535_v16 }
0x4a83   :  { %v12624_v47 = vadd.f32 %v15537_v15, %v15515_v9 }
0x4a85   :  { %v12628_v61 = vadd.f32 %v12624_v47, %v20271_v45 }
0x4a8a   :  { %v12781_v13 = vpop.f32.mrf.mxu1  ;;  %v12824_v41 = vpop.f32.mrf.mxu0 }
0x4a8b   :  { %v12782_v25 = vadd.f32 %v12781_v13, %v12650_v44  ;;  %v12825_v40 = vadd.f32 %v12824_v41, %v12658_v27 }
0x4a8c   :  { %v12783_v8 = vpop.f32.mrf.mxu1  ;;  %v12826_v39 = vpop.f32.mrf.mxu0 }
0x4a8d   :  { %v12784_v38 = vadd.f32 %v12783_v8, %v12654_v19  ;;  %v12827_v45 = vadd.f32 %v12826_v39, %v12662_v20  ;;  %v12833_v7 = vmax.f32 %v12782_v25, 0.0  ;;  %v12835_v57 = vmax.f32 %v12825_v40, 0.0  ;;  %v14828_v40 = vld [vmem:[%s20489_s14 + $0x2] ss:$0 sm:$0xff] }
0x4a8e   :  { %v12785_v2 = vpop.f32.mrf.mxu1  ;;  %v12828_v33 = vpop.f32.mrf.mxu0 }
0x4a8f   :  { %v12786_v11 = vadd.f32 %v12785_v2, %v12650_v44  ;;  %v12829_v28 = vadd.f32 %v12828_v33, %v12658_v27  ;;  %v12834_v42 = vmax.f32 %v12784_v38, 0.0  ;;  %v12836_v22 = vmax.f32 %v12827_v45, 0.0  ;;  %v16666_v44 = vld [vmem:[%s20562_s0 + $0x8] sm:$0xff]   ;;  %v16667_v27 = vld [vmem:[%s20562_s0] sm:$0xff]  }
0x4a90   :  { %v12787_v26 = vpop.f32.mrf.mxu1  ;;  %v12830_v0 = vpop.f32.mrf.mxu0 }
0x4a91   :  { %v12788_v1 = vadd.f32 %v12787_v26, %v12654_v19  ;;  %v12831_v21 = vadd.f32 %v12830_v0, %v12662_v20  ;;  %v12837_v31 = vmax.f32 %v12786_v11, 0.0  ;;  %v12839_v24 = vmax.f32 %v12829_v28, 0.0  ;;  %v16665_v20 = vld [vmem:[%s20562_s0 + $0x10] sm:$0xff]   ;;  %v14827_v28 = vld [vmem:[%s20488_s13 + $0x2] ss:$0 sm:$0xff] }
0x4a93   :  { %v12838_v48 = vmax.f32 %v12788_v1, 0.0  ;;  %v12840_v23 = vmax.f32 %v12831_v21, 0.0  ;;  %v12841_v32 = vpack.c.bf16 %v12837_v31, %v12833_v7  ;;  %v12843_v50 = vpack.c.bf16 %v12839_v24, %v12835_v57 }
0x4a95   :  { %v12842_v36 = vpack.c.bf16 %v12838_v48, %v12834_v42  ;;  %v12844_v59 = vpack.c.bf16 %v12840_v23, %v12836_v22 }
0x4a97   :  { %13133 = vmatprep.mubr.bf16.mxu1 %v12842_v36  ;;  %13174 = vmatprep.mubr.bf16.mxu0 %v12844_v59 }
0x4a98   :  { %13134 = vmatmul.mubr.bf16.vlgmr.msra.gmra.mxu1 %v12841_v32  ;;  %13175 = vmatmul.mubr.bf16.vlgmr.msra.gmra.mxu0 %v12843_v50 }
0x4a99   :  { %16207 = vmatprep.mubr.msk.bf16.mxu1 %vm16908_vm1, %v16907_v58 }
0x4b58   :  { %v15554_v3 = vpop.f32.mrf.mxu1  ;;  %v15576_v51 = vpop.f32.mrf.mxu0 }
0x4b5a   :  { %v15555_v37 = vpop.f32.mrf.mxu1  ;;  %v15577_v34 = vpop.f32.mrf.mxu0 }
0x4b5b   :  { %v15556_v62 = vadd.f32 %v15555_v37, %v15554_v3  ;;  %v15578_v56 = vadd.f32 %v15577_v34, %v15576_v51 }
0x4b5c   :  { %v15557_v60 = vpop.f32.mrf.mxu1  ;;  %v15579_v55 = vpop.f32.mrf.mxu0 }
0x4b5d   :  { %v13177_v52 = vadd.f32 %v15578_v56, %v15556_v62 }
0x4b5e   :  { %v15558_v43 = vpop.f32.mrf.mxu1  ;;  %v15580_v54 = vpop.f32.mrf.mxu0 }
0x4b5f   :  { %v13183_v46 = vadd.f32 %v13177_v52, %v12627_v49  ;;  %v15559_v10 = vadd.f32 %v15558_v43, %v15557_v60  ;;  %v15581_v63 = vadd.f32 %v15580_v54, %v15579_v55 }
0x4b61   :  { %v13180_v12 = vadd.f32 %v15581_v63, %v15559_v10  ;;  %v13193_v4 = vadd.f32 %v14824_v14, %v13183_v46 }
0x4b63   :  { %v13184_v6 = vadd.f32 %v13180_v12, %v12628_v61  ;;  %v13195_v53 = vadd.f32 %v13193_v4, %v19825_v29 }
0x4b65   :  { %v13201_v16 = vsel %vm207_vm14, %v13195_v53, 0.0  ;;  %v13194_v5 = vadd.f32 %v14824_v14, %v13184_v6  ;;  %v14829_v14 = vld [vmem:[%s20563_s16] ss:$0 sm:$0xff] }
0x4b66   :  { %13202 = vadd.xlane.f32.xlu1 %v13201_v16 }
0x4b67   :  { %v13196_v17 = vadd.f32 %v13194_v5, %v19827_v30  ;;  %v16664_v30 = vld [vmem:[%s20562_s0 + $0x18] sm:$0xff]  }
0x4b68   :  { %16200 = vmatpush3.bf16.msra.mxu1 %v16664_v30 }
0x4b69   :  { %v13204_v18 = vsel %vm207_vm14, %v13196_v17, 0.0  ;;  %16201 = vmatprep.subr.bf16.mxu1 %v16907_v58 }
0x4b6a   :  { %13205 = vadd.xlane.f32.xlu0 %v13204_v18 }
0x4b6c   :  { %16202 = vmatpush3.bf16.msra.mxu1 %v16665_v20 }
0x4b6d   :  { %16203 = vmatprep.subr.bf16.mxu1 %v16907_v58 }
0x4b70   :  { %16204 = vmatpush3.bf16.msra.mxu1 %v16666_v44 }
0x4b71   :  { %16205 = vmatprep.subr.bf16.mxu1 %v16907_v58 }
0x4b74   :  { %16206 = vmatpush3.bf16.msra.mxu1 %v16667_v27 }
0x4bef   :  { %v13203_v9 = vpop.xlane.xlu1 %13202 }
0x4bf0   :  { %v13207_v15 = vmul.f32 0.015625, %v13203_v9 }
0x4bf2   :  { %v13209_v47 = vsub.f32 %v13195_v53, %v13207_v15 }
0x4bf3   :  { %v13206_v49 = vpop.xlane.xlu0 %13205 }
0x4bf4   :  { %v13208_v35 = vmul.f32 0.015625, %v13206_v49  ;;  %v13211_v13 = vmul.f32 %v13209_v47, %v13209_v47 }
0x4bf6   :  { %v13210_v41 = vsub.f32 %v13196_v17, %v13208_v35  ;;  %v13213_v61 = vsel %vm207_vm14, %v13211_v13, 0.0 }
0x4bf7   :  { %13214 = vadd.xlane.f32.xlu1 %v13213_v61 }
0x4bf8   :  { %v13212_v29 = vmul.f32 %v13210_v41, %v13210_v41 }
0x4bfa   :  { %v13216_v19 = vsel %vm207_vm14, %v13212_v29, 0.0 }
0x4bfb   :  { %13217 = vadd.xlane.f32.xlu0 %v13216_v19 }
0x4c80   :  { %v13215_v8 = vpop.xlane.xlu1 %13214 }
0x4c81   :  { %v13219_v39 = vmul.f32 0.015625, %v13215_v8 }
0x4c83   :  { %v13221_v2 = vadd.f32 1e-05, %v13219_v39 }
0x4c84   :  { %v13218_v33 = vpop.xlane.xlu0 %13217 }
0x4c85   :  { %16880 = vrsqrt.f32 %v13221_v2  ;;  %v13220_v38 = vmul.f32 0.015625, %v13218_v33 }
0x4c87   :  { %v13222_v45 = vadd.f32 1e-05, %v13220_v38 }
0x4c89   :  { %16882 = vrsqrt.f32 %v13222_v45 }
0x4c92   :  { %v16881_v11 = vpop.eup %16880 }
0x4c93   :  { %v13225_v25 = vmul.f32 %v16881_v11, %v13209_v47 }
0x4c95   :  { %v13233_v58 = vmul.f32 %v14827_v28, %v13225_v25 }
0x4c96   :  { %v16883_v26 = vpop.eup %16882 }
0x4c97   :  { %v13241_v0 = vadd.f32 %v14828_v40, %v13233_v58  ;;  %v13226_v1 = vmul.f32 %v16883_v26, %v13210_v41 }
0x4c99   :  { %v13243_v21 = vsel %vm207_vm14, %v13241_v0, 0.0  ;;  %v13234_v31 = vmul.f32 %v14827_v28, %v13226_v1 }
0x4c9a   :  { %v13244_v24 = vrot.slane %v13243_v21, 4 }
0x4c9b   :  { %v13242_v42 = vadd.f32 %v14828_v40, %v13234_v31 }
0x4c9c   :  { %v13245_v22 = vadd.f32 %v13244_v24, %v13243_v21 }
0x4c9d   :  { %v13250_v48 = vsel %vm207_vm14, %v13242_v42, 0.0 }
0x4c9e   :  { %v13246_v23 = vrot.slane %v13245_v22, 2  ;;  %v13251_v7 = vrot.slane %v13250_v48, 4 }
0x4ca0   :  { %v13247_v57 = vadd.f32 %v13246_v23, %v13245_v22  ;;  %v13252_v36 = vadd.f32 %v13251_v7, %v13250_v48 }
0x4ca2   :  { %v13253_v59 = vrot.slane %v13252_v36, 2  ;;  %v13248_v32 = vrot.slane %v13247_v57, 1 }
0x4ca4   :  { %v13254_v50 = vadd.f32 %v13253_v59, %v13252_v36  ;;  %v13249_v3 = vadd.f32 %v13248_v32, %v13247_v57 }
0x4ca6   :  { %v13255_v51 = vrot.slane %v13254_v50, 1  ;;  %v13258_v37 = vmul.f32 0.125, %v13249_v3 }
0x4ca8   :  { %v13256_v34 = vadd.f32 %v13255_v51, %v13254_v50  ;;  %v13260_v56 = vpack.c.bf16 %v13258_v37, %v13258_v37 }
0x4caa   :  { %v13259_v62 = vmul.f32 0.125, %v13256_v34  ;;  %v13279_v55 = vunpack.c.l.b16 %v13260_v56 }
0x4cac   :  { %v13261_v60 = vpack.c.bf16 %v13259_v62, %v13259_v62 }
0x4cae   :  { %v13280_v52 = vunpack.c.l.b16 %v13261_v60 }
0x4cb0   :  { %v13282_v43 = vsel %vm13281_vm11, %v13280_v52, %v13279_v55 }
0x4cb1   :  { %v13283_v54 = vpack.c.b16 %v13282_v43, %v13282_v43 }
0x4cb3   :  { %16208 = vmatmul.mubr.msk.bf16.vlgmr.msra.gmra.mxu1 %vm207_vm14, %v13283_v54 }
0x4d73   :  { %v13345_v46 = vpop.f32.mrf.mxu1 }
0x4d74   :  { %v13346_v10 = vadd.f32 %v14829_v14, %v13345_v46 }
0x4d75   :  { %v16209_v63 = vpop.f32.mrf.mxu1 }
0x4d76   :  { %13352 = vst.msk [vmem:[#allocation3] sm:$0x3] %vm13351_vm12, %v13346_v10 }
0x4d77   :  { %v13348_v12 = vpop.f32.mrf.mxu1 }
0x4d78   :  { %16895 = shalt.err (!%p16892_p4)
}
0x4d79   :  { %s20564_s19 = sld [smem:[#allocation14_spill]]  ;;  %v16210_v4 = vpop.f32.mrf.mxu1 }
0x4d7f   :  { %13362 = dma.vmem_to_hbm [thread:$0]  %s13360_s17, 32, %s20564_s19, [#allocation4]  }
0x4d80   :  { %16904 = dma.done.wait [#allocation4], 32  }
0x4d81   :  { %16905 = vsyncadd [#allocation4], 4294967264 }
0x4d82   :  { %13366 = vsyncpa [#allocation4], 1 }

</bundles_post_ra>
